<compile_context>
chip_gen: v6e
topology: v6e:2x2x1
jax: 0.10.0
libtpu: 0.0.40
codegen_flags: <defaults>
</compile_context>

<pallas_src>
import math

import jax
import jax.numpy as jnp
from jax.experimental import pallas as pl
from jax.experimental.pallas import tpu as pltpu


# ---- Stand-in for the PyTorch `Config` ----
class Config:
    SDIF_FEATURE_DIM = 32           # d_model
    SDIF_NUM_HEAD = 4               # nhead
    SDIF_NUMLAYER_SELF_ATTENTION = 2


D = Config.SDIF_FEATURE_DIM
H = Config.SDIF_NUM_HEAD
DH = D // H
NLAYERS = Config.SDIF_NUMLAYER_SELF_ATTENTION
DFF = 2048                          # nn.TransformerEncoderLayer default dim_feedforward
LN_EPS = 1e-5
NUM_REPS = 6                        # all_reps carries 6 reps; + shallow_rep -> 7 tokens
S = NUM_REPS + 1                    # matches `range(7)` in the reference forward
S_PAD = 8                           # pad seq to a sublane multiple; padded keys masked
TB_MAX = 32                         # batch tile -> M = TB*S_PAD = 256 rows for the MXU


def _layer_norm(t, gamma, beta):
    mu = jnp.mean(t, axis=-1, keepdims=True)
    d = t - mu
    var = jnp.mean(d * d, axis=-1, keepdims=True)
    return d * jax.lax.rsqrt(var + LN_EPS) * gamma + beta


# ----------------------------------------------------------------------------
# Fused kernel: mlp_project + masked mean pooling + NLAYERS encoder layers.
# One grid step handles TB batch elements; activations live as (TB*S_PAD, D)
# rows so every big matmul has a tall M dimension.
# ----------------------------------------------------------------------------
def sdif_kernel(shallow_ref, mask_ref, tokens_ref,
                mlp_w_ref, mlp_b_ref,
                wqkv_ref, bqkv_ref, wo_ref, bo_ref,
                ln1g_ref, ln1b_ref,
                w1_ref, b1_ref, w2_ref, b2_ref,
                ln2g_ref, ln2b_ref,
                out_ref):
    tb, L, _ = shallow_ref.shape
    R = tb * S_PAD

    # ---- mlp_project: Linear -> Dropout(id) -> GELU, then masked mean pool ----
    xs = shallow_ref[...].reshape(tb * L, D)                          # (tb*L, D)
    h = jnp.dot(xs.astype(jnp.bfloat16), mlp_w_ref[...],
                preferred_element_type=jnp.float32) + mlp_b_ref[...]
    h = 0.5 * h * (1.0 + jax.lax.erf(h * (1.0 / math.sqrt(2.0))))     # exact GELU
    h = h.reshape(tb, L, D)
    m = mask_ref[...]                                                 # (tb, L, 1)
    total = jnp.sum(m * h, axis=1)                                    # (tb, D)
    count = jnp.maximum(jnp.sum(m, axis=1), 1.0)                      # (tb, 1), no 0-div
    shallow_rep = total * pl.reciprocal(count, approx=True)           # (tb, D)

    # ---- build the 7-token sequence (padded to 8): token 6 <- shallow_rep ----
    # tokens_ref rows 6 & 7 are zero-padded by the wrapper; place shallow_rep
    # at token 6 via a small placement matmul (avoids sublane broadcasts).
    r_idx = jax.lax.broadcasted_iota(jnp.int32, (R, tb), 0)
    b_idx = jax.lax.broadcasted_iota(jnp.int32, (R, tb), 1)
    place = (r_idx == b_idx * S_PAD + NUM_REPS).astype(jnp.float32)   # (R, tb)
    x = tokens_ref[...].reshape(R, D) + jnp.dot(
        place, shallow_rep, preferred_element_type=jnp.float32)       # (R, D) f32

    # additive key mask: padded key position (index 7) gets -1e30
    key_idx = jax.lax.broadcasted_iota(jnp.int32, (S_PAD, S_PAD), 1)
    key_bias = jnp.where(key_idx < S, 0.0, -1e30)                     # (S_PAD, S_PAD) f32

    scale = 1.0 / math.sqrt(DH)

    for l in range(NLAYERS):
        # --- multi-head self-attention (nn.MultiheadAttention semantics) ---
        qkv = jnp.dot(x.astype(jnp.bfloat16), wqkv_ref[l],
                      preferred_element_type=jnp.float32) + bqkv_ref[l]   # (R, 3D)
        q3 = (qkv[:, 0:D] * scale).reshape(tb, S_PAD, D)
        k3 = qkv[:, D:2 * D].reshape(tb, S_PAD, D)
        v3 = qkv[:, 2 * D:3 * D].reshape(tb, S_PAD, D)
        wo_l = wo_ref[l]                                                  # (D, D) f32

        attn = jnp.zeros((R, D), jnp.float32)
        for hh in range(H):
            sl = slice(hh * DH, (hh + 1) * DH)
            sc = jnp.einsum('bqd,bkd->bqk', q3[:, :, sl], k3[:, :, sl],
                            preferred_element_type=jnp.float32)           # (tb, 8, 8)
            sc = sc + key_bias[None, :, :]
            sc = sc - jnp.max(sc, axis=-1, keepdims=True)
            p = jnp.exp(sc)
            p = p * pl.reciprocal(jnp.sum(p, axis=-1, keepdims=True), approx=True)
            hv = jnp.einsum('bqk,bkd->bqd', p, v3[:, :, sl],
                            preferred_element_type=jnp.float32)           # (tb, 8, DH)
            # fold head output directly into the output projection: no concat
            attn = attn + jnp.dot(hv.reshape(R, DH), wo_l[sl, :],
                                  preferred_element_type=jnp.float32)
        attn = attn + bo_ref[l]

        x = _layer_norm(x + attn, ln1g_ref[l], ln1b_ref[l])

        # --- feed-forward: linear1 -> ReLU -> linear2 (dropouts are identity) ---
        ff = jnp.dot(x.astype(jnp.bfloat16), w1_ref[l],
                     preferred_element_type=jnp.float32) + b1_ref[l]       # (R, DFF)
        ff = jnp.maximum(ff, 0.0)
        ff = jnp.dot(ff.astype(jnp.bfloat16), w2_ref[l],
                     preferred_element_type=jnp.float32) + b2_ref[l]       # (R, D)
        x = _layer_norm(x + ff, ln2g_ref[l], ln2b_ref[l])

    out_ref[...] = x.reshape(tb, S_PAD, D).astype(out_ref.dtype)


# ----------------------------------------------------------------------------
# Wrapper
# ----------------------------------------------------------------------------
def sdif_forward(params, all_reps, shallow_seq, text_mask, video_mask, audio_mask):
    B, L, _ = shallow_seq.shape
    TB = TB_MAX if B >= TB_MAX else ((B + 7) // 8) * 8   # batch tile, multiple of 8
    nb = (B + TB - 1) // TB
    B_pad = nb * TB
    pad_b = B_pad - B

    tri_cat_mask = jnp.concatenate([text_mask, video_mask, audio_mask], axis=-1)  # (B, L)
    mask3 = tri_cat_mask.astype(jnp.float32)[:, :, None]                           # (B, L, 1)
    tokens = jnp.transpose(all_reps, (1, 0, 2)).astype(jnp.float32)                # (B, 6, D)

    shallow_p = jnp.pad(shallow_seq.astype(jnp.float32), ((0, pad_b), (0, 0), (0, 0)))
    mask_p = jnp.pad(mask3, ((0, pad_b), (0, 0), (0, 0)))
    tokens_p = jnp.pad(tokens, ((0, pad_b), (0, S_PAD - NUM_REPS), (0, 0)))        # (B_pad, 8, D)

    def _rep(shape):
        zeros = (0,) * len(shape)
        return pl.BlockSpec(shape, lambda b, _z=zeros: _z)   # weights: constant block index

    out = pl.pallas_call(
        sdif_kernel,
        out_shape=jax.ShapeDtypeStruct((B_pad, S_PAD, D), jnp.float32),
        grid=(nb,),
        in_specs=[
            pl.BlockSpec((TB, L, D), lambda b: (b, 0, 0)),
            pl.BlockSpec((TB, L, 1), lambda b: (b, 0, 0)),
            pl.BlockSpec((TB, S_PAD, D), lambda b: (b, 0, 0)),
            _rep((D, D)), _rep((1, D)),
            _rep((NLAYERS, D, 3 * D)), _rep((NLAYERS, 1, 3 * D)),
            _rep((NLAYERS, D, D)), _rep((NLAYERS, 1, D)),
            _rep((NLAYERS, 1, D)), _rep((NLAYERS, 1, D)),
            _rep((NLAYERS, D, DFF)), _rep((NLAYERS, 1, DFF)),
            _rep((NLAYERS, DFF, D)), _rep((NLAYERS, 1, D)),
            _rep((NLAYERS, 1, D)), _rep((NLAYERS, 1, D)),
        ],
        out_specs=pl.BlockSpec((TB, S_PAD, D), lambda b: (b, 0, 0)),
        compiler_params=pltpu.CompilerParams(dimension_semantics=("parallel",)),
    )(shallow_p, mask_p, tokens_p,
      params["mlp_w_t"], params["mlp_b"],
      params["wqkv_t"], params["bqkv"], params["wo_t"], params["bo"],
      params["ln1_g"], params["ln1_b"],
      params["w1_t"], params["b1"], params["w2_t"], params["b2"],
      params["ln2_g"], params["ln2_b"])

    # == torch.cat([all_hiddens[i] for i in range(7)], dim=1)
    deep_rep = out[:B, :S, :].reshape(B, S * D)
    return deep_rep


# ----------------------------------------------------------------------------
# Deterministic parameter init (weights pre-transposed to (in, out), stacked
# over layers; big matmul weights stored in bf16).
# ----------------------------------------------------------------------------
def init_params(key):
    ks = jax.random.split(key, 2 + NLAYERS)
    params = {
        "mlp_w_t": (jax.random.normal(ks[0], (D, D), jnp.float32) * 0.05).astype(jnp.bfloat16),
        "mlp_b": jax.random.normal(ks[1], (1, D), jnp.float32) * 0.05,
    }
    wqkv, wo, w1, w2 = [], [], [], []
    for i in range(NLAYERS):
        lk = jax.random.split(ks[2 + i], 4)
        wqkv.append(jax.random.normal(lk[0], (D, 3 * D), jnp.float32) * 0.05)
        wo.append(jax.random.normal(lk[1], (D, D), jnp.float32) * 0.05)
        w1.append(jax.random.normal(lk[2], (D, DFF), jnp.float32) * 0.05)
        w2.append(jax.random.normal(lk[3], (DFF, D), jnp.float32) * 0.02)
    params.update({
        "wqkv_t": jnp.stack(wqkv).astype(jnp.bfloat16),     # (NL, D, 3D)
        "bqkv": jnp.zeros((NLAYERS, 1, 3 * D), jnp.float32),
        "wo_t": jnp.stack(wo),                              # (NL, D, D) f32 (tiny, sliced per head)
        "bo": jnp.zeros((NLAYERS, 1, D), jnp.float32),
        "ln1_g": jnp.ones((NLAYERS, 1, D), jnp.float32),
        "ln1_b": jnp.zeros((NLAYERS, 1, D), jnp.float32),
        "w1_t": jnp.stack(w1).astype(jnp.bfloat16),         # (NL, D, DFF)
        "b1": jnp.zeros((NLAYERS, 1, DFF), jnp.float32),
        "w2_t": jnp.stack(w2).astype(jnp.bfloat16),         # (NL, DFF, D)
        "b2": jnp.zeros((NLAYERS, 1, D), jnp.float32),
        "ln2_g": jnp.ones((NLAYERS, 1, D), jnp.float32),
        "ln2_b": jnp.zeros((NLAYERS, 1, D), jnp.float32),
    })
    return params


if __name__ == "__main__":
    key = jax.random.PRNGKey(0)
    pkey, k1, k2, k3, k4, k5 = jax.random.split(key, 6)
    params = init_params(pkey)

    B = 2
    L_TEXT, L_VIDEO, L_AUDIO = 6, 5, 5
    L = L_TEXT + L_VIDEO + L_AUDIO

    all_reps = jax.random.normal(k1, (NUM_REPS, B, D), jnp.float32)     # (6, B, D)
    shallow_seq = jax.random.normal(k2, (B, L, D), jnp.float32)         # (B, 16, D)
    text_mask = (jax.random.uniform(k3, (B, L_TEXT)) > 0.3).astype(jnp.float32)
    video_mask = (jax.random.uniform(k4, (B, L_VIDEO)) > 0.3).astype(jnp.float32)
    audio_mask = (jax.random.uniform(k5, (B, L_AUDIO)) > 0.3).astype(jnp.float32)
    text_mask = text_mask.at[:, 0].set(1.0)   # ensure tri_mask_len > 0

    deep_rep = sdif_forward(params, all_reps, shallow_seq,
                            text_mask, video_mask, audio_mask)
    jax.block_until_ready(deep_rep)
    assert deep_rep.shape == (B, S * D), deep_rep.shape
    print("KERNEL_OK")
</pallas_src>

<mosaic_0001>
module attributes {stable_mosaic.version = 11 : i64} {
  func.func @sdif_kernel(%arg0: i32, %arg1: memref<8x16x32xf32, #tpu.memory_space<vmem>>, %arg2: memref<8x16x1xf32, #tpu.memory_space<vmem>>, %arg3: memref<8x8x32xf32, #tpu.memory_space<vmem>>, %arg4: memref<32x32xbf16, #tpu.memory_space<vmem>>, %arg5: memref<1x32xf32, #tpu.memory_space<vmem>>, %arg6: memref<2x32x96xbf16, #tpu.memory_space<vmem>>, %arg7: memref<2x1x96xf32, #tpu.memory_space<vmem>>, %arg8: memref<2x32x32xf32, #tpu.memory_space<vmem>>, %arg9: memref<2x1x32xf32, #tpu.memory_space<vmem>>, %arg10: memref<2x1x32xf32, #tpu.memory_space<vmem>>, %arg11: memref<2x1x32xf32, #tpu.memory_space<vmem>>, %arg12: memref<2x32x2048xbf16, #tpu.memory_space<vmem>>, %arg13: memref<2x1x2048xf32, #tpu.memory_space<vmem>>, %arg14: memref<2x2048x32xbf16, #tpu.memory_space<vmem>>, %arg15: memref<2x1x32xf32, #tpu.memory_space<vmem>>, %arg16: memref<2x1x32xf32, #tpu.memory_space<vmem>>, %arg17: memref<2x1x32xf32, #tpu.memory_space<vmem>>, %arg18: memref<8x8x32xf32, #tpu.memory_space<vmem>>) attributes {dimension_semantics = [#tpu.dimension_semantics<parallel>], iteration_bounds = array<i64: 1>, scalar_prefetch = 0 : i64, scratch_operands = 0 : i64, tpu.core_type = #tpu.core_type<tc>, window_params = [{transform_indices = @transform_0, window_bounds = array<i64: 8, 16, 32>}, {transform_indices = @transform_1, window_bounds = array<i64: 8, 16, 1>}, {transform_indices = @transform_2, window_bounds = array<i64: 8, 8, 32>}, {pipeline_mode = #tpu.pipeline_mode<synchronous>, transform_indices = @transform_3, window_bounds = array<i64: 32, 32>}, {pipeline_mode = #tpu.pipeline_mode<synchronous>, transform_indices = @transform_4, window_bounds = array<i64: 1, 32>}, {pipeline_mode = #tpu.pipeline_mode<synchronous>, transform_indices = @transform_5, window_bounds = array<i64: 2, 32, 96>}, {pipeline_mode = #tpu.pipeline_mode<synchronous>, transform_indices = @transform_6, window_bounds = array<i64: 2, 1, 96>}, {pipeline_mode = #tpu.pipeline_mode<synchronous>, transform_indices = @transform_7, window_bounds = array<i64: 2, 32, 32>}, {pipeline_mode = #tpu.pipeline_mode<synchronous>, transform_indices = @transform_8, window_bounds = array<i64: 2, 1, 32>}, {pipeline_mode = #tpu.pipeline_mode<synchronous>, transform_indices = @transform_9, window_bounds = array<i64: 2, 1, 32>}, {pipeline_mode = #tpu.pipeline_mode<synchronous>, transform_indices = @transform_10, window_bounds = array<i64: 2, 1, 32>}, {pipeline_mode = #tpu.pipeline_mode<synchronous>, transform_indices = @transform_11, window_bounds = array<i64: 2, 32, 2048>}, {pipeline_mode = #tpu.pipeline_mode<synchronous>, transform_indices = @transform_12, window_bounds = array<i64: 2, 1, 2048>}, {pipeline_mode = #tpu.pipeline_mode<synchronous>, transform_indices = @transform_13, window_bounds = array<i64: 2, 2048, 32>}, {pipeline_mode = #tpu.pipeline_mode<synchronous>, transform_indices = @transform_14, window_bounds = array<i64: 2, 1, 32>}, {pipeline_mode = #tpu.pipeline_mode<synchronous>, transform_indices = @transform_15, window_bounds = array<i64: 2, 1, 32>}, {pipeline_mode = #tpu.pipeline_mode<synchronous>, transform_indices = @transform_16, window_bounds = array<i64: 2, 1, 32>}, {transform_indices = @transform_17, window_bounds = array<i64: 8, 8, 32>}]} {
    %c0 = arith.constant 0 : index
    %c0_0 = arith.constant 0 : index
    %c0_1 = arith.constant 0 : index
    %0 = vector.load %arg1[%c0, %c0_0, %c0_1] : memref<8x16x32xf32, #tpu.memory_space<vmem>>, vector<8x16x32xf32>
    %1 = vector.shape_cast %0 : vector<8x16x32xf32> to vector<128x32xf32>
    %2 = arith.truncf %1 : vector<128x32xf32> to vector<128x32xbf16>
    %c0_2 = arith.constant 0 : index
    %c0_3 = arith.constant 0 : index
    %3 = vector.load %arg4[%c0_2, %c0_3] : memref<32x32xbf16, #tpu.memory_space<vmem>>, vector<32x32xbf16>
    %cst = arith.constant dense<0.000000e+00> : vector<128x32xf32>
    %4 = tpu.matmul %2, %3, %cst {dimension_numbers = #tpu.dot_dimension_numbers<[1], [0], [0], [1], [0, 0, 1, 1], [], []>} : vector<128x32xbf16>, vector<32x32xbf16>, vector<128x32xf32> -> vector<128x32xf32>
    %c0_4 = arith.constant 0 : index
    %c0_5 = arith.constant 0 : index
    %5 = vector.load %arg5[%c0_4, %c0_5] : memref<1x32xf32, #tpu.memory_space<vmem>>, vector<1x32xf32>
    %6 = vector.broadcast %5 : vector<1x32xf32> to vector<128x32xf32>
    %7 = arith.addf %4, %6 : vector<128x32xf32>
    %cst_6 = arith.constant 5.000000e-01 : f32
    %8 = vector.broadcast %cst_6 : f32 to vector<128x32xf32>
    %9 = arith.mulf %8, %7 : vector<128x32xf32>
    %cst_7 = arith.constant 0.707106769 : f32
    %10 = vector.broadcast %cst_7 : f32 to vector<128x32xf32>
    %11 = arith.mulf %7, %10 : vector<128x32xf32>
    %12 = math.erf %11 : vector<128x32xf32>
    %cst_8 = arith.constant 1.000000e+00 : f32
    %13 = vector.broadcast %cst_8 : f32 to vector<128x32xf32>
    %14 = arith.addf %13, %12 : vector<128x32xf32>
    %15 = arith.mulf %9, %14 : vector<128x32xf32>
    %16 = vector.shape_cast %15 : vector<128x32xf32> to vector<8x16x32xf32>
    %c0_9 = arith.constant 0 : index
    %c0_10 = arith.constant 0 : index
    %c0_11 = arith.constant 0 : index
    %17 = vector.load %arg2[%c0_9, %c0_10, %c0_11] : memref<8x16x1xf32, #tpu.memory_space<vmem>>, vector<8x16x1xf32>
    %18 = vector.broadcast %17 : vector<8x16x1xf32> to vector<8x16x32xf32>
    %19 = arith.mulf %18, %16 : vector<8x16x32xf32>
    %cst_12 = arith.constant dense<0.000000e+00> : vector<8x32xf32>
    %20 = vector.multi_reduction <add>, %19, %cst_12 [1] : vector<8x16x32xf32> to vector<8x32xf32>
    %cst_13 = arith.constant dense<0.000000e+00> : vector<8x1xf32>
    %21 = vector.multi_reduction <add>, %17, %cst_13 [1] : vector<8x16x1xf32> to vector<8x1xf32>
    %cst_14 = arith.constant 1.000000e+00 : f32
    %22 = vector.broadcast %cst_14 : f32 to vector<8x1xf32>
    %23 = arith.maximumf %21, %22 : vector<8x1xf32>
    %24 = tpu.reciprocal %23 {approx = true} : vector<8x1xf32> -> vector<8x1xf32>
    %25 = vector.broadcast %24 : vector<8x1xf32> to vector<8x32xf32>
    %26 = arith.mulf %20, %25 : vector<8x32xf32>
    %27 = tpu.iota {dimensions = array<i32: 0>} : vector<64x8xi32>
    %28 = tpu.iota {dimensions = array<i32: 1>} : vector<64x8xi32>
    %c8_i32 = arith.constant 8 : i32
    %29 = vector.broadcast %c8_i32 : i32 to vector<64x8xi32>
    %30 = arith.muli %28, %29 : vector<64x8xi32>
    %c6_i32 = arith.constant 6 : i32
    %31 = vector.broadcast %c6_i32 : i32 to vector<64x8xi32>
    %32 = arith.addi %30, %31 : vector<64x8xi32>
    %33 = arith.cmpi eq, %27, %32 : vector<64x8xi32>
    %34 = arith.extui %33 : vector<64x8xi1> to vector<64x8xi32>
    %35 = arith.sitofp %34 : vector<64x8xi32> to vector<64x8xf32>
    %c0_15 = arith.constant 0 : index
    %c0_16 = arith.constant 0 : index
    %c0_17 = arith.constant 0 : index
    %36 = vector.load %arg3[%c0_15, %c0_16, %c0_17] : memref<8x8x32xf32, #tpu.memory_space<vmem>>, vector<8x8x32xf32>
    %37 = vector.shape_cast %36 : vector<8x8x32xf32> to vector<64x32xf32>
    %cst_18 = arith.constant dense<0.000000e+00> : vector<64x32xf32>
    %38 = tpu.matmul %35, %26, %cst_18 {dimension_numbers = #tpu.dot_dimension_numbers<[1], [0], [0], [1], [0, 0, 1, 1], [], []>} : vector<64x8xf32>, vector<8x32xf32>, vector<64x32xf32> -> vector<64x32xf32>
    %39 = arith.addf %37, %38 : vector<64x32xf32>
    %40 = tpu.iota {dimensions = array<i32: 1>} : vector<8x8xi32>
    %c7_i32 = arith.constant 7 : i32
    %41 = vector.broadcast %c7_i32 : i32 to vector<8x8xi32>
    %42 = arith.cmpi slt, %40, %41 : vector<8x8xi32>
    %cst_19 = arith.constant 0.000000e+00 : f32
    %cst_20 = arith.constant -1.000000e+30 : f32
    %43 = vector.broadcast %cst_19 : f32 to vector<8x8xf32>
    %44 = vector.broadcast %cst_20 : f32 to vector<8x8xf32>
    %45 = arith.select %42, %43, %44 : vector<8x8xi1>, vector<8x8xf32>
    %46 = arith.truncf %39 : vector<64x32xf32> to vector<64x32xbf16>
    %c0_21 = arith.constant 0 : index
    %c0_22 = arith.constant 0 : index
    %c0_23 = arith.constant 0 : index
    %47 = vector.load %arg6[%c0_21, %c0_22, %c0_23] : memref<2x32x96xbf16, #tpu.memory_space<vmem>>, vector<1x32x96xbf16>
    %48 = vector.shape_cast %47 : vector<1x32x96xbf16> to vector<32x96xbf16>
    %cst_24 = arith.constant dense<0.000000e+00> : vector<64x96xf32>
    %49 = tpu.matmul %46, %48, %cst_24 {dimension_numbers = #tpu.dot_dimension_numbers<[1], [0], [0], [1], [0, 0, 1, 1], [], []>} : vector<64x32xbf16>, vector<32x96xbf16>, vector<64x96xf32> -> vector<64x96xf32>
    %c0_25 = arith.constant 0 : index
    %c0_26 = arith.constant 0 : index
    %c0_27 = arith.constant 0 : index
    %50 = vector.load %arg7[%c0_25, %c0_26, %c0_27] : memref<2x1x96xf32, #tpu.memory_space<vmem>>, vector<1x1x96xf32>
    %51 = vector.shape_cast %50 : vector<1x1x96xf32> to vector<1x96xf32>
    %52 = vector.broadcast %51 : vector<1x96xf32> to vector<64x96xf32>
    %53 = arith.addf %49, %52 : vector<64x96xf32>
    %54 = vector.extract_strided_slice %53 {offsets = [0, 0], sizes = [64, 32], strides = [1, 1]} : vector<64x96xf32> to vector<64x32xf32>
    %cst_28 = arith.constant 0.353553385 : f32
    %55 = vector.broadcast %cst_28 : f32 to vector<64x32xf32>
    %56 = arith.mulf %54, %55 : vector<64x32xf32>
    %57 = vector.shape_cast %56 : vector<64x32xf32> to vector<8x8x32xf32>
    %58 = vector.extract_strided_slice %53 {offsets = [0, 32], sizes = [64, 32], strides = [1, 1]} : vector<64x96xf32> to vector<64x32xf32>
    %59 = vector.shape_cast %58 : vector<64x32xf32> to vector<8x8x32xf32>
    %60 = vector.extract_strided_slice %53 {offsets = [0, 64], sizes = [64, 32], strides = [1, 1]} : vector<64x96xf32> to vector<64x32xf32>
    %61 = vector.shape_cast %60 : vector<64x32xf32> to vector<8x8x32xf32>
    %c0_29 = arith.constant 0 : index
    %c0_30 = arith.constant 0 : index
    %c0_31 = arith.constant 0 : index
    %62 = vector.load %arg8[%c0_29, %c0_30, %c0_31] : memref<2x32x32xf32, #tpu.memory_space<vmem>>, vector<1x32x32xf32>
    %63 = vector.shape_cast %62 : vector<1x32x32xf32> to vector<32x32xf32>
    %cst_32 = arith.constant 0.000000e+00 : f32
    %64 = vector.broadcast %cst_32 : f32 to vector<64x32xf32>
    %65 = vector.extract_strided_slice %57 {offsets = [0, 0, 0], sizes = [8, 8, 8], strides = [1, 1, 1]} : vector<8x8x32xf32> to vector<8x8x8xf32>
    %66 = vector.extract_strided_slice %59 {offsets = [0, 0, 0], sizes = [8, 8, 8], strides = [1, 1, 1]} : vector<8x8x32xf32> to vector<8x8x8xf32>
    "tpu.trace_start"() <{level = 10 : i32, message = "bqd,bkd->bqk"}> : () -> ()
    %cst_33 = arith.constant dense<0.000000e+00> : vector<8x8x8xf32>
    %67 = tpu.matmul %65, %66, %cst_33 {dimension_numbers = #tpu.dot_dimension_numbers<[2], [2], [1], [1], [0, 0, 0, 1, 1, 1], [0], [0]>} : vector<8x8x8xf32>, vector<8x8x8xf32>, vector<8x8x8xf32> -> vector<8x8x8xf32>
    "tpu.trace_stop"() : () -> ()
    %68 = vector.shape_cast %45 : vector<8x8xf32> to vector<1x8x8xf32>
    %69 = vector.broadcast %68 : vector<1x8x8xf32> to vector<8x8x8xf32>
    %70 = arith.addf %67, %69 : vector<8x8x8xf32>
    %cst_34 = arith.constant dense<0xFF800000> : vector<8x8xf32>
    %71 = vector.multi_reduction <maximumf>, %70, %cst_34 [2] : vector<8x8x8xf32> to vector<8x8xf32>
    %72 = vector.shape_cast %71 : vector<8x8xf32> to vector<8x8x1xf32>
    %73 = vector.broadcast %72 : vector<8x8x1xf32> to vector<8x8x8xf32>
    %74 = arith.subf %70, %73 : vector<8x8x8xf32>
    %75 = math.exp %74 : vector<8x8x8xf32>
    %cst_35 = arith.constant dense<0.000000e+00> : vector<8x8xf32>
    %76 = vector.multi_reduction <add>, %75, %cst_35 [2] : vector<8x8x8xf32> to vector<8x8xf32>
    %77 = vector.shape_cast %76 : vector<8x8xf32> to vector<8x8x1xf32>
    %78 = tpu.reciprocal %77 {approx = true} : vector<8x8x1xf32> -> vector<8x8x1xf32>
    %79 = vector.broadcast %78 : vector<8x8x1xf32> to vector<8x8x8xf32>
    %80 = arith.mulf %75, %79 : vector<8x8x8xf32>
    %81 = vector.extract_strided_slice %61 {offsets = [0, 0, 0], sizes = [8, 8, 8], strides = [1, 1, 1]} : vector<8x8x32xf32> to vector<8x8x8xf32>
    "tpu.trace_start"() <{level = 10 : i32, message = "bqk,bkd->bqd"}> : () -> ()
    %cst_36 = arith.constant dense<0.000000e+00> : vector<8x8x8xf32>
    %82 = tpu.matmul %80, %81, %cst_36 {dimension_numbers = #tpu.dot_dimension_numbers<[2], [1], [1], [2], [0, 0, 0, 1, 1, 2], [0], [0]>} : vector<8x8x8xf32>, vector<8x8x8xf32>, vector<8x8x8xf32> -> vector<8x8x8xf32>
    "tpu.trace_stop"() : () -> ()
    %83 = vector.shape_cast %82 : vector<8x8x8xf32> to vector<64x8xf32>
    %84 = vector.extract_strided_slice %63 {offsets = [0, 0], sizes = [8, 32], strides = [1, 1]} : vector<32x32xf32> to vector<8x32xf32>
    %cst_37 = arith.constant dense<0.000000e+00> : vector<64x32xf32>
    %85 = tpu.matmul %83, %84, %cst_37 {dimension_numbers = #tpu.dot_dimension_numbers<[1], [0], [0], [1], [0, 0, 1, 1], [], []>} : vector<64x8xf32>, vector<8x32xf32>, vector<64x32xf32> -> vector<64x32xf32>
    %86 = arith.addf %64, %85 : vector<64x32xf32>
    %87 = vector.extract_strided_slice %57 {offsets = [0, 0, 8], sizes = [8, 8, 8], strides = [1, 1, 1]} : vector<8x8x32xf32> to vector<8x8x8xf32>
    %88 = vector.extract_strided_slice %59 {offsets = [0, 0, 8], sizes = [8, 8, 8], strides = [1, 1, 1]} : vector<8x8x32xf32> to vector<8x8x8xf32>
    "tpu.trace_start"() <{level = 10 : i32, message = "bqd,bkd->bqk"}> : () -> ()
    %cst_38 = arith.constant dense<0.000000e+00> : vector<8x8x8xf32>
    %89 = tpu.matmul %87, %88, %cst_38 {dimension_numbers = #tpu.dot_dimension_numbers<[2], [2], [1], [1], [0, 0, 0, 1, 1, 1], [0], [0]>} : vector<8x8x8xf32>, vector<8x8x8xf32>, vector<8x8x8xf32> -> vector<8x8x8xf32>
    "tpu.trace_stop"() : () -> ()
    %90 = vector.shape_cast %45 : vector<8x8xf32> to vector<1x8x8xf32>
    %91 = vector.broadcast %90 : vector<1x8x8xf32> to vector<8x8x8xf32>
    %92 = arith.addf %89, %91 : vector<8x8x8xf32>
    %cst_39 = arith.constant dense<0xFF800000> : vector<8x8xf32>
    %93 = vector.multi_reduction <maximumf>, %92, %cst_39 [2] : vector<8x8x8xf32> to vector<8x8xf32>
    %94 = vector.shape_cast %93 : vector<8x8xf32> to vector<8x8x1xf32>
    %95 = vector.broadcast %94 : vector<8x8x1xf32> to vector<8x8x8xf32>
    %96 = arith.subf %92, %95 : vector<8x8x8xf32>
    %97 = math.exp %96 : vector<8x8x8xf32>
    %cst_40 = arith.constant dense<0.000000e+00> : vector<8x8xf32>
    %98 = vector.multi_reduction <add>, %97, %cst_40 [2] : vector<8x8x8xf32> to vector<8x8xf32>
    %99 = vector.shape_cast %98 : vector<8x8xf32> to vector<8x8x1xf32>
    %100 = tpu.reciprocal %99 {approx = true} : vector<8x8x1xf32> -> vector<8x8x1xf32>
    %101 = vector.broadcast %100 : vector<8x8x1xf32> to vector<8x8x8xf32>
    %102 = arith.mulf %97, %101 : vector<8x8x8xf32>
    %103 = vector.extract_strided_slice %61 {offsets = [0, 0, 8], sizes = [8, 8, 8], strides = [1, 1, 1]} : vector<8x8x32xf32> to vector<8x8x8xf32>
    "tpu.trace_start"() <{level = 10 : i32, message = "bqk,bkd->bqd"}> : () -> ()
    %cst_41 = arith.constant dense<0.000000e+00> : vector<8x8x8xf32>
    %104 = tpu.matmul %102, %103, %cst_41 {dimension_numbers = #tpu.dot_dimension_numbers<[2], [1], [1], [2], [0, 0, 0, 1, 1, 2], [0], [0]>} : vector<8x8x8xf32>, vector<8x8x8xf32>, vector<8x8x8xf32> -> vector<8x8x8xf32>
    "tpu.trace_stop"() : () -> ()
    %105 = vector.shape_cast %104 : vector<8x8x8xf32> to vector<64x8xf32>
    %106 = vector.extract_strided_slice %63 {offsets = [8, 0], sizes = [8, 32], strides = [1, 1]} : vector<32x32xf32> to vector<8x32xf32>
    %cst_42 = arith.constant dense<0.000000e+00> : vector<64x32xf32>
    %107 = tpu.matmul %105, %106, %cst_42 {dimension_numbers = #tpu.dot_dimension_numbers<[1], [0], [0], [1], [0, 0, 1, 1], [], []>} : vector<64x8xf32>, vector<8x32xf32>, vector<64x32xf32> -> vector<64x32xf32>
    %108 = arith.addf %86, %107 : vector<64x32xf32>
    %109 = vector.extract_strided_slice %57 {offsets = [0, 0, 16], sizes = [8, 8, 8], strides = [1, 1, 1]} : vector<8x8x32xf32> to vector<8x8x8xf32>
    %110 = vector.extract_strided_slice %59 {offsets = [0, 0, 16], sizes = [8, 8, 8], strides = [1, 1, 1]} : vector<8x8x32xf32> to vector<8x8x8xf32>
    "tpu.trace_start"() <{level = 10 : i32, message = "bqd,bkd->bqk"}> : () -> ()
    %cst_43 = arith.constant dense<0.000000e+00> : vector<8x8x8xf32>
    %111 = tpu.matmul %109, %110, %cst_43 {dimension_numbers = #tpu.dot_dimension_numbers<[2], [2], [1], [1], [0, 0, 0, 1, 1, 1], [0], [0]>} : vector<8x8x8xf32>, vector<8x8x8xf32>, vector<8x8x8xf32> -> vector<8x8x8xf32>
    "tpu.trace_stop"() : () -> ()
    %112 = vector.shape_cast %45 : vector<8x8xf32> to vector<1x8x8xf32>
    %113 = vector.broadcast %112 : vector<1x8x8xf32> to vector<8x8x8xf32>
    %114 = arith.addf %111, %113 : vector<8x8x8xf32>
    %cst_44 = arith.constant dense<0xFF800000> : vector<8x8xf32>
    %115 = vector.multi_reduction <maximumf>, %114, %cst_44 [2] : vector<8x8x8xf32> to vector<8x8xf32>
    %116 = vector.shape_cast %115 : vector<8x8xf32> to vector<8x8x1xf32>
    %117 = vector.broadcast %116 : vector<8x8x1xf32> to vector<8x8x8xf32>
    %118 = arith.subf %114, %117 : vector<8x8x8xf32>
    %119 = math.exp %118 : vector<8x8x8xf32>
    %cst_45 = arith.constant dense<0.000000e+00> : vector<8x8xf32>
    %120 = vector.multi_reduction <add>, %119, %cst_45 [2] : vector<8x8x8xf32> to vector<8x8xf32>
    %121 = vector.shape_cast %120 : vector<8x8xf32> to vector<8x8x1xf32>
    %122 = tpu.reciprocal %121 {approx = true} : vector<8x8x1xf32> -> vector<8x8x1xf32>
    %123 = vector.broadcast %122 : vector<8x8x1xf32> to vector<8x8x8xf32>
    %124 = arith.mulf %119, %123 : vector<8x8x8xf32>
    %125 = vector.extract_strided_slice %61 {offsets = [0, 0, 16], sizes = [8, 8, 8], strides = [1, 1, 1]} : vector<8x8x32xf32> to vector<8x8x8xf32>
    "tpu.trace_start"() <{level = 10 : i32, message = "bqk,bkd->bqd"}> : () -> ()
    %cst_46 = arith.constant dense<0.000000e+00> : vector<8x8x8xf32>
    %126 = tpu.matmul %124, %125, %cst_46 {dimension_numbers = #tpu.dot_dimension_numbers<[2], [1], [1], [2], [0, 0, 0, 1, 1, 2], [0], [0]>} : vector<8x8x8xf32>, vector<8x8x8xf32>, vector<8x8x8xf32> -> vector<8x8x8xf32>
    "tpu.trace_stop"() : () -> ()
    %127 = vector.shape_cast %126 : vector<8x8x8xf32> to vector<64x8xf32>
    %128 = vector.extract_strided_slice %63 {offsets = [16, 0], sizes = [8, 32], strides = [1, 1]} : vector<32x32xf32> to vector<8x32xf32>
    %cst_47 = arith.constant dense<0.000000e+00> : vector<64x32xf32>
    %129 = tpu.matmul %127, %128, %cst_47 {dimension_numbers = #tpu.dot_dimension_numbers<[1], [0], [0], [1], [0, 0, 1, 1], [], []>} : vector<64x8xf32>, vector<8x32xf32>, vector<64x32xf32> -> vector<64x32xf32>
    %130 = arith.addf %108, %129 : vector<64x32xf32>
    %131 = vector.extract_strided_slice %57 {offsets = [0, 0, 24], sizes = [8, 8, 8], strides = [1, 1, 1]} : vector<8x8x32xf32> to vector<8x8x8xf32>
    %132 = vector.extract_strided_slice %59 {offsets = [0, 0, 24], sizes = [8, 8, 8], strides = [1, 1, 1]} : vector<8x8x32xf32> to vector<8x8x8xf32>
    "tpu.trace_start"() <{level = 10 : i32, message = "bqd,bkd->bqk"}> : () -> ()
    %cst_48 = arith.constant dense<0.000000e+00> : vector<8x8x8xf32>
    %133 = tpu.matmul %131, %132, %cst_48 {dimension_numbers = #tpu.dot_dimension_numbers<[2], [2], [1], [1], [0, 0, 0, 1, 1, 1], [0], [0]>} : vector<8x8x8xf32>, vector<8x8x8xf32>, vector<8x8x8xf32> -> vector<8x8x8xf32>
    "tpu.trace_stop"() : () -> ()
    %134 = vector.shape_cast %45 : vector<8x8xf32> to vector<1x8x8xf32>
    %135 = vector.broadcast %134 : vector<1x8x8xf32> to vector<8x8x8xf32>
    %136 = arith.addf %133, %135 : vector<8x8x8xf32>
    %cst_49 = arith.constant dense<0xFF800000> : vector<8x8xf32>
    %137 = vector.multi_reduction <maximumf>, %136, %cst_49 [2] : vector<8x8x8xf32> to vector<8x8xf32>
    %138 = vector.shape_cast %137 : vector<8x8xf32> to vector<8x8x1xf32>
    %139 = vector.broadcast %138 : vector<8x8x1xf32> to vector<8x8x8xf32>
    %140 = arith.subf %136, %139 : vector<8x8x8xf32>
    %141 = math.exp %140 : vector<8x8x8xf32>
    %cst_50 = arith.constant dense<0.000000e+00> : vector<8x8xf32>
    %142 = vector.multi_reduction <add>, %141, %cst_50 [2] : vector<8x8x8xf32> to vector<8x8xf32>
    %143 = vector.shape_cast %142 : vector<8x8xf32> to vector<8x8x1xf32>
    %144 = tpu.reciprocal %143 {approx = true} : vector<8x8x1xf32> -> vector<8x8x1xf32>
    %145 = vector.broadcast %144 : vector<8x8x1xf32> to vector<8x8x8xf32>
    %146 = arith.mulf %141, %145 : vector<8x8x8xf32>
    %147 = vector.extract_strided_slice %61 {offsets = [0, 0, 24], sizes = [8, 8, 8], strides = [1, 1, 1]} : vector<8x8x32xf32> to vector<8x8x8xf32>
    "tpu.trace_start"() <{level = 10 : i32, message = "bqk,bkd->bqd"}> : () -> ()
    %cst_51 = arith.constant dense<0.000000e+00> : vector<8x8x8xf32>
    %148 = tpu.matmul %146, %147, %cst_51 {dimension_numbers = #tpu.dot_dimension_numbers<[2], [1], [1], [2], [0, 0, 0, 1, 1, 2], [0], [0]>} : vector<8x8x8xf32>, vector<8x8x8xf32>, vector<8x8x8xf32> -> vector<8x8x8xf32>
    "tpu.trace_stop"() : () -> ()
    %149 = vector.shape_cast %148 : vector<8x8x8xf32> to vector<64x8xf32>
    %150 = vector.extract_strided_slice %63 {offsets = [24, 0], sizes = [8, 32], strides = [1, 1]} : vector<32x32xf32> to vector<8x32xf32>
    %cst_52 = arith.constant dense<0.000000e+00> : vector<64x32xf32>
    %151 = tpu.matmul %149, %150, %cst_52 {dimension_numbers = #tpu.dot_dimension_numbers<[1], [0], [0], [1], [0, 0, 1, 1], [], []>} : vector<64x8xf32>, vector<8x32xf32>, vector<64x32xf32> -> vector<64x32xf32>
    %152 = arith.addf %130, %151 : vector<64x32xf32>
    %c0_53 = arith.constant 0 : index
    %c0_54 = arith.constant 0 : index
    %c0_55 = arith.constant 0 : index
    %153 = vector.load %arg9[%c0_53, %c0_54, %c0_55] : memref<2x1x32xf32, #tpu.memory_space<vmem>>, vector<1x1x32xf32>
    %154 = vector.shape_cast %153 : vector<1x1x32xf32> to vector<1x32xf32>
    %155 = vector.broadcast %154 : vector<1x32xf32> to vector<64x32xf32>
    %156 = arith.addf %152, %155 : vector<64x32xf32>
    %157 = arith.addf %39, %156 : vector<64x32xf32>
    %c0_56 = arith.constant 0 : index
    %c0_57 = arith.constant 0 : index
    %c0_58 = arith.constant 0 : index
    %158 = vector.load %arg10[%c0_56, %c0_57, %c0_58] : memref<2x1x32xf32, #tpu.memory_space<vmem>>, vector<1x1x32xf32>
    %159 = vector.shape_cast %158 : vector<1x1x32xf32> to vector<1x32xf32>
    %c0_59 = arith.constant 0 : index
    %c0_60 = arith.constant 0 : index
    %c0_61 = arith.constant 0 : index
    %160 = vector.load %arg11[%c0_59, %c0_60, %c0_61] : memref<2x1x32xf32, #tpu.memory_space<vmem>>, vector<1x1x32xf32>
    %161 = vector.shape_cast %160 : vector<1x1x32xf32> to vector<1x32xf32>
    %cst_62 = arith.constant dense<0.000000e+00> : vector<64xf32>
    %162 = vector.multi_reduction <add>, %157, %cst_62 [1] : vector<64x32xf32> to vector<64xf32>
    %163 = vector.shape_cast %162 : vector<64xf32> to vector<64x1xf32>
    %cst_63 = arith.constant 3.200000e+01 : f32
    %164 = vector.broadcast %cst_63 : f32 to vector<64x1xf32>
    %165 = arith.divf %163, %164 : vector<64x1xf32>
    %166 = vector.broadcast %165 : vector<64x1xf32> to vector<64x32xf32>
    %167 = arith.subf %157, %166 : vector<64x32xf32>
    %168 = arith.mulf %167, %167 : vector<64x32xf32>
    %cst_64 = arith.constant dense<0.000000e+00> : vector<64xf32>
    %169 = vector.multi_reduction <add>, %168, %cst_64 [1] : vector<64x32xf32> to vector<64xf32>
    %170 = vector.shape_cast %169 : vector<64xf32> to vector<64x1xf32>
    %cst_65 = arith.constant 3.200000e+01 : f32
    %171 = vector.broadcast %cst_65 : f32 to vector<64x1xf32>
    %172 = arith.divf %170, %171 : vector<64x1xf32>
    %cst_66 = arith.constant 9.99999974E-6 : f32
    %173 = vector.broadcast %cst_66 : f32 to vector<64x1xf32>
    %174 = arith.addf %172, %173 : vector<64x1xf32>
    %175 = math.rsqrt %174 : vector<64x1xf32>
    %176 = vector.broadcast %175 : vector<64x1xf32> to vector<64x32xf32>
    %177 = arith.mulf %167, %176 : vector<64x32xf32>
    %178 = vector.broadcast %159 : vector<1x32xf32> to vector<64x32xf32>
    %179 = arith.mulf %177, %178 : vector<64x32xf32>
    %180 = vector.broadcast %161 : vector<1x32xf32> to vector<64x32xf32>
    %181 = arith.addf %179, %180 : vector<64x32xf32>
    %182 = arith.truncf %181 : vector<64x32xf32> to vector<64x32xbf16>
    %c0_67 = arith.constant 0 : index
    %c0_68 = arith.constant 0 : index
    %c0_69 = arith.constant 0 : index
    %183 = vector.load %arg12[%c0_67, %c0_68, %c0_69] : memref<2x32x2048xbf16, #tpu.memory_space<vmem>>, vector<1x32x2048xbf16>
    %184 = vector.shape_cast %183 : vector<1x32x2048xbf16> to vector<32x2048xbf16>
    %cst_70 = arith.constant dense<0.000000e+00> : vector<64x2048xf32>
    %185 = tpu.matmul %182, %184, %cst_70 {dimension_numbers = #tpu.dot_dimension_numbers<[1], [0], [0], [1], [0, 0, 1, 1], [], []>} : vector<64x32xbf16>, vector<32x2048xbf16>, vector<64x2048xf32> -> vector<64x2048xf32>
    %c0_71 = arith.constant 0 : index
    %c0_72 = arith.constant 0 : index
    %c0_73 = arith.constant 0 : index
    %186 = vector.load %arg13[%c0_71, %c0_72, %c0_73] : memref<2x1x2048xf32, #tpu.memory_space<vmem>>, vector<1x1x2048xf32>
    %187 = vector.shape_cast %186 : vector<1x1x2048xf32> to vector<1x2048xf32>
    %188 = vector.broadcast %187 : vector<1x2048xf32> to vector<64x2048xf32>
    %189 = arith.addf %185, %188 : vector<64x2048xf32>
    %cst_74 = arith.constant 0.000000e+00 : f32
    %190 = vector.broadcast %cst_74 : f32 to vector<64x2048xf32>
    %191 = arith.maximumf %189, %190 : vector<64x2048xf32>
    %192 = arith.truncf %191 : vector<64x2048xf32> to vector<64x2048xbf16>
    %c0_75 = arith.constant 0 : index
    %c0_76 = arith.constant 0 : index
    %c0_77 = arith.constant 0 : index
    %193 = vector.load %arg14[%c0_75, %c0_76, %c0_77] : memref<2x2048x32xbf16, #tpu.memory_space<vmem>>, vector<1x2048x32xbf16>
    %194 = vector.shape_cast %193 : vector<1x2048x32xbf16> to vector<2048x32xbf16>
    %cst_78 = arith.constant dense<0.000000e+00> : vector<64x32xf32>
    %195 = tpu.matmul %192, %194, %cst_78 {dimension_numbers = #tpu.dot_dimension_numbers<[1], [0], [0], [1], [0, 0, 1, 1], [], []>} : vector<64x2048xbf16>, vector<2048x32xbf16>, vector<64x32xf32> -> vector<64x32xf32>
    %c0_79 = arith.constant 0 : index
    %c0_80 = arith.constant 0 : index
    %c0_81 = arith.constant 0 : index
    %196 = vector.load %arg15[%c0_79, %c0_80, %c0_81] : memref<2x1x32xf32, #tpu.memory_space<vmem>>, vector<1x1x32xf32>
    %197 = vector.shape_cast %196 : vector<1x1x32xf32> to vector<1x32xf32>
    %198 = vector.broadcast %197 : vector<1x32xf32> to vector<64x32xf32>
    %199 = arith.addf %195, %198 : vector<64x32xf32>
    %200 = arith.addf %181, %199 : vector<64x32xf32>
    %c0_82 = arith.constant 0 : index
    %c0_83 = arith.constant 0 : index
    %c0_84 = arith.constant 0 : index
    %201 = vector.load %arg16[%c0_82, %c0_83, %c0_84] : memref<2x1x32xf32, #tpu.memory_space<vmem>>, vector<1x1x32xf32>
    %202 = vector.shape_cast %201 : vector<1x1x32xf32> to vector<1x32xf32>
    %c0_85 = arith.constant 0 : index
    %c0_86 = arith.constant 0 : index
    %c0_87 = arith.constant 0 : index
    %203 = vector.load %arg17[%c0_85, %c0_86, %c0_87] : memref<2x1x32xf32, #tpu.memory_space<vmem>>, vector<1x1x32xf32>
    %204 = vector.shape_cast %203 : vector<1x1x32xf32> to vector<1x32xf32>
    %cst_88 = arith.constant dense<0.000000e+00> : vector<64xf32>
    %205 = vector.multi_reduction <add>, %200, %cst_88 [1] : vector<64x32xf32> to vector<64xf32>
    %206 = vector.shape_cast %205 : vector<64xf32> to vector<64x1xf32>
    %cst_89 = arith.constant 3.200000e+01 : f32
    %207 = vector.broadcast %cst_89 : f32 to vector<64x1xf32>
    %208 = arith.divf %206, %207 : vector<64x1xf32>
    %209 = vector.broadcast %208 : vector<64x1xf32> to vector<64x32xf32>
    %210 = arith.subf %200, %209 : vector<64x32xf32>
    %211 = arith.mulf %210, %210 : vector<64x32xf32>
    %cst_90 = arith.constant dense<0.000000e+00> : vector<64xf32>
    %212 = vector.multi_reduction <add>, %211, %cst_90 [1] : vector<64x32xf32> to vector<64xf32>
    %213 = vector.shape_cast %212 : vector<64xf32> to vector<64x1xf32>
    %cst_91 = arith.constant 3.200000e+01 : f32
    %214 = vector.broadcast %cst_91 : f32 to vector<64x1xf32>
    %215 = arith.divf %213, %214 : vector<64x1xf32>
    %cst_92 = arith.constant 9.99999974E-6 : f32
    %216 = vector.broadcast %cst_92 : f32 to vector<64x1xf32>
    %217 = arith.addf %215, %216 : vector<64x1xf32>
    %218 = math.rsqrt %217 : vector<64x1xf32>
    %219 = vector.broadcast %218 : vector<64x1xf32> to vector<64x32xf32>
    %220 = arith.mulf %210, %219 : vector<64x32xf32>
    %221 = vector.broadcast %202 : vector<1x32xf32> to vector<64x32xf32>
    %222 = arith.mulf %220, %221 : vector<64x32xf32>
    %223 = vector.broadcast %204 : vector<1x32xf32> to vector<64x32xf32>
    %224 = arith.addf %222, %223 : vector<64x32xf32>
    %225 = arith.truncf %224 : vector<64x32xf32> to vector<64x32xbf16>
    %c1 = arith.constant 1 : index
    %c0_93 = arith.constant 0 : index
    %c0_94 = arith.constant 0 : index
    %226 = vector.load %arg6[%c1, %c0_93, %c0_94] : memref<2x32x96xbf16, #tpu.memory_space<vmem>>, vector<1x32x96xbf16>
    %227 = vector.shape_cast %226 : vector<1x32x96xbf16> to vector<32x96xbf16>
    %cst_95 = arith.constant dense<0.000000e+00> : vector<64x96xf32>
    %228 = tpu.matmul %225, %227, %cst_95 {dimension_numbers = #tpu.dot_dimension_numbers<[1], [0], [0], [1], [0, 0, 1, 1], [], []>} : vector<64x32xbf16>, vector<32x96xbf16>, vector<64x96xf32> -> vector<64x96xf32>
    %c1_96 = arith.constant 1 : index
    %c0_97 = arith.constant 0 : index
    %c0_98 = arith.constant 0 : index
    %229 = vector.load %arg7[%c1_96, %c0_97, %c0_98] : memref<2x1x96xf32, #tpu.memory_space<vmem>>, vector<1x1x96xf32>
    %230 = vector.shape_cast %229 : vector<1x1x96xf32> to vector<1x96xf32>
    %231 = vector.broadcast %230 : vector<1x96xf32> to vector<64x96xf32>
    %232 = arith.addf %228, %231 : vector<64x96xf32>
    %233 = vector.extract_strided_slice %232 {offsets = [0, 0], sizes = [64, 32], strides = [1, 1]} : vector<64x96xf32> to vector<64x32xf32>
    %cst_99 = arith.constant 0.353553385 : f32
    %234 = vector.broadcast %cst_99 : f32 to vector<64x32xf32>
    %235 = arith.mulf %233, %234 : vector<64x32xf32>
    %236 = vector.shape_cast %235 : vector<64x32xf32> to vector<8x8x32xf32>
    %237 = vector.extract_strided_slice %232 {offsets = [0, 32], sizes = [64, 32], strides = [1, 1]} : vector<64x96xf32> to vector<64x32xf32>
    %238 = vector.shape_cast %237 : vector<64x32xf32> to vector<8x8x32xf32>
    %239 = vector.extract_strided_slice %232 {offsets = [0, 64], sizes = [64, 32], strides = [1, 1]} : vector<64x96xf32> to vector<64x32xf32>
    %240 = vector.shape_cast %239 : vector<64x32xf32> to vector<8x8x32xf32>
    %c1_100 = arith.constant 1 : index
    %c0_101 = arith.constant 0 : index
    %c0_102 = arith.constant 0 : index
    %241 = vector.load %arg8[%c1_100, %c0_101, %c0_102] : memref<2x32x32xf32, #tpu.memory_space<vmem>>, vector<1x32x32xf32>
    %242 = vector.shape_cast %241 : vector<1x32x32xf32> to vector<32x32xf32>
    %cst_103 = arith.constant 0.000000e+00 : f32
    %243 = vector.broadcast %cst_103 : f32 to vector<64x32xf32>
    %244 = vector.extract_strided_slice %236 {offsets = [0, 0, 0], sizes = [8, 8, 8], strides = [1, 1, 1]} : vector<8x8x32xf32> to vector<8x8x8xf32>
    %245 = vector.extract_strided_slice %238 {offsets = [0, 0, 0], sizes = [8, 8, 8], strides = [1, 1, 1]} : vector<8x8x32xf32> to vector<8x8x8xf32>
    "tpu.trace_start"() <{level = 10 : i32, message = "bqd,bkd->bqk"}> : () -> ()
    %cst_104 = arith.constant dense<0.000000e+00> : vector<8x8x8xf32>
    %246 = tpu.matmul %244, %245, %cst_104 {dimension_numbers = #tpu.dot_dimension_numbers<[2], [2], [1], [1], [0, 0, 0, 1, 1, 1], [0], [0]>} : vector<8x8x8xf32>, vector<8x8x8xf32>, vector<8x8x8xf32> -> vector<8x8x8xf32>
    "tpu.trace_stop"() : () -> ()
    %247 = vector.shape_cast %45 : vector<8x8xf32> to vector<1x8x8xf32>
    %248 = vector.broadcast %247 : vector<1x8x8xf32> to vector<8x8x8xf32>
    %249 = arith.addf %246, %248 : vector<8x8x8xf32>
    %cst_105 = arith.constant dense<0xFF800000> : vector<8x8xf32>
    %250 = vector.multi_reduction <maximumf>, %249, %cst_105 [2] : vector<8x8x8xf32> to vector<8x8xf32>
    %251 = vector.shape_cast %250 : vector<8x8xf32> to vector<8x8x1xf32>
    %252 = vector.broadcast %251 : vector<8x8x1xf32> to vector<8x8x8xf32>
    %253 = arith.subf %249, %252 : vector<8x8x8xf32>
    %254 = math.exp %253 : vector<8x8x8xf32>
    %cst_106 = arith.constant dense<0.000000e+00> : vector<8x8xf32>
    %255 = vector.multi_reduction <add>, %254, %cst_106 [2] : vector<8x8x8xf32> to vector<8x8xf32>
    %256 = vector.shape_cast %255 : vector<8x8xf32> to vector<8x8x1xf32>
    %257 = tpu.reciprocal %256 {approx = true} : vector<8x8x1xf32> -> vector<8x8x1xf32>
    %258 = vector.broadcast %257 : vector<8x8x1xf32> to vector<8x8x8xf32>
    %259 = arith.mulf %254, %258 : vector<8x8x8xf32>
    %260 = vector.extract_strided_slice %240 {offsets = [0, 0, 0], sizes = [8, 8, 8], strides = [1, 1, 1]} : vector<8x8x32xf32> to vector<8x8x8xf32>
    "tpu.trace_start"() <{level = 10 : i32, message = "bqk,bkd->bqd"}> : () -> ()
    %cst_107 = arith.constant dense<0.000000e+00> : vector<8x8x8xf32>
    %261 = tpu.matmul %259, %260, %cst_107 {dimension_numbers = #tpu.dot_dimension_numbers<[2], [1], [1], [2], [0, 0, 0, 1, 1, 2], [0], [0]>} : vector<8x8x8xf32>, vector<8x8x8xf32>, vector<8x8x8xf32> -> vector<8x8x8xf32>
    "tpu.trace_stop"() : () -> ()
    %262 = vector.shape_cast %261 : vector<8x8x8xf32> to vector<64x8xf32>
    %263 = vector.extract_strided_slice %242 {offsets = [0, 0], sizes = [8, 32], strides = [1, 1]} : vector<32x32xf32> to vector<8x32xf32>
    %cst_108 = arith.constant dense<0.000000e+00> : vector<64x32xf32>
    %264 = tpu.matmul %262, %263, %cst_108 {dimension_numbers = #tpu.dot_dimension_numbers<[1], [0], [0], [1], [0, 0, 1, 1], [], []>} : vector<64x8xf32>, vector<8x32xf32>, vector<64x32xf32> -> vector<64x32xf32>
    %265 = arith.addf %243, %264 : vector<64x32xf32>
    %266 = vector.extract_strided_slice %236 {offsets = [0, 0, 8], sizes = [8, 8, 8], strides = [1, 1, 1]} : vector<8x8x32xf32> to vector<8x8x8xf32>
    %267 = vector.extract_strided_slice %238 {offsets = [0, 0, 8], sizes = [8, 8, 8], strides = [1, 1, 1]} : vector<8x8x32xf32> to vector<8x8x8xf32>
    "tpu.trace_start"() <{level = 10 : i32, message = "bqd,bkd->bqk"}> : () -> ()
    %cst_109 = arith.constant dense<0.000000e+00> : vector<8x8x8xf32>
    %268 = tpu.matmul %266, %267, %cst_109 {dimension_numbers = #tpu.dot_dimension_numbers<[2], [2], [1], [1], [0, 0, 0, 1, 1, 1], [0], [0]>} : vector<8x8x8xf32>, vector<8x8x8xf32>, vector<8x8x8xf32> -> vector<8x8x8xf32>
    "tpu.trace_stop"() : () -> ()
    %269 = vector.shape_cast %45 : vector<8x8xf32> to vector<1x8x8xf32>
    %270 = vector.broadcast %269 : vector<1x8x8xf32> to vector<8x8x8xf32>
    %271 = arith.addf %268, %270 : vector<8x8x8xf32>
    %cst_110 = arith.constant dense<0xFF800000> : vector<8x8xf32>
    %272 = vector.multi_reduction <maximumf>, %271, %cst_110 [2] : vector<8x8x8xf32> to vector<8x8xf32>
    %273 = vector.shape_cast %272 : vector<8x8xf32> to vector<8x8x1xf32>
    %274 = vector.broadcast %273 : vector<8x8x1xf32> to vector<8x8x8xf32>
    %275 = arith.subf %271, %274 : vector<8x8x8xf32>
    %276 = math.exp %275 : vector<8x8x8xf32>
    %cst_111 = arith.constant dense<0.000000e+00> : vector<8x8xf32>
    %277 = vector.multi_reduction <add>, %276, %cst_111 [2] : vector<8x8x8xf32> to vector<8x8xf32>
    %278 = vector.shape_cast %277 : vector<8x8xf32> to vector<8x8x1xf32>
    %279 = tpu.reciprocal %278 {approx = true} : vector<8x8x1xf32> -> vector<8x8x1xf32>
    %280 = vector.broadcast %279 : vector<8x8x1xf32> to vector<8x8x8xf32>
    %281 = arith.mulf %276, %280 : vector<8x8x8xf32>
    %282 = vector.extract_strided_slice %240 {offsets = [0, 0, 8], sizes = [8, 8, 8], strides = [1, 1, 1]} : vector<8x8x32xf32> to vector<8x8x8xf32>
    "tpu.trace_start"() <{level = 10 : i32, message = "bqk,bkd->bqd"}> : () -> ()
    %cst_112 = arith.constant dense<0.000000e+00> : vector<8x8x8xf32>
    %283 = tpu.matmul %281, %282, %cst_112 {dimension_numbers = #tpu.dot_dimension_numbers<[2], [1], [1], [2], [0, 0, 0, 1, 1, 2], [0], [0]>} : vector<8x8x8xf32>, vector<8x8x8xf32>, vector<8x8x8xf32> -> vector<8x8x8xf32>
    "tpu.trace_stop"() : () -> ()
    %284 = vector.shape_cast %283 : vector<8x8x8xf32> to vector<64x8xf32>
    %285 = vector.extract_strided_slice %242 {offsets = [8, 0], sizes = [8, 32], strides = [1, 1]} : vector<32x32xf32> to vector<8x32xf32>
    %cst_113 = arith.constant dense<0.000000e+00> : vector<64x32xf32>
    %286 = tpu.matmul %284, %285, %cst_113 {dimension_numbers = #tpu.dot_dimension_numbers<[1], [0], [0], [1], [0, 0, 1, 1], [], []>} : vector<64x8xf32>, vector<8x32xf32>, vector<64x32xf32> -> vector<64x32xf32>
    %287 = arith.addf %265, %286 : vector<64x32xf32>
    %288 = vector.extract_strided_slice %236 {offsets = [0, 0, 16], sizes = [8, 8, 8], strides = [1, 1, 1]} : vector<8x8x32xf32> to vector<8x8x8xf32>
    %289 = vector.extract_strided_slice %238 {offsets = [0, 0, 16], sizes = [8, 8, 8], strides = [1, 1, 1]} : vector<8x8x32xf32> to vector<8x8x8xf32>
    "tpu.trace_start"() <{level = 10 : i32, message = "bqd,bkd->bqk"}> : () -> ()
    %cst_114 = arith.constant dense<0.000000e+00> : vector<8x8x8xf32>
    %290 = tpu.matmul %288, %289, %cst_114 {dimension_numbers = #tpu.dot_dimension_numbers<[2], [2], [1], [1], [0, 0, 0, 1, 1, 1], [0], [0]>} : vector<8x8x8xf32>, vector<8x8x8xf32>, vector<8x8x8xf32> -> vector<8x8x8xf32>
    "tpu.trace_stop"() : () -> ()
    %291 = vector.shape_cast %45 : vector<8x8xf32> to vector<1x8x8xf32>
    %292 = vector.broadcast %291 : vector<1x8x8xf32> to vector<8x8x8xf32>
    %293 = arith.addf %290, %292 : vector<8x8x8xf32>
    %cst_115 = arith.constant dense<0xFF800000> : vector<8x8xf32>
    %294 = vector.multi_reduction <maximumf>, %293, %cst_115 [2] : vector<8x8x8xf32> to vector<8x8xf32>
    %295 = vector.shape_cast %294 : vector<8x8xf32> to vector<8x8x1xf32>
    %296 = vector.broadcast %295 : vector<8x8x1xf32> to vector<8x8x8xf32>
    %297 = arith.subf %293, %296 : vector<8x8x8xf32>
    %298 = math.exp %297 : vector<8x8x8xf32>
    %cst_116 = arith.constant dense<0.000000e+00> : vector<8x8xf32>
    %299 = vector.multi_reduction <add>, %298, %cst_116 [2] : vector<8x8x8xf32> to vector<8x8xf32>
    %300 = vector.shape_cast %299 : vector<8x8xf32> to vector<8x8x1xf32>
    %301 = tpu.reciprocal %300 {approx = true} : vector<8x8x1xf32> -> vector<8x8x1xf32>
    %302 = vector.broadcast %301 : vector<8x8x1xf32> to vector<8x8x8xf32>
    %303 = arith.mulf %298, %302 : vector<8x8x8xf32>
    %304 = vector.extract_strided_slice %240 {offsets = [0, 0, 16], sizes = [8, 8, 8], strides = [1, 1, 1]} : vector<8x8x32xf32> to vector<8x8x8xf32>
    "tpu.trace_start"() <{level = 10 : i32, message = "bqk,bkd->bqd"}> : () -> ()
    %cst_117 = arith.constant dense<0.000000e+00> : vector<8x8x8xf32>
    %305 = tpu.matmul %303, %304, %cst_117 {dimension_numbers = #tpu.dot_dimension_numbers<[2], [1], [1], [2], [0, 0, 0, 1, 1, 2], [0], [0]>} : vector<8x8x8xf32>, vector<8x8x8xf32>, vector<8x8x8xf32> -> vector<8x8x8xf32>
    "tpu.trace_stop"() : () -> ()
    %306 = vector.shape_cast %305 : vector<8x8x8xf32> to vector<64x8xf32>
    %307 = vector.extract_strided_slice %242 {offsets = [16, 0], sizes = [8, 32], strides = [1, 1]} : vector<32x32xf32> to vector<8x32xf32>
    %cst_118 = arith.constant dense<0.000000e+00> : vector<64x32xf32>
    %308 = tpu.matmul %306, %307, %cst_118 {dimension_numbers = #tpu.dot_dimension_numbers<[1], [0], [0], [1], [0, 0, 1, 1], [], []>} : vector<64x8xf32>, vector<8x32xf32>, vector<64x32xf32> -> vector<64x32xf32>
    %309 = arith.addf %287, %308 : vector<64x32xf32>
    %310 = vector.extract_strided_slice %236 {offsets = [0, 0, 24], sizes = [8, 8, 8], strides = [1, 1, 1]} : vector<8x8x32xf32> to vector<8x8x8xf32>
    %311 = vector.extract_strided_slice %238 {offsets = [0, 0, 24], sizes = [8, 8, 8], strides = [1, 1, 1]} : vector<8x8x32xf32> to vector<8x8x8xf32>
    "tpu.trace_start"() <{level = 10 : i32, message = "bqd,bkd->bqk"}> : () -> ()
    %cst_119 = arith.constant dense<0.000000e+00> : vector<8x8x8xf32>
    %312 = tpu.matmul %310, %311, %cst_119 {dimension_numbers = #tpu.dot_dimension_numbers<[2], [2], [1], [1], [0, 0, 0, 1, 1, 1], [0], [0]>} : vector<8x8x8xf32>, vector<8x8x8xf32>, vector<8x8x8xf32> -> vector<8x8x8xf32>
    "tpu.trace_stop"() : () -> ()
    %313 = vector.shape_cast %45 : vector<8x8xf32> to vector<1x8x8xf32>
    %314 = vector.broadcast %313 : vector<1x8x8xf32> to vector<8x8x8xf32>
    %315 = arith.addf %312, %314 : vector<8x8x8xf32>
    %cst_120 = arith.constant dense<0xFF800000> : vector<8x8xf32>
    %316 = vector.multi_reduction <maximumf>, %315, %cst_120 [2] : vector<8x8x8xf32> to vector<8x8xf32>
    %317 = vector.shape_cast %316 : vector<8x8xf32> to vector<8x8x1xf32>
    %318 = vector.broadcast %317 : vector<8x8x1xf32> to vector<8x8x8xf32>
    %319 = arith.subf %315, %318 : vector<8x8x8xf32>
    %320 = math.exp %319 : vector<8x8x8xf32>
    %cst_121 = arith.constant dense<0.000000e+00> : vector<8x8xf32>
    %321 = vector.multi_reduction <add>, %320, %cst_121 [2] : vector<8x8x8xf32> to vector<8x8xf32>
    %322 = vector.shape_cast %321 : vector<8x8xf32> to vector<8x8x1xf32>
    %323 = tpu.reciprocal %322 {approx = true} : vector<8x8x1xf32> -> vector<8x8x1xf32>
    %324 = vector.broadcast %323 : vector<8x8x1xf32> to vector<8x8x8xf32>
    %325 = arith.mulf %320, %324 : vector<8x8x8xf32>
    %326 = vector.extract_strided_slice %240 {offsets = [0, 0, 24], sizes = [8, 8, 8], strides = [1, 1, 1]} : vector<8x8x32xf32> to vector<8x8x8xf32>
    "tpu.trace_start"() <{level = 10 : i32, message = "bqk,bkd->bqd"}> : () -> ()
    %cst_122 = arith.constant dense<0.000000e+00> : vector<8x8x8xf32>
    %327 = tpu.matmul %325, %326, %cst_122 {dimension_numbers = #tpu.dot_dimension_numbers<[2], [1], [1], [2], [0, 0, 0, 1, 1, 2], [0], [0]>} : vector<8x8x8xf32>, vector<8x8x8xf32>, vector<8x8x8xf32> -> vector<8x8x8xf32>
    "tpu.trace_stop"() : () -> ()
    %328 = vector.shape_cast %327 : vector<8x8x8xf32> to vector<64x8xf32>
    %329 = vector.extract_strided_slice %242 {offsets = [24, 0], sizes = [8, 32], strides = [1, 1]} : vector<32x32xf32> to vector<8x32xf32>
    %cst_123 = arith.constant dense<0.000000e+00> : vector<64x32xf32>
    %330 = tpu.matmul %328, %329, %cst_123 {dimension_numbers = #tpu.dot_dimension_numbers<[1], [0], [0], [1], [0, 0, 1, 1], [], []>} : vector<64x8xf32>, vector<8x32xf32>, vector<64x32xf32> -> vector<64x32xf32>
    %331 = arith.addf %309, %330 : vector<64x32xf32>
    %c1_124 = arith.constant 1 : index
    %c0_125 = arith.constant 0 : index
    %c0_126 = arith.constant 0 : index
    %332 = vector.load %arg9[%c1_124, %c0_125, %c0_126] : memref<2x1x32xf32, #tpu.memory_space<vmem>>, vector<1x1x32xf32>
    %333 = vector.shape_cast %332 : vector<1x1x32xf32> to vector<1x32xf32>
    %334 = vector.broadcast %333 : vector<1x32xf32> to vector<64x32xf32>
    %335 = arith.addf %331, %334 : vector<64x32xf32>
    %336 = arith.addf %224, %335 : vector<64x32xf32>
    %c1_127 = arith.constant 1 : index
    %c0_128 = arith.constant 0 : index
    %c0_129 = arith.constant 0 : index
    %337 = vector.load %arg10[%c1_127, %c0_128, %c0_129] : memref<2x1x32xf32, #tpu.memory_space<vmem>>, vector<1x1x32xf32>
    %338 = vector.shape_cast %337 : vector<1x1x32xf32> to vector<1x32xf32>
    %c1_130 = arith.constant 1 : index
    %c0_131 = arith.constant 0 : index
    %c0_132 = arith.constant 0 : index
    %339 = vector.load %arg11[%c1_130, %c0_131, %c0_132] : memref<2x1x32xf32, #tpu.memory_space<vmem>>, vector<1x1x32xf32>
    %340 = vector.shape_cast %339 : vector<1x1x32xf32> to vector<1x32xf32>
    %cst_133 = arith.constant dense<0.000000e+00> : vector<64xf32>
    %341 = vector.multi_reduction <add>, %336, %cst_133 [1] : vector<64x32xf32> to vector<64xf32>
    %342 = vector.shape_cast %341 : vector<64xf32> to vector<64x1xf32>
    %cst_134 = arith.constant 3.200000e+01 : f32
    %343 = vector.broadcast %cst_134 : f32 to vector<64x1xf32>
    %344 = arith.divf %342, %343 : vector<64x1xf32>
    %345 = vector.broadcast %344 : vector<64x1xf32> to vector<64x32xf32>
    %346 = arith.subf %336, %345 : vector<64x32xf32>
    %347 = arith.mulf %346, %346 : vector<64x32xf32>
    %cst_135 = arith.constant dense<0.000000e+00> : vector<64xf32>
    %348 = vector.multi_reduction <add>, %347, %cst_135 [1] : vector<64x32xf32> to vector<64xf32>
    %349 = vector.shape_cast %348 : vector<64xf32> to vector<64x1xf32>
    %cst_136 = arith.constant 3.200000e+01 : f32
    %350 = vector.broadcast %cst_136 : f32 to vector<64x1xf32>
    %351 = arith.divf %349, %350 : vector<64x1xf32>
    %cst_137 = arith.constant 9.99999974E-6 : f32
    %352 = vector.broadcast %cst_137 : f32 to vector<64x1xf32>
    %353 = arith.addf %351, %352 : vector<64x1xf32>
    %354 = math.rsqrt %353 : vector<64x1xf32>
    %355 = vector.broadcast %354 : vector<64x1xf32> to vector<64x32xf32>
    %356 = arith.mulf %346, %355 : vector<64x32xf32>
    %357 = vector.broadcast %338 : vector<1x32xf32> to vector<64x32xf32>
    %358 = arith.mulf %356, %357 : vector<64x32xf32>
    %359 = vector.broadcast %340 : vector<1x32xf32> to vector<64x32xf32>
    %360 = arith.addf %358, %359 : vector<64x32xf32>
    %361 = arith.truncf %360 : vector<64x32xf32> to vector<64x32xbf16>
    %c1_138 = arith.constant 1 : index
    %c0_139 = arith.constant 0 : index
    %c0_140 = arith.constant 0 : index
    %362 = vector.load %arg12[%c1_138, %c0_139, %c0_140] : memref<2x32x2048xbf16, #tpu.memory_space<vmem>>, vector<1x32x2048xbf16>
    %363 = vector.shape_cast %362 : vector<1x32x2048xbf16> to vector<32x2048xbf16>
    %cst_141 = arith.constant dense<0.000000e+00> : vector<64x2048xf32>
    %364 = tpu.matmul %361, %363, %cst_141 {dimension_numbers = #tpu.dot_dimension_numbers<[1], [0], [0], [1], [0, 0, 1, 1], [], []>} : vector<64x32xbf16>, vector<32x2048xbf16>, vector<64x2048xf32> -> vector<64x2048xf32>
    %c1_142 = arith.constant 1 : index
    %c0_143 = arith.constant 0 : index
    %c0_144 = arith.constant 0 : index
    %365 = vector.load %arg13[%c1_142, %c0_143, %c0_144] : memref<2x1x2048xf32, #tpu.memory_space<vmem>>, vector<1x1x2048xf32>
    %366 = vector.shape_cast %365 : vector<1x1x2048xf32> to vector<1x2048xf32>
    %367 = vector.broadcast %366 : vector<1x2048xf32> to vector<64x2048xf32>
    %368 = arith.addf %364, %367 : vector<64x2048xf32>
    %cst_145 = arith.constant 0.000000e+00 : f32
    %369 = vector.broadcast %cst_145 : f32 to vector<64x2048xf32>
    %370 = arith.maximumf %368, %369 : vector<64x2048xf32>
    %371 = arith.truncf %370 : vector<64x2048xf32> to vector<64x2048xbf16>
    %c1_146 = arith.constant 1 : index
    %c0_147 = arith.constant 0 : index
    %c0_148 = arith.constant 0 : index
    %372 = vector.load %arg14[%c1_146, %c0_147, %c0_148] : memref<2x2048x32xbf16, #tpu.memory_space<vmem>>, vector<1x2048x32xbf16>
    %373 = vector.shape_cast %372 : vector<1x2048x32xbf16> to vector<2048x32xbf16>
    %cst_149 = arith.constant dense<0.000000e+00> : vector<64x32xf32>
    %374 = tpu.matmul %371, %373, %cst_149 {dimension_numbers = #tpu.dot_dimension_numbers<[1], [0], [0], [1], [0, 0, 1, 1], [], []>} : vector<64x2048xbf16>, vector<2048x32xbf16>, vector<64x32xf32> -> vector<64x32xf32>
    %c1_150 = arith.constant 1 : index
    %c0_151 = arith.constant 0 : index
    %c0_152 = arith.constant 0 : index
    %375 = vector.load %arg15[%c1_150, %c0_151, %c0_152] : memref<2x1x32xf32, #tpu.memory_space<vmem>>, vector<1x1x32xf32>
    %376 = vector.shape_cast %375 : vector<1x1x32xf32> to vector<1x32xf32>
    %377 = vector.broadcast %376 : vector<1x32xf32> to vector<64x32xf32>
    %378 = arith.addf %374, %377 : vector<64x32xf32>
    %379 = arith.addf %360, %378 : vector<64x32xf32>
    %c1_153 = arith.constant 1 : index
    %c0_154 = arith.constant 0 : index
    %c0_155 = arith.constant 0 : index
    %380 = vector.load %arg16[%c1_153, %c0_154, %c0_155] : memref<2x1x32xf32, #tpu.memory_space<vmem>>, vector<1x1x32xf32>
    %381 = vector.shape_cast %380 : vector<1x1x32xf32> to vector<1x32xf32>
    %c1_156 = arith.constant 1 : index
    %c0_157 = arith.constant 0 : index
    %c0_158 = arith.constant 0 : index
    %382 = vector.load %arg17[%c1_156, %c0_157, %c0_158] : memref<2x1x32xf32, #tpu.memory_space<vmem>>, vector<1x1x32xf32>
    %383 = vector.shape_cast %382 : vector<1x1x32xf32> to vector<1x32xf32>
    %cst_159 = arith.constant dense<0.000000e+00> : vector<64xf32>
    %384 = vector.multi_reduction <add>, %379, %cst_159 [1] : vector<64x32xf32> to vector<64xf32>
    %385 = vector.shape_cast %384 : vector<64xf32> to vector<64x1xf32>
    %cst_160 = arith.constant 3.200000e+01 : f32
    %386 = vector.broadcast %cst_160 : f32 to vector<64x1xf32>
    %387 = arith.divf %385, %386 : vector<64x1xf32>
    %388 = vector.broadcast %387 : vector<64x1xf32> to vector<64x32xf32>
    %389 = arith.subf %379, %388 : vector<64x32xf32>
    %390 = arith.mulf %389, %389 : vector<64x32xf32>
    %cst_161 = arith.constant dense<0.000000e+00> : vector<64xf32>
    %391 = vector.multi_reduction <add>, %390, %cst_161 [1] : vector<64x32xf32> to vector<64xf32>
    %392 = vector.shape_cast %391 : vector<64xf32> to vector<64x1xf32>
    %cst_162 = arith.constant 3.200000e+01 : f32
    %393 = vector.broadcast %cst_162 : f32 to vector<64x1xf32>
    %394 = arith.divf %392, %393 : vector<64x1xf32>
    %cst_163 = arith.constant 9.99999974E-6 : f32
    %395 = vector.broadcast %cst_163 : f32 to vector<64x1xf32>
    %396 = arith.addf %394, %395 : vector<64x1xf32>
    %397 = math.rsqrt %396 : vector<64x1xf32>
    %398 = vector.broadcast %397 : vector<64x1xf32> to vector<64x32xf32>
    %399 = arith.mulf %389, %398 : vector<64x32xf32>
    %400 = vector.broadcast %381 : vector<1x32xf32> to vector<64x32xf32>
    %401 = arith.mulf %399, %400 : vector<64x32xf32>
    %402 = vector.broadcast %383 : vector<1x32xf32> to vector<64x32xf32>
    %403 = arith.addf %401, %402 : vector<64x32xf32>
    %404 = vector.shape_cast %403 : vector<64x32xf32> to vector<8x8x32xf32>
    %c0_164 = arith.constant 0 : index
    %c0_165 = arith.constant 0 : index
    %c0_166 = arith.constant 0 : index
    %405 = vector.load %arg18[%c0_164, %c0_165, %c0_166] : memref<8x8x32xf32, #tpu.memory_space<vmem>>, vector<8x8x32xf32>
    tpu.vector_store %arg18[%c0_164, %c0_165, %c0_166], %404 {strides = array<i32>} : memref<8x8x32xf32, #tpu.memory_space<vmem>>, vector<8x8x32xf32>,
    return
  }
  func.func @transform_0(%arg0: i32) -> (i32, i32, i32) {
    %c0_i32 = arith.constant 0 : i32
    %c0_i32_0 = arith.constant 0 : i32
    %c0_i32_1 = arith.constant 0 : i32
    return %arg0, %c0_i32, %c0_i32_0 : i32, i32, i32
  }
  func.func @transform_1(%arg0: i32) -> (i32, i32, i32) {
    %c0_i32 = arith.constant 0 : i32
    %c0_i32_0 = arith.constant 0 : i32
    %c0_i32_1 = arith.constant 0 : i32
    return %arg0, %c0_i32, %c0_i32_0 : i32, i32, i32
  }
  func.func @transform_2(%arg0: i32) -> (i32, i32, i32) {
    %c0_i32 = arith.constant 0 : i32
    %c0_i32_0 = arith.constant 0 : i32
    %c0_i32_1 = arith.constant 0 : i32
    return %arg0, %c0_i32, %c0_i32_0 : i32, i32, i32
  }
  func.func @transform_3(%arg0: i32) -> (i32, i32) {
    %c0_i32 = arith.constant 0 : i32
    %c0_i32_0 = arith.constant 0 : i32
    %c0_i32_1 = arith.constant 0 : i32
    return %c0_i32, %c0_i32_0 : i32, i32
  }
  func.func @transform_4(%arg0: i32) -> (i32, i32) {
    %c0_i32 = arith.constant 0 : i32
    %c0_i32_0 = arith.constant 0 : i32
    %c0_i32_1 = arith.constant 0 : i32
    return %c0_i32, %c0_i32_0 : i32, i32
  }
  func.func @transform_5(%arg0: i32) -> (i32, i32, i32) {
    %c0_i32 = arith.constant 0 : i32
    %c0_i32_0 = arith.constant 0 : i32
    %c0_i32_1 = arith.constant 0 : i32
    %c0_i32_2 = arith.constant 0 : i32
    return %c0_i32, %c0_i32_0, %c0_i32_1 : i32, i32, i32
  }
  func.func @transform_6(%arg0: i32) -> (i32, i32, i32) {
    %c0_i32 = arith.constant 0 : i32
    %c0_i32_0 = arith.constant 0 : i32
    %c0_i32_1 = arith.constant 0 : i32
    %c0_i32_2 = arith.constant 0 : i32
    return %c0_i32, %c0_i32_0, %c0_i32_1 : i32, i32, i32
  }
  func.func @transform_7(%arg0: i32) -> (i32, i32, i32) {
    %c0_i32 = arith.constant 0 : i32
    %c0_i32_0 = arith.constant 0 : i32
    %c0_i32_1 = arith.constant 0 : i32
    %c0_i32_2 = arith.constant 0 : i32
    return %c0_i32, %c0_i32_0, %c0_i32_1 : i32, i32, i32
  }
  func.func @transform_8(%arg0: i32) -> (i32, i32, i32) {
    %c0_i32 = arith.constant 0 : i32
    %c0_i32_0 = arith.constant 0 : i32
    %c0_i32_1 = arith.constant 0 : i32
    %c0_i32_2 = arith.constant 0 : i32
    return %c0_i32, %c0_i32_0, %c0_i32_1 : i32, i32, i32
  }
  func.func @transform_9(%arg0: i32) -> (i32, i32, i32) {
    %c0_i32 = arith.constant 0 : i32
    %c0_i32_0 = arith.constant 0 : i32
    %c0_i32_1 = arith.constant 0 : i32
    %c0_i32_2 = arith.constant 0 : i32
    return %c0_i32, %c0_i32_0, %c0_i32_1 : i32, i32, i32
  }
  func.func @transform_10(%arg0: i32) -> (i32, i32, i32) {
    %c0_i32 = arith.constant 0 : i32
    %c0_i32_0 = arith.constant 0 : i32
    %c0_i32_1 = arith.constant 0 : i32
    %c0_i32_2 = arith.constant 0 : i32
    return %c0_i32, %c0_i32_0, %c0_i32_1 : i32, i32, i32
  }
  func.func @transform_11(%arg0: i32) -> (i32, i32, i32) {
    %c0_i32 = arith.constant 0 : i32
    %c0_i32_0 = arith.constant 0 : i32
    %c0_i32_1 = arith.constant 0 : i32
    %c0_i32_2 = arith.constant 0 : i32
    return %c0_i32, %c0_i32_0, %c0_i32_1 : i32, i32, i32
  }
  func.func @transform_12(%arg0: i32) -> (i32, i32, i32) {
    %c0_i32 = arith.constant 0 : i32
    %c0_i32_0 = arith.constant 0 : i32
    %c0_i32_1 = arith.constant 0 : i32
    %c0_i32_2 = arith.constant 0 : i32
    return %c0_i32, %c0_i32_0, %c0_i32_1 : i32, i32, i32
  }
  func.func @transform_13(%arg0: i32) -> (i32, i32, i32) {
    %c0_i32 = arith.constant 0 : i32
    %c0_i32_0 = arith.constant 0 : i32
    %c0_i32_1 = arith.constant 0 : i32
    %c0_i32_2 = arith.constant 0 : i32
    return %c0_i32, %c0_i32_0, %c0_i32_1 : i32, i32, i32
  }
  func.func @transform_14(%arg0: i32) -> (i32, i32, i32) {
    %c0_i32 = arith.constant 0 : i32
    %c0_i32_0 = arith.constant 0 : i32
    %c0_i32_1 = arith.constant 0 : i32
    %c0_i32_2 = arith.constant 0 : i32
    return %c0_i32, %c0_i32_0, %c0_i32_1 : i32, i32, i32
  }
  func.func @transform_15(%arg0: i32) -> (i32, i32, i32) {
    %c0_i32 = arith.constant 0 : i32
    %c0_i32_0 = arith.constant 0 : i32
    %c0_i32_1 = arith.constant 0 : i32
    %c0_i32_2 = arith.constant 0 : i32
    return %c0_i32, %c0_i32_0, %c0_i32_1 : i32, i32, i32
  }
  func.func @transform_16(%arg0: i32) -> (i32, i32, i32) {
    %c0_i32 = arith.constant 0 : i32
    %c0_i32_0 = arith.constant 0 : i32
    %c0_i32_1 = arith.constant 0 : i32
    %c0_i32_2 = arith.constant 0 : i32
    return %c0_i32, %c0_i32_0, %c0_i32_1 : i32, i32, i32
  }
  func.func @transform_17(%arg0: i32) -> (i32, i32, i32) {
    %c0_i32 = arith.constant 0 : i32
    %c0_i32_0 = arith.constant 0 : i32
    %c0_i32_1 = arith.constant 0 : i32
    return %arg0, %c0_i32, %c0_i32_0 : i32, i32, i32
  }
}

</mosaic_0001>

<bundles_post_ra>
// kernel: tpu_custom_call.1
= control target key start
LH: loop header
LB: loop body
LE: loop exit
PB: predicated region body
PF: predicated region fallthrough
CT: control target
= control target key end

     0   :  { %s26801_s0 = inlined_call_operand.vmem [shape: f32[8,16,32], index: 0, kind: input, shape index: {}]   ;;  %s26802_s1 = inlined_call_operand.vmem [shape: f32[8,16,1], index: 1, kind: input, shape index: {}]   ;;  %s26803_s2 = inlined_call_operand.vmem [shape: f32[8,8,32], index: 2, kind: input, shape index: {}]   ;;  %s26804_s3 = inlined_call_operand.vmem [shape: bf16[32,32], index: 3, kind: input, shape index: {}]   ;;  %s26805_s4 = inlined_call_operand.vmem [shape: f32[1,32], index: 4, kind: input, shape index: {}]   ;;  %s26806_s5 = inlined_call_operand.vmem [shape: bf16[2,32,96], index: 5, kind: input, shape index: {}]   ;;  %s26807_s6 = inlined_call_operand.vmem [shape: f32[2,1,96], index: 6, kind: input, shape index: {}]   ;;  %s26808_s7 = inlined_call_operand.vmem [shape: f32[2,32,32], index: 7, kind: input, shape index: {}]   ;;  %s26809_s8 = inlined_call_operand.vmem [shape: f32[2,1,32], index: 8, kind: input, shape index: {}]   ;;  %s26810_s9 = inlined_call_operand.vmem [shape: f32[2,1,32], index: 9, kind: input, shape index: {}]   ;;  %s26811_s10 = inlined_call_operand.vmem [shape: f32[2,1,32], index: 10, kind: input, shape index: {}]   ;;  %s26812_s11 = inlined_call_operand.vmem [shape: bf16[2,32,2048], index: 11, kind: input, shape index: {}]   ;;  %s26813_s12 = inlined_call_operand.vmem [shape: f32[2,1,2048], index: 12, kind: input, shape index: {}]   ;;  %s26814_s13 = inlined_call_operand.vmem [shape: bf16[2,2048,32], index: 13, kind: input, shape index: {}]   ;;  %s26815_s14 = inlined_call_operand.vmem [shape: f32[2,1,32], index: 14, kind: input, shape index: {}]   ;;  %s26816_s15 = inlined_call_operand.vmem [shape: f32[2,1,32], index: 15, kind: input, shape index: {}]   ;;  %s26817_s16 = inlined_call_operand.vmem [shape: f32[2,1,32], index: 16, kind: input, shape index: {}]   ;;  %s26818_s17 = inlined_call_operand.hbm [shape: f32[8,8,32], index: 17, kind: output, shape index: {}]  }
   0x1   :  { %26870 = sst [smem:[#allocation36_spill]] %s26801_s0 }
   0x2   :  { %26871 = sst [smem:[#allocation37_spill]] %s26802_s1 }
   0x3   :  { %v21394_v0 = vld [vmem:[%s26804_s3 + $0x8] sm:$0xff]   ;;  %v21395_v1 = vld [vmem:[%s26804_s3] sm:$0xff]   ;;  %s26872_s0 = sld [smem:[#allocation36_spill]]  ;;  %vm105_vm0 = vcmask 261120   ;;  %v26821_v5 = vmov 0   ;;  %vm491_vm1 = vcmask 7168  }
   0x4   :  { %20562 = vmatprep.subr.bf16.mxu0 %v21394_v0  ;;  %21393 = vset.pattern.permute.xlu1 %v26821_v5  ;;  %s26873_s28 = sld [smem:[#allocation37_spill]]  ;;  %vm696_vm3 = vcmask 64512  }
   0x5   :  { %20563 = vmatpush3.bf16.msra.mxu0 %v21394_v0  ;;  %21392 = vset.pattern.permute.xlu0 %v26821_v5 }
   0x6   :  { %20564 = vmatprep.subr.bf16.mxu0 %v21395_v1 }
   0x9   :  { %v58_v2 = vld [vmem:[%s26872_s0] sm:$0xff]  ;;  %v59_v3 = vld [vmem:[%s26872_s0 + $0x8] sm:$0xff]  ;;  %v60_v4 = vld [vmem:[%s26872_s0 + $0x10] sm:$0xff]  ;;  %20565 = vmatpush3.bf16.msra.mxu0 %v21395_v1 }
   0xa   :  { %v74_v6 = vpack.c.bf16 %v59_v3, %v58_v2  ;;  %v61_v7 = vld [vmem:[%s26872_s0 + $0x18] sm:$0xff]  ;;  %v62_v8 = vld [vmem:[%s26872_s0 + $0x20] sm:$0xff]  ;;  %v63_v9 = vld [vmem:[%s26872_s0 + $0x28] sm:$0xff] }
   0xb   :  { %v22183_v10 = vld [vmem:[%s26872_s0 + $0x30] sm:$0xff]  ;;  %v22188_v11 = vld [vmem:[%s26872_s0 + $0x38] sm:$0xff]  ;;  %v22193_v12 = vld [vmem:[%s26872_s0 + $0x40] sm:$0xff]  ;;  %v75_v16 = vpack.c.bf16 %v61_v7, %v60_v4  ;;  %v76_v19 = vpack.c.bf16 %v63_v9, %v62_v8 }
   0xc   :  { %20566 = vmatprep.mubr.msk.bf16.mxu0 %vm105_vm0, %v74_v6  ;;  %v22199_v13 = vld [vmem:[%s26872_s0 + $0x48] sm:$0xff]  ;;  %v22204_v14 = vld [vmem:[%s26872_s0 + $0x50] sm:$0xff]  ;;  %v22209_v15 = vld [vmem:[%s26872_s0 + $0x58] sm:$0xff]  ;;  %v77_v20 = vpack.c.bf16 %v22188_v11, %v22183_v10 }
   0xd   :  { %v22214_v17 = vld [vmem:[%s26872_s0 + $0x60] sm:$0xff]  ;;  %v22219_v18 = vld [vmem:[%s26872_s0 + $0x68] sm:$0xff]  ;;  %v309_v21 = vld [vmem:[%s26873_s28 + $0x10] sm:$0xff]  ;;  %v78_v23 = vpack.c.bf16 %v22199_v13, %v22193_v12  ;;  %v79_v24 = vpack.c.bf16 %v22209_v15, %v22204_v14  ;;  %20567 = vmatmul.mubr.msk.bf16.vlgmr.msra.gmra.mxu0 %vm105_vm0, %v75_v16 }
   0xe   :  { %v307_v22 = vld [vmem:[%s26873_s28] sm:$0xff]  ;;  %335 = vperm.xlu1 %21393, %v309_v21   ;;  %v501_v25 = vsel %vm491_vm1, %v309_v21, 0.0  ;;  %v310_v27 = vld [vmem:[%s26873_s28 + $0x18] sm:$0xff]  ;;  %v308_v28 = vld [vmem:[%s26873_s28 + $0x8] sm:$0xff]  ;;  %v80_v30 = vpack.c.bf16 %v22219_v18, %v22214_v17  ;;  %20570 = vmatprep.mubr.msk.bf16.mxu0 %vm105_vm0, %v76_v19 }
   0xf   :  { %325 = vperm.xlu0 %21392, %v307_v22   ;;  %v492_v26 = vsel %vm491_vm1, %v307_v22, 0.0  ;;  %v312_v29 = vld [vmem:[%s26873_s28 + $0x28] sm:$0xff]  ;;  %v502_v31 = vsel %vm491_vm1, %v310_v27, 0.0  ;;  %v493_v32 = vsel %vm491_vm1, %v308_v28, 0.0  ;;  %v311_v34 = vld [vmem:[%s26873_s28 + $0x20] sm:$0xff]  ;;  %v314_v35 = vld [vmem:[%s26873_s28 + $0x38] sm:$0xff] }
  0x10   :  { %v511_v33 = vsel %vm491_vm1, %v312_v29, 0.0  ;;  %v313_v36 = vld [vmem:[%s26873_s28 + $0x30] sm:$0xff]  ;;  %v503_v37 = vadd.f32 %v502_v31, %v501_v25  ;;  %v494_v38 = vadd.f32 %v493_v32, %v492_v26  ;;  %v510_v39 = vsel %vm491_vm1, %v311_v34, 0.0  ;;  %v22264_v41 = vld [vmem:[%s26873_s28 + $0x48] sm:$0xff]  ;;  %v22269_v42 = vld [vmem:[%s26873_s28 + $0x40] sm:$0xff] }
  0x11   :  { %v520_v40 = vsel %vm491_vm1, %v314_v35, 0.0  ;;  %v22274_v43 = vld [vmem:[%s26873_s28 + $0x58] sm:$0xff]  ;;  %v512_v44 = vadd.f32 %v511_v33, %v510_v39  ;;  %v519_v45 = vsel %vm491_vm1, %v313_v36, 0.0  ;;  %v529_v46 = vsel %vm491_vm1, %v22264_v41, 0.0  ;;  %v22285_v48 = vld [vmem:[%s26873_s28 + $0x50] sm:$0xff]  ;;  %v22290_v49 = vld [vmem:[%s26873_s28 + $0x68] sm:$0xff] }
  0x12   :  { %v528_v47 = vsel %vm491_vm1, %v22269_v42, 0.0  ;;  %v22295_v50 = vld [vmem:[%s26873_s28 + $0x60] sm:$0xff]  ;;  %340 = vperm.xlu1 %21393, %v310_v27   ;;  %v504_v51 = vrot.slane %v503_v37, 4  ;;  %v495_v52 = vrot.slane %v494_v38, 4  ;;  %v521_v53 = vadd.f32 %v520_v40, %v519_v45  ;;  %v22300_v55 = vld [vmem:[%s26873_s28 + $0x78] sm:$0xff]  ;;  %v22305_v56 = vld [vmem:[%s26873_s28 + $0x70] sm:$0xff] }
  0x13   :  { %330 = vperm.xlu0 %21392, %v308_v28   ;;  %v530_v54 = vadd.f32 %v529_v46, %v528_v47  ;;  %v513_v57 = vrot.slane %v512_v44, 4  ;;  %v538_v58 = vsel %vm491_vm1, %v22274_v43, 0.0  ;;  %v537_v59 = vsel %vm491_vm1, %v22285_v48, 0.0 }
  0x14   :  { %v547_v60 = vsel %vm491_vm1, %v22290_v49, 0.0  ;;  %v505_v61 = vadd.f32 %v504_v51, %v503_v37  ;;  %v496_v62 = vadd.f32 %v495_v52, %v494_v38  ;;  %v522_v63 = vrot.slane %v521_v53, 4 }
  0x15   :  { %v531_v0 = vrot.slane %v530_v54, 4  ;;  %v514_v1 = vadd.f32 %v513_v57, %v512_v44  ;;  %v539_v2 = vadd.f32 %v538_v58, %v537_v59  ;;  %v546_v3 = vsel %vm491_vm1, %v22295_v50, 0.0  ;;  %20571 = vmatmul.mubr.msk.bf16.gmra.mxu0 %vm105_vm0, %v77_v20 }
  0x16   :  { %v556_v4 = vsel %vm491_vm1, %v22300_v55, 0.0  ;;  %v506_v6 = vrot.slane %v505_v61, 2  ;;  %v497_v7 = vrot.slane %v496_v62, 2  ;;  %350 = vperm.xlu1 %21393, %v312_v29   ;;  %v523_v8 = vadd.f32 %v522_v63, %v521_v53  ;;  %20574 = vmatprep.mubr.msk.bf16.mxu0 %vm105_vm0, %v78_v23 }
  0x17   :  { %345 = vperm.xlu0 %21392, %v311_v34   ;;  %v532_v9 = vadd.f32 %v531_v0, %v530_v54  ;;  %v515_v16 = vrot.slane %v514_v1, 2  ;;  %v540_v19 = vrot.slane %v539_v2, 4  ;;  %v548_v21 = vadd.f32 %v547_v60, %v546_v3 }
  0x18   :  { %v555_v22 = vsel %vm491_vm1, %v22305_v56, 0.0  ;;  %v507_v25 = vadd.f32 %v506_v6, %v505_v61  ;;  %v498_v26 = vadd.f32 %v497_v7, %v496_v62  ;;  %v524_v27 = vrot.slane %v523_v8, 2 }
  0x19   :  { %v533_v28 = vrot.slane %v532_v9, 2  ;;  %v516_v29 = vadd.f32 %v515_v16, %v514_v1  ;;  %v541_v31 = vadd.f32 %v540_v19, %v539_v2  ;;  %v549_v32 = vrot.slane %v548_v21, 4 }
  0x1a   :  { %v557_v33 = vadd.f32 %v556_v4, %v555_v22  ;;  %v508_v34 = vrot.slane %v507_v25, 1  ;;  %v499_v37 = vrot.slane %v498_v26, 1  ;;  %360 = vperm.xlu1 %21393, %v314_v35   ;;  %v525_v38 = vadd.f32 %v524_v27, %v523_v8 }
  0x1b   :  { %355 = vperm.xlu0 %21392, %v313_v36   ;;  %v534_v10 = vadd.f32 %v533_v28, %v532_v9  ;;  %v517_v11 = vrot.slane %v516_v29, 1  ;;  %v542_v20 = vrot.slane %v541_v31, 2  ;;  %v550_v39 = vadd.f32 %v549_v32, %v548_v21  ;;  %v72_v36 = vld [vmem:[%s26872_s0 + $0x70] sm:$0xff]  ;;  %v22365_v21 = vld [vmem:[%s26805_s4] ss:$0 sm:$0xff] }
  0x1c   :  { %v558_v40 = vrot.slane %v557_v33, 4  ;;  %v509_v44 = vadd.f32 %v508_v34, %v507_v25  ;;  %v500_v45 = vadd.f32 %v499_v37, %v498_v26  ;;  %v526_v46 = vrot.slane %v525_v38, 1 }
  0x1d   :  { %v535_v12 = vrot.slane %v534_v10, 1  ;;  %v518_v13 = vadd.f32 %v517_v11, %v516_v29  ;;  %v543_v23 = vadd.f32 %v542_v20, %v541_v31  ;;  %v551_v47 = vrot.slane %v550_v39, 2  ;;  %20575 = vmatmul.mubr.msk.bf16.gmra.mxu0 %vm105_vm0, %v79_v24 }
  0x1e   :  { %v559_v51 = vadd.f32 %v558_v40, %v557_v33  ;;  %v565_v52 = vmax.f32 %v509_v44, 1.0  ;;  %v564_v53 = vmax.f32 %v500_v45, 1.0  ;;  %v527_v54 = vadd.f32 %v526_v46, %v525_v38  ;;  %370 = vperm.xlu1 %21393, %v22264_v41   ;;  %20578 = vmatprep.mubr.msk.bf16.mxu0 %vm105_vm0, %v80_v30  ;;  %v73_v41 = vld [vmem:[%s26872_s0 + $0x78] sm:$0xff] }
  0x1f   :  { %v536_v35 = vadd.f32 %v535_v12, %v534_v10  ;;  %365 = vperm.xlu0 %21392, %v22269_v42   ;;  %v566_v57 = vmax.f32 %v518_v13, 1.0  ;;  %v544_v58 = vrot.slane %v543_v23, 1  ;;  %v552_v59 = vadd.f32 %v551_v47, %v550_v39 }
  0x20   :  { %v560_v60 = vrot.slane %v559_v51, 2  ;;  %21656 = vrcp.f32 %v565_v52  ;;  %v567_v61 = vmax.f32 %v527_v54, 1.0  ;;  %v81_v17 = vpack.c.bf16 %v73_v41, %v72_v36 }
  0x21   :  { %v568_v62 = vmax.f32 %v536_v35, 1.0  ;;  %21658 = vrcp.f32 %v564_v53  ;;  %v545_v42 = vadd.f32 %v544_v58, %v543_v23  ;;  %v553_v63 = vrot.slane %v552_v59, 1 }
  0x22   :  { %v561_v0 = vadd.f32 %v560_v60, %v559_v51  ;;  %21660 = vrcp.f32 %v566_v57  ;;  %380 = vperm.xlu1 %21393, %v22274_v43   ;;  %v26823_v16 = vmov 0.0  }
  0x23   :  { %375 = vperm.xlu0 %21392, %v22285_v48   ;;  %21662 = vrcp.f32 %v567_v61  ;;  %v569_v14 = vmax.f32 %v545_v42, 1.0  ;;  %v554_v15 = vadd.f32 %v553_v63, %v552_v59  ;;  %20618 = vmatprep.subr.mxu0 %v26823_v16 }
  0x24   :  { %v562_v24 = vrot.slane %v561_v0, 1 }
  0x25   :  { %21664 = vrcp.f32 %v569_v14  ;;  %v570_v30 = vmax.f32 %v554_v15, 1.0  ;;  %20579 = vmatmul.mubr.msk.bf16.gmra.mxu0 %vm105_vm0, %v81_v17 }
  0x26   :  { %v563_v18 = vadd.f32 %v562_v24, %v561_v0  ;;  %390 = vperm.xlu1 %21393, %v22290_v49   ;;  %21666 = vrcp.f32 %v568_v62 }
  0x27   :  { %385 = vperm.xlu0 %21392, %v22295_v50  }
  0x28   :  { %v571_v1 = vmax.f32 %v563_v18, 1.0 }
  0x2a   :  { %400 = vperm.xlu1 %21393, %v22300_v55   ;;  %21668 = vrcp.f32 %v571_v1  ;;  %v628_v55 = vlaneseq }
  0x2b   :  { %395 = vperm.xlu0 %21392, %v22305_v56   ;;  %21670 = vrcp.f32 %v570_v30 }
  0x2c   :  { %v22350_v7 = vand.u32 127, %v628_v55  ;;  %v22353_v8 = vshrl.u32 %v628_v55, 7 }
  0x2d   :  { %v21657_v43 = vpop.eup %21656 }
  0x2e   :  { %v21659_v48 = vpop.eup %21658  ;;  %587 = vperm.xlu1 %21393, %v21657_v43   ;;  %v639_v56 = vmul.u32 8, %v22350_v7  ;;  %26874 = vst [vmem:[#allocation5_spill] sm:$0xff] %v22353_v8 }
  0x2f   :  { %v21661_v2 = vpop.eup %21660  ;;  %582 = vperm.xlu0 %21392, %v21659_v48  }
  0x30   :  { %v21663_v3 = vpop.eup %21662  ;;  %v22355_v9 = vadd.s32 6, %v639_v56 }
  0x32   :  { %597 = vperm.xlu1 %21393, %v21663_v3   ;;  %v21665_v49 = vpop.eup %21664  ;;  %vm641_vm2 = vcmp.eq.s32.totalorder %v22353_v8, %v22355_v9 }
  0x33   :  { %592 = vperm.xlu0 %21392, %v21661_v2   ;;  %v21667_v50 = vpop.eup %21666  ;;  %v18576_v19 = vsel %vm641_vm2, 1.0, %v26823_v16 }
  0x34   :  { %20584 = vmatprep.mubr.msk.f32.mxu1 %vm696_vm3, %v18576_v19 }
  0x36   :  { %607 = vperm.xlu1 %21393, %v21665_v49  }
  0x37   :  { %v21669_v4 = vpop.eup %21668  ;;  %602 = vperm.xlu0 %21392, %v21667_v50  }
  0x38   :  { %v21671_v6 = vpop.eup %21670 }
  0x3a   :  { %617 = vperm.xlu1 %21393, %v21669_v4  }
  0x3b   :  { %612 = vperm.xlu0 %21392, %v21671_v6  }
  0x3c   :  { %22 = vsyncpa [#allocation3], 0  ;;  %vm681_vm4 = vcmask 1041409   ;;  %vm683_vm5 = vcmask 1042434   ;;  %vm685_vm6 = vcmask 1043459   ;;  %vm687_vm7 = vcmask 1044484  }
  0x3d   :  { %vm689_vm8 = vcmask 1045509   ;;  %vm691_vm9 = vcmask 1046534   ;;  %vm693_vm10 = vcmask 1047559   ;;  %s22049_s23 = smov 96   ;;  %s22050_s24 = smov 64  }
  0x3e   :  { %s22052_s25 = smov 88   ;;  %s22053_s26 = smov 120  }
  0x3f   :  { %s22054_s27 = smov 56   ;;  %s22055_s29 = smov 80  }
  0x40   :  { %s22056_s30 = smov 112   ;;  %s22057_s0 = smov 48  }
  0x41   :  { %s26833_s3 = smov 104   ;;  %s26831_s4 = smov 72  }
  0x89   :  { %v22376_v39 = vpop.permute.xlu1 %335 }
  0x8a   :  { %v22371_v10 = vpop.permute.xlu0 %325 }
  0x8d   :  { %v341_v53 = vpop.permute.xlu1 %340 }
  0x8e   :  { %v331_v47 = vpop.permute.xlu0 %330 }
  0x91   :  { %v22400_v0 = vpop.permute.xlu1 %350 }
  0x92   :  { %v22395_v41 = vpop.permute.xlu0 %345 }
  0xcd   :  { %v20568_v22 = vpop.f32.mrf.mxu0 }
  0xce   :  { %v173_v25 = vadd.f32 %v20568_v22, %v22365_v21 }
  0xcf   :  { %v164_v26 = vpop.f32.mrf.mxu0 }
  0xd0   :  { %v165_v27 = vadd.f32 %v22365_v21, %v164_v26  ;;  %v245_v28 = vmul.f32 0.70710677, %v173_v25  ;;  %v229_v3 = vmul.f32 0.5, %v173_v25  ;;  %v356_v26 = vpop.permute.xlu0 %355 }
  0xd1   :  { %v20569_v29 = vpop.f32.mrf.mxu0 }
  0xd2   :  { %v243_v31 = vmul.f32 0.70710677, %v165_v27  ;;  %v176_v32 = vadd.f32 %v20569_v29, %v22365_v21  ;;  %v227_v17 = vmul.f32 0.5, %v165_v27 }
  0xd3   :  { %v167_v33 = vpop.f32.mrf.mxu0 }
  0xd4   :  { %21672 = verf.f32 %v243_v31  ;;  %v246_v34 = vmul.f32 0.70710677, %v176_v32  ;;  %v168_v37 = vadd.f32 %v22365_v21, %v167_v33  ;;  %v230_v49 = vmul.f32 0.5, %v176_v32  ;;  %v361_v31 = vpop.permute.xlu1 %360 }
  0xd5   :  { %21674 = verf.f32 %v245_v28  ;;  %v20572_v38 = vpop.f32.mrf.mxu0 }
  0xd6   :  { %21676 = verf.f32 %v246_v34  ;;  %v244_v11 = vmul.f32 0.70710677, %v168_v37  ;;  %v22374_v20 = vadd.f32 %v20572_v38, %v22365_v21  ;;  %v228_v50 = vmul.f32 0.5, %v168_v37 }
  0xd7   :  { %v180_v40 = vpop.f32.mrf.mxu0 }
  0xd8   :  { %21678 = verf.f32 %v244_v11  ;;  %v249_v44 = vmul.f32 0.70710677, %v22374_v20  ;;  %v181_v45 = vadd.f32 %v22365_v21, %v180_v40 }
  0xd9   :  { %v20573_v46 = vpop.f32.mrf.mxu0 }
  0xda   :  { %v247_v12 = vmul.f32 0.70710677, %v181_v45  ;;  %v22381_v13 = vadd.f32 %v20573_v46, %v22365_v21  ;;  %21680 = verf.f32 %v249_v44  ;;  %v231_v37 = vmul.f32 0.5, %v181_v45 }
  0xdb   :  { %v183_v23 = vpop.f32.mrf.mxu0 }
  0xdc   :  { %21682 = verf.f32 %v247_v12  ;;  %v250_v51 = vmul.f32 0.70710677, %v22381_v13  ;;  %v22385_v52 = vadd.f32 %v22365_v21, %v183_v23 }
  0xdd   :  { %v20576_v54 = vpop.f32.mrf.mxu0 }
  0xde   :  { %21684 = verf.f32 %v250_v51  ;;  %v248_v35 = vmul.f32 0.70710677, %v22385_v52  ;;  %v22389_v36 = vadd.f32 %v20576_v54, %v22365_v21  ;;  %v234_v54 = vmul.f32 0.5, %v22381_v13  ;;  %v371_v13 = vpop.permute.xlu1 %370 }
  0xdf   :  { %v196_v57 = vpop.f32.mrf.mxu0  ;;  %v232_v45 = vmul.f32 0.5, %v22385_v52 }
  0xe0   :  { %21686 = verf.f32 %v248_v35  ;;  %v253_v58 = vmul.f32 0.70710677, %v22389_v36  ;;  %v22393_v60 = vadd.f32 %v22365_v21, %v196_v57 }
  0xe1   :  { %v21673_v59 = vpop.eup %21672  ;;  %v20577_v61 = vpop.f32.mrf.mxu0 }
  0xe2   :  { %v21675_v62 = vpop.eup %21674  ;;  %21688 = verf.f32 %v253_v58  ;;  %v22398_v42 = vadd.f32 %v20577_v61, %v22365_v21  ;;  %v275_v14 = vadd.f32 1.0, %v21673_v59  ;;  %v251_v15 = vmul.f32 0.70710677, %v22393_v60 }
  0xe3   :  { %v21677_v63 = vpop.eup %21676  ;;  %v199_v24 = vpop.f32.mrf.mxu0  ;;  %v277_v1 = vadd.f32 1.0, %v21675_v62 }
  0xe4   :  { %v278_v18 = vadd.f32 1.0, %v21677_v63  ;;  %21690 = verf.f32 %v251_v15  ;;  %v254_v43 = vmul.f32 0.70710677, %v22398_v42  ;;  %v22405_v48 = vadd.f32 %v22365_v21, %v199_v24 }
  0xe5   :  { %v21679_v30 = vpop.eup %21678  ;;  %v20580_v2 = vpop.f32.mrf.mxu0  ;;  %v291_v6 = vmul.f32 %v275_v14, %v227_v17  ;;  %v293_v33 = vmul.f32 %v277_v1, %v229_v3 }
  0xe6   :  { %v276_v4 = vadd.f32 1.0, %v21679_v30  ;;  %21692 = verf.f32 %v254_v43  ;;  %v252_v55 = vmul.f32 0.70710677, %v22405_v48  ;;  %v22409_v56 = vadd.f32 %v20580_v2, %v22365_v21 }
  0xe7   :  { %v212_v19 = vpop.f32.mrf.mxu0  ;;  %v21681_v22 = vpop.eup %21680  ;;  %v294_v27 = vmul.f32 %v278_v18, %v230_v49  ;;  %v403_v44 = vmul.f32 %v22371_v10, %v291_v6  ;;  %v405_v58 = vmul.f32 %v22376_v39, %v293_v33 }
  0xe8   :  { %v292_v28 = vmul.f32 %v276_v4, %v228_v50  ;;  %21694 = verf.f32 %v252_v55  ;;  %v257_v25 = vmul.f32 0.70710677, %v22409_v56  ;;  %v22413_v32 = vadd.f32 %v22365_v21, %v212_v19  ;;  %v366_v10 = vpop.permute.xlu0 %365 }
  0xe9   :  { %v21683_v29 = vpop.eup %21682  ;;  %v20581_v11 = vpop.f32.mrf.mxu0  ;;  %v281_v46 = vadd.f32 1.0, %v21681_v22  ;;  %v406_v23 = vmul.f32 %v341_v53, %v294_v27  ;;  %v419_v15 = vsel %vm105_vm0, %v403_v44, 0.0  ;;  %v428_v3 = vsel %vm105_vm0, %v405_v58, 0.0 }
  0xea   :  { %v404_v34 = vmul.f32 %v331_v47, %v292_v28  ;;  %v279_v38 = vadd.f32 1.0, %v21683_v29  ;;  %21696 = verf.f32 %v257_v25  ;;  %v255_v12 = vmul.f32 0.70710677, %v22413_v32 }
  0xeb   :  { %v21685_v40 = vpop.eup %21684  ;;  %v233_v47 = vmul.f32 0.5, %v22374_v20  ;;  %v22422_v59 = vadd.f32 %v20581_v11, %v22365_v21  ;;  %v215_v53 = vpop.f32.mrf.mxu0  ;;  %v429_v20 = vsel %vm105_vm0, %v406_v23, 0.0  ;;  %v237_v50 = vmul.f32 0.5, %v22389_v36 }
  0xec   :  { %v295_v51 = vmul.f32 %v279_v38, %v231_v37  ;;  %v282_v35 = vadd.f32 1.0, %v21685_v40  ;;  %v420_v61 = vsel %vm105_vm0, %v404_v34, 0.0  ;;  %21698 = verf.f32 %v255_v12  ;;  %v376_v22 = vpop.permute.xlu0 %375 }
  0xed   :  { %v21687_v57 = vpop.eup %21686  ;;  %v297_v24 = vmul.f32 %v281_v46, %v233_v47  ;;  %v258_v39 = vmul.f32 0.70710677, %v22422_v59  ;;  %v421_v30 = vadd.f32 %v420_v61, %v419_v15  ;;  %v22430_v43 = vadd.f32 %v22365_v21, %v215_v53 }
  0xee   :  { %v298_v62 = vmul.f32 %v282_v35, %v234_v54  ;;  %v280_v63 = vadd.f32 1.0, %v21687_v57  ;;  %v407_v52 = vmul.f32 %v22395_v41, %v295_v51  ;;  %v430_v4 = vadd.f32 %v429_v20, %v428_v3 }
  0xef   :  { %v21689_v14 = vpop.eup %21688  ;;  %21700 = verf.f32 %v258_v39  ;;  %v409_v6 = vmul.f32 %v356_v26, %v297_v24  ;;  %v235_v55 = vmul.f32 0.5, %v22393_v60  ;;  %v256_v29 = vmul.f32 0.70710677, %v22430_v43 }
  0xf0   :  { %v296_v17 = vmul.f32 %v280_v63, %v232_v45  ;;  %v285_v18 = vadd.f32 1.0, %v21689_v14  ;;  %v410_v1 = vmul.f32 %v361_v31, %v298_v62  ;;  %v437_v27 = vsel %vm105_vm0, %v407_v52, 0.0  ;;  %v381_v31 = vpop.permute.xlu1 %380  ;;  %v386_v35 = vpop.permute.xlu0 %385 }
  0xf1   :  { %v21691_v2 = vpop.eup %21690  ;;  %v238_v26 = vmul.f32 0.5, %v22398_v42  ;;  %21702 = verf.f32 %v256_v29  ;;  %v446_v37 = vsel %vm105_vm0, %v409_v6, 0.0  ;;  %v431_v38 = vrot.slane %v430_v4, 4 }
  0xf2   :  { %v408_v49 = vmul.f32 %v22400_v0, %v296_v17  ;;  %v283_v41 = vadd.f32 1.0, %v21691_v2  ;;  %v301_v21 = vmul.f32 %v285_v18, %v237_v50  ;;  %v447_v33 = vsel %vm105_vm0, %v410_v1, 0.0 }
  0xf3   :  { %v21693_v19 = vpop.eup %21692  ;;  %v422_v0 = vrot.slane %v421_v30, 4  ;;  %v236_v40 = vmul.f32 0.5, %v22405_v48  ;;  %v448_v46 = vadd.f32 %v447_v33, %v446_v37  ;;  %v432_v62 = vadd.f32 %v431_v38, %v430_v4 }
  0xf4   :  { %v438_v28 = vsel %vm105_vm0, %v408_v49, 0.0  ;;  %v299_v34 = vmul.f32 %v283_v41, %v235_v55  ;;  %v286_v60 = vadd.f32 1.0, %v21693_v19  ;;  %v413_v12 = vmul.f32 %v376_v22, %v301_v21  ;;  %v391_v61 = vpop.permute.xlu1 %390  ;;  %v396_v49 = vpop.permute.xlu0 %395 }
  0xf5   :  { %v439_v25 = vadd.f32 %v438_v28, %v437_v27  ;;  %v21695_v36 = vpop.eup %21694  ;;  %v423_v54 = vadd.f32 %v422_v0, %v421_v30  ;;  %v241_v53 = vmul.f32 0.5, %v22409_v56  ;;  %v449_v48 = vrot.slane %v448_v46, 4 }
  0xf6   :  { %v302_v23 = vmul.f32 %v286_v60, %v238_v26  ;;  %v284_v51 = vadd.f32 1.0, %v21695_v36  ;;  %v411_v57 = vmul.f32 %v366_v10, %v299_v34  ;;  %v464_v14 = vsel %vm105_vm0, %v413_v12, 0.0 }
  0xf7   :  { %v440_v11 = vrot.slane %v439_v25, 4  ;;  %v21697_v44 = vpop.eup %21696  ;;  %v424_v39 = vrot.slane %v423_v54, 2  ;;  %v433_v1 = vrot.slane %v432_v62, 2  ;;  %v239_v56 = vmul.f32 0.5, %v22413_v32 }
  0xf8   :  { %v414_v58 = vmul.f32 %v381_v31, %v302_v23  ;;  %v300_v47 = vmul.f32 %v284_v51, %v236_v40  ;;  %v289_v45 = vadd.f32 1.0, %v21697_v44  ;;  %v455_v10 = vsel %vm105_vm0, %v411_v57, 0.0  ;;  %v401_v55 = vpop.permute.xlu1 %400 }
  0xf9   :  { %v21699_v42 = vpop.eup %21698  ;;  %v441_v63 = vadd.f32 %v440_v11, %v439_v25  ;;  %v450_v50 = vadd.f32 %v449_v48, %v448_v46  ;;  %v242_v6 = vmul.f32 0.5, %v22422_v59  ;;  %v425_v41 = vadd.f32 %v424_v39, %v423_v54  ;;  %v583_v59 = vpop.permute.xlu0 %582 }
  0xfa   :  { %v465_v15 = vsel %vm105_vm0, %v414_v58, 0.0  ;;  %v412_v24 = vmul.f32 %v371_v13, %v300_v47  ;;  %v305_v18 = vmul.f32 %v289_v45, %v241_v53  ;;  %v287_v30 = vadd.f32 1.0, %v21699_v42 }
  0xfb   :  { %v466_v20 = vadd.f32 %v465_v15, %v464_v14  ;;  %v442_v2 = vrot.slane %v441_v63, 2  ;;  %v434_v29 = vadd.f32 %v433_v1, %v432_v62  ;;  %v240_v0 = vmul.f32 0.5, %v22430_v43 }
  0xfc   :  { %v21701_v52 = vpop.eup %21700  ;;  %v456_v17 = vsel %vm105_vm0, %v412_v24, 0.0  ;;  %v417_v22 = vmul.f32 %v396_v49, %v305_v18  ;;  %v303_v27 = vmul.f32 %v287_v30, %v239_v56  ;;  %v451_v25 = vrot.slane %v450_v50, 2  ;;  %v588_v44 = vpop.permute.xlu1 %587 }
  0xfd   :  { %v457_v3 = vadd.f32 %v456_v17, %v455_v10  ;;  %v467_v4 = vrot.slane %v466_v20, 4  ;;  %v290_v13 = vadd.f32 1.0, %v21701_v52  ;;  %v443_v31 = vadd.f32 %v442_v2, %v441_v63  ;;  %v593_v15 = vpop.permute.xlu0 %592 }
  0xfe   :  { %v21703_v21 = vpop.eup %21702  ;;  %v426_v26 = vrot.slane %v425_v41, 1  ;;  %v482_v37 = vsel %vm105_vm0, %v417_v22, 0.0  ;;  %v415_v38 = vmul.f32 %v386_v35, %v303_v27  ;;  %v435_v51 = vrot.slane %v434_v29, 1 }
  0xff   :  { %v458_v19 = vrot.slane %v457_v3, 4  ;;  %v306_v28 = vmul.f32 %v290_v13, %v242_v6  ;;  %v468_v32 = vadd.f32 %v467_v4, %v466_v20  ;;  %v288_v34 = vadd.f32 1.0, %v21703_v21 }
 0x100   :  { %v444_v46 = vrot.slane %v443_v31, 1  ;;  %v452_v54 = vadd.f32 %v451_v25, %v450_v50  ;;  %v427_v47 = vadd.f32 %v426_v26, %v425_v41  ;;  %v473_v45 = vsel %vm105_vm0, %v415_v38, 0.0  ;;  %v598_v39 = vpop.permute.xlu1 %597 }
 0x101   :  { %v459_v33 = vadd.f32 %v458_v19, %v457_v3  ;;  %v418_v36 = vmul.f32 %v401_v55, %v306_v28  ;;  %v304_v40 = vmul.f32 %v288_v34, %v240_v0  ;;  %v469_v43 = vrot.slane %v468_v32, 2  ;;  %v603_v50 = vpop.permute.xlu0 %602 }
 0x102   :  { %v445_v62 = vadd.f32 %v444_v46, %v443_v31  ;;  %v436_v14 = vadd.f32 %v435_v51, %v434_v29  ;;  %v453_v48 = vrot.slane %v452_v54, 1  ;;  %v620_v10 = vmul.f32 %v583_v59, %v427_v47  ;;  %v21396_v47 = vld [vmem:[%s26806_s5 + $0x8] sm:$0xff]  }
 0x103   :  { %v460_v60 = vrot.slane %v459_v33, 2  ;;  %v483_v11 = vsel %vm105_vm0, %v418_v36, 0.0  ;;  %v416_v57 = vmul.f32 %v391_v61, %v304_v40  ;;  %v470_v24 = vadd.f32 %v469_v43, %v468_v32 }
 0x104   :  { %v484_v23 = vadd.f32 %v483_v11, %v482_v37  ;;  %v622_v61 = vmul.f32 %v593_v15, %v445_v62  ;;  %v621_v1 = vmul.f32 %v588_v44, %v436_v14  ;;  %v454_v2 = vadd.f32 %v453_v48, %v452_v54  ;;  %v608_v13 = vpop.permute.xlu1 %607  ;;  %v665_v62 = vld [vmem:[%s26803_s2] sm:$0xff]  ;;  %v668_v14 = vld [vmem:[%s26803_s2 + $0x18] sm:$0xff]  ;;  %v667_v15 = vld [vmem:[%s26803_s2 + $0x10] sm:$0xff] }
 0x105   :  { %v461_v12 = vadd.f32 %v460_v60, %v459_v33  ;;  %v474_v42 = vsel %vm105_vm0, %v416_v57, 0.0  ;;  %v471_v3 = vrot.slane %v470_v24, 1  ;;  %v630_v28 = vadd.s32 8, %v22353_v8  ;;  %v613_v32 = vpop.permute.xlu0 %612 }
 0x106   :  { %v485_v58 = vrot.slane %v484_v23, 4  ;;  %v475_v35 = vadd.f32 %v474_v42, %v473_v45  ;;  %v682_v49 = vsel %vm681_vm4, %v621_v1, %v620_v10  ;;  %v623_v19 = vmul.f32 %v598_v39, %v454_v2  ;;  %v21397_v45 = vld [vmem:[%s26806_s5] sm:$0xff]   ;;  %v672_v2 = vld [vmem:[%s26803_s2 + $0x38] sm:$0xff] }
 0x107   :  { %v462_v63 = vrot.slane %v461_v12, 1  ;;  %v684_v6 = vsel %vm683_vm5, %v622_v61, %v682_v49  ;;  %v472_v22 = vadd.f32 %v471_v3, %v470_v24  ;;  %v631_v31 = vadd.s32 16, %v22353_v8  ;;  %v671_v49 = vld [vmem:[%s26803_s2 + $0x30] sm:$0xff] }
 0x108   :  { %v486_v53 = vadd.f32 %v485_v58, %v484_v23  ;;  %v476_v20 = vrot.slane %v475_v35, 4  ;;  %v686_v21 = vsel %vm685_vm6, %v623_v19, %v684_v6  ;;  %v618_v36 = vpop.permute.xlu1 %617  ;;  %vm642_vm11 = vcmp.eq.s32.totalorder %v630_v28, %v22355_v9  ;;  %v18592_v19 = vld [vmem:[%s26807_s6] ss:$0 sm:$0xff] }
 0x109   :  { %v463_v18 = vadd.f32 %v462_v63, %v461_v12  ;;  %v625_v25 = vmul.f32 %v608_v13, %v472_v22  ;;  %v632_v26 = vadd.s32 24, %v22353_v8  ;;  %vm643_vm12 = vcmp.eq.s32.totalorder %v631_v31, %v22355_v9 }
 0x10a   :  { %v487_v52 = vrot.slane %v486_v53, 2  ;;  %v477_v17 = vadd.f32 %v476_v20, %v475_v35  ;;  %v633_v37 = vadd.s32 32, %v22353_v8  ;;  %v18577_v40 = vsel %vm642_vm11, 1.0, %v26823_v16  ;;  %v670_v20 = vld [vmem:[%s26803_s2 + $0x28] sm:$0xff] }
 0x10b   :  { %v624_v41 = vmul.f32 %v603_v50, %v463_v18  ;;  %v18578_v44 = vsel %vm643_vm12, 1.0, %v26823_v16  ;;  %vm644_vm13 = vcmp.eq.s32.totalorder %v632_v26, %v22355_v9  ;;  %v634_v46 = vadd.s32 40, %v22353_v8 }
 0x10c   :  { %v488_v30 = vadd.f32 %v487_v52, %v486_v53  ;;  %v478_v56 = vrot.slane %v477_v17, 2  ;;  %vm645_vm14 = vcmp.eq.s32.totalorder %v633_v37, %v22355_v9  ;;  %v635_v12 = vadd.s32 48, %v22353_v8 }
 0x10d   :  { %v688_v0 = vsel %vm687_vm7, %v624_v41, %v686_v21  ;;  %v18579_v23 = vsel %vm644_vm13, 1.0, %v26823_v16  ;;  %v18580_v51 = vsel %vm645_vm14, 1.0, %v26823_v16  ;;  %vm646_vm15 = vcmp.eq.s32.totalorder %v634_v46, %v22355_v9 }
 0x10e   :  { %v489_v4 = vrot.slane %v488_v30, 1  ;;  %v479_v55 = vadd.f32 %v478_v56, %v477_v17  ;;  %v690_v59 = vsel %vm689_vm8, %v625_v25, %v688_v0  ;;  %v636_v54 = vadd.s32 56, %v22353_v8  ;;  %v669_v17 = vld [vmem:[%s26803_s2 + $0x20] sm:$0xff] }
 0x10f   :  { %vm647_vm1 = vcmp.eq.s32.totalorder %v635_v12, %v22355_v9  ;;  %v18581_v43 = vsel %vm646_vm15, 1.0, %v26823_v16  ;;  %vm22048_vm4 = vmmov 0   ;;  %vm834_vm5 = vcmp.lt.s32.totalorder %v22350_v7, 7 }
 0x110   :  { %v480_v27 = vrot.slane %v479_v55, 1  ;;  %v490_v29 = vadd.f32 %v489_v4, %v488_v30  ;;  %v18582_v57 = vsel %vm647_vm1, 1.0, %v26823_v16  ;;  %vm648_vm2 = vcmp.eq.s32.totalorder %v636_v54, %v22355_v9  ;;  %v666_v9 = vld [vmem:[%s26803_s2 + $0x8] sm:$0xff]  ;;  %20620 = vmatprep.mubr.msk.f32.mxu0 %vm22048_vm4, %v26823_v16  ;;  %s26829_s2 = smov 40  }
 0x111   :  { %v18583_v58 = vsel %vm648_vm2, 1.0, %v26823_v16 }
 0x112   :  { %v481_v33 = vadd.f32 %v480_v27, %v479_v55  ;;  %v627_v60 = vmul.f32 %v618_v36, %v490_v29 }
 0x114   :  { %v626_v34 = vmul.f32 %v613_v32, %v481_v33 }
 0x116   :  { %v692_v38 = vsel %vm691_vm9, %v626_v34, %v690_v59 }
 0x117   :  { %v694_v11 = vsel %vm693_vm10, %v627_v60, %v692_v38 }
 0x118   :  { %20582 = vmatprep.subr.mxu1 %v694_v11 }
 0x119   :  { %20583 = vmatpush3.msra.mxu1 %v694_v11 }
 0x11a   :  { %20585 = vmatmul.mubr.msk.f32.vlgmr.msra.gmra.mxu1 %vm696_vm3, %v18577_v40  ;;  %20596 = vmatprep.subr.bf16.mxu1 %v21396_v47 }
 0x11b   :  { %20587 = vmatprep.mubr.msk.f32.mxu1 %vm696_vm3, %v18578_v44  ;;  %20597 = vmatpush3.bf16.msra.mxu1 %v21396_v47 }
 0x11c   :  { %20598 = vmatprep.subr.bf16.mxu1 %v21397_v45 }
 0x11e   :  { %20588 = vmatmul.mubr.msk.f32.gmra.mxu1 %vm696_vm3, %v18579_v23 }
 0x11f   :  { %20590 = vmatprep.mubr.msk.f32.mxu1 %vm696_vm3, %v18580_v51  ;;  %20599 = vmatpush3.bf16.msra.mxu1 %v21397_v45 }
 0x120   :  { %20608 = vmatprep.subr.mxu1 %v26823_v16 }
 0x122   :  { %20591 = vmatmul.mubr.msk.f32.gmra.mxu1 %vm696_vm3, %v18581_v43 }
 0x123   :  { %20593 = vmatprep.mubr.msk.f32.mxu1 %vm696_vm3, %v18582_v57 }
 0x126   :  { %20594 = vmatmul.mubr.msk.f32.gmra.mxu1 %vm696_vm3, %v18583_v58 }
 0x1da   :  { %v20586_v42 = vpop.f32.mrf.mxu1 }
 0x1db   :  { %v22496_v35 = vadd.f32 %v20586_v42, %v666_v9 }
 0x1dc   :  { %v787_v63 = vpop.f32.mrf.mxu1 }
 0x1dd   :  { %v22498_v53 = vadd.f32 %v787_v63, %v665_v62  ;;  %v22051_v62 = vmov -1e+30  }
 0x1de   :  { %v20589_v48 = vpop.f32.mrf.mxu1  ;;  %v22657_v63 = vsel %vm834_vm5, 0.0, %v22051_v62 }
 0x1df   :  { %v836_v24 = vpack.c.bf16 %v22496_v35, %v22498_v53  ;;  %v22511_v52 = vadd.f32 %v20589_v48, %v668_v14  ;;  %26877 = vst [vmem:[#allocation8_spill] sm:$0xff] %v22657_v63 }
 0x1e0   :  { %v797_v39 = vpop.f32.mrf.mxu1 }
 0x1e1   :  { %v22513_v10 = vadd.f32 %v797_v39, %v667_v15  ;;  %20600 = vmatprep.mubr.msk.bf16.mxu1 %vm105_vm0, %v836_v24 }
 0x1e2   :  { %v20592_v61 = vpop.f32.mrf.mxu1 }
 0x1e3   :  { %v837_v18 = vpack.c.bf16 %v22511_v52, %v22513_v10  ;;  %v22521_v30 = vadd.f32 %v20592_v61, %v670_v20 }
 0x1e4   :  { %v807_v1 = vpop.f32.mrf.mxu1 }
 0x1e5   :  { %v22526_v3 = vadd.f32 %v807_v1, %v669_v17  ;;  %20601 = vmatmul.mubr.msk.bf16.vlgmr.msra.gmra.mxu1 %vm105_vm0, %v837_v18 }
 0x1e6   :  { %v20595_v56 = vpop.f32.mrf.mxu1 }
 0x1e7   :  { %v838_v50 = vpack.c.bf16 %v22521_v30, %v22526_v3  ;;  %v22534_v4 = vadd.f32 %v20595_v56, %v672_v2 }
 0x1e8   :  { %v817_v6 = vpop.f32.mrf.mxu1 }
 0x1e9   :  { %26875 = vst [vmem:[#allocation6_spill] sm:$0xff] %v22534_v4  ;;  %v22536_v13 = vadd.f32 %v817_v6, %v671_v49  ;;  %20604 = vmatprep.mubr.msk.bf16.mxu1 %vm105_vm0, %v838_v50 }
 0x1eb   :  { %26876 = vst [vmem:[#allocation7_spill] sm:$0xff] %v22536_v13  ;;  %v839_v55 = vpack.c.bf16 %v22534_v4, %v22536_v13 }
 0x1ed   :  { %20605 = vmatmul.mubr.msk.bf16.gmra.mxu1 %vm105_vm0, %v839_v55 }
 0x1ee   :  { %20610 = vmatprep.mubr.msk.f32.mxu1 %vm22048_vm4, %v26823_v16 }
 0x2a5   :  { %v20602_v41 = vpop.f32.mrf.mxu1 }
 0x2a6   :  { %v22553_v29 = vadd.f32 %v20602_v41, %v18592_v19 }
 0x2a7   :  { %v909_v22 = vpop.f32.mrf.mxu1 }
 0x2a8   :  { %v22549_v27 = vadd.f32 %v18592_v19, %v909_v22  ;;  %v22598_v46 = vmul.f32 0.35355338, %v22553_v29 }
 0x2a9   :  { %v20603_v28 = vpop.f32.mrf.mxu1 }
 0x2aa   :  { %953 = vrot.lane.b32.xlu0 %v22549_v27, %s22049_s23  ;;  %v22561_v25 = vadd.f32 %v20603_v28, %v18592_v19  ;;  %v22586_v38 = vmul.f32 0.35355338, %v22549_v27 }
 0x2ab   :  { %v912_v21 = vpop.f32.mrf.mxu1 }
 0x2ac   :  { %v22555_v31 = vadd.f32 %v18592_v19, %v912_v21  ;;  %v22613_v51 = vmul.f32 0.35355338, %v22561_v25 }
 0x2ad   :  { %v20606_v33 = vpop.f32.mrf.mxu1 }
 0x2ae   :  { %1031 = vrot.lane.b32.xlu1 %v22555_v31, %s22049_s23  ;;  %1109 = vrot.lane.b32.xlu0 %v22553_v29, %s22049_s23  ;;  %v22565_v34 = vadd.f32 %v20606_v33, %v18592_v19  ;;  %v22595_v44 = vmul.f32 0.35355338, %v22555_v31 }
 0x2af   :  { %v925_v0 = vpop.f32.mrf.mxu1 }
 0x2b0   :  { %v22563_v32 = vadd.f32 %v18592_v19, %v925_v0  ;;  %v22634_v47 = vmul.f32 0.35355338, %v22565_v34 }
 0x2b1   :  { %v20607_v36 = vpop.f32.mrf.mxu1 }
 0x2b2   :  { %1187 = vrot.lane.b32.xlu1 %v22561_v25, %s22049_s23  ;;  %1265 = vrot.lane.b32.xlu0 %v22563_v32, %s22049_s23  ;;  %v22573_v59 = vadd.f32 %v20607_v36, %v18592_v19  ;;  %v22616_v54 = vmul.f32 0.35355338, %v22563_v32 }
 0x2b3   :  { %v928_v26 = vpop.f32.mrf.mxu1 }
 0x2b4   :  { %v22571_v60 = vadd.f32 %v18592_v19, %v928_v26  ;;  %v22646_v9 = vmul.f32 0.35355338, %v22573_v59 }
 0x2b6   :  { %1343 = vrot.lane.b32.xlu1 %v22571_v60, %s22049_s23  ;;  %1421 = vrot.lane.b32.xlu0 %v22565_v34, %s22049_s23  ;;  %v22631_v58 = vmul.f32 0.35355338, %v22571_v60 }
 0x2ba   :  { %1499 = vrot.lane.b32.xlu1 %v22573_v59, %s22049_s23 }
 0x2be   :  { %1664 = vrot.lane.b32.xlu1 %v22549_v27, %s22050_s24 }
 0x31c   :  { %v954_v37 = vpop.permute.xlu0 %953 }
 0x31d   :  { %20609 = vmatpush3.xpose.msk.msra.mxu1 %vm696_vm3, %v954_v37 }
 0x31e   :  { %20613 = vmatprep.subr.mxu1 %v26823_v16 }
 0x320   :  { %v1032_v11 = vpop.permute.xlu1 %1031  ;;  %v1110_v40 = vpop.permute.xlu0 %1109  ;;  %20611 = vmatmul.mubr.msk.f32.vlgmr.msra.gmra.mxu1 %vm696_vm3, %v22586_v38 }
 0x321   :  { %20614 = vmatpush3.xpose.msk.msra.mxu1 %vm696_vm3, %v1032_v11  ;;  %20619 = vmatpush3.xpose.msk.msra.mxu0 %vm696_vm3, %v1110_v40 }
 0x322   :  { %20615 = vmatprep.mubr.msk.f32.mxu1 %vm22048_vm4, %v26823_v16  ;;  %20623 = vmatprep.subr.mxu1 %v26823_v16 }
 0x323   :  { %20628 = vmatprep.subr.mxu0 %v26823_v16 }
 0x324   :  { %v1188_v12 = vpop.permute.xlu1 %1187  ;;  %20616 = vmatmul.mubr.msk.f32.vlgmr.msra.gmra.mxu1 %vm696_vm3, %v22595_v44  ;;  %20621 = vmatmul.mubr.msk.f32.vlgmr.msra.gmra.mxu0 %vm696_vm3, %v22598_v46  ;;  %v1266_v23 = vpop.permute.xlu0 %1265 }
 0x325   :  { %20624 = vmatpush3.xpose.msk.msra.mxu1 %vm696_vm3, %v1188_v12  ;;  %20629 = vmatpush3.xpose.msk.msra.mxu0 %vm696_vm3, %v1266_v23 }
 0x326   :  { %20625 = vmatprep.mubr.msk.f32.mxu1 %vm22048_vm4, %v26823_v16  ;;  %20630 = vmatprep.mubr.msk.f32.mxu0 %vm22048_vm4, %v26823_v16 }
 0x327   :  { %20633 = vmatprep.subr.mxu1 %v26823_v16  ;;  %20638 = vmatprep.subr.mxu0 %v26823_v16 }
 0x328   :  { %20626 = vmatmul.mubr.msk.f32.vlgmr.msra.gmra.mxu1 %vm696_vm3, %v22613_v51  ;;  %v1344_v43 = vpop.permute.xlu1 %1343  ;;  %v1422_v57 = vpop.permute.xlu0 %1421  ;;  %20631 = vmatmul.mubr.msk.f32.vlgmr.msra.gmra.mxu0 %vm696_vm3, %v22616_v54 }
 0x329   :  { %20634 = vmatpush3.xpose.msk.msra.mxu1 %vm696_vm3, %v1344_v43  ;;  %20639 = vmatpush3.xpose.msk.msra.mxu0 %vm696_vm3, %v1422_v57 }
 0x32a   :  { %20635 = vmatprep.mubr.msk.f32.mxu1 %vm22048_vm4, %v26823_v16  ;;  %20640 = vmatprep.mubr.msk.f32.mxu0 %vm22048_vm4, %v26823_v16 }
 0x32b   :  { %20643 = vmatprep.subr.mxu1 %v26823_v16  ;;  %20648 = vmatprep.subr.mxu0 %v26823_v16 }
 0x32c   :  { %v1500_v45 = vpop.permute.xlu1 %1499  ;;  %20636 = vmatmul.mubr.msk.f32.vlgmr.msra.gmra.mxu1 %vm696_vm3, %v22631_v58  ;;  %20641 = vmatmul.mubr.msk.f32.vlgmr.msra.gmra.mxu0 %vm696_vm3, %v22634_v47 }
 0x32d   :  { %20644 = vmatpush3.xpose.msk.msra.mxu1 %vm696_vm3, %v1500_v45  ;;  %20645 = vmatprep.mubr.msk.f32.mxu1 %vm22048_vm4, %v26823_v16 }
 0x32e   :  { %20653 = vmatprep.subr.mxu1 %v26823_v16  ;;  %20650 = vmatprep.mubr.msk.f32.mxu0 %vm22048_vm4, %v26823_v16 }
 0x330   :  { %v1665_v42 = vpop.permute.xlu1 %1664  ;;  %20646 = vmatmul.mubr.msk.f32.vlgmr.msra.gmra.mxu1 %vm696_vm3, %v22646_v9 }
 0x331   :  { %20649 = vmatpush3.msra.mxu0 %v1665_v42  ;;  %20655 = vmatprep.mubr.msk.f32.mxu1 %vm22048_vm4, %v26823_v16 }
 0x332   :  { %20658 = vmatprep.subr.mxu0 %v26823_v16 }
 0x3e0   :  { %v1026_v14 = vpop.f32.mrf.mxu1 }
 0x3e1   :  { %v22660_v48 = vadd.f32 %v1026_v14, %v22657_v63 }
 0x3e2   :  { %v20612_v15 = vpop.f32.mrf.mxu1 }
 0x3e3   :  { %v1576_v24 = vsel %vm696_vm3, %v22660_v48, -inf }
 0x3e4   :  { %v1104_v39 = vpop.f32.mrf.mxu1  ;;  %v1182_v20 = vpop.f32.mrf.mxu0  ;;  %1577 = vmax.xlane.f32.xlu0 %v1576_v24 }
 0x3e5   :  { %v1105_v61 = vadd.f32 %v1104_v39, %v22657_v63  ;;  %v1183_v17 = vadd.f32 %v1182_v20, %v22657_v63 }
 0x3e6   :  { %v20617_v18 = vpop.f32.mrf.mxu1  ;;  %v20622_v7 = vpop.f32.mrf.mxu0 }
 0x3e7   :  { %v1579_v1 = vsel %vm696_vm3, %v1105_v61, -inf  ;;  %v1582_v2 = vsel %vm696_vm3, %v1183_v17, -inf }
 0x3e8   :  { %v1260_v56 = vpop.f32.mrf.mxu1  ;;  %1580 = vmax.xlane.f32.xlu1 %v1579_v1  ;;  %1583 = vmax.xlane.f32.xlu0 %v1582_v2  ;;  %v1338_v49 = vpop.f32.mrf.mxu0 }
 0x3e9   :  { %v1261_v50 = vadd.f32 %v1260_v56, %v22657_v63  ;;  %v22670_v6 = vadd.f32 %v1338_v49, %v22657_v63 }
 0x3ea   :  { %v20627_v55 = vpop.f32.mrf.mxu1  ;;  %v20632_v41 = vpop.f32.mrf.mxu0 }
 0x3eb   :  { %v1585_v19 = vsel %vm696_vm3, %v1261_v50, -inf  ;;  %v1588_v22 = vsel %vm696_vm3, %v22670_v6, -inf }
 0x3ec   :  { %v1416_v28 = vpop.f32.mrf.mxu1  ;;  %1586 = vmax.xlane.f32.xlu0 %v1585_v19  ;;  %1589 = vmax.xlane.f32.xlu1 %v1588_v22  ;;  %v1494_v21 = vpop.f32.mrf.mxu0 }
 0x3ed   :  { %v1417_v33 = vadd.f32 %v1416_v28, %v22657_v63  ;;  %v22677_v0 = vadd.f32 %v1494_v21, %v22657_v63 }
 0x3ee   :  { %v20637_v36 = vpop.f32.mrf.mxu1  ;;  %v20642_v26 = vpop.f32.mrf.mxu0 }
 0x3ef   :  { %v1591_v37 = vsel %vm696_vm3, %v1417_v33, -inf  ;;  %v1594_v11 = vsel %vm696_vm3, %v22677_v0, -inf }
 0x3f0   :  { %v1572_v40 = vpop.f32.mrf.mxu1  ;;  %1592 = vmax.xlane.f32.xlu0 %v1591_v37  ;;  %1595 = vmax.xlane.f32.xlu1 %v1594_v11 }
 0x3f1   :  { %v1573_v12 = vadd.f32 %v1572_v40, %v22657_v63 }
 0x3f2   :  { %v20647_v23 = vpop.f32.mrf.mxu1 }
 0x3f3   :  { %v1597_v43 = vsel %vm696_vm3, %v1573_v12, -inf }
 0x3f4   :  { %1598 = vmax.xlane.f32.xlu0 %v1597_v43 }
 0x401   :  { %1816 = vrot.lane.b32.xlu1 %v22553_v29, %s22050_s24 }
 0x405   :  { %1892 = vrot.lane.b32.xlu1 %v22561_v25, %s22050_s24 }
 0x409   :  { %2044 = vrot.lane.b32.xlu1 %v22571_v60, %s22050_s24 }
 0x40a   :  { %1740 = vrot.lane.b32.xlu0 %v22555_v31, %s22050_s24 }
 0x40d   :  { %2196 = vrot.lane.b32.xlu1 %v22573_v59, %s22050_s24 }
 0x40e   :  { %1968 = vrot.lane.b32.xlu0 %v22563_v32, %s22050_s24 }
 0x411   :  { %2352 = vrot.lane.b32.xlu1 %v22555_v31, %s22052_s25 }
 0x412   :  { %2120 = vrot.lane.b32.xlu0 %v22565_v34, %s22050_s24 }
 0x415   :  { %2350 = vrot.lane.b32.xlu1 %v22595_v44, %s22053_s26 }
 0x416   :  { %2274 = vrot.lane.b32.xlu0 %v22549_v27, %s22052_s25 }
 0x419   :  { %2508 = vrot.lane.b32.xlu1 %v22561_v25, %s22052_s25 }
 0x41a   :  { %2272 = vrot.lane.b32.xlu0 %v22586_v38, %s22053_s26 }
 0x41e   :  { %2430 = vrot.lane.b32.xlu0 %v22553_v29, %s22052_s25 }
 0x422   :  { %2428 = vrot.lane.b32.xlu0 %v22598_v46, %s22053_s26 }
 0x46d   :  { %v1578_v57 = vpop.xlane.xlu0 %1577 }
 0x46e   :  { %v1600_v45 = vsub.f32 %v22660_v48, %v1578_v57 }
 0x470   :  { %v1608_v20 = vmul.f32 1.442695, %v1600_v45 }
 0x471   :  { %v1581_v42 = vpop.xlane.xlu1 %1580  ;;  %v1584_v62 = vpop.xlane.xlu0 %1583 }
 0x472   :  { %v1601_v14 = vsub.f32 %v1105_v61, %v1581_v42  ;;  %v1602_v15 = vsub.f32 %v1183_v17, %v1584_v62 }
 0x474   :  { %v1610_v24 = vmul.f32 1.442695, %v1601_v14  ;;  %v1612_v39 = vmul.f32 1.442695, %v1602_v15 }
 0x475   :  { %v1587_v18 = vpop.xlane.xlu0 %1586 }
 0x476   :  { %21704 = vpow2.f32 %v1610_v24  ;;  %v1603_v7 = vsub.f32 %v1261_v50, %v1587_v18 }
 0x477   :  { %21706 = vpow2.f32 %v1612_v39 }
 0x478   :  { %v1614_v1 = vmul.f32 1.442695, %v1603_v7  ;;  %21708 = vpow2.f32 %v1608_v20 }
 0x479   :  { %v1593_v2 = vpop.xlane.xlu0 %1592 }
 0x47a   :  { %21710 = vpow2.f32 %v1614_v1  ;;  %v1605_v56 = vsub.f32 %v1417_v33, %v1593_v2 }
 0x47c   :  { %v1618_v49 = vmul.f32 1.442695, %v1605_v56 }
 0x47d   :  { %v1599_v55 = vpop.xlane.xlu0 %1598 }
 0x47e   :  { %21712 = vpow2.f32 %v1618_v49  ;;  %v1607_v48 = vsub.f32 %v1573_v12, %v1599_v55  ;;  %v1590_v12 = vpop.xlane.xlu1 %1589 }
 0x47f   :  { %v1604_v23 = vsub.f32 %v22670_v6, %v1590_v12 }
 0x480   :  { %v1622_v41 = vmul.f32 1.442695, %v1607_v48 }
 0x481   :  { %v1741_v19 = vpop.permute.xlu0 %1740  ;;  %v1616_v57 = vmul.f32 1.442695, %v1604_v23 }
 0x482   :  { %21714 = vpow2.f32 %v1622_v41  ;;  %20654 = vmatpush3.msra.mxu1 %v1741_v19  ;;  %v1596_v43 = vpop.xlane.xlu1 %1595 }
 0x483   :  { %v22713_v61 = vpop.eup %21704  ;;  %20663 = vmatprep.subr.mxu1 %v26823_v16  ;;  %v1606_v45 = vsub.f32 %v22677_v0, %v1596_v43  ;;  %21716 = vpow2.f32 %v1616_v57 }
 0x484   :  { %v22716_v17 = vpop.eup %21706  ;;  %v1627_v50 = vsel %vm696_vm3, %v22713_v61, 0.0 }
 0x485   :  { %1628 = vadd.xlane.f32.xlu0 %v1627_v50  ;;  %v1630_v22 = vsel %vm696_vm3, %v22716_v17, 0.0  ;;  %v22722_v28 = vpop.eup %21708  ;;  %v1620_v42 = vmul.f32 1.442695, %v1606_v45  ;;  %v1969_v24 = vpop.permute.xlu0 %1968 }
 0x486   :  { %1631 = vadd.xlane.f32.xlu1 %v1630_v22  ;;  %v1624_v36 = vsel %vm696_vm3, %v22722_v28, 0.0  ;;  %v1817_v15 = vpop.permute.xlu1 %1816 }
 0x487   :  { %v22724_v21 = vpop.eup %21710  ;;  %21718 = vpow2.f32 %v1620_v42 }
 0x488   :  { %v1633_v33 = vsel %vm696_vm3, %v22724_v21, 0.0 }
 0x489   :  { %1634 = vadd.xlane.f32.xlu0 %v1633_v33  ;;  %v22766_v20 = vpop.permute.xlu0 %2120 }
 0x48a   :  { %1625 = vadd.xlane.f32.xlu1 %v1624_v36  ;;  %v1893_v39 = vpop.permute.xlu1 %1892 }
 0x48b   :  { %v22730_v26 = vpop.eup %21712 }
 0x48c   :  { %v1639_v37 = vsel %vm696_vm3, %v22730_v26, 0.0 }
 0x48d   :  { %1640 = vadd.xlane.f32.xlu0 %v1639_v37  ;;  %v22768_v7 = vpop.permute.xlu0 %2274 }
 0x48e   :  { %v2045_v18 = vpop.permute.xlu1 %2044 }
 0x48f   :  { %v22734_v11 = vpop.eup %21714 }
 0x490   :  { %v1645_v40 = vsel %vm696_vm3, %v22734_v11, 0.0  ;;  %v22750_v6 = vpop.eup %21716 }
 0x491   :  { %1646 = vadd.xlane.f32.xlu0 %v1645_v40  ;;  %v1636_v62 = vsel %vm696_vm3, %v22750_v6, 0.0  ;;  %v22770_v2 = vpop.permute.xlu0 %2272 }
 0x492   :  { %v2197_v1 = vpop.permute.xlu1 %2196 }
 0x494   :  { %v22754_v14 = vpop.eup %21718 }
 0x495   :  { %v1642_v0 = vsel %vm696_vm3, %v22754_v14, 0.0  ;;  %v22772_v49 = vpop.permute.xlu0 %2430 }
 0x496   :  { %v2353_v56 = vpop.permute.xlu1 %2352 }
 0x499   :  { %v22774_v48 = vpop.permute.xlu0 %2428 }
 0x49a   :  { %v2351_v55 = vpop.permute.xlu1 %2350 }
 0x49b   :  { %2506 = vrot.lane.b32.xlu1 %v22613_v51, %s22053_s26 }
 0x49e   :  { %v2509_v41 = vpop.permute.xlu1 %2508 }
 0x4a7   :  { %2586 = vrot.lane.b32.xlu0 %v22563_v32, %s22052_s25 }
 0x4ab   :  { %2584 = vrot.lane.b32.xlu0 %v22616_v54, %s22053_s26 }
 0x4af   :  { %2742 = vrot.lane.b32.xlu0 %v22565_v34, %s22052_s25 }
 0x4b3   :  { %2740 = vrot.lane.b32.xlu0 %v22634_v47, %s22053_s26 }
 0x4bf   :  { %1637 = vadd.xlane.f32.xlu1 %v1636_v62 }
 0x4c3   :  { %1643 = vadd.xlane.f32.xlu1 %v1642_v0 }
 0x4d4   :  { %2664 = vrot.lane.b32.xlu1 %v22571_v60, %s22052_s25 }
 0x4d8   :  { %2662 = vrot.lane.b32.xlu1 %v22631_v58, %s22053_s26 }
 0x4dc   :  { %2820 = vrot.lane.b32.xlu1 %v22573_v59, %s22052_s25 }
 0x4e0   :  { %2818 = vrot.lane.b32.xlu1 %v22646_v9, %s22053_s26 }
 0x50e   :  { %v1629_v19 = vpop.xlane.xlu0 %1628 }
 0x50f   :  { %21720 = vrcp.f32 %v1629_v19  ;;  %v1632_v50 = vpop.xlane.xlu1 %1631 }
 0x512   :  { %v1635_v22 = vpop.xlane.xlu0 %1634 }
 0x513   :  { %21722 = vrcp.f32 %v1635_v22  ;;  %v1626_v33 = vpop.xlane.xlu1 %1625 }
 0x514   :  { %21724 = vrcp.f32 %v1626_v33 }
 0x515   :  { %21726 = vrcp.f32 %v1632_v50 }
 0x516   :  { %v1641_v36 = vpop.xlane.xlu0 %1640 }
 0x517   :  { %21728 = vrcp.f32 %v1641_v36 }
 0x51a   :  { %v1647_v37 = vpop.xlane.xlu0 %1646 }
 0x51b   :  { %21730 = vrcp.f32 %v1647_v37 }
 0x51c   :  { %v21721_v40 = vpop.eup %21720 }
 0x51d   :  { %v1657_v12 = vmul.f32 %v21721_v40, %v22713_v61 }
 0x51f   :  { %20656 = vmatmul.mubr.msk.f32.vlgmr.msra.gmra.mxu1 %vm696_vm3, %v1657_v12 }
 0x520   :  { %v21723_v23 = vpop.eup %21722  ;;  %20664 = vmatpush3.msra.mxu1 %v1893_v39  ;;  %20665 = vmatprep.mubr.msk.f32.mxu1 %vm22048_vm4, %v26823_v16 }
 0x521   :  { %v21725_v43 = vpop.eup %21724  ;;  %20673 = vmatprep.subr.mxu1 %v26823_v16  ;;  %v1659_v57 = vmul.f32 %v21723_v23, %v22724_v21 }
 0x522   :  { %v1656_v45 = vmul.f32 %v21725_v43, %v22722_v28  ;;  %v21727_v42 = vpop.eup %21726 }
 0x523   :  { %20666 = vmatmul.mubr.msk.f32.vlgmr.msra.gmra.mxu1 %vm696_vm3, %v1659_v57  ;;  %v1658_v28 = vmul.f32 %v21727_v42, %v22716_v17  ;;  %v2507_v17 = vpop.permute.xlu1 %2506 }
 0x524   :  { %v21729_v62 = vpop.eup %21728  ;;  %20651 = vmatmul.mubr.msk.f32.vlgmr.msra.gmra.mxu0 %vm696_vm3, %v1656_v45  ;;  %20674 = vmatpush3.msra.mxu1 %v2045_v18 }
 0x525   :  { %20659 = vmatpush3.msra.mxu0 %v1817_v15  ;;  %20660 = vmatprep.mubr.msk.f32.mxu0 %vm22048_vm4, %v26823_v16  ;;  %v1661_v61 = vmul.f32 %v21729_v62, %v22730_v26 }
 0x526   :  { %20668 = vmatprep.subr.mxu0 %v26823_v16  ;;  %20675 = vmatprep.mubr.msk.f32.mxu1 %vm22048_vm4, %v26823_v16 }
 0x527   :  { %20683 = vmatprep.subr.mxu1 %v26823_v16  ;;  %20676 = vmatmul.mubr.msk.f32.vlgmr.msra.gmra.mxu1 %vm696_vm3, %v1661_v61 }
 0x528   :  { %v21731_v21 = vpop.eup %21730  ;;  %20661 = vmatmul.mubr.msk.f32.vlgmr.msra.gmra.mxu0 %vm696_vm3, %v1658_v28  ;;  %20684 = vmatpush3.msra.mxu1 %v2197_v1 }
 0x529   :  { %20669 = vmatpush3.msra.mxu0 %v1969_v24  ;;  %20685 = vmatprep.mubr.msk.f32.mxu1 %vm22048_vm4, %v26823_v16  ;;  %v1663_v26 = vmul.f32 %v21731_v21, %v22734_v11 }
 0x52a   :  { %20693 = vmatprep.subr.mxu1 %v26823_v16  ;;  %20670 = vmatprep.mubr.msk.f32.mxu0 %vm22048_vm4, %v26823_v16 }
 0x52b   :  { %20686 = vmatmul.mubr.msk.f32.vlgmr.msra.gmra.mxu1 %vm696_vm3, %v1663_v26  ;;  %20678 = vmatprep.subr.mxu0 %v26823_v16 }
 0x52c   :  { %20694 = vmatpush3.xpose.msk.msra.mxu1 %vm696_vm3, %v2353_v56  ;;  %20695 = vmatprep.mubr.msk.f32.mxu1 %vm22048_vm4, %v26823_v16 }
 0x52d   :  { %20703 = vmatprep.subr.mxu1 %v26823_v16 }
 0x52f   :  { %20696 = vmatmul.mubr.msk.f32.vlgmr.msra.gmra.mxu1 %vm696_vm3, %v2351_v55  ;;  %v2587_v55 = vpop.permute.xlu0 %2586 }
 0x530   :  { %20704 = vmatpush3.xpose.msk.msra.mxu1 %vm696_vm3, %v2509_v41  ;;  %20705 = vmatprep.mubr.msk.f32.mxu1 %vm22048_vm4, %v26823_v16 }
 0x531   :  { %20713 = vmatprep.subr.mxu1 %v26823_v16 }
 0x533   :  { %20706 = vmatmul.mubr.msk.f32.vlgmr.msra.gmra.mxu1 %vm696_vm3, %v2507_v17 }
 0x534   :  { %20715 = vmatprep.mubr.msk.f32.mxu1 %vm22048_vm4, %v26823_v16 }
 0x548   :  { %v1638_v11 = vpop.xlane.xlu1 %1637 }
 0x549   :  { %21732 = vrcp.f32 %v1638_v11 }
 0x54c   :  { %v1644_v0 = vpop.xlane.xlu1 %1643 }
 0x54d   :  { %21734 = vrcp.f32 %v1644_v0 }
 0x550   :  { %v2665_v15 = vpop.permute.xlu1 %2664 }
 0x551   :  { %20714 = vmatpush3.xpose.msk.msra.mxu1 %vm696_vm3, %v2665_v15 }
 0x552   :  { %20723 = vmatprep.subr.mxu1 %v26823_v16 }
 0x554   :  { %v2663_v24 = vpop.permute.xlu1 %2662 }
 0x555   :  { %20716 = vmatmul.mubr.msk.f32.vlgmr.msra.gmra.mxu1 %vm696_vm3, %v2663_v24 }
 0x556   :  { %v21733_v39 = vpop.eup %21732  ;;  %20725 = vmatprep.mubr.msk.f32.mxu1 %vm22048_vm4, %v26823_v16 }
 0x557   :  { %v1660_v18 = vmul.f32 %v21733_v39, %v22750_v6  ;;  %v2585_v6 = vpop.permute.xlu0 %2584 }
 0x558   :  { %v2821_v1 = vpop.permute.xlu1 %2820 }
 0x559   :  { %20671 = vmatmul.mubr.msk.f32.vlgmr.msra.gmra.mxu0 %vm696_vm3, %v1660_v18  ;;  %20724 = vmatpush3.xpose.msk.msra.mxu1 %vm696_vm3, %v2821_v1 }
 0x55a   :  { %v21735_v56 = vpop.eup %21734  ;;  %20679 = vmatpush3.msra.mxu0 %v22766_v20  ;;  %20680 = vmatprep.mubr.msk.f32.mxu0 %vm22048_vm4, %v26823_v16 }
 0x55b   :  { %20688 = vmatprep.subr.mxu0 %v26823_v16  ;;  %v1662_v41 = vmul.f32 %v21735_v56, %v22754_v14  ;;  %20733 = vmatprep.subr.mxu1 %v26823_v16  ;;  %v2743_v14 = vpop.permute.xlu0 %2742 }
 0x55c   :  { %v2819_v19 = vpop.permute.xlu1 %2818 }
 0x55d   :  { %20681 = vmatmul.mubr.msk.f32.vlgmr.msra.gmra.mxu0 %vm696_vm3, %v1662_v41  ;;  %20726 = vmatmul.mubr.msk.f32.vlgmr.msra.gmra.mxu1 %vm696_vm3, %v2819_v19 }
 0x55e   :  { %20689 = vmatpush3.xpose.msk.msra.mxu0 %vm696_vm3, %v22768_v7  ;;  %20690 = vmatprep.mubr.msk.f32.mxu0 %vm22048_vm4, %v26823_v16 }
 0x55f   :  { %20698 = vmatprep.subr.mxu0 %v26823_v16  ;;  %20735 = vmatprep.mubr.msk.f32.mxu1 %vm22048_vm4, %v26823_v16  ;;  %v2741_v20 = vpop.permute.xlu0 %2740 }
 0x561   :  { %20691 = vmatmul.mubr.msk.f32.vlgmr.msra.gmra.mxu0 %vm696_vm3, %v22770_v2 }
 0x562   :  { %20699 = vmatpush3.xpose.msk.msra.mxu0 %vm696_vm3, %v22772_v49  ;;  %20700 = vmatprep.mubr.msk.f32.mxu0 %vm22048_vm4, %v26823_v16 }
 0x563   :  { %20708 = vmatprep.subr.mxu0 %v26823_v16 }
 0x565   :  { %20701 = vmatmul.mubr.msk.f32.vlgmr.msra.gmra.mxu0 %vm696_vm3, %v22774_v48 }
 0x566   :  { %20709 = vmatpush3.xpose.msk.msra.mxu0 %vm696_vm3, %v2587_v55  ;;  %20710 = vmatprep.mubr.msk.f32.mxu0 %vm22048_vm4, %v26823_v16 }
 0x567   :  { %20718 = vmatprep.subr.mxu0 %v26823_v16 }
 0x569   :  { %20711 = vmatmul.mubr.msk.f32.vlgmr.msra.gmra.mxu0 %vm696_vm3, %v2585_v6 }
 0x56a   :  { %20719 = vmatpush3.xpose.msk.msra.mxu0 %vm696_vm3, %v2743_v14  ;;  %20720 = vmatprep.mubr.msk.f32.mxu0 %vm22048_vm4, %v26823_v16 }
 0x56b   :  { %20728 = vmatprep.subr.mxu0 %v26823_v16 }
 0x56d   :  { %20721 = vmatmul.mubr.msk.f32.vlgmr.msra.gmra.mxu0 %vm696_vm3, %v2741_v20 }
 0x56e   :  { %20730 = vmatprep.mubr.msk.f32.mxu0 %vm22048_vm4, %v26823_v16 }
 0x5df   :  { %v22859_v7 = vpop.f32.mrf.mxu1 }
 0x5e1   :  { %v20657_v2 = vpop.f32.mrf.mxu1 }
 0x5e3   :  { %v22861_v49 = vpop.f32.mrf.mxu1 }
 0x5e4   :  { %v22863_v48 = vpop.f32.mrf.mxu0 }
 0x5e5   :  { %v20667_v50 = vpop.f32.mrf.mxu1 }
 0x5e6   :  { %v20652_v22 = vpop.f32.mrf.mxu0 }
 0x5e7   :  { %v22865_v33 = vpop.f32.mrf.mxu1 }
 0x5e8   :  { %v22867_v36 = vpop.f32.mrf.mxu0 }
 0x5e9   :  { %v20677_v37 = vpop.f32.mrf.mxu1 }
 0x5ea   :  { %v20662_v40 = vpop.f32.mrf.mxu0 }
 0x5eb   :  { %v22869_v12 = vpop.f32.mrf.mxu1 }
 0x5ed   :  { %v20687_v23 = vpop.f32.mrf.mxu1 }
 0x5ef   :  { %v2424_v43 = vpop.f32.mrf.mxu1 }
 0x5f0   :  { %v2425_v57 = vadd.f32 %v2424_v43, %v22657_v63 }
 0x5f1   :  { %v20697_v45 = vpop.f32.mrf.mxu1 }
 0x5f2   :  { %v2899_v42 = vsel %vm696_vm3, %v2425_v57, -inf }
 0x5f3   :  { %2900 = vmax.xlane.f32.xlu1 %v2899_v42  ;;  %v2580_v62 = vpop.f32.mrf.mxu1 }
 0x5f4   :  { %v2581_v6 = vadd.f32 %v2580_v62, %v22657_v63 }
 0x5f5   :  { %v20707_v61 = vpop.f32.mrf.mxu1 }
 0x5f6   :  { %v2905_v37 = vsel %vm696_vm3, %v2581_v6, -inf }
 0x615   :  { %v2736_v28 = vpop.f32.mrf.mxu1 }
 0x616   :  { %v2737_v22 = vadd.f32 %v2736_v28, %v22657_v63 }
 0x617   :  { %v20717_v21 = vpop.f32.mrf.mxu1 }
 0x618   :  { %v2911_v62 = vsel %vm696_vm3, %v2737_v22, -inf }
 0x619   :  { %v22873_v26 = vpop.f32.mrf.mxu0 }
 0x61b   :  { %v20672_v17 = vpop.f32.mrf.mxu0 }
 0x61d   :  { %v22875_v11 = vpop.f32.mrf.mxu0  ;;  %v2892_v0 = vpop.f32.mrf.mxu1 }
 0x61e   :  { %v2893_v42 = vadd.f32 %v2892_v0, %v22657_v63 }
 0x61f   :  { %v20682_v15 = vpop.f32.mrf.mxu0  ;;  %v20727_v24 = vpop.f32.mrf.mxu1 }
 0x620   :  { %v2917_v28 = vsel %vm696_vm3, %v2893_v42, -inf }
 0x621   :  { %v2346_v39 = vpop.f32.mrf.mxu0 }
 0x622   :  { %v2347_v18 = vadd.f32 %v2346_v39, %v22657_v63 }
 0x623   :  { %v20692_v1 = vpop.f32.mrf.mxu0 }
 0x624   :  { %v2896_v56 = vsel %vm696_vm3, %v2347_v18, -inf }
 0x625   :  { %2897 = vmax.xlane.f32.xlu0 %v2896_v56  ;;  %v2502_v55 = vpop.f32.mrf.mxu0 }
 0x626   :  { %v2503_v41 = vadd.f32 %v2502_v55, %v22657_v63 }
 0x627   :  { %v20702_v19 = vpop.f32.mrf.mxu0 }
 0x628   :  { %v2902_v14 = vsel %vm696_vm3, %v2503_v41, -inf }
 0x629   :  { %2903 = vmax.xlane.f32.xlu0 %v2902_v14  ;;  %v2658_v20 = vpop.f32.mrf.mxu0 }
 0x62a   :  { %v2659_v2 = vadd.f32 %v2658_v20, %v22657_v63 }
 0x62b   :  { %v20712_v50 = vpop.f32.mrf.mxu0 }
 0x62c   :  { %v2908_v40 = vsel %vm696_vm3, %v2659_v2, -inf }
 0x62d   :  { %2906 = vmax.xlane.f32.xlu0 %v2905_v37  ;;  %2909 = vmax.xlane.f32.xlu1 %v2908_v40  ;;  %v2814_v23 = vpop.f32.mrf.mxu0 }
 0x62e   :  { %v2815_v43 = vadd.f32 %v2814_v23, %v22657_v63 }
 0x62f   :  { %v20722_v45 = vpop.f32.mrf.mxu0 }
 0x630   :  { %v2914_v61 = vsel %vm696_vm3, %v2815_v43, -inf }
 0x631   :  { %2912 = vmax.xlane.f32.xlu0 %v2911_v62  ;;  %2915 = vmax.xlane.f32.xlu1 %v2914_v61 }
 0x635   :  { %2918 = vmax.xlane.f32.xlu0 %v2917_v28 }
 0x642   :  { %2984 = vrot.lane.b32.xlu1 %v22549_v27, %s22054_s27 }
 0x646   :  { %3136 = vrot.lane.b32.xlu1 %v22553_v29, %s22054_s27 }
 0x64a   :  { %3212 = vrot.lane.b32.xlu1 %v22561_v25, %s22054_s27 }
 0x64b   :  { %3060 = vrot.lane.b32.xlu0 %v22555_v31, %s22054_s27 }
 0x64e   :  { %3364 = vrot.lane.b32.xlu1 %v22571_v60, %s22054_s27 }
 0x64f   :  { %3288 = vrot.lane.b32.xlu0 %v22563_v32, %s22054_s27 }
 0x67c   :  { %v2901_v21 = vpop.xlane.xlu1 %2900 }
 0x67d   :  { %v2921_v17 = vsub.f32 %v2425_v57, %v2901_v21 }
 0x67f   :  { %v2930_v0 = vmul.f32 1.442695, %v2921_v17 }
 0x681   :  { %21736 = vpow2.f32 %v2930_v0 }
 0x68e   :  { %v22903_v15 = vpop.eup %21736 }
 0x68f   :  { %v2947_v24 = vsel %vm696_vm3, %v22903_v15, 0.0 }
 0x690   :  { %2948 = vadd.xlane.f32.xlu0 %v2947_v24 }
 0x6ae   :  { %v2898_v39 = vpop.xlane.xlu0 %2897 }
 0x6af   :  { %v2920_v1 = vsub.f32 %v2347_v18, %v2898_v39 }
 0x6b1   :  { %v2928_v56 = vmul.f32 1.442695, %v2920_v1 }
 0x6b2   :  { %v2904_v55 = vpop.xlane.xlu0 %2903 }
 0x6b3   :  { %21738 = vpow2.f32 %v2928_v56  ;;  %v2922_v19 = vsub.f32 %v2503_v41, %v2904_v55 }
 0x6b5   :  { %v2932_v14 = vmul.f32 1.442695, %v2922_v19 }
 0x6b6   :  { %v2907_v20 = vpop.xlane.xlu0 %2906  ;;  %v2910_v50 = vpop.xlane.xlu1 %2909 }
 0x6b7   :  { %21740 = vpow2.f32 %v2932_v14  ;;  %v2923_v37 = vsub.f32 %v2581_v6, %v2907_v20  ;;  %v2924_v57 = vsub.f32 %v2659_v2, %v2910_v50 }
 0x6b9   :  { %v2934_v40 = vmul.f32 1.442695, %v2923_v37  ;;  %v2936_v23 = vmul.f32 1.442695, %v2924_v57 }
 0x6ba   :  { %v2913_v45 = vpop.xlane.xlu0 %2912  ;;  %v2916_v62 = vpop.xlane.xlu1 %2915 }
 0x6bb   :  { %21742 = vpow2.f32 %v2934_v40  ;;  %v2925_v61 = vsub.f32 %v2737_v22, %v2913_v45  ;;  %v2926_v28 = vsub.f32 %v2815_v43, %v2916_v62 }
 0x6bc   :  { %21744 = vpow2.f32 %v2936_v23 }
 0x6bd   :  { %v2938_v21 = vmul.f32 1.442695, %v2925_v61  ;;  %v2940_v18 = vmul.f32 1.442695, %v2926_v28 }
 0x6be   :  { %v2919_v17 = vpop.xlane.xlu0 %2918  ;;  %v2985_v0 = vpop.permute.xlu1 %2984 }
 0x6bf   :  { %21746 = vpow2.f32 %v2938_v21  ;;  %v2927_v41 = vsub.f32 %v2893_v42, %v2919_v17  ;;  %20729 = vmatpush3.msra.mxu0 %v2985_v0 }
 0x6c0   :  { %v22907_v24 = vpop.eup %21738  ;;  %21748 = vpow2.f32 %v2940_v18  ;;  %20738 = vmatprep.subr.mxu0 %v26823_v16 }
 0x6c1   :  { %v2942_v6 = vmul.f32 1.442695, %v2927_v41  ;;  %v2944_v2 = vsel %vm696_vm3, %v22907_v24, 0.0 }
 0x6c2   :  { %v3061_v39 = vpop.permute.xlu0 %3060  ;;  %2945 = vadd.xlane.f32.xlu1 %v2944_v2  ;;  %v3137_v45 = vpop.permute.xlu1 %3136 }
 0x6c3   :  { %21750 = vpow2.f32 %v2942_v6  ;;  %20734 = vmatpush3.msra.mxu1 %v3061_v39 }
 0x6c4   :  { %v22912_v22 = vpop.eup %21740  ;;  %20743 = vmatprep.subr.mxu1 %v26823_v16 }
 0x6c5   :  { %v2950_v43 = vsel %vm696_vm3, %v22912_v22, 0.0 }
 0x6c6   :  { %2951 = vadd.xlane.f32.xlu1 %v2950_v43  ;;  %v3289_v40 = vpop.permute.xlu0 %3288  ;;  %v3213_v28 = vpop.permute.xlu1 %3212 }
 0x6c8   :  { %v22917_v42 = vpop.eup %21742 }
 0x6c9   :  { %v22919_v1 = vpop.eup %21744  ;;  %v2953_v56 = vsel %vm696_vm3, %v22917_v42, 0.0 }
 0x6ca   :  { %2954 = vadd.xlane.f32.xlu0 %v2953_v56  ;;  %v2956_v55 = vsel %vm696_vm3, %v22919_v1, 0.0  ;;  %v3365_v21 = vpop.permute.xlu1 %3364 }
 0x6cb   :  { %2957 = vadd.xlane.f32.xlu1 %v2956_v55 }
 0x6cc   :  { %v22925_v19 = vpop.eup %21746 }
 0x6cd   :  { %v22927_v14 = vpop.eup %21748  ;;  %v2959_v20 = vsel %vm696_vm3, %v22925_v19, 0.0 }
 0x6ce   :  { %2960 = vadd.xlane.f32.xlu0 %v2959_v20  ;;  %v2962_v50 = vsel %vm696_vm3, %v22927_v14, 0.0 }
 0x6cf   :  { %2963 = vadd.xlane.f32.xlu1 %v2962_v50 }
 0x6d0   :  { %v22933_v37 = vpop.eup %21750 }
 0x6d1   :  { %v2965_v57 = vsel %vm696_vm3, %v22933_v37, 0.0 }
 0x6d2   :  { %2966 = vadd.xlane.f32.xlu0 %v2965_v57 }
 0x6e0   :  { %3516 = vrot.lane.b32.xlu1 %v22573_v59, %s22054_s27 }
 0x6e4   :  { %3930 = vrot.lane.b32.xlu1 %v22555_v31, %s22055_s29 }
 0x6e8   :  { %3928 = vrot.lane.b32.xlu1 %v22595_v44, %s22056_s30  ;;  %3440 = vrot.lane.b32.xlu0 %v22565_v34, %s22054_s27 }
 0x6ec   :  { %4086 = vrot.lane.b32.xlu1 %v22561_v25, %s22055_s29  ;;  %3852 = vrot.lane.b32.xlu0 %v22549_v27, %s22055_s29 }
 0x6f0   :  { %4084 = vrot.lane.b32.xlu1 %v22613_v51, %s22056_s30  ;;  %3850 = vrot.lane.b32.xlu0 %v22586_v38, %s22056_s30 }
 0x6f4   :  { %4242 = vrot.lane.b32.xlu1 %v22571_v60, %s22055_s29  ;;  %4008 = vrot.lane.b32.xlu0 %v22553_v29, %s22055_s29 }
 0x6f8   :  { %4240 = vrot.lane.b32.xlu1 %v22631_v58, %s22056_s30  ;;  %4006 = vrot.lane.b32.xlu0 %v22598_v46, %s22056_s30 }
 0x6fc   :  { %4398 = vrot.lane.b32.xlu1 %v22573_v59, %s22055_s29  ;;  %4164 = vrot.lane.b32.xlu0 %v22563_v32, %s22055_s29 }
 0x700   :  { %4396 = vrot.lane.b32.xlu1 %v22646_v9, %s22056_s30  ;;  %4162 = vrot.lane.b32.xlu0 %v22616_v54, %s22056_s30 }
 0x704   :  { %4320 = vrot.lane.b32.xlu0 %v22565_v34, %s22055_s29 }
 0x708   :  { %4318 = vrot.lane.b32.xlu0 %v22634_v47, %s22056_s30 }
 0x719   :  { %v2949_v23 = vpop.xlane.xlu0 %2948 }
 0x71a   :  { %21752 = vrcp.f32 %v2949_v23 }
 0x727   :  { %v21753_v62 = vpop.eup %21752 }
 0x728   :  { %v2977_v61 = vmul.f32 %v21753_v62, %v22903_v15 }
 0x72a   :  { %20736 = vmatmul.mubr.msk.f32.vlgmr.msra.gmra.mxu1 %vm696_vm3, %v2977_v61 }
 0x72b   :  { %20744 = vmatpush3.msra.mxu1 %v3213_v28  ;;  %20745 = vmatprep.mubr.msk.f32.mxu1 %vm22048_vm4, %v26823_v16 }
 0x72c   :  { %20753 = vmatprep.subr.mxu1 %v26823_v16 }
 0x74b   :  { %v2946_v18 = vpop.xlane.xlu1 %2945 }
 0x74c   :  { %21754 = vrcp.f32 %v2946_v18 }
 0x74f   :  { %v2952_v17 = vpop.xlane.xlu1 %2951 }
 0x750   :  { %21756 = vrcp.f32 %v2952_v17 }
 0x753   :  { %v2955_v0 = vpop.xlane.xlu0 %2954 }
 0x754   :  { %21758 = vrcp.f32 %v2955_v0  ;;  %v2958_v41 = vpop.xlane.xlu1 %2957 }
 0x755   :  { %21760 = vrcp.f32 %v2958_v41 }
 0x757   :  { %v2961_v6 = vpop.xlane.xlu0 %2960 }
 0x758   :  { %21762 = vrcp.f32 %v2961_v6  ;;  %v2964_v15 = vpop.xlane.xlu1 %2963 }
 0x759   :  { %v21755_v2 = vpop.eup %21754  ;;  %21764 = vrcp.f32 %v2964_v15 }
 0x75a   :  { %v2976_v39 = vmul.f32 %v21755_v2, %v22907_v24 }
 0x75b   :  { %v2967_v43 = vpop.xlane.xlu0 %2966 }
 0x75c   :  { %21766 = vrcp.f32 %v2967_v43  ;;  %v3517_v56 = vpop.permute.xlu1 %3516  ;;  %20731 = vmatmul.mubr.msk.f32.vlgmr.msra.gmra.mxu0 %vm696_vm3, %v2976_v39 }
 0x75d   :  { %v21757_v55 = vpop.eup %21756  ;;  %20739 = vmatpush3.msra.mxu0 %v3137_v45  ;;  %20740 = vmatprep.mubr.msk.f32.mxu0 %vm22048_vm4, %v26823_v16 }
 0x75e   :  { %20748 = vmatprep.subr.mxu0 %v26823_v16  ;;  %v2978_v20 = vmul.f32 %v21757_v55, %v22912_v22 }
 0x75f   :  { %v3441_v61 = vpop.permute.xlu0 %3440 }
 0x760   :  { %20741 = vmatmul.mubr.msk.f32.vlgmr.msra.gmra.mxu0 %vm696_vm3, %v2978_v20  ;;  %v3931_v57 = vpop.permute.xlu1 %3930 }
 0x761   :  { %v21759_v50 = vpop.eup %21758  ;;  %20749 = vmatpush3.msra.mxu0 %v3289_v40  ;;  %20750 = vmatprep.mubr.msk.f32.mxu0 %vm22048_vm4, %v26823_v16 }
 0x762   :  { %v21761_v24 = vpop.eup %21760  ;;  %20758 = vmatprep.subr.mxu0 %v26823_v16  ;;  %v2979_v23 = vmul.f32 %v21759_v50, %v22917_v42 }
 0x763   :  { %v2980_v45 = vmul.f32 %v21761_v24, %v22919_v1  ;;  %v948_v1 = vld [vmem:[%s26808_s7] sm:$0xff] }
 0x764   :  { %20746 = vmatmul.mubr.msk.f32.vlgmr.msra.gmra.mxu1 %vm696_vm3, %v2979_v23  ;;  %v3929_v28 = vpop.permute.xlu1 %3928 }
 0x765   :  { %v21763_v62 = vpop.eup %21762  ;;  %20751 = vmatmul.mubr.msk.f32.vlgmr.msra.gmra.mxu0 %vm696_vm3, %v2980_v45  ;;  %20754 = vmatpush3.msra.mxu1 %v3365_v21 }
 0x766   :  { %v21765_v22 = vpop.eup %21764  ;;  %20759 = vmatpush3.msra.mxu0 %v3441_v61  ;;  %20755 = vmatprep.mubr.msk.f32.mxu1 %vm22048_vm4, %v26823_v16  ;;  %v2981_v40 = vmul.f32 %v21763_v62, %v22925_v19 }
 0x767   :  { %20760 = vmatprep.mubr.msk.f32.mxu0 %vm22048_vm4, %v26823_v16  ;;  %20763 = vmatprep.subr.mxu1 %v26823_v16  ;;  %v2982_v42 = vmul.f32 %v21765_v22, %v22927_v14  ;;  %v949_v14 = vld [vmem:[%s26808_s7 + $0x8] sm:$0xff] }
 0x768   :  { %20756 = vmatmul.mubr.msk.f32.vlgmr.msra.gmra.mxu1 %vm696_vm3, %v2981_v40  ;;  %v4087_v18 = vpop.permute.xlu1 %4086  ;;  %20768 = vmatprep.subr.mxu0 %v949_v14 }
 0x769   :  { %v21767_v21 = vpop.eup %21766  ;;  %20761 = vmatmul.mubr.msk.f32.vlgmr.msra.gmra.mxu0 %vm696_vm3, %v2982_v42  ;;  %20764 = vmatpush3.msra.mxu1 %v3517_v56 }
 0x76a   :  { %20765 = vmatprep.mubr.msk.f32.mxu1 %vm22048_vm4, %v26823_v16  ;;  %v2983_v19 = vmul.f32 %v21767_v21, %v22933_v37  ;;  %20782 = vmatprep.subr.mxu1 %v948_v1 }
 0x76b   :  { %20769 = vmatpush3.msra.mxu0 %v949_v14 }
 0x76c   :  { %20766 = vmatmul.mubr.msk.f32.vlgmr.msra.gmra.mxu1 %vm696_vm3, %v2983_v19  ;;  %20796 = vmatprep.subr.mxu0 %v26823_v16  ;;  %v4085_v37 = vpop.permute.xlu1 %4084 }
 0x76d   :  { %20784 = vmatprep.mubr.msk.f32.mxu1 %vm696_vm3, %v22863_v48  ;;  %20783 = vmatpush3.msra.mxu1 %v948_v1 }
 0x76e   :  { %20801 = vmatprep.subr.mxu1 %v26823_v16 }
 0x770   :  { %20785 = vmatmul.mubr.msk.f32.vlgmr.msra.gmra.mxu1 %vm696_vm3, %v22859_v7  ;;  %v4243_v7 = vpop.permute.xlu1 %4242 }
 0x771   :  { %20802 = vmatpush3.xpose.msk.msra.mxu1 %vm696_vm3, %v3931_v57  ;;  %20787 = vmatprep.mubr.msk.f32.mxu1 %vm696_vm3, %v22867_v36 }
 0x772   :  { %20811 = vmatprep.subr.mxu1 %v26823_v16 }
 0x774   :  { %20788 = vmatmul.mubr.msk.f32.gmra.mxu1 %vm696_vm3, %v22861_v49  ;;  %v4241_v48 = vpop.permute.xlu1 %4240 }
 0x775   :  { %20790 = vmatprep.mubr.msk.f32.mxu1 %vm696_vm3, %v22873_v26  ;;  %v3853_v26 = vpop.permute.xlu0 %3852 }
 0x778   :  { %20791 = vmatmul.mubr.msk.f32.gmra.mxu1 %vm696_vm3, %v22865_v33  ;;  %v4399_v49 = vpop.permute.xlu1 %4398 }
 0x779   :  { %20793 = vmatprep.mubr.msk.f32.mxu1 %vm696_vm3, %v22875_v11  ;;  %v3851_v11 = vpop.permute.xlu0 %3850 }
 0x77c   :  { %20794 = vmatmul.mubr.msk.f32.gmra.mxu1 %vm696_vm3, %v22869_v12  ;;  %v4397_v33 = vpop.permute.xlu1 %4396 }
 0x77d   :  { %20803 = vmatprep.mubr.msk.f32.mxu1 %vm22048_vm4, %v26823_v16  ;;  %v4009_v0 = vpop.permute.xlu0 %4008 }
 0x780   :  { %20804 = vmatmul.mubr.msk.f32.vlgmr.msra.gmra.mxu1 %vm696_vm3, %v3929_v28 }
 0x781   :  { %20812 = vmatpush3.xpose.msk.msra.mxu1 %vm696_vm3, %v4087_v18  ;;  %20813 = vmatprep.mubr.msk.f32.mxu1 %vm22048_vm4, %v26823_v16  ;;  %v4007_v2 = vpop.permute.xlu0 %4006 }
 0x782   :  { %20821 = vmatprep.subr.mxu1 %v26823_v16 }
 0x784   :  { %20814 = vmatmul.mubr.msk.f32.vlgmr.msra.gmra.mxu1 %vm696_vm3, %v4085_v37 }
 0x785   :  { %20822 = vmatpush3.xpose.msk.msra.mxu1 %vm696_vm3, %v4243_v7  ;;  %20823 = vmatprep.mubr.msk.f32.mxu1 %vm22048_vm4, %v26823_v16  ;;  %v4165_v57 = vpop.permute.xlu0 %4164 }
 0x786   :  { %20831 = vmatprep.subr.mxu1 %v26823_v16 }
 0x788   :  { %20824 = vmatmul.mubr.msk.f32.vlgmr.msra.gmra.mxu1 %vm696_vm3, %v4241_v48 }
 0x789   :  { %20832 = vmatpush3.xpose.msk.msra.mxu1 %vm696_vm3, %v4399_v49  ;;  %20833 = vmatprep.mubr.msk.f32.mxu1 %vm22048_vm4, %v26823_v16  ;;  %v4163_v61 = vpop.permute.xlu0 %4162 }
 0x78a   :  { %20841 = vmatprep.subr.mxu1 %v26823_v16 }
 0x78c   :  { %20834 = vmatmul.mubr.msk.f32.vlgmr.msra.gmra.mxu1 %vm696_vm3, %v4397_v33 }
 0x78d   :  { %20843 = vmatprep.mubr.msk.f32.mxu1 %vm22048_vm4, %v26823_v16  ;;  %v4321_v42 = vpop.permute.xlu0 %4320 }
 0x791   :  { %v4319_v14 = vpop.permute.xlu0 %4318 }
 0x7ea   :  { %v3132_v36 = vpop.f32.mrf.mxu1 }
 0x7ec   :  { %v20737_v12 = vpop.f32.mrf.mxu1 }
 0x81c   :  { %v3056_v17 = vpop.f32.mrf.mxu0 }
 0x81d   :  { %20770 = vmatprep.mubr.msk.f32.mxu0 %vm696_vm3, %v3056_v17 }
 0x81e   :  { %v20732_v41 = vpop.f32.mrf.mxu0  ;;  %20771 = vmatmul.mubr.msk.f32.vlgmr.msra.gmra.mxu0 %vm696_vm3, %v3132_v36 }
 0x81f   :  { %20797 = vmatpush3.xpose.msk.msra.mxu0 %vm696_vm3, %v3853_v26 }
 0x820   :  { %v3208_v6 = vpop.f32.mrf.mxu0  ;;  %20806 = vmatprep.subr.mxu0 %v26823_v16 }
 0x821   :  { %20773 = vmatprep.mubr.msk.f32.mxu0 %vm696_vm3, %v3208_v6 }
 0x822   :  { %v20742_v15 = vpop.f32.mrf.mxu0 }
 0x824   :  { %v3284_v39 = vpop.f32.mrf.mxu1 }
 0x825   :  { %v3360_v43 = vpop.f32.mrf.mxu0  ;;  %20774 = vmatmul.mubr.msk.f32.gmra.mxu0 %vm696_vm3, %v3284_v39 }
 0x826   :  { %v20747_v56 = vpop.f32.mrf.mxu1  ;;  %20776 = vmatprep.mubr.msk.f32.mxu0 %vm696_vm3, %v3360_v43 }
 0x827   :  { %v20752_v55 = vpop.f32.mrf.mxu0 }
 0x828   :  { %v3436_v20 = vpop.f32.mrf.mxu1 }
 0x829   :  { %v3512_v50 = vpop.f32.mrf.mxu0  ;;  %20777 = vmatmul.mubr.msk.f32.gmra.mxu0 %vm696_vm3, %v3436_v20 }
 0x82a   :  { %v20757_v24 = vpop.f32.mrf.mxu1  ;;  %20779 = vmatprep.mubr.msk.f32.mxu0 %vm696_vm3, %v3512_v50 }
 0x82b   :  { %v20762_v23 = vpop.f32.mrf.mxu0 }
 0x82c   :  { %v3588_v45 = vpop.f32.mrf.mxu1 }
 0x82d   :  { %20780 = vmatmul.mubr.msk.f32.gmra.mxu0 %vm696_vm3, %v3588_v45 }
 0x82e   :  { %v20767_v62 = vpop.f32.mrf.mxu1  ;;  %20798 = vmatprep.mubr.msk.f32.mxu0 %vm22048_vm4, %v26823_v16 }
 0x830   :  { %v23063_v22 = vpop.f32.mrf.mxu1 }
 0x831   :  { %20799 = vmatmul.mubr.msk.f32.vlgmr.msra.gmra.mxu0 %vm696_vm3, %v3851_v11 }
 0x832   :  { %20807 = vmatpush3.xpose.msk.msra.mxu0 %vm696_vm3, %v4009_v0  ;;  %v23067_v40 = vpop.f32.mrf.mxu1  ;;  %20808 = vmatprep.mubr.msk.f32.mxu0 %vm22048_vm4, %v26823_v16 }
 0x833   :  { %20816 = vmatprep.subr.mxu0 %v26823_v16 }
 0x834   :  { %v23072_v28 = vpop.f32.mrf.mxu1 }
 0x835   :  { %20809 = vmatmul.mubr.msk.f32.vlgmr.msra.gmra.mxu0 %vm696_vm3, %v4007_v2 }
 0x836   :  { %20817 = vmatpush3.xpose.msk.msra.mxu0 %vm696_vm3, %v4165_v57  ;;  %v23076_v1 = vpop.f32.mrf.mxu1  ;;  %20818 = vmatprep.mubr.msk.f32.mxu0 %vm22048_vm4, %v26823_v16 }
 0x837   :  { %20826 = vmatprep.subr.mxu0 %v26823_v16 }
 0x838   :  { %v23081_v21 = vpop.f32.mrf.mxu1 }
 0x839   :  { %20819 = vmatmul.mubr.msk.f32.vlgmr.msra.gmra.mxu0 %vm696_vm3, %v4163_v61 }
 0x83a   :  { %20827 = vmatpush3.xpose.msk.msra.mxu0 %vm696_vm3, %v4321_v42  ;;  %v23085_v19 = vpop.f32.mrf.mxu1  ;;  %20828 = vmatprep.mubr.msk.f32.mxu0 %vm22048_vm4, %v26823_v16 }
 0x83b   :  { %20836 = vmatprep.subr.mxu0 %v26823_v16 }
 0x83c   :  { %v23090_v18 = vpop.f32.mrf.mxu1 }
 0x83d   :  { %20829 = vmatmul.mubr.msk.f32.vlgmr.msra.gmra.mxu0 %vm696_vm3, %v4319_v14 }
 0x83e   :  { %v23093_v37 = vpop.f32.mrf.mxu1  ;;  %20838 = vmatprep.mubr.msk.f32.mxu0 %vm22048_vm4, %v26823_v16 }
 0x840   :  { %v4002_v7 = vpop.f32.mrf.mxu1 }
 0x841   :  { %v4003_v48 = vadd.f32 %v4002_v7, %v22657_v63 }
 0x842   :  { %v20805_v49 = vpop.f32.mrf.mxu1 }
 0x843   :  { %v4477_v33 = vsel %vm696_vm3, %v4003_v48, -inf }
 0x844   :  { %4478 = vmax.xlane.f32.xlu1 %v4477_v33  ;;  %v4158_v36 = vpop.f32.mrf.mxu1 }
 0x845   :  { %v4159_v7 = vadd.f32 %v4158_v36, %v22657_v63 }
 0x846   :  { %v20815_v12 = vpop.f32.mrf.mxu1 }
 0x848   :  { %v4314_v26 = vpop.f32.mrf.mxu1 }
 0x84a   :  { %v20825_v11 = vpop.f32.mrf.mxu1 }
 0x84b   :  { %v4315_v11 = vadd.f32 %v4314_v26, %v22657_v63 }
 0x84c   :  { %v4470_v17 = vpop.f32.mrf.mxu1 }
 0x84e   :  { %v20835_v0 = vpop.f32.mrf.mxu1 }
 0x84f   :  { %v4483_v0 = vsel %vm696_vm3, %v4159_v7, -inf }
 0x8cd   :  { %v4479_v56 = vpop.xlane.xlu1 %4478 }
 0x8ce   :  { %v4499_v50 = vsub.f32 %v4003_v48, %v4479_v56 }
 0x8d0   :  { %v4508_v45 = vmul.f32 1.442695, %v4499_v50 }
 0x8d2   :  { %21768 = vpow2.f32 %v4508_v45  ;;  %v4489_v45 = vsel %vm696_vm3, %v4315_v11, -inf }
 0x8de   :  { %v23099_v41 = vpop.f32.mrf.mxu0 }
 0x8e0   :  { %v23101_v6 = vpop.f32.mrf.mxu0 }
 0x8e5   :  { %v23103_v15 = vpop.f32.mrf.mxu0 }
 0x8e7   :  { %v23105_v2 = vpop.f32.mrf.mxu0 }
 0x8e9   :  { %v23107_v39 = vpop.f32.mrf.mxu0 }
 0x8eb   :  { %v23109_v43 = vpop.f32.mrf.mxu0 }
 0x8ed   :  { %v23111_v55 = vpop.f32.mrf.mxu0 }
 0x8ef   :  { %v23113_v20 = vpop.f32.mrf.mxu0 }
 0x8f1   :  { %v3924_v57 = vpop.f32.mrf.mxu0 }
 0x8f2   :  { %v3925_v24 = vadd.f32 %v3924_v57, %v22657_v63 }
 0x8f3   :  { %v20800_v23 = vpop.f32.mrf.mxu0 }
 0x8f4   :  { %v4474_v62 = vsel %vm696_vm3, %v3925_v24, -inf  ;;  %v4471_v23 = vadd.f32 %v4470_v17, %v22657_v63 }
 0x8f5   :  { %4475 = vmax.xlane.f32.xlu0 %v4474_v62  ;;  %v4080_v61 = vpop.f32.mrf.mxu0 }
 0x8f6   :  { %v4081_v42 = vadd.f32 %v4080_v61, %v22657_v63  ;;  %v4495_v26 = vsel %vm696_vm3, %v4471_v23, -inf  ;;  %v23129_v61 = vpop.eup %21768 }
 0x8f7   :  { %v20810_v14 = vpop.f32.mrf.mxu0 }
 0x8f8   :  { %v4480_v49 = vsel %vm696_vm3, %v4081_v42, -inf  ;;  %v4525_v14 = vsel %vm696_vm3, %v23129_v61, 0.0 }
 0x8f9   :  { %4481 = vmax.xlane.f32.xlu0 %v4480_v49  ;;  %v4236_v33 = vpop.f32.mrf.mxu0 }
 0x8fa   :  { %v4237_v48 = vadd.f32 %v4236_v33, %v22657_v63 }
 0x8fb   :  { %v20820_v12 = vpop.f32.mrf.mxu0 }
 0x8fc   :  { %v4486_v56 = vsel %vm696_vm3, %v4237_v48, -inf }
 0x8fd   :  { %4484 = vmax.xlane.f32.xlu0 %v4483_v0  ;;  %4487 = vmax.xlane.f32.xlu1 %v4486_v56  ;;  %v4392_v50 = vpop.f32.mrf.mxu0 }
 0x8fe   :  { %v4393_v57 = vadd.f32 %v4392_v50, %v22657_v63 }
 0x8ff   :  { %v20830_v36 = vpop.f32.mrf.mxu0 }
 0x900   :  { %v4492_v62 = vsel %vm696_vm3, %v4393_v57, -inf }
 0x901   :  { %4490 = vmax.xlane.f32.xlu0 %v4489_v45  ;;  %4493 = vmax.xlane.f32.xlu1 %v4492_v62 }
 0x905   :  { %4496 = vmax.xlane.f32.xlu0 %v4495_v26 }
 0x909   :  { %4526 = vadd.xlane.f32.xlu0 %v4525_v14 }
 0x912   :  { %4562 = vrot.lane.b32.xlu1 %v22549_v27, %s22057_s0 }
 0x916   :  { %4714 = vrot.lane.b32.xlu1 %v22553_v29, %s22057_s0 }
 0x91a   :  { %4790 = vrot.lane.b32.xlu1 %v22561_v25, %s22057_s0 }
 0x91e   :  { %4942 = vrot.lane.b32.xlu1 %v22571_v60, %s22057_s0 }
 0x97e   :  { %v4476_v17 = vpop.xlane.xlu0 %4475 }
 0x97f   :  { %v4498_v49 = vsub.f32 %v3925_v24, %v4476_v17 }
 0x981   :  { %v4506_v33 = vmul.f32 1.442695, %v4498_v49 }
 0x982   :  { %v4482_v12 = vpop.xlane.xlu0 %4481 }
 0x983   :  { %21770 = vpow2.f32 %v4506_v33  ;;  %v4500_v0 = vsub.f32 %v4081_v42, %v4482_v12 }
 0x985   :  { %v4510_v56 = vmul.f32 1.442695, %v4500_v0 }
 0x986   :  { %v4485_v50 = vpop.xlane.xlu0 %4484  ;;  %v4488_v36 = vpop.xlane.xlu1 %4487 }
 0x987   :  { %21772 = vpow2.f32 %v4510_v56  ;;  %v4501_v45 = vsub.f32 %v4159_v7, %v4485_v50  ;;  %v4502_v62 = vsub.f32 %v4237_v48, %v4488_v36  ;;  %v26878_v7 = vmov 0.0  }
 0x989   :  { %v4512_v26 = vmul.f32 1.442695, %v4501_v45  ;;  %v4514_v14 = vmul.f32 1.442695, %v4502_v62 }
 0x98a   :  { %v4491_v5 = vpop.xlane.xlu0 %4490  ;;  %v4494_v16 = vpop.xlane.xlu1 %4493 }
 0x98b   :  { %21774 = vpow2.f32 %v4512_v26  ;;  %v4503_v8 = vsub.f32 %v4315_v11, %v4491_v5  ;;  %v4504_v13 = vsub.f32 %v4393_v57, %v4494_v16 }
 0x98c   :  { %21776 = vpow2.f32 %v4514_v14 }
 0x98d   :  { %v4516_v4 = vmul.f32 1.442695, %v4503_v8  ;;  %v4518_v24 = vmul.f32 1.442695, %v4504_v13 }
 0x98e   :  { %v4497_v17 = vpop.xlane.xlu0 %4496  ;;  %v4563_v49 = vpop.permute.xlu1 %4562 }
 0x98f   :  { %21778 = vpow2.f32 %v4516_v4  ;;  %v4505_v42 = vsub.f32 %v4471_v23, %v4497_v17  ;;  %20837 = vmatpush3.msra.mxu0 %v4563_v49 }
 0x990   :  { %v23141_v33 = vpop.eup %21770  ;;  %21780 = vpow2.f32 %v4518_v24  ;;  %20846 = vmatprep.subr.mxu0 %v26878_v7 }
 0x991   :  { %v4520_v48 = vmul.f32 1.442695, %v4505_v42  ;;  %v4522_v12 = vsel %vm696_vm3, %v23141_v33, 0.0 }
 0x992   :  { %4523 = vadd.xlane.f32.xlu1 %v4522_v12 }
 0x993   :  { %21782 = vpow2.f32 %v4520_v48 }
 0x994   :  { %v23146_v5 = vpop.eup %21772 }
 0x995   :  { %v4528_v8 = vsel %vm696_vm3, %v23146_v5, 0.0 }
 0x996   :  { %4529 = vadd.xlane.f32.xlu1 %v4528_v8 }
 0x998   :  { %v23150_v16 = vpop.eup %21774 }
 0x999   :  { %v23152_v4 = vpop.eup %21776  ;;  %v4531_v13 = vsel %vm696_vm3, %v23150_v16, 0.0 }
 0x99a   :  { %4532 = vadd.xlane.f32.xlu0 %v4531_v13  ;;  %v4534_v11 = vsel %vm696_vm3, %v23152_v4, 0.0 }
 0x99b   :  { %4535 = vadd.xlane.f32.xlu1 %v4534_v11 }
 0x99c   :  { %v23158_v57 = vpop.eup %21778 }
 0x99d   :  { %v23160_v23 = vpop.eup %21780  ;;  %v4537_v0 = vsel %vm696_vm3, %v23158_v57, 0.0 }
 0x99e   :  { %4538 = vadd.xlane.f32.xlu0 %v4537_v0  ;;  %v4540_v56 = vsel %vm696_vm3, %v23160_v23, 0.0 }
 0x99f   :  { %4541 = vadd.xlane.f32.xlu1 %v4540_v56 }
 0x9a0   :  { %v23166_v50 = vpop.eup %21782 }
 0x9a1   :  { %v4543_v36 = vsel %vm696_vm3, %v23166_v50, 0.0 }
 0x9a2   :  { %4544 = vadd.xlane.f32.xlu0 %v4543_v36 }
 0x9b0   :  { %5094 = vrot.lane.b32.xlu1 %v22573_v59, %s22057_s0 }
 0x9b4   :  { %5307 = vrot.lane.b32.xlu1 %v22586_v38, %s26833_s3  ;;  %v4715_v38 = vpop.permute.xlu1 %4714 }
 0x9b8   :  { %5385 = vrot.lane.b32.xlu1 %v22595_v44, %s26833_s3  ;;  %4638 = vrot.lane.b32.xlu0 %v22555_v31, %s22057_s0  ;;  %v4791_v44 = vpop.permute.xlu1 %4790 }
 0x9bc   :  { %5463 = vrot.lane.b32.xlu1 %v22598_v46, %s26833_s3  ;;  %4866 = vrot.lane.b32.xlu0 %v22563_v32, %s22057_s0  ;;  %v4943_v46 = vpop.permute.xlu1 %4942 }
 0x9c0   :  { %5541 = vrot.lane.b32.xlu1 %v22613_v51, %s26833_s3  ;;  %5018 = vrot.lane.b32.xlu0 %v22565_v34, %s22057_s0 }
 0x9c4   :  { %5699 = vrot.lane.b32.xlu1 %v22571_v60, %s26831_s4  ;;  %5309 = vrot.lane.b32.xlu0 %v22549_v27, %s26831_s4 }
 0x9c8   :  { %5697 = vrot.lane.b32.xlu1 %v22631_v58, %s26833_s3  ;;  %5387 = vrot.lane.b32.xlu0 %v22555_v31, %s26831_s4  ;;  %v4527_v58 = vpop.xlane.xlu0 %4526 }
 0x9cc   :  { %5855 = vrot.lane.b32.xlu1 %v22573_v59, %s26831_s4  ;;  %5465 = vrot.lane.b32.xlu0 %v22553_v29, %s26831_s4 }
 0x9d0   :  { %5853 = vrot.lane.b32.xlu1 %v22646_v9, %s26833_s3  ;;  %5543 = vrot.lane.b32.xlu0 %v22561_v25, %s26831_s4 }
 0x9d4   :  { %5621 = vrot.lane.b32.xlu0 %v22563_v32, %s26831_s4 }
 0x9d8   :  { %5619 = vrot.lane.b32.xlu0 %v22616_v54, %s26833_s3 }
 0x9dc   :  { %5777 = vrot.lane.b32.xlu0 %v22565_v34, %s26831_s4 }
 0x9e0   :  { %5775 = vrot.lane.b32.xlu0 %v22634_v47, %s26833_s3 }
 0xa1b   :  { %v4524_v51 = vpop.xlane.xlu1 %4523 }
 0xa1c   :  { %21784 = vrcp.f32 %v4524_v51 }
 0xa1d   :  { %21786 = vrcp.f32 %v4527_v58 }
 0xa1f   :  { %v4530_v9 = vpop.xlane.xlu1 %4529 }
 0xa20   :  { %21788 = vrcp.f32 %v4530_v9 }
 0xa23   :  { %v4533_v45 = vpop.xlane.xlu0 %4532 }
 0xa24   :  { %21790 = vrcp.f32 %v4533_v45  ;;  %v4536_v62 = vpop.xlane.xlu1 %4535 }
 0xa25   :  { %21792 = vrcp.f32 %v4536_v62 }
 0xa27   :  { %v4539_v54 = vpop.xlane.xlu0 %4538 }
 0xa28   :  { %21794 = vrcp.f32 %v4539_v54  ;;  %v4542_v26 = vpop.xlane.xlu1 %4541 }
 0xa29   :  { %v21785_v14 = vpop.eup %21784  ;;  %21796 = vrcp.f32 %v4542_v26 }
 0xa2a   :  { %v4554_v47 = vmul.f32 %v21785_v14, %v23141_v33  ;;  %v21787_v17 = vpop.eup %21786 }
 0xa2b   :  { %v4545_v24 = vpop.xlane.xlu0 %4544  ;;  %v4555_v8 = vmul.f32 %v21787_v17, %v23129_v61 }
 0xa2c   :  { %21798 = vrcp.f32 %v4545_v24  ;;  %v5095_v49 = vpop.permute.xlu1 %5094  ;;  %20839 = vmatmul.mubr.msk.f32.vlgmr.msra.gmra.mxu0 %vm696_vm3, %v4554_v47  ;;  %v950_v47 = vld [vmem:[%s26808_s7 + $0x10] sm:$0xff] }
 0xa2d   :  { %v21789_v42 = vpop.eup %21788  ;;  %20847 = vmatpush3.msra.mxu0 %v4715_v38  ;;  %20848 = vmatprep.mubr.msk.f32.mxu0 %vm22048_vm4, %v26878_v7 }
 0xa2e   :  { %v4556_v48 = vmul.f32 %v21789_v42, %v23146_v5  ;;  %20856 = vmatprep.subr.mxu0 %v26878_v7 }
 0xa2f   :  { %v4639_v12 = vpop.permute.xlu0 %4638 }
 0xa30   :  { %v5308_v13 = vpop.permute.xlu1 %5307  ;;  %20842 = vmatpush3.msra.mxu1 %v4639_v12  ;;  %20849 = vmatmul.mubr.msk.f32.vlgmr.msra.gmra.mxu0 %vm696_vm3, %v4556_v48 }
 0xa31   :  { %v21791_v33 = vpop.eup %21790  ;;  %20844 = vmatmul.mubr.msk.f32.vlgmr.msra.gmra.mxu1 %vm696_vm3, %v4555_v8  ;;  %20851 = vmatprep.subr.mxu1 %v26878_v7 }
 0xa32   :  { %v21793_v11 = vpop.eup %21792  ;;  %20852 = vmatpush3.msra.mxu1 %v4791_v44  ;;  %20853 = vmatprep.mubr.msk.f32.mxu1 %vm22048_vm4, %v26878_v7  ;;  %v4557_v5 = vmul.f32 %v21791_v33, %v23150_v16 }
 0xa33   :  { %v4867_v0 = vpop.permute.xlu0 %4866  ;;  %20858 = vmatprep.mubr.msk.f32.mxu0 %vm22048_vm4, %v26878_v7  ;;  %20861 = vmatprep.subr.mxu1 %v26878_v7  ;;  %v4558_v61 = vmul.f32 %v21793_v11, %v23152_v4 }
 0xa34   :  { %v5386_v56 = vpop.permute.xlu1 %5385  ;;  %20857 = vmatpush3.msra.mxu0 %v4867_v0 }
 0xa35   :  { %v21795_v36 = vpop.eup %21794  ;;  %20854 = vmatmul.mubr.msk.f32.vlgmr.msra.gmra.mxu1 %vm696_vm3, %v4557_v5  ;;  %20859 = vmatmul.mubr.msk.f32.vlgmr.msra.gmra.mxu0 %vm696_vm3, %v4558_v61 }
 0xa36   :  { %v21797_v38 = vpop.eup %21796  ;;  %20862 = vmatpush3.msra.mxu1 %v4943_v46  ;;  %20866 = vmatprep.subr.mxu0 %v26878_v7  ;;  %v4559_v16 = vmul.f32 %v21795_v36, %v23158_v57 }
 0xa37   :  { %v5019_v44 = vpop.permute.xlu0 %5018  ;;  %20863 = vmatprep.mubr.msk.f32.mxu1 %vm22048_vm4, %v26878_v7  ;;  %20868 = vmatprep.mubr.msk.f32.mxu0 %vm22048_vm4, %v26878_v7  ;;  %v4560_v4 = vmul.f32 %v21797_v38, %v23160_v23 }
 0xa38   :  { %v5464_v51 = vpop.permute.xlu1 %5463  ;;  %20867 = vmatpush3.msra.mxu0 %v5019_v44  ;;  %20871 = vmatprep.subr.mxu1 %v26878_v7 }
 0xa39   :  { %v21799_v58 = vpop.eup %21798  ;;  %20864 = vmatmul.mubr.msk.f32.vlgmr.msra.gmra.mxu1 %vm696_vm3, %v4559_v16  ;;  %20869 = vmatmul.mubr.msk.f32.vlgmr.msra.gmra.mxu0 %vm696_vm3, %v4560_v4 }
 0xa3a   :  { %20872 = vmatpush3.msra.mxu1 %v5095_v49  ;;  %20873 = vmatprep.mubr.msk.f32.mxu1 %vm22048_vm4, %v26878_v7  ;;  %v4561_v57 = vmul.f32 %v21799_v58, %v23166_v50 }
 0xa3b   :  { %v5310_v46 = vpop.permute.xlu0 %5309  ;;  %20890 = vmatprep.subr.mxu1 %v26878_v7  ;;  %20876 = vmatprep.subr.mxu0 %v950_v47 }
 0xa3c   :  { %v5542_v9 = vpop.permute.xlu1 %5541  ;;  %20877 = vmatpush3.msra.mxu0 %v950_v47 }
 0xa3d   :  { %20874 = vmatmul.mubr.msk.f32.vlgmr.msra.gmra.mxu1 %vm696_vm3, %v4561_v57  ;;  %20910 = vmatprep.subr.mxu0 %v26878_v7 }
 0xa3e   :  { %20891 = vmatpush3.xpose.msk.msra.mxu1 %vm696_vm3, %v5310_v46  ;;  %20892 = vmatprep.mubr.msk.f32.mxu1 %vm22048_vm4, %v26878_v7 }
 0xa3f   :  { %v5388_v23 = vpop.permute.xlu0 %5387  ;;  %20895 = vmatprep.subr.mxu1 %v26878_v7 }
 0xa40   :  { %v5700_v45 = vpop.permute.xlu1 %5699 }
 0xa41   :  { %20893 = vmatmul.mubr.msk.f32.vlgmr.msra.gmra.mxu1 %vm696_vm3, %v5308_v13 }
 0xa42   :  { %20896 = vmatpush3.xpose.msk.msra.mxu1 %vm696_vm3, %v5388_v23  ;;  %20897 = vmatprep.mubr.msk.f32.mxu1 %vm22048_vm4, %v26878_v7 }
 0xa43   :  { %v5466_v50 = vpop.permute.xlu0 %5465  ;;  %20900 = vmatprep.subr.mxu1 %v26878_v7 }
 0xa44   :  { %v5698_v54 = vpop.permute.xlu1 %5697 }
 0xa45   :  { %20898 = vmatmul.mubr.msk.f32.vlgmr.msra.gmra.mxu1 %vm696_vm3, %v5386_v56 }
 0xa46   :  { %20901 = vmatpush3.xpose.msk.msra.mxu1 %vm696_vm3, %v5466_v50  ;;  %20902 = vmatprep.mubr.msk.f32.mxu1 %vm22048_vm4, %v26878_v7 }
 0xa47   :  { %v5544_v62 = vpop.permute.xlu0 %5543  ;;  %20905 = vmatprep.subr.mxu1 %v26878_v7 }
 0xa48   :  { %v5856_v26 = vpop.permute.xlu1 %5855 }
 0xa49   :  { %20903 = vmatmul.mubr.msk.f32.vlgmr.msra.gmra.mxu1 %vm696_vm3, %v5464_v51 }
 0xa4a   :  { %20906 = vmatpush3.xpose.msk.msra.mxu1 %vm696_vm3, %v5544_v62  ;;  %20907 = vmatprep.mubr.msk.f32.mxu1 %vm22048_vm4, %v26878_v7 }
 0xa4b   :  { %20915 = vmatprep.subr.mxu1 %v26878_v7  ;;  %v5622_v48 = vpop.permute.xlu0 %5621 }
 0xa4c   :  { %v5854_v14 = vpop.permute.xlu1 %5853 }
 0xa4d   :  { %20908 = vmatmul.mubr.msk.f32.vlgmr.msra.gmra.mxu1 %vm696_vm3, %v5542_v9 }
 0xa4e   :  { %20916 = vmatpush3.xpose.msk.msra.mxu1 %vm696_vm3, %v5700_v45  ;;  %20917 = vmatprep.mubr.msk.f32.mxu1 %vm22048_vm4, %v26878_v7 }
 0xa4f   :  { %20925 = vmatprep.subr.mxu1 %v26878_v7  ;;  %v5620_v0 = vpop.permute.xlu0 %5619 }
 0xa51   :  { %20918 = vmatmul.mubr.msk.f32.vlgmr.msra.gmra.mxu1 %vm696_vm3, %v5698_v54 }
 0xa52   :  { %20926 = vmatpush3.xpose.msk.msra.mxu1 %vm696_vm3, %v5856_v26  ;;  %20927 = vmatprep.mubr.msk.f32.mxu1 %vm22048_vm4, %v26878_v7 }
 0xa53   :  { %20935 = vmatprep.subr.mxu1 %v26878_v7  ;;  %v5778_v44 = vpop.permute.xlu0 %5777 }
 0xa55   :  { %20928 = vmatmul.mubr.msk.f32.vlgmr.msra.gmra.mxu1 %vm696_vm3, %v5854_v14 }
 0xa56   :  { %20937 = vmatprep.mubr.msk.f32.mxu1 %vm22048_vm4, %v26878_v7 }
 0xa57   :  { %v5776_v9 = vpop.permute.xlu0 %5775 }
 0xaec   :  { %v4634_v24 = vpop.f32.mrf.mxu0 }
 0xaed   :  { %20878 = vmatprep.mubr.msk.f32.mxu0 %vm696_vm3, %v4634_v24 }
 0xaee   :  { %v20840_v17 = vpop.f32.mrf.mxu0 }
 0xaf0   :  { %v4786_v49 = vpop.f32.mrf.mxu0 }
 0xaf1   :  { %v4710_v42 = vpop.f32.mrf.mxu1 }
 0xaf2   :  { %v20850_v12 = vpop.f32.mrf.mxu0  ;;  %20879 = vmatmul.mubr.msk.f32.vlgmr.msra.gmra.mxu0 %vm696_vm3, %v4710_v42 }
 0xaf3   :  { %20911 = vmatpush3.xpose.msk.msra.mxu0 %vm696_vm3, %v5622_v48  ;;  %v20845_v8 = vpop.f32.mrf.mxu1  ;;  %20881 = vmatprep.mubr.msk.f32.mxu0 %vm696_vm3, %v4786_v49 }
 0xaf4   :  { %20920 = vmatprep.subr.mxu0 %v26878_v7 }
 0xaf5   :  { %v4862_v13 = vpop.f32.mrf.mxu1  ;;  %v4938_v33 = vpop.f32.mrf.mxu0 }
 0xaf6   :  { %20882 = vmatmul.mubr.msk.f32.gmra.mxu0 %vm696_vm3, %v4862_v13 }
 0xaf7   :  { %v20855_v11 = vpop.f32.mrf.mxu1  ;;  %v20860_v5 = vpop.f32.mrf.mxu0  ;;  %20884 = vmatprep.mubr.msk.f32.mxu0 %vm696_vm3, %v4938_v33 }
 0xaf9   :  { %v5014_v61 = vpop.f32.mrf.mxu1  ;;  %v5090_v56 = vpop.f32.mrf.mxu0 }
 0xafa   :  { %20885 = vmatmul.mubr.msk.f32.gmra.mxu0 %vm696_vm3, %v5014_v61 }
 0xafb   :  { %v20865_v36 = vpop.f32.mrf.mxu1  ;;  %v20870_v38 = vpop.f32.mrf.mxu0  ;;  %20887 = vmatprep.mubr.msk.f32.mxu0 %vm696_vm3, %v5090_v56 }
 0xafd   :  { %v5166_v16 = vpop.f32.mrf.mxu1 }
 0xafe   :  { %20888 = vmatmul.mubr.msk.f32.gmra.mxu0 %vm696_vm3, %v5166_v16 }
 0xaff   :  { %v20875_v4 = vpop.f32.mrf.mxu1  ;;  %20912 = vmatprep.mubr.msk.f32.mxu0 %vm22048_vm4, %v26878_v7 }
 0xb01   :  { %v5381_v51 = vpop.f32.mrf.mxu1 }
 0xb02   :  { %v23293_v58 = vadd.f32 %v5381_v51, %v22657_v63  ;;  %20913 = vmatmul.mubr.msk.f32.vlgmr.msra.gmra.mxu0 %vm696_vm3, %v5620_v0 }
 0xb03   :  { %20921 = vmatpush3.xpose.msk.msra.mxu0 %vm696_vm3, %v5778_v44  ;;  %v20894_v57 = vpop.f32.mrf.mxu1  ;;  %20922 = vmatprep.mubr.msk.f32.mxu0 %vm22048_vm4, %v26878_v7 }
 0xb04   :  { %v5931_v46 = vsel %vm696_vm3, %v23293_v58, -inf  ;;  %20930 = vmatprep.subr.mxu0 %v26878_v7 }
 0xb05   :  { %5932 = vmax.xlane.f32.xlu0 %v5931_v46  ;;  %v5459_v23 = vpop.f32.mrf.mxu1 }
 0xb06   :  { %v5460_v45 = vadd.f32 %v5459_v23, %v22657_v63  ;;  %20923 = vmatmul.mubr.msk.f32.vlgmr.msra.gmra.mxu0 %vm696_vm3, %v5776_v9 }
 0xb07   :  { %v20899_v50 = vpop.f32.mrf.mxu1  ;;  %20932 = vmatprep.mubr.msk.f32.mxu0 %vm22048_vm4, %v26878_v7 }
 0xb08   :  { %v5934_v62 = vsel %vm696_vm3, %v5460_v45, -inf }
 0xb09   :  { %5935 = vmax.xlane.f32.xlu1 %v5934_v62  ;;  %v5537_v54 = vpop.f32.mrf.mxu1 }
 0xb0a   :  { %v23308_v26 = vadd.f32 %v5537_v54, %v22657_v63 }
 0xb0b   :  { %v20904_v14 = vpop.f32.mrf.mxu1 }
 0xb0c   :  { %v5937_v47 = vsel %vm696_vm3, %v23308_v26, -inf }
 0xb0d   :  { %5938 = vmax.xlane.f32.xlu0 %v5937_v47  ;;  %v5615_v24 = vpop.f32.mrf.mxu1 }
 0xb0e   :  { %v5616_v17 = vadd.f32 %v5615_v24, %v22657_v63 }
 0xb0f   :  { %v20909_v49 = vpop.f32.mrf.mxu1 }
 0xb10   :  { %v5940_v42 = vsel %vm696_vm3, %v5616_v17, -inf }
 0xb11   :  { %5941 = vmax.xlane.f32.xlu0 %v5940_v42  ;;  %v5771_v48 = vpop.f32.mrf.mxu1 }
 0xb12   :  { %v5772_v12 = vadd.f32 %v5771_v48, %v22657_v63  ;;  %v3812_v48 = vadd.f32 %v23067_v40, %v23101_v6  ;;  %v3837_v6 = vadd.f32 %v23081_v21, %v23107_v39 }
 0xb13   :  { %v20919_v8 = vpop.f32.mrf.mxu1 }
 0xb14   :  { %v5946_v13 = vsel %vm696_vm3, %v5772_v12, -inf }
 0xb15   :  { %5947 = vmax.xlane.f32.xlu0 %v5946_v13  ;;  %v5927_v33 = vpop.f32.mrf.mxu1 }
 0xb16   :  { %v5928_v11 = vadd.f32 %v5927_v33, %v22657_v63  ;;  %v3827_v33 = vadd.f32 %v23072_v28, %v23103_v15  ;;  %v3832_v15 = vadd.f32 %v23085_v19, %v23109_v43 }
 0xb17   :  { %v20929_v5 = vpop.f32.mrf.mxu1 }
 0xb18   :  { %v5952_v0 = vsel %vm696_vm3, %v5928_v11, -inf }
 0xb19   :  { %5953 = vmax.xlane.f32.xlu0 %v5952_v0 }
 0xb8e   :  { %v5933_v61 = vpop.xlane.xlu0 %5932 }
 0xb92   :  { %v5936_v56 = vpop.xlane.xlu1 %5935 }
 0xb93   :  { %v5956_v36 = vsub.f32 %v5460_v45, %v5936_v56 }
 0xb95   :  { %v5965_v38 = vmul.f32 1.442695, %v5956_v36 }
 0xb96   :  { %v5939_v16 = vpop.xlane.xlu0 %5938 }
 0xb97   :  { %21800 = vpow2.f32 %v5965_v38  ;;  %v5957_v36 = vsub.f32 %v23308_v26, %v5939_v16  ;;  %v3847_v38 = vadd.f32 %v23090_v18, %v23111_v55 }
 0xb9a   :  { %v5942_v44 = vpop.xlane.xlu0 %5941 }
 0xb9b   :  { %v5958_v4 = vsub.f32 %v5616_v17, %v5942_v44  ;;  %v3817_v17 = vadd.f32 %v23063_v22, %v23099_v41  ;;  %v5967_v44 = vmul.f32 1.442695, %v5957_v36 }
 0xb9d   :  { %v5969_v51 = vmul.f32 1.442695, %v5958_v4 }
 0xb9e   :  { %v5948_v57 = vpop.xlane.xlu0 %5947 }
 0xb9f   :  { %21802 = vpow2.f32 %v5969_v51  ;;  %v5960_v46 = vsub.f32 %v5772_v12, %v5948_v57 }
 0xba1   :  { %v5973_v9 = vmul.f32 1.442695, %v5960_v46 }
 0xba2   :  { %v5954_v23 = vpop.xlane.xlu0 %5953 }
 0xba3   :  { %21804 = vpow2.f32 %v5973_v9  ;;  %v5962_v50 = vsub.f32 %v5928_v11, %v5954_v23  ;;  %v5955_v11 = vsub.f32 %v23293_v58, %v5933_v61 }
 0xba4   :  { %v23318_v62 = vpop.eup %21800 }
 0xba5   :  { %v5977_v54 = vmul.f32 1.442695, %v5962_v50  ;;  %v5982_v14 = vsel %vm696_vm3, %v23318_v62, 0.0  ;;  %v5963_v56 = vmul.f32 1.442695, %v5955_v11 }
 0xba6   :  { %5983 = vadd.xlane.f32.xlu0 %v5982_v14 }
 0xba7   :  { %21806 = vpow2.f32 %v5977_v54 }
 0xba8   :  { %21808 = vpow2.f32 %v5963_v56 }
 0xba9   :  { %21810 = vpow2.f32 %v5967_v44 }
 0xbac   :  { %v23322_v45 = vpop.eup %21802 }
 0xbad   :  { %v5988_v47 = vsel %vm696_vm3, %v23322_v45, 0.0 }
 0xbae   :  { %5989 = vadd.xlane.f32.xlu0 %v5988_v47 }
 0xbb0   :  { %v23326_v24 = vpop.eup %21804 }
 0xbb1   :  { %v5994_v49 = vsel %vm696_vm3, %v23326_v24, 0.0 }
 0xbb2   :  { %5995 = vadd.xlane.f32.xlu0 %v5994_v49  ;;  %v20880_v42 = vpop.f32.mrf.mxu0 }
 0xbb3   :  { %v23334_v12 = vadd.f32 %v20880_v42, %v3817_v17 }
 0xbb4   :  { %v23336_v8 = vpop.eup %21806  ;;  %v5260_v13 = vpop.f32.mrf.mxu0 }
 0xbb5   :  { %v23341_v5 = vadd.f32 %v5260_v13, %v3812_v48  ;;  %v6000_v22 = vsel %vm696_vm3, %v23336_v8, 0.0  ;;  %v21809_v9 = vpop.eup %21808 }
 0xbb6   :  { %6001 = vadd.xlane.f32.xlu0 %v6000_v22  ;;  %v20883_v41 = vpop.f32.mrf.mxu0  ;;  %v5979_v23 = vsel %vm696_vm3, %v21809_v9, 0.0  ;;  %v21811_v50 = vpop.eup %21810 }
 0xbb7   :  { %v23345_v0 = vadd.f32 %v20883_v41, %v3827_v33  ;;  %v5985_v54 = vsel %vm696_vm3, %v21811_v50, 0.0 }
 0xbb8   :  { %v23347_v40 = vpop.f32.mrf.mxu0 }
 0xbba   :  { %v20886_v28 = vpop.f32.mrf.mxu0 }
 0xbbb   :  { %v23354_v58 = vadd.f32 %v20886_v28, %v3837_v6 }
 0xbbc   :  { %v5280_v61 = vpop.f32.mrf.mxu0 }
 0xbbd   :  { %v23358_v4 = vadd.f32 %v5280_v61, %v3832_v15 }
 0xbbe   :  { %v20889_v51 = vpop.f32.mrf.mxu0 }
 0xbbf   :  { %v23360_v57 = vadd.f32 %v20889_v51, %v3847_v38 }
 0xbc0   :  { %v23362_v21 = vpop.f32.mrf.mxu0 }
 0xbc2   :  { %v5693_v39 = vpop.f32.mrf.mxu0 }
 0xbc3   :  { %v5694_v26 = vadd.f32 %v5693_v39, %v22657_v63 }
 0xbc4   :  { %v20914_v19 = vpop.f32.mrf.mxu0 }
 0xbc5   :  { %v5943_v43 = vsel %vm696_vm3, %v5694_v26, -inf }
 0xbc6   :  { %5944 = vmax.xlane.f32.xlu1 %v5943_v43  ;;  %v5849_v16 = vpop.f32.mrf.mxu0 }
 0xbc7   :  { %v5850_v18 = vadd.f32 %v5849_v16, %v22657_v63 }
 0xbc8   :  { %v20924_v55 = vpop.f32.mrf.mxu0 }
 0xbc9   :  { %v5949_v46 = vsel %vm696_vm3, %v5850_v18, -inf }
 0xbca   :  { %5950 = vmax.xlane.f32.xlu1 %v5949_v46  ;;  %v26879_v46 = vmov 0  }
 0xbcc   :  { %6095 = vrot.lane.b32.xlu0 %v22555_v31, %s26829_s2 }
 0xbce   :  { %5980 = vadd.xlane.f32.xlu1 %v5979_v23 }
 0xbd0   :  { %6323 = vrot.lane.b32.xlu0 %v22563_v32, %s26829_s2 }
 0xbd2   :  { %5986 = vadd.xlane.f32.xlu1 %v5985_v54 }
 0xbd4   :  { %6475 = vrot.lane.b32.xlu0 %v22565_v34, %s26829_s2 }
 0xbe3   :  { %6019 = vrot.lane.b32.xlu1 %v22549_v27, %s26829_s2 }
 0xbe7   :  { %6171 = vrot.lane.b32.xlu1 %v22553_v29, %s26829_s2 }
 0xbeb   :  { %6247 = vrot.lane.b32.xlu1 %v22561_v25, %s26829_s2 }
 0xbef   :  { %6399 = vrot.lane.b32.xlu1 %v22571_v60, %s26829_s2 }
 0xc2f   :  { %v5984_v31 = vpop.xlane.xlu0 %5983 }
 0xc30   :  { %21812 = vrcp.f32 %v5984_v31 }
 0xc37   :  { %v5990_v32 = vpop.xlane.xlu0 %5989 }
 0xc3b   :  { %v5996_v14 = vpop.xlane.xlu0 %5995 }
 0xc3d   :  { %v21813_v17 = vpop.eup %21812 }
 0xc3e   :  { %v6012_v34 = vmul.f32 %v21813_v17, %v23318_v62 }
 0xc3f   :  { %v6002_v47 = vpop.xlane.xlu0 %6001 }
 0xc43   :  { %v6096_v49 = vpop.permute.xlu0 %6095 }
 0xc44   :  { %20936 = vmatpush3.msra.mxu1 %v6096_v49 }
 0xc45   :  { %20938 = vmatmul.mubr.msk.f32.vlgmr.msra.gmra.mxu1 %vm696_vm3, %v6012_v34  ;;  %20945 = vmatprep.subr.mxu1 %v26878_v7 }
 0xc46   :  { %20947 = vmatprep.mubr.msk.f32.mxu1 %vm22048_vm4, %v26878_v7 }
 0xc4f   :  { %v5945_v27 = vpop.xlane.xlu1 %5944 }
 0xc50   :  { %v5959_v29 = vsub.f32 %v5694_v26, %v5945_v27 }
 0xc52   :  { %v5971_v25 = vmul.f32 1.442695, %v5959_v29 }
 0xc53   :  { %v5951_v60 = vpop.xlane.xlu1 %5950 }
 0xc54   :  { %21814 = vpow2.f32 %v5971_v25  ;;  %v5961_v42 = vsub.f32 %v5850_v18, %v5951_v60 }
 0xc55   :  { %21816 = vrcp.f32 %v5990_v32 }
 0xc56   :  { %v5975_v48 = vmul.f32 1.442695, %v5961_v42 }
 0xc57   :  { %v5981_v13 = vpop.xlane.xlu1 %5980 }
 0xc58   :  { %21818 = vpow2.f32 %v5975_v48 }
 0xc59   :  { %21820 = vrcp.f32 %v5981_v13 }
 0xc5a   :  { %21822 = vrcp.f32 %v5996_v14 }
 0xc5b   :  { %v5987_v62 = vpop.xlane.xlu1 %5986 }
 0xc5c   :  { %21824 = vrcp.f32 %v5987_v62 }
 0xc5d   :  { %21826 = vrcp.f32 %v6002_v47 }
 0xc5f   :  { %v6020_v33 = vpop.permute.xlu1 %6019 }
 0xc60   :  { %20931 = vmatpush3.msra.mxu0 %v6020_v33 }
 0xc61   :  { %v21815_v11 = vpop.eup %21814  ;;  %20940 = vmatprep.subr.mxu0 %v26878_v7 }
 0xc62   :  { %v5991_v22 = vsel %vm696_vm3, %v21815_v11, 0.0  ;;  %v21817_v6 = vpop.eup %21816 }
 0xc63   :  { %5992 = vadd.xlane.f32.xlu1 %v5991_v22  ;;  %v6172_v41 = vpop.permute.xlu1 %6171  ;;  %v6014_v38 = vmul.f32 %v21817_v6, %v23322_v45  ;;  %v6324_v45 = vpop.permute.xlu0 %6323  ;;  %v18727_v22 = vld [vmem:[%s26809_s8] ss:$0 sm:$0xff] }
 0xc65   :  { %v21819_v56 = vpop.eup %21818 }
 0xc66   :  { %v21821_v36 = vpop.eup %21820  ;;  %v5997_v28 = vsel %vm696_vm3, %v21819_v56, 0.0 }
 0xc67   :  { %5998 = vadd.xlane.f32.xlu1 %v5997_v28  ;;  %v6248_v15 = vpop.permute.xlu1 %6247  ;;  %v6011_v61 = vmul.f32 %v21821_v36, %v21809_v9  ;;  %v21823_v44 = vpop.eup %21822 }
 0xc68   :  { %20946 = vmatpush3.msra.mxu1 %v6248_v15  ;;  %v6016_v19 = vmul.f32 %v21823_v44, %v23326_v24 }
 0xc69   :  { %v21825_v51 = vpop.eup %21824  ;;  %20933 = vmatmul.mubr.msk.f32.vlgmr.msra.gmra.mxu0 %vm696_vm3, %v6011_v61  ;;  %20948 = vmatmul.mubr.msk.f32.vlgmr.msra.gmra.mxu1 %vm696_vm3, %v6014_v38 }
 0xc6a   :  { %20941 = vmatpush3.msra.mxu0 %v6172_v41  ;;  %20942 = vmatprep.mubr.msk.f32.mxu0 %vm22048_vm4, %v26878_v7  ;;  %v6013_v39 = vmul.f32 %v21825_v51, %v21811_v50  ;;  %v21827_v16 = vpop.eup %21826  ;;  %v6476_v50 = vpop.permute.xlu0 %6475 }
 0xc6b   :  { %20950 = vmatprep.subr.mxu0 %v26878_v7  ;;  %20955 = vmatprep.subr.mxu1 %v26878_v7  ;;  %v6400_v26 = vpop.permute.xlu1 %6399  ;;  %v6018_v55 = vmul.f32 %v21827_v16, %v23336_v8 }
 0xc6c   :  { %20956 = vmatpush3.msra.mxu1 %v6400_v26  ;;  %20957 = vmatprep.mubr.msk.f32.mxu1 %vm22048_vm4, %v26878_v7 }
 0xc6d   :  { %20943 = vmatmul.mubr.msk.f32.vlgmr.msra.gmra.mxu0 %vm696_vm3, %v6013_v39  ;;  %20958 = vmatmul.mubr.msk.f32.vlgmr.msra.gmra.mxu1 %vm696_vm3, %v6016_v19 }
 0xc6e   :  { %20951 = vmatpush3.msra.mxu0 %v6324_v45  ;;  %20965 = vmatprep.subr.mxu1 %v26878_v7 }
 0xc6f   :  { %20967 = vmatprep.mubr.msk.f32.mxu1 %vm22048_vm4, %v26878_v7  ;;  %20952 = vmatprep.mubr.msk.f32.mxu0 %vm22048_vm4, %v26878_v7 }
 0xc70   :  { %20960 = vmatprep.subr.mxu0 %v26878_v7 }
 0xc78   :  { %6551 = vrot.lane.b32.xlu1 %v22573_v59, %s26829_s2  ;;  %v951_v59 = vld [vmem:[%s26808_s7 + $0x18] sm:$0xff] }
 0xcec   :  { %v5993_v24 = vpop.xlane.xlu1 %5992 }
 0xced   :  { %21828 = vrcp.f32 %v5993_v24 }
 0xcf0   :  { %v5999_v43 = vpop.xlane.xlu1 %5998 }
 0xcf1   :  { %21830 = vrcp.f32 %v5999_v43 }
 0xcf4   :  { %v6552_v18 = vpop.permute.xlu1 %6551 }
 0xcf5   :  { %20966 = vmatpush3.msra.mxu1 %v6552_v18 }
 0xcf6   :  { %20968 = vmatmul.mubr.msk.f32.vlgmr.msra.gmra.mxu1 %vm696_vm3, %v6018_v55 }
 0xcf7   :  { %7246 = vmatprep.mubr.bf16.mxu1 %v26879_v46 }
 0xcfa   :  { %v21829_v9 = vpop.eup %21828 }
 0xcfb   :  { %v6015_v23 = vmul.f32 %v21829_v9, %v21815_v11  ;;  %v3842_v9 = vadd.f32 %v23093_v37, %v23113_v20 }
 0xcfd   :  { %20953 = vmatmul.mubr.msk.f32.vlgmr.msra.gmra.mxu0 %vm696_vm3, %v6015_v23 }
 0xcfe   :  { %v21831_v54 = vpop.eup %21830  ;;  %20961 = vmatpush3.msra.mxu0 %v6476_v50  ;;  %20962 = vmatprep.mubr.msk.f32.mxu0 %vm22048_vm4, %v26878_v7 }
 0xcff   :  { %v6017_v8 = vmul.f32 %v21831_v54, %v21819_v56  ;;  %20970 = vmatprep.subr.mxu0 %v951_v59  ;;  %v3822_v56 = vadd.f32 %v23076_v1, %v23105_v2  ;;  %v5305_v54 = vadd.f32 %v23362_v21, %v3842_v9 }
 0xd01   :  { %20963 = vmatmul.mubr.msk.f32.vlgmr.msra.gmra.mxu0 %vm696_vm3, %v6017_v8  ;;  %v5301_v61 = vadd.f32 %v23347_v40, %v3822_v56 }
 0xd02   :  { %20971 = vmatpush3.msra.mxu0 %v951_v59 }
 0xd05   :  { %v6167_v31 = vpop.f32.mrf.mxu1 }
 0xd07   :  { %v20939_v32 = vpop.f32.mrf.mxu1 }
 0xd29   :  { %v6091_v14 = vpop.f32.mrf.mxu0  ;;  %v6319_v47 = vpop.f32.mrf.mxu1 }
 0xd2a   :  { %20972 = vmatprep.mubr.msk.f32.mxu0 %vm696_vm3, %v6091_v14 }
 0xd2b   :  { %v20934_v17 = vpop.f32.mrf.mxu0  ;;  %20973 = vmatmul.mubr.msk.f32.vlgmr.msra.gmra.mxu0 %vm696_vm3, %v6167_v31  ;;  %v20949_v49 = vpop.f32.mrf.mxu1 }
 0xd2d   :  { %v6243_v34 = vpop.f32.mrf.mxu0  ;;  %v6471_v27 = vpop.f32.mrf.mxu1 }
 0xd2e   :  { %20975 = vmatprep.mubr.msk.f32.mxu0 %vm696_vm3, %v6243_v34 }
 0xd2f   :  { %v20944_v29 = vpop.f32.mrf.mxu0  ;;  %20976 = vmatmul.mubr.msk.f32.gmra.mxu0 %vm696_vm3, %v6319_v47  ;;  %v20959_v25 = vpop.f32.mrf.mxu1 }
 0xd30   :  { %v26880_v29 = vld [vmem:[#allocation6_spill] sm:$0xff] }
 0xdb6   :  { %v6623_v60 = vpop.f32.mrf.mxu1 }
 0xdb8   :  { %v20969_v42 = vpop.f32.mrf.mxu1 }
 0xdb9   :  { %v26881_v42 = vld [vmem:[#allocation7_spill] sm:$0xff] }
 0xdbd   :  { %v6395_v48 = vpop.f32.mrf.mxu0 }
 0xdbe   :  { %20978 = vmatprep.mubr.msk.f32.mxu0 %vm696_vm3, %v6395_v48 }
 0xdbf   :  { %v20954_v13 = vpop.f32.mrf.mxu0  ;;  %20979 = vmatmul.mubr.msk.f32.gmra.mxu0 %vm696_vm3, %v6471_v27 }
 0xdc1   :  { %v6547_v62 = vpop.f32.mrf.mxu0 }
 0xdc2   :  { %20981 = vmatprep.mubr.msk.f32.mxu0 %vm696_vm3, %v6547_v62 }
 0xdc3   :  { %v20964_v33 = vpop.f32.mrf.mxu0  ;;  %20982 = vmatmul.mubr.msk.f32.gmra.mxu0 %vm696_vm3, %v6623_v60 }
 0xdc4   :  { %7319 = vmatprep.mubr.bf16.mxu0 %v26879_v46 }
 0xdeb   :  { %v20974_v11 = vpop.f32.mrf.mxu0 }
 0xdec   :  { %v6757_v41 = vadd.f32 %v20974_v11, %v23334_v12 }
 0xded   :  { %v6717_v6 = vpop.f32.mrf.mxu0 }
 0xdee   :  { %v6772_v36 = vadd.f32 %v18727_v22, %v6757_v41  ;;  %v6756_v28 = vadd.f32 %v6717_v6, %v23341_v5 }
 0xdef   :  { %v20977_v15 = vpop.f32.mrf.mxu0 }
 0xdf0   :  { %v6771_v38 = vadd.f32 %v18727_v22, %v6756_v28  ;;  %v6759_v44 = vadd.f32 %v20977_v15, %v23345_v0  ;;  %v6780_v51 = vadd.f32 %v6772_v36, %v22496_v35  ;;  %v6942_v28 = vld [vmem:[%s26812_s11 + $0x80] sm:$0xff] }
 0xdf1   :  { %v6727_v39 = vpop.f32.mrf.mxu0  ;;  %v6950_v15 = vld [vmem:[%s26812_s11 + $0xc0] sm:$0xff] }
 0xdf2   :  { %v6758_v26 = vadd.f32 %v6727_v39, %v5301_v61  ;;  %v6792_v19 = vsel %vm105_vm0, %v6780_v51, 0.0  ;;  %v6779_v12 = vadd.f32 %v6771_v38, %v22498_v53  ;;  %v6774_v45 = vadd.f32 %v18727_v22, %v6759_v44  ;;  %v6943_v61 = vld [vmem:[%s26812_s11 + $0x88] sm:$0xff] }
 0xdf3   :  { %6793 = vadd.xlane.f32.xlu1 %v6792_v19  ;;  %v18747_v38 = vcombine.high %v6942_v28, %v6950_v15  ;;  %v6951_v44 = vld [vmem:[%s26812_s11 + $0xc8] sm:$0xff]  ;;  %v6926_v19 = vld [vmem:[%s26812_s11] sm:$0xff] }
 0xdf4   :  { %v6773_v1 = vadd.f32 %v18727_v22, %v6758_v26  ;;  %v6789_v2 = vsel %vm105_vm0, %v6779_v12, 0.0  ;;  %v6782_v0 = vadd.f32 %v6774_v45, %v22511_v52  ;;  %v18748_v39 = vcombine.low %v6943_v61, %v6951_v44  ;;  %v6927_v45 = vld [vmem:[%s26812_s11 + $0x8] sm:$0xff] }
 0xdf5   :  { %6790 = vadd.xlane.f32.xlu0 %v6789_v2  ;;  %v18749_v26 = vcombine.high %v6943_v61, %v6951_v44  ;;  %7226 = vmatprep.subr.bf16.mxu1 %v18747_v38  ;;  %v6935_v2 = vld [vmem:[%s26812_s11 + $0x48] sm:$0xff] }
 0xdf6   :  { %v6781_v5 = vadd.f32 %v6773_v1, %v22513_v10  ;;  %v6798_v35 = vsel %vm105_vm0, %v6782_v0, 0.0 }
 0xdf7   :  { %7299 = vmatprep.subr.bf16.mxu0 %v18749_v26  ;;  %v6944_v26 = vld [vmem:[%s26812_s11 + $0x90] sm:$0xff] }
 0xdf8   :  { %v6795_v40 = vsel %vm105_vm0, %v6781_v5, 0.0  ;;  %7300 = vmatpush1.bf16.msra.mxu0 %v18748_v39 }
 0xdf9   :  { %6796 = vadd.xlane.f32.xlu0 %v6795_v40  ;;  %v18732_v40 = vcombine.low %v6927_v45, %v6935_v2 }
 0xdfd   :  { %6799 = vadd.xlane.f32.xlu0 %v6798_v35 }
 0xe7c   :  { %v6794_v24 = vpop.xlane.xlu1 %6793 }
 0xe7d   :  { %v6815_v18 = vmul.f32 0.03125, %v6794_v24 }
 0xe7e   :  { %v6791_v43 = vpop.xlane.xlu0 %6790 }
 0xe7f   :  { %v20980_v16 = vpop.f32.mrf.mxu0  ;;  %v6814_v50 = vmul.f32 0.03125, %v6791_v43  ;;  %v23455_v14 = vsub.f32 %v6780_v51, %v6815_v18  ;;  %v18746_v51 = vcombine.low %v6942_v28, %v6950_v15 }
 0xe80   :  { %v6761_v53 = vadd.f32 %v20980_v16, %v23354_v58 }
 0xe81   :  { %v6737_v55 = vpop.f32.mrf.mxu0  ;;  %7227 = vmatpush1.bf16.msra.mxu1 %v18746_v51 }
 0xe82   :  { %v6776_v23 = vadd.f32 %v18727_v22, %v6761_v53  ;;  %v6797_v10 = vpop.xlane.xlu0 %6796  ;;  %v6760_v59 = vadd.f32 %v6737_v55, %v23358_v4  ;;  %v23459_v4 = vsub.f32 %v6779_v12, %v6814_v50  ;;  %v6934_v12 = vld [vmem:[%s26812_s11 + $0x40] sm:$0xff] }
 0xe83   :  { %v20983_v52 = vpop.f32.mrf.mxu0  ;;  %v6816_v21 = vmul.f32 0.03125, %v6797_v10  ;;  %v18731_v1 = vcombine.high %v6926_v19, %v6934_v12 }
 0xe84   :  { %v6775_v8 = vadd.f32 %v18727_v22, %v6760_v59  ;;  %v6763_v31 = vadd.f32 %v20983_v52, %v23360_v57  ;;  %v6784_v32 = vadd.f32 %v6776_v23, %v22521_v30  ;;  %v6830_v33 = vmul.f32 %v23459_v4, %v23459_v4 }
 0xe85   :  { %v6747_v58 = vpop.f32.mrf.mxu0  ;;  %v23469_v13 = vsub.f32 %v6781_v5, %v6816_v21  ;;  %v18730_v5 = vcombine.low %v6926_v19, %v6934_v12  ;;  %7228 = vmatprep.subr.bf16.mxu1 %v18731_v1  ;;  %v6952_v19 = vld [vmem:[%s26812_s11 + $0xd0] sm:$0xff]  ;;  %v6945_v12 = vld [vmem:[%s26812_s11 + $0x98] sm:$0xff] }
 0xe86   :  { %v6778_v47 = vadd.f32 %v18727_v22, %v6763_v31  ;;  %v6800_v17 = vpop.xlane.xlu0 %6799  ;;  %v6762_v49 = vadd.f32 %v6747_v58, %v5305_v54  ;;  %v6804_v37 = vsel %vm105_vm0, %v6784_v32, 0.0  ;;  %v6783_v20 = vadd.f32 %v6775_v8, %v22526_v3 }
 0xe87   :  { %v6817_v34 = vmul.f32 0.03125, %v6800_v17  ;;  %6805 = vadd.xlane.f32.xlu0 %v6804_v37  ;;  %v6831_v3 = vmul.f32 %v23455_v14, %v23455_v14  ;;  %v6838_v41 = vsel %vm105_vm0, %v6830_v33, 0.0  ;;  %v6832_v6 = vmul.f32 %v23469_v13, %v23469_v13  ;;  %7229 = vmatpush1.bf16.msra.mxu1 %v18730_v5  ;;  %v6928_v5 = vld [vmem:[%s26812_s11 + $0x10] sm:$0xff] }
 0xe88   :  { %v6777_v27 = vadd.f32 %v18727_v22, %v6762_v49  ;;  %v6801_v57 = vsel %vm105_vm0, %v6783_v20, 0.0  ;;  %v6786_v30 = vadd.f32 %v6778_v47, %v26880_v29  ;;  %v18751_v1 = vcombine.high %v6944_v26, %v6952_v19 }
 0xe89   :  { %6802 = vadd.xlane.f32.xlu1 %v6801_v57  ;;  %v23463_v25 = vsub.f32 %v6782_v0, %v6817_v34  ;;  %v6841_v11 = vsel %vm105_vm0, %v6831_v3, 0.0  ;;  %v6844_v36 = vsel %vm105_vm0, %v6832_v6, 0.0  ;;  %v18733_v0 = vcombine.high %v6927_v45, %v6935_v2  ;;  %v6953_v2 = vld [vmem:[%s26812_s11 + $0xd8] sm:$0xff] }
 0xe8a   :  { %v6810_v60 = vsel %vm105_vm0, %v6786_v30, 0.0  ;;  %v6785_v48 = vadd.f32 %v6777_v27, %v26881_v42  ;;  %v18750_v45 = vcombine.low %v6944_v26, %v6952_v19  ;;  %7372 = vmatprep.subr.bf16.mxu1 %v18751_v1  ;;  %v6931_v19 = vld [vmem:[%s26812_s11 + $0x28] sm:$0xff] }
 0xe8b   :  { %6811 = vadd.xlane.f32.xlu0 %v6810_v60  ;;  %v6833_v22 = vmul.f32 %v23463_v25, %v23463_v25  ;;  %7301 = vmatprep.subr.bf16.mxu0 %v18733_v0  ;;  %v18752_v0 = vcombine.low %v6945_v12, %v6953_v2 }
 0xe8c   :  { %v6807_v62 = vsel %vm105_vm0, %v6785_v48, 0.0  ;;  %7302 = vmatpush1.bf16.msra.mxu0 %v18732_v40  ;;  %v6936_v40 = vld [vmem:[%s26812_s11 + $0x50] sm:$0xff] }
 0xe8d   :  { %6808 = vadd.xlane.f32.xlu1 %v6807_v62  ;;  %v6847_v56 = vsel %vm105_vm0, %v6833_v22, 0.0  ;;  %v23529_v62 = vld [vmem:[%s26810_s9] ss:$0 sm:$0xff] }
 0xe8f   :  { %6842 = vadd.xlane.f32.xlu0 %v6841_v11 }
 0xe91   :  { %6839 = vadd.xlane.f32.xlu1 %v6838_v41 }
 0xe93   :  { %6848 = vadd.xlane.f32.xlu0 %v6847_v56  ;;  %v23537_v56 = vld [vmem:[%s26811_s10] ss:$0 sm:$0xff] }
 0xe95   :  { %6845 = vadd.xlane.f32.xlu1 %v6844_v36 }
 0xf10   :  { %v6806_v35 = vpop.xlane.xlu0 %6805 }
 0xf11   :  { %v6819_v24 = vmul.f32 0.03125, %v6806_v35  ;;  %v18753_v35 = vcombine.high %v6945_v12, %v6953_v2  ;;  %v6939_v12 = vld [vmem:[%s26812_s11 + $0x68] sm:$0xff]  ;;  %v6948_v2 = vld [vmem:[%s26812_s11 + $0xb0] sm:$0xff] }
 0xf12   :  { %v6803_v43 = vpop.xlane.xlu1 %6802  ;;  %v18741_v1 = vcombine.high %v6931_v19, %v6939_v12 }
 0xf13   :  { %v23506_v16 = vsub.f32 %v6784_v32, %v6819_v24  ;;  %v6818_v53 = vmul.f32 0.03125, %v6803_v43  ;;  %v18735_v24 = vcombine.high %v6928_v5, %v6936_v40  ;;  %v6929_v43 = vld [vmem:[%s26812_s11 + $0x18] sm:$0xff]  ;;  %7445 = vmatprep.subr.bf16.mxu0 %v18753_v35 }
 0xf14   :  { %v6812_v18 = vpop.xlane.xlu0 %6811 }
 0xf15   :  { %v23508_v55 = vsub.f32 %v6783_v20, %v6818_v53  ;;  %v6821_v9 = vmul.f32 0.03125, %v6812_v18  ;;  %v6835_v23 = vmul.f32 %v23506_v16, %v23506_v16  ;;  %v6937_v53 = vld [vmem:[%s26812_s11 + $0x58] sm:$0xff] }
 0xf16   :  { %v6809_v10 = vpop.xlane.xlu1 %6808  ;;  %v18737_v18 = vcombine.high %v6929_v43, %v6937_v53 }
 0xf17   :  { %v23512_v59 = vsub.f32 %v6786_v30, %v6821_v9  ;;  %v6820_v50 = vmul.f32 0.03125, %v6809_v10  ;;  %v6853_v52 = vsel %vm105_vm0, %v6835_v23, 0.0  ;;  %v6834_v54 = vmul.f32 %v23508_v55, %v23508_v55  ;;  %v23603_v10 = vld [vmem:[%s26812_s11 + $0xa0] sm:$0xff] }
 0xf18   :  { %6854 = vadd.xlane.f32.xlu0 %v6853_v52  ;;  %v6843_v8 = vpop.xlane.xlu0 %6842  ;;  %v18734_v9 = vcombine.low %v6928_v5, %v6936_v40  ;;  %v18736_v23 = vcombine.low %v6929_v43, %v6937_v53  ;;  %v23613_v52 = vld [vmem:[%s26812_s11 + $0xa8] sm:$0xff]  ;;  %v6956_v5 = vld [vmem:[%s26812_s11 + $0xf0] sm:$0xff]  ;;  %v6949_v40 = vld [vmem:[%s26812_s11 + $0xb8] sm:$0xff] }
 0xf19   :  { %v23517_v31 = vsub.f32 %v6785_v48, %v6820_v50  ;;  %v6863_v32 = vmul.f32 0.03125, %v6843_v8  ;;  %v6850_v58 = vsel %vm105_vm0, %v6834_v54, 0.0  ;;  %v6837_v47 = vmul.f32 %v23512_v59, %v23512_v59  ;;  %v23608_v50 = vld [vmem:[%s26812_s11 + $0xe0] sm:$0xff] }
 0xf1a   :  { %6851 = vadd.xlane.f32.xlu1 %v6850_v58  ;;  %v6840_v17 = vpop.xlane.xlu1 %6839  ;;  %v18754_v54 = vcombine.low %v23603_v10, %v23608_v50  ;;  %v18755_v8 = vcombine.high %v23603_v10, %v23608_v50  ;;  %v18759_v43 = vcombine.high %v6948_v2, %v6956_v5  ;;  %v6941_v10 = vld [vmem:[%s26812_s11 + $0x78] sm:$0xff]  ;;  %v18758_v50 = vcombine.low %v6948_v2, %v6956_v5 }
 0xf1b   :  { %v6871_v49 = vadd.f32 1e-05, %v6863_v32  ;;  %v6862_v37 = vmul.f32 0.03125, %v6840_v17  ;;  %v6859_v20 = vsel %vm105_vm0, %v6837_v47, 0.0  ;;  %v6836_v34 = vmul.f32 %v23517_v31, %v23517_v31  ;;  %v6955_v32 = vld [vmem:[%s26812_s11 + $0xe8] sm:$0xff] }
 0xf1c   :  { %6860 = vadd.xlane.f32.xlu0 %v6859_v20  ;;  %v6849_v21 = vpop.xlane.xlu0 %6848  ;;  %v18756_v58 = vcombine.low %v23613_v52, %v6955_v32  ;;  %v18757_v47 = vcombine.high %v23613_v52, %v6955_v32 }
 0xf1d   :  { %21832 = vrsqrt.f32 %v6871_v49  ;;  %v6870_v27 = vadd.f32 1e-05, %v6862_v37  ;;  %v6865_v57 = vmul.f32 0.03125, %v6849_v21  ;;  %v6856_v29 = vsel %vm105_vm0, %v6836_v34, 0.0 }
 0xf1e   :  { %6857 = vadd.xlane.f32.xlu1 %v6856_v29  ;;  %v6846_v30 = vpop.xlane.xlu1 %6845 }
 0xf1f   :  { %21834 = vrsqrt.f32 %v6870_v27  ;;  %v6873_v60 = vadd.f32 1e-05, %v6865_v57  ;;  %v6864_v42 = vmul.f32 0.03125, %v6846_v30 }
 0xf21   :  { %21836 = vrsqrt.f32 %v6873_v60  ;;  %v6872_v48 = vadd.f32 1e-05, %v6864_v42 }
 0xf23   :  { %21838 = vrsqrt.f32 %v6872_v48 }
 0xf2a   :  { %v21833_v3 = vpop.eup %21832 }
 0xf2b   :  { %v6887_v33 = vmul.f32 %v21833_v3, %v23455_v14 }
 0xf2c   :  { %v21835_v11 = vpop.eup %21834 }
 0xf2d   :  { %v6901_v22 = vmul.f32 %v23529_v62, %v6887_v33  ;;  %v6886_v41 = vmul.f32 %v21835_v11, %v23459_v4 }
 0xf2e   :  { %v21837_v6 = vpop.eup %21836 }
 0xf2f   :  { %v6900_v36 = vmul.f32 %v23529_v62, %v6886_v41  ;;  %v23541_v15 = vadd.f32 %v23537_v56, %v6901_v22  ;;  %v6889_v14 = vmul.f32 %v21837_v6, %v23463_v25 }
 0xf30   :  { %v21839_v28 = vpop.eup %21838 }
 0xf31   :  { %v23544_v61 = vadd.f32 %v23537_v56, %v6900_v36  ;;  %v6888_v38 = vmul.f32 %v21839_v28, %v23469_v13  ;;  %v6903_v51 = vmul.f32 %v23529_v62, %v6889_v14 }
 0xf33   :  { %v23550_v4 = vpack.c.bf16 %v23541_v15, %v23544_v61  ;;  %v6902_v44 = vmul.f32 %v23529_v62, %v6888_v38  ;;  %v23564_v13 = vadd.f32 %v23537_v56, %v6903_v51 }
 0xf35   :  { %18762 = vmatmul.mubr.msk.bf16.vlgmr.msra.gmra.mxu1 %vm105_vm0, %v23550_v4  ;;  %18766 = vmatmul.mubr.msk.bf16.vlgmr.msra.gmra.mxu0 %vm105_vm0, %v23550_v4  ;;  %v23561_v25 = vadd.f32 %v23537_v56, %v6902_v44  ;;  %26883 = vst [vmem:[#allocation7_spill] sm:$0xff] %v23564_v13 }
 0xf36   :  { %7256 = vmatprep.mubr.bf16.mxu1 %v26879_v46  ;;  %7329 = vmatprep.mubr.bf16.mxu0 %v26879_v46 }
 0xf37   :  { %26882 = vst [vmem:[#allocation6_spill] sm:$0xff] %v23561_v25  ;;  %v23568_v39 = vpack.c.bf16 %v23564_v13, %v23561_v25  ;;  %7373 = vmatpush1.bf16.msra.mxu1 %v18750_v45  ;;  %7446 = vmatpush1.bf16.msra.mxu0 %v18752_v0  ;;  %v6957_v0 = vld [vmem:[%s26812_s11 + $0xf8] sm:$0xff] }
 0xf38   :  { %7374 = vmatprep.subr.bf16.mxu1 %v18735_v24  ;;  %7447 = vmatprep.subr.bf16.mxu0 %v18737_v18  ;;  %v18740_v24 = vcombine.low %v6931_v19, %v6939_v12  ;;  %v18761_v53 = vcombine.high %v6949_v40, %v6957_v0  ;;  %v6932_v18 = vld [vmem:[%s26812_s11 + $0x30] sm:$0xff]  ;;  %v18760_v52 = vcombine.low %v6949_v40, %v6957_v0  ;;  %v21415_v12 = vld [vmem:[%s26814_s13 + $0xd8] sm:$0xff]  }
 0xf39   :  { %v21416_v40 = vld [vmem:[%s26814_s13 + $0x18] sm:$0xff]  }
 0xf3a   :  { %v21417_v0 = vld [vmem:[%s26814_s13 + $0x98] sm:$0xff]  }
 0xf3b   :  { %7375 = vmatpush1.bf16.msra.mxu1 %v18734_v9  ;;  %7448 = vmatpush1.bf16.msra.mxu0 %v18736_v23  ;;  %v6940_v9 = vld [vmem:[%s26812_s11 + $0x70] sm:$0xff]  ;;  %v6933_v23 = vld [vmem:[%s26812_s11 + $0x38] sm:$0xff] }
 0xf3c   :  { %7518 = vmatprep.subr.bf16.mxu1 %v18755_v8  ;;  %7591 = vmatprep.subr.bf16.mxu0 %v18757_v47  ;;  %v18745_v8 = vcombine.high %v6933_v23, %v6941_v10  ;;  %v18742_v32 = vcombine.low %v6932_v18, %v6940_v9  ;;  %v21398_v47 = vld [vmem:[%s26814_s13 + $0x78] sm:$0xff]  }
 0xf3d   :  { %18763 = vmatmul.mubr.msk.bf16.gmra.mxu1 %vm105_vm0, %v23568_v39  ;;  %18767 = vmatmul.mubr.msk.bf16.gmra.mxu0 %vm105_vm0, %v23568_v39 }
 0xf3e   :  { %7266 = vmatprep.mubr.bf16.mxu1 %v26879_v46  ;;  %7339 = vmatprep.mubr.bf16.mxu0 %v26879_v46 }
 0xfa1   :  { %v6855_v17 = vpop.xlane.xlu0 %6854 }
 0xfa2   :  { %v6867_v49 = vmul.f32 0.03125, %v6855_v17  ;;  %v21399_v17 = vld [vmem:[%s26814_s13 + $0xf8] sm:$0xff]  }
 0xfa3   :  { %v6852_v37 = vpop.xlane.xlu1 %6851 }
 0xfa4   :  { %v6875_v20 = vadd.f32 1e-05, %v6867_v49  ;;  %v6866_v34 = vmul.f32 0.03125, %v6852_v37 }
 0xfa5   :  { %v6861_v21 = vpop.xlane.xlu0 %6860 }
 0xfa6   :  { %21840 = vrsqrt.f32 %v6875_v20  ;;  %v6874_v27 = vadd.f32 1e-05, %v6866_v34  ;;  %v6869_v57 = vmul.f32 0.03125, %v6861_v21  ;;  %v21400_v21 = vld [vmem:[%s26814_s13 + $0x38] sm:$0xff]  }
 0xfa7   :  { %v6858_v29 = vpop.xlane.xlu1 %6857 }
 0xfa8   :  { %21842 = vrsqrt.f32 %v6874_v27  ;;  %v6877_v30 = vadd.f32 1e-05, %v6869_v57  ;;  %v6868_v60 = vmul.f32 0.03125, %v6858_v29  ;;  %v21401_v27 = vld [vmem:[%s26814_s13 + $0xb8] sm:$0xff]   ;;  %v21402_v57 = vld [vmem:[%s26814_s13 + $0x70] sm:$0xff]  }
 0xfa9   :  { %v21403_v29 = vld [vmem:[%s26814_s13 + $0xf0] sm:$0xff]  }
 0xfaa   :  { %21844 = vrsqrt.f32 %v6877_v30  ;;  %v6876_v42 = vadd.f32 1e-05, %v6868_v60 }
 0xfac   :  { %21846 = vrsqrt.f32 %v6876_v42  ;;  %v21404_v42 = vld [vmem:[%s26814_s13 + $0x30] sm:$0xff]  }
 0xfb3   :  { %v21841_v48 = vpop.eup %21840 }
 0xfb4   :  { %v6891_v3 = vmul.f32 %v21841_v48, %v23506_v16  ;;  %v21405_v48 = vld [vmem:[%s26814_s13 + $0xb0] sm:$0xff]  }
 0xfb5   :  { %v21843_v33 = vpop.eup %21842 }
 0xfb6   :  { %v6905_v11 = vmul.f32 %v23529_v62, %v6891_v3  ;;  %v6890_v22 = vmul.f32 %v21843_v33, %v23508_v55  ;;  %v21406_v3 = vld [vmem:[%s26814_s13 + $0x68] sm:$0xff]  }
 0xfb7   :  { %v21845_v41 = vpop.eup %21844 }
 0xfb8   :  { %v6904_v6 = vmul.f32 %v23529_v62, %v6890_v22  ;;  %v23629_v28 = vadd.f32 %v23537_v56, %v6905_v11  ;;  %v6893_v38 = vmul.f32 %v21845_v41, %v23512_v59  ;;  %v21408_v22 = vld [vmem:[%s26814_s13 + $0x28] sm:$0xff]  }
 0xfb9   :  { %v21847_v36 = vpop.eup %21846  ;;  %v21409_v41 = vld [vmem:[%s26814_s13 + $0xa8] sm:$0xff]  }
 0xfba   :  { %26884 = vst [vmem:[#allocation9_spill] sm:$0xff] %v23629_v28  ;;  %v23632_v14 = vadd.f32 %v23537_v56, %v6904_v6  ;;  %v6892_v44 = vmul.f32 %v21847_v36, %v23517_v31  ;;  %v6907_v51 = vmul.f32 %v23529_v62, %v6893_v38  ;;  %v21410_v6 = vld [vmem:[%s26814_s13 + $0x60] sm:$0xff]  }
 0xfbb   :  { %v21411_v36 = vld [vmem:[%s26814_s13 + $0xe0] sm:$0xff]  }
 0xfbc   :  { %26885 = vst [vmem:[#allocation10_spill] sm:$0xff] %v23632_v14  ;;  %v23638_v16 = vpack.c.bf16 %v23629_v28, %v23632_v14  ;;  %v6906_v55 = vmul.f32 %v23529_v62, %v6892_v44  ;;  %v23652_v31 = vadd.f32 %v23537_v56, %v6907_v51  ;;  %v6930_v62 = vld [vmem:[%s26812_s11 + $0x20] sm:$0xff] }
 0xfbd   :  { %v26888_v44 = vld [vmem:[#allocation5_spill] sm:$0xff] }
 0xfbe   :  { %18764 = vmatmul.mubr.msk.bf16.gmra.mxu1 %vm105_vm0, %v23638_v16  ;;  %18768 = vmatmul.mubr.msk.bf16.gmra.mxu0 %vm105_vm0, %v23638_v16  ;;  %v23649_v59 = vadd.f32 %v23537_v56, %v6906_v55  ;;  %26887 = vst [vmem:[#allocation12_spill] sm:$0xff] %v23652_v31  ;;  %v6938_v56 = vld [vmem:[%s26812_s11 + $0x60] sm:$0xff]  ;;  %v23815_v55 = vsub.s32 1, %v26888_v44  ;;  %v23826_v19 = vsub.s32 3, %v26888_v44 }
 0xfbf   :  { %7276 = vmatprep.mubr.bf16.mxu1 %v26879_v46  ;;  %7349 = vmatprep.mubr.bf16.mxu0 %v26879_v46  ;;  %v18739_v45 = vcombine.high %v6930_v62, %v6938_v56  ;;  %v18738_v35 = vcombine.low %v6930_v62, %v6938_v56  ;;  %v21412_v62 = vld [vmem:[%s26814_s13 + $0x20] sm:$0xff]  }
 0xfc0   :  { %26886 = vst [vmem:[#allocation11_spill] sm:$0xff] %v23649_v59  ;;  %v23656_v26 = vpack.c.bf16 %v23652_v31, %v23649_v59  ;;  %26889 = vst [vmem:[#allocation5_spill] sm:$0xff] %v23815_v55  ;;  %v21413_v56 = vld [vmem:[%s26814_s13 + $0xa0] sm:$0xff]  }
 0xfc1   :  { %26890 = vst [vmem:[#allocation13_spill] sm:$0xff] %v23826_v19 }
 0xfc6   :  { %18765 = vmatmul.mubr.msk.bf16.gmra.mxu1 %vm105_vm0, %v23656_v26  ;;  %18769 = vmatmul.mubr.msk.bf16.gmra.mxu0 %vm105_vm0, %v23656_v26 }
 0xfc7   :  { %7392 = vmatprep.mubr.bf16.mxu1 %v26879_v46  ;;  %7465 = vmatprep.mubr.bf16.mxu0 %v26879_v46 }
 0xfce   :  { %18770 = vmatmul.mubr.msk.bf16.vlgmr.msra.gmra.mxu1 %vm105_vm0, %v23550_v4  ;;  %18774 = vmatmul.mubr.msk.bf16.vlgmr.msra.gmra.mxu0 %vm105_vm0, %v23550_v4 }
 0xfcf   :  { %7402 = vmatprep.mubr.bf16.mxu1 %v26879_v46  ;;  %7475 = vmatprep.mubr.bf16.mxu0 %v26879_v46 }
 0xfd0   :  { %7519 = vmatpush1.bf16.msra.mxu1 %v18754_v54  ;;  %7592 = vmatpush1.bf16.msra.mxu0 %v18756_v58  ;;  %v18743_v54 = vcombine.high %v6932_v18, %v6940_v9  ;;  %v18744_v58 = vcombine.low %v6933_v23, %v6941_v10  ;;  %v23863_v18 = vsub.s32 0, %v26888_v44  ;;  %v23873_v10 = vsub.s32 2, %v26888_v44 }
 0xfd1   :  { %7520 = vmatprep.subr.bf16.mxu1 %v18739_v45  ;;  %7593 = vmatprep.subr.bf16.mxu0 %v18741_v1  ;;  %v23839_v45 = vld [vmem:[%s26813_s12] sm:$0xff] }
 0xfd2   :  { %v23843_v2 = vrot.slane %v23839_v45, %v23815_v55  ;;  %26891 = vst [vmem:[#allocation14_spill] sm:$0xff] %v23863_v18  ;;  %26892 = vst [vmem:[#allocation15_spill] sm:$0xff] %v23873_v10 }
 0xfd4   :  { %7521 = vmatpush1.bf16.msra.mxu1 %v18738_v35  ;;  %7594 = vmatpush1.bf16.msra.mxu0 %v18740_v24  ;;  %v23853_v35 = vrot.slane %v23839_v45, %v23826_v19  ;;  %v21418_v24 = vld [vmem:[%s26814_s13 + $0x50] sm:$0xff]  }
 0xfd5   :  { %7664 = vmatprep.subr.bf16.mxu1 %v18759_v43  ;;  %7737 = vmatprep.subr.bf16.mxu0 %v18761_v53  ;;  %v21419_v43 = vld [vmem:[%s26814_s13 + $0xd0] sm:$0xff]  }
 0xfd6   :  { %18771 = vmatmul.mubr.msk.bf16.gmra.mxu1 %vm105_vm0, %v23568_v39  ;;  %18775 = vmatmul.mubr.msk.bf16.gmra.mxu0 %vm105_vm0, %v23568_v39 }
 0xfd7   :  { %7412 = vmatprep.mubr.bf16.mxu1 %v26879_v46  ;;  %7485 = vmatprep.mubr.bf16.mxu0 %v26879_v46 }
 0xfde   :  { %18772 = vmatmul.mubr.msk.bf16.gmra.mxu1 %vm105_vm0, %v23638_v16  ;;  %18776 = vmatmul.mubr.msk.bf16.gmra.mxu0 %vm105_vm0, %v23638_v16 }
 0xfdf   :  { %7422 = vmatprep.mubr.bf16.mxu1 %v26879_v46  ;;  %7495 = vmatprep.mubr.bf16.mxu0 %v26879_v46 }
 0xfe6   :  { %18773 = vmatmul.mubr.msk.bf16.gmra.mxu1 %vm105_vm0, %v23656_v26  ;;  %18777 = vmatmul.mubr.msk.bf16.gmra.mxu0 %vm105_vm0, %v23656_v26 }
 0xfe7   :  { %7538 = vmatprep.mubr.bf16.mxu1 %v26879_v46  ;;  %7611 = vmatprep.mubr.bf16.mxu0 %v26879_v46 }
 0xfee   :  { %18778 = vmatmul.mubr.msk.bf16.vlgmr.msra.gmra.mxu1 %vm105_vm0, %v23550_v4  ;;  %18782 = vmatmul.mubr.msk.bf16.vlgmr.msra.gmra.mxu0 %vm105_vm0, %v23550_v4 }
 0xfef   :  { %7548 = vmatprep.mubr.bf16.mxu1 %v26879_v46  ;;  %7621 = vmatprep.mubr.bf16.mxu0 %v26879_v46 }
 0xff0   :  { %7665 = vmatpush1.bf16.msra.mxu1 %v18758_v50  ;;  %7738 = vmatpush1.bf16.msra.mxu0 %v18760_v52 }
 0xff1   :  { %7666 = vmatprep.subr.bf16.mxu1 %v18743_v54  ;;  %7739 = vmatprep.subr.bf16.mxu0 %v18745_v8  ;;  %v21420_v54 = vld [vmem:[%s26814_s13 + $0x10] sm:$0xff]  }
 0xff2   :  { %v21421_v8 = vld [vmem:[%s26814_s13 + $0x90] sm:$0xff]  }
 0xff4   :  { %7667 = vmatpush1.bf16.msra.mxu1 %v18742_v32  ;;  %7740 = vmatpush1.bf16.msra.mxu0 %v18744_v58  ;;  %v21422_v32 = vld [vmem:[%s26814_s13 + $0x48] sm:$0xff]  }
 0xff5   :  { %19752 = vmatprep.subr.bf16.mxu1 %v21398_v47  ;;  %19792 = vmatprep.subr.bf16.mxu0 %v21399_v17  ;;  %v23748_v49 = vpop.f32.mrf.mxu1  ;;  %v23754_v37 = vpop.f32.mrf.mxu0  ;;  %v21423_v58 = vld [vmem:[%s26814_s13 + $0xc8] sm:$0xff]   ;;  %v23897_v17 = vrot.slane %v23839_v45, %v23863_v18 }
 0xff6   :  { %18779 = vmatmul.mubr.msk.bf16.gmra.mxu1 %vm105_vm0, %v23568_v39  ;;  %18783 = vmatmul.mubr.msk.bf16.gmra.mxu0 %vm105_vm0, %v23568_v39 }
 0xff7   :  { %7558 = vmatprep.mubr.bf16.mxu1 %v26879_v46  ;;  %7631 = vmatprep.mubr.bf16.mxu0 %v26879_v46  ;;  %v23758_v20 = vpop.f32.mrf.mxu1  ;;  %v23760_v34 = vpop.f32.mrf.mxu0 }
 0xff8   :  { %v7251_v50 = vadd.f32 %v23758_v20, %v23843_v2 }
 0xff9   :  { %v23774_v30 = vpop.f32.mrf.mxu1  ;;  %v23780_v60 = vpop.f32.mrf.mxu0 }
 0xffb   :  { %v7254_v33 = vpop.f32.mrf.mxu1  ;;  %v7327_v11 = vpop.f32.mrf.mxu0 }
 0xffc   :  { %v7255_v53 = vadd.f32 %v7254_v33, %v23843_v2  ;;  %v7328_v9 = vadd.f32 %v7327_v11, %v23853_v35 }
 0xffd   :  { %v23808_v38 = vpop.f32.mrf.mxu1  ;;  %v23817_v51 = vpop.f32.mrf.mxu0 }
 0xffe   :  { %18780 = vmatmul.mubr.msk.bf16.gmra.mxu1 %vm105_vm0, %v23638_v16  ;;  %18784 = vmatmul.mubr.msk.bf16.gmra.mxu0 %vm105_vm0, %v23638_v16  ;;  %v7815_v47 = vmax.f32 %v7255_v53, 0.0  ;;  %v7817_v20 = vmax.f32 %v7328_v9, 0.0 }
 0xfff   :  { %7568 = vmatprep.mubr.bf16.mxu1 %v26879_v46  ;;  %7641 = vmatprep.mubr.bf16.mxu0 %v26879_v46  ;;  %v7260_v1 = vpop.f32.mrf.mxu1  ;;  %v7333_v5 = vpop.f32.mrf.mxu0 }
0x1001   :  { %v23866_v23 = vpop.f32.mrf.mxu1  ;;  %v23877_v52 = vpop.f32.mrf.mxu0 }
0x1006   :  { %18781 = vmatmul.mubr.msk.bf16.gmra.mxu1 %vm105_vm0, %v23656_v26  ;;  %18785 = vmatmul.mubr.msk.bf16.gmra.mxu0 %vm105_vm0, %v23656_v26 }
0x1007   :  { %7684 = vmatprep.mubr.bf16.mxu1 %v26879_v46  ;;  %7757 = vmatprep.mubr.bf16.mxu0 %v26879_v46 }
0x100e   :  { %18786 = vmatmul.mubr.msk.bf16.vlgmr.msra.gmra.mxu1 %vm105_vm0, %v23550_v4  ;;  %18790 = vmatmul.mubr.msk.bf16.vlgmr.msra.gmra.mxu0 %vm105_vm0, %v23550_v4  ;;  %v21407_v4 = vld [vmem:[%s26814_s13 + $0xe8] sm:$0xff]  }
0x100f   :  { %19753 = vmatpush3.bf16.msra.mxu1 %v21400_v21  ;;  %19793 = vmatpush3.bf16.msra.mxu0 %v21401_v27  ;;  %v23901_v21 = vrot.slane %v23839_v45, %v23873_v10  ;;  %v7799_v27 = vmax.f32 %v7251_v50, 0.0  ;;  %v7263_v50 = vadd.f32 %v23866_v23, %v23897_v17  ;;  %v21434_v23 = vld [vmem:[%s26814_s13 + $0x170] sm:$0xff]  }
0x1010   :  { %19754 = vmatprep.subr.bf16.mxu1 %v21402_v57  ;;  %19794 = vmatprep.subr.bf16.mxu0 %v21403_v29  ;;  %v7337_v57 = vpop.f32.mrf.mxu0  ;;  %v21424_v29 = vld [vmem:[%s26814_s13 + $0x8] sm:$0xff]  }
0x1011   :  { %7694 = vmatprep.mubr.bf16.mxu1 %v26879_v46  ;;  %7767 = vmatprep.mubr.bf16.mxu0 %v26879_v46  ;;  %v7927_v11 = vpack.c.bf16 %v7815_v47, %v7799_v27  ;;  %v7259_v47 = vadd.f32 %v23808_v38, %v23897_v17  ;;  %v7846_v27 = vmax.f32 %v7263_v50, 0.0  ;;  %v21437_v38 = vld [vmem:[%s26814_s13 + $0x1b0] sm:$0xff]   ;;  %v21462_v50 = vld [vmem:[%s26814_s13 + $0x278] sm:$0xff]  }
0x1013   :  { %19755 = vmatpush3.bf16.msra.mxu1 %v21404_v42  ;;  %19795 = vmatpush3.bf16.msra.mxu0 %v21405_v48  ;;  %v7253_v48 = vadd.f32 %v23774_v30, %v23897_v17  ;;  %v21427_v30 = vld [vmem:[%s26814_s13 + $0xc0] sm:$0xff]  }
0x1014   :  { %19756 = vmatprep.subr.bf16.mxu1 %v21406_v3  ;;  %19796 = vmatprep.subr.bf16.mxu0 %v21407_v4  ;;  %v21425_v3 = vld [vmem:[%s26814_s13 + $0x88] sm:$0xff]   ;;  %v7326_v4 = vadd.f32 %v23780_v60, %v23901_v21 }
0x1016   :  { %18787 = vmatmul.mubr.msk.bf16.gmra.mxu1 %vm105_vm0, %v23568_v39  ;;  %18791 = vmatmul.mubr.msk.bf16.gmra.mxu0 %vm105_vm0, %v23568_v39  ;;  %v21414_v39 = vld [vmem:[%s26814_s13 + $0x58] sm:$0xff]  }
0x1017   :  { %19757 = vmatpush3.bf16.msra.mxu1 %v21408_v22  ;;  %19797 = vmatpush3.bf16.msra.mxu0 %v21409_v41  ;;  %v21426_v22 = vld [vmem:[%s26814_s13 + $0x40] sm:$0xff]   ;;  %v7249_v41 = vadd.f32 %v23748_v49, %v23897_v17 }
0x1018   :  { %19758 = vmatprep.subr.bf16.mxu1 %v21410_v6  ;;  %19798 = vmatprep.subr.bf16.mxu0 %v21411_v36  ;;  %v7338_v6 = vadd.f32 %v7337_v57, %v23853_v35  ;;  %v7322_v36 = vadd.f32 %v23754_v37, %v23901_v21  ;;  %v21428_v49 = vld [vmem:[%s26814_s13] sm:$0xff]   ;;  %v21430_v37 = vld [vmem:[%s26814_s13 + $0x178] sm:$0xff]   ;;  %v21436_v57 = vld [vmem:[%s26814_s13 + $0x130] sm:$0xff]  }
0x1019   :  { %7704 = vmatprep.mubr.bf16.mxu1 %v26879_v46  ;;  %7777 = vmatprep.mubr.bf16.mxu0 %v26879_v46 }
0x101b   :  { %19759 = vmatpush3.bf16.msra.mxu1 %v21412_v62  ;;  %19799 = vmatpush3.bf16.msra.mxu0 %v21413_v56  ;;  %v7261_v62 = vadd.f32 %v7260_v1, %v23843_v2  ;;  %v7814_v56 = vmax.f32 %v7253_v48, 0.0  ;;  %v21439_v48 = vld [vmem:[%s26814_s13 + $0x1e8] sm:$0xff]  }
0x101c   :  { %19760 = vmatprep.subr.bf16.mxu1 %v21414_v39  ;;  %19800 = vmatprep.subr.bf16.mxu0 %v21415_v12  ;;  %v7334_v39 = vadd.f32 %v7333_v5, %v23853_v35  ;;  %v7816_v12 = vmax.f32 %v7326_v4, 0.0  ;;  %v7849_v5 = vmax.f32 %v7338_v6, 0.0  ;;  %v21444_v6 = vld [vmem:[%s26814_s13 + $0x120] sm:$0xff]  }
0x101e   :  { %18788 = vmatmul.mubr.msk.bf16.gmra.mxu1 %vm105_vm0, %v23638_v16  ;;  %18792 = vmatmul.mubr.msk.bf16.gmra.mxu0 %vm105_vm0, %v23638_v16  ;;  %v7324_v16 = vadd.f32 %v23760_v34, %v23853_v35  ;;  %v7264_v34 = vpop.f32.mrf.mxu1  ;;  %v7833_v9 = vmax.f32 %v7334_v39, 0.0  ;;  %v21450_v39 = vld [vmem:[%s26814_s13 + $0x150] sm:$0xff]  }
0x101f   :  { %19761 = vmatpush3.bf16.msra.mxu1 %v21416_v40  ;;  %19801 = vmatpush3.bf16.msra.mxu0 %v21417_v0  ;;  %v7265_v33 = vadd.f32 %v7264_v34, %v23843_v2  ;;  %v21431_v40 = vld [vmem:[%s26814_s13 + $0x1f8] sm:$0xff]   ;;  %v7798_v0 = vmax.f32 %v7249_v41, 0.0  ;;  %v21435_v34 = vld [vmem:[%s26814_s13 + $0x1f0] sm:$0xff]   ;;  %v21443_v41 = vld [vmem:[%s26814_s13 + $0x1e0] sm:$0xff]  }
0x1020   :  { %19762 = vmatprep.subr.bf16.mxu1 %v21418_v24  ;;  %19802 = vmatprep.subr.bf16.mxu0 %v21419_v43  ;;  %v7801_v42 = vmax.f32 %v7324_v16, 0.0  ;;  %v7800_v24 = vmax.f32 %v7322_v36, 0.0  ;;  %v7831_v43 = vmax.f32 %v7261_v62, 0.0  ;;  %v7336_v16 = vadd.f32 %v23877_v52, %v23901_v21  ;;  %v21446_v36 = vld [vmem:[%s26814_s13 + $0x158] sm:$0xff]  }
0x1021   :  { %7714 = vmatprep.mubr.bf16.mxu1 %v26879_v46  ;;  %7787 = vmatprep.mubr.bf16.mxu0 %v26879_v46  ;;  %v7847_v1 = vmax.f32 %v7265_v33, 0.0  ;;  %v7926_v53 = vpack.c.bf16 %v7814_v56, %v7798_v0  ;;  %v7332_v52 = vadd.f32 %v23817_v51, %v23901_v21  ;;  %v21438_v51 = vld [vmem:[%s26814_s13 + $0x168] sm:$0xff]   ;;  %v21447_v62 = vld [vmem:[%s26814_s13 + $0x1d8] sm:$0xff]  }
0x1022   :  { %v7929_v60 = vpack.c.bf16 %v7817_v20, %v7801_v42  ;;  %v7945_v20 = vpack.c.bf16 %v7849_v5, %v7833_v9  ;;  %v7830_v42 = vmax.f32 %v7259_v47, 0.0  ;;  %v21440_v33 = vld [vmem:[%s26814_s13 + $0x128] sm:$0xff]   ;;  %v21449_v56 = vld [vmem:[%s26814_s13 + $0x198] sm:$0xff]   ;;  %v21461_v9 = vld [vmem:[%s26814_s13 + $0x180] sm:$0xff]  }
0x1023   :  { %19763 = vmatpush3.bf16.msra.mxu1 %v21420_v54  ;;  %19803 = vmatpush3.bf16.msra.mxu0 %v21421_v8  ;;  %v21432_v54 = vld [vmem:[%s26814_s13 + $0x138] sm:$0xff]   ;;  %v7928_v8 = vpack.c.bf16 %v7816_v12, %v7800_v24  ;;  %v21453_v12 = vld [vmem:[%s26814_s13 + $0x190] sm:$0xff]   ;;  %v21456_v0 = vld [vmem:[%s26814_s13 + $0x108] sm:$0xff]  }
0x1024   :  { %19764 = vmatprep.subr.bf16.mxu1 %v21422_v32  ;;  %19804 = vmatprep.subr.bf16.mxu0 %v21423_v58  ;;  %v7943_v32 = vpack.c.bf16 %v7847_v1, %v7831_v43  ;;  %v21433_v58 = vld [vmem:[%s26814_s13 + $0x1b8] sm:$0xff]   ;;  %v7942_v4 = vpack.c.bf16 %v7846_v27, %v7830_v42  ;;  %v21454_v1 = vld [vmem:[%s26814_s13 + $0x148] sm:$0xff]   ;;  %v21458_v24 = vld [vmem:[%s26814_s13 + $0x140] sm:$0xff]  }
0x1025   :  { %v21457_v5 = vld [vmem:[%s26814_s13 + $0x188] sm:$0xff]   ;;  %v21459_v43 = vld [vmem:[%s26814_s13 + $0x1c0] sm:$0xff]  }
0x1026   :  { %18789 = vmatmul.mubr.msk.bf16.gmra.mxu1 %vm105_vm0, %v23656_v26  ;;  %18793 = vmatmul.mubr.msk.bf16.gmra.mxu0 %vm105_vm0, %v23656_v26  ;;  %v21429_v26 = vld [vmem:[%s26814_s13 + $0x80] sm:$0xff]  }
0x1027   :  { %19765 = vmatpush3.bf16.msra.mxu1 %v21424_v29  ;;  %9053 = vmatprep.mubr.bf16.mxu1 %v7927_v11  ;;  %v7848_v29 = vmax.f32 %v7336_v16, 0.0 }
0x1028   :  { %19805 = vmatpush3.bf16.msra.mxu0 %v21425_v3  ;;  %9118 = vmatprep.mubr.bf16.mxu0 %v7929_v60  ;;  %v7832_v3 = vmax.f32 %v7332_v52, 0.0  ;;  %v21445_v60 = vld [vmem:[%s26814_s13 + $0x1a0] sm:$0xff]  }
0x1029   :  { %19766 = vmatprep.subr.bf16.mxu1 %v21426_v22  ;;  %19806 = vmatprep.subr.bf16.mxu0 %v21427_v30  ;;  %v21441_v22 = vld [vmem:[%s26814_s13 + $0x1a8] sm:$0xff]   ;;  %v21442_v30 = vld [vmem:[%s26814_s13 + $0x160] sm:$0xff]  }
0x102a   :  { %v7944_v11 = vpack.c.bf16 %v7848_v29, %v7832_v3 }
0x102b   :  { %19767 = vmatpush3.bf16.msra.mxu1 %v21428_v49  ;;  %v21448_v49 = vld [vmem:[%s26814_s13 + $0x118] sm:$0xff]  }
0x102c   :  { %19807 = vmatpush3.bf16.msra.mxu0 %v21429_v26  ;;  %19832 = vmatprep.subr.bf16.mxu1 %v21430_v37  ;;  %v21451_v26 = vld [vmem:[%s26814_s13 + $0x1d0] sm:$0xff]  }
0x102d   :  { %19872 = vmatprep.subr.bf16.mxu0 %v21431_v40  ;;  %v21452_v37 = vld [vmem:[%s26814_s13 + $0x110] sm:$0xff]   ;;  %v21455_v40 = vld [vmem:[%s26814_s13 + $0x1c8] sm:$0xff]  }
0x102e   :  { %9054 = vmatmul.mubr.bf16.vlgmr.msra.gmra.mxu1 %v7926_v53  ;;  %v21460_v53 = vld [vmem:[%s26814_s13 + $0x100] sm:$0xff]  }
0x102f   :  { %9119 = vmatmul.mubr.bf16.vlgmr.msra.gmra.mxu0 %v7928_v8  ;;  %9061 = vmatprep.mubr.bf16.mxu1 %v7943_v32 }
0x1030   :  { %9126 = vmatprep.mubr.bf16.mxu0 %v7945_v20  ;;  %19833 = vmatpush3.bf16.msra.mxu1 %v21432_v54  ;;  %v21463_v54 = vld [vmem:[%s26814_s13 + $0x2f8] sm:$0xff]  }
0x1031   :  { %19873 = vmatpush3.bf16.msra.mxu0 %v21433_v58  ;;  %19834 = vmatprep.subr.bf16.mxu1 %v21434_v23 }
0x1032   :  { %19874 = vmatprep.subr.bf16.mxu0 %v21435_v34 }
0x1034   :  { %19835 = vmatpush3.bf16.msra.mxu1 %v21436_v57 }
0x1035   :  { %19875 = vmatpush3.bf16.msra.mxu0 %v21437_v38  ;;  %19836 = vmatprep.subr.bf16.mxu1 %v21438_v51 }
0x1036   :  { %9062 = vmatmul.mubr.bf16.gmra.mxu1 %v7942_v4  ;;  %19876 = vmatprep.subr.bf16.mxu0 %v21439_v48 }
0x1037   :  { %9127 = vmatmul.mubr.bf16.gmra.mxu0 %v7944_v11 }
0x1038   :  { %19837 = vmatpush3.bf16.msra.mxu1 %v21440_v33 }
0x1039   :  { %19877 = vmatpush3.bf16.msra.mxu0 %v21441_v22  ;;  %19838 = vmatprep.subr.bf16.mxu1 %v21442_v30 }
0x103a   :  { %19878 = vmatprep.subr.bf16.mxu0 %v21443_v41 }
0x103c   :  { %19839 = vmatpush3.bf16.msra.mxu1 %v21444_v6 }
0x103d   :  { %19879 = vmatpush3.bf16.msra.mxu0 %v21445_v60  ;;  %19840 = vmatprep.subr.bf16.mxu1 %v21446_v36 }
0x103e   :  { %19880 = vmatprep.subr.bf16.mxu0 %v21447_v62 }
0x1040   :  { %19841 = vmatpush3.bf16.msra.mxu1 %v21448_v49 }
0x1041   :  { %19881 = vmatpush3.bf16.msra.mxu0 %v21449_v56  ;;  %19842 = vmatprep.subr.bf16.mxu1 %v21450_v39 }
0x1042   :  { %19882 = vmatprep.subr.bf16.mxu0 %v21451_v26  ;;  %v24056_v26 = vsub.s32 5, %v26888_v44 }
0x1044   :  { %19843 = vmatpush3.bf16.msra.mxu1 %v21452_v37  ;;  %26893 = vst [vmem:[#allocation16_spill] sm:$0xff] %v24056_v26 }
0x1045   :  { %19883 = vmatpush3.bf16.msra.mxu0 %v21453_v12  ;;  %19844 = vmatprep.subr.bf16.mxu1 %v21454_v1 }
0x1046   :  { %19884 = vmatprep.subr.bf16.mxu0 %v21455_v40 }
0x1048   :  { %19845 = vmatpush3.bf16.msra.mxu1 %v21456_v0 }
0x1049   :  { %19885 = vmatpush3.bf16.msra.mxu0 %v21457_v5  ;;  %19846 = vmatprep.subr.bf16.mxu1 %v21458_v24  ;;  %v24060_v5 = vsub.s32 7, %v26888_v44 }
0x104a   :  { %19886 = vmatprep.subr.bf16.mxu0 %v21459_v43 }
0x104b   :  { %26894 = vst [vmem:[#allocation17_spill] sm:$0xff] %v24060_v5 }
0x104c   :  { %19847 = vmatpush3.bf16.msra.mxu1 %v21460_v53 }
0x104d   :  { %19887 = vmatpush3.bf16.msra.mxu0 %v21461_v9  ;;  %19912 = vmatprep.subr.bf16.mxu1 %v21462_v50 }
0x104e   :  { %19952 = vmatprep.subr.bf16.mxu0 %v21463_v54 }
0x107e   :  { %v7268_v8 = vpop.f32.mrf.mxu1  ;;  %v7341_v16 = vpop.f32.mrf.mxu0 }
0x107f   :  { %v7269_v57 = vadd.f32 %v7268_v8, %v23897_v17  ;;  %v7342_v29 = vadd.f32 %v7341_v16, %v23901_v21  ;;  %v24068_v16 = vsub.s32 4, %v26888_v44 }
0x1080   :  { %v7270_v32 = vpop.f32.mrf.mxu1  ;;  %v7343_v58 = vpop.f32.mrf.mxu0 }
0x1081   :  { %v7271_v20 = vadd.f32 %v7270_v32, %v23843_v2  ;;  %v7344_v34 = vadd.f32 %v7343_v58, %v23853_v35  ;;  %v7862_v60 = vmax.f32 %v7269_v57, 0.0  ;;  %v7864_v36 = vmax.f32 %v7342_v29, 0.0  ;;  %26895 = vst [vmem:[#allocation18_spill] sm:$0xff] %v24068_v16 }
0x1082   :  { %v7272_v23 = vpop.f32.mrf.mxu1  ;;  %v7345_v47 = vpop.f32.mrf.mxu0  ;;  %v24071_v32 = vsub.s32 6, %v26888_v44 }
0x1083   :  { %v7273_v52 = vadd.f32 %v7272_v23, %v23897_v17  ;;  %v7346_v27 = vadd.f32 %v7345_v47, %v23901_v21  ;;  %v7863_v22 = vmax.f32 %v7271_v20, 0.0  ;;  %v7865_v30 = vmax.f32 %v7344_v34, 0.0 }
0x1084   :  { %v7274_v38 = vpop.f32.mrf.mxu1  ;;  %v7347_v51 = vpop.f32.mrf.mxu0  ;;  %26896 = vst [vmem:[#allocation19_spill] sm:$0xff] %v24071_v32 }
0x1085   :  { %v7275_v42 = vadd.f32 %v7274_v38, %v23843_v2  ;;  %v7348_v48 = vadd.f32 %v7347_v51, %v23853_v35  ;;  %v7878_v3 = vmax.f32 %v7273_v52, 0.0  ;;  %v7880_v4 = vmax.f32 %v7346_v27, 0.0 }
0x1086   :  { %v7278_v33 = vpop.f32.mrf.mxu1  ;;  %v7351_v11 = vpop.f32.mrf.mxu0  ;;  %v24081_v52 = vrot.slane %v23839_v45, %v24060_v5  ;;  %v24089_v51 = vrot.slane %v23839_v45, %v24071_v32 }
0x1087   :  { %v7879_v41 = vmax.f32 %v7275_v42, 0.0  ;;  %v7881_v6 = vmax.f32 %v7348_v48, 0.0  ;;  %v7958_v37 = vpack.c.bf16 %v7878_v3, %v7862_v60  ;;  %v7960_v12 = vpack.c.bf16 %v7880_v4, %v7864_v36 }
0x1088   :  { %v7280_v62 = vpop.f32.mrf.mxu1  ;;  %v7353_v49 = vpop.f32.mrf.mxu0  ;;  %v7279_v9 = vadd.f32 %v7278_v33, %v23897_v17  ;;  %v7352_v50 = vadd.f32 %v7351_v11, %v23901_v21 }
0x1089   :  { %v7959_v56 = vpack.c.bf16 %v7879_v41, %v7863_v22  ;;  %v7961_v39 = vpack.c.bf16 %v7881_v6, %v7865_v30  ;;  %v7281_v1 = vadd.f32 %v7280_v62, %v23843_v2  ;;  %v7354_v24 = vadd.f32 %v7353_v49, %v23853_v35 }
0x108a   :  { %v7282_v40 = vpop.f32.mrf.mxu1  ;;  %v7355_v0 = vpop.f32.mrf.mxu0  ;;  %v7894_v38 = vmax.f32 %v7279_v9, 0.0 }
0x108b   :  { %v7283_v43 = vadd.f32 %v7282_v40, %v23897_v17  ;;  %v7356_v53 = vadd.f32 %v7355_v0, %v23901_v21  ;;  %9069 = vmatprep.mubr.bf16.mxu1 %v7959_v56  ;;  %9134 = vmatprep.mubr.bf16.mxu0 %v7961_v39  ;;  %v24077_v21 = vrot.slane %v23839_v45, %v24056_v26  ;;  %v7895_v27 = vmax.f32 %v7281_v1, 0.0 }
0x108c   :  { %v7284_v54 = vpop.f32.mrf.mxu1  ;;  %v7357_v8 = vpop.f32.mrf.mxu0  ;;  %9070 = vmatmul.mubr.bf16.gmra.mxu1 %v7958_v37  ;;  %9135 = vmatmul.mubr.bf16.gmra.mxu0 %v7960_v12  ;;  %v7897_v57 = vmax.f32 %v7354_v24, 0.0 }
0x108d   :  { %v7285_v58 = vadd.f32 %v7284_v54, %v23843_v2  ;;  %v7358_v23 = vadd.f32 %v7357_v8, %v23853_v35  ;;  %v7910_v47 = vmax.f32 %v7283_v43, 0.0  ;;  %v7912_v20 = vmax.f32 %v7356_v53, 0.0 }
0x108e   :  { %v7394_v34 = vpop.f32.mrf.mxu1  ;;  %v7467_v17 = vpop.f32.mrf.mxu0  ;;  %v7896_v2 = vmax.f32 %v7352_v50, 0.0  ;;  %v24085_v35 = vrot.slane %v23839_v45, %v24068_v16 }
0x108f   :  { %v7911_v44 = vmax.f32 %v7285_v58, 0.0  ;;  %v7913_v29 = vmax.f32 %v7358_v23, 0.0  ;;  %v7974_v33 = vpack.c.bf16 %v7910_v47, %v7894_v38  ;;  %v7468_v62 = vadd.f32 %v7467_v17, %v24089_v51  ;;  %v21467_v38 = vld [vmem:[%s26814_s13 + $0x2f0] sm:$0xff]  }
0x1090   :  { %v7396_v42 = vpop.f32.mrf.mxu1  ;;  %v7469_v48 = vpop.f32.mrf.mxu0  ;;  %v7976_v11 = vpack.c.bf16 %v7912_v20, %v7896_v2  ;;  %v7395_v45 = vadd.f32 %v7394_v34, %v24085_v35  ;;  %v21464_v20 = vld [vmem:[%s26814_s13 + $0x238] sm:$0xff]  }
0x1091   :  { %v7975_v3 = vpack.c.bf16 %v7911_v44, %v7895_v27  ;;  %v7977_v4 = vpack.c.bf16 %v7913_v29, %v7897_v57  ;;  %v7397_v22 = vadd.f32 %v7396_v42, %v24077_v21  ;;  %v7470_v6 = vadd.f32 %v7469_v48, %v24081_v52  ;;  %v21465_v34 = vld [vmem:[%s26814_s13 + $0x2b8] sm:$0xff]   ;;  %v21466_v29 = vld [vmem:[%s26814_s13 + $0x270] sm:$0xff]  }
0x1092   :  { %v7398_v30 = vpop.f32.mrf.mxu1  ;;  %v7471_v41 = vpop.f32.mrf.mxu0  ;;  %v7802_v50 = vmax.f32 %v7395_v45, 0.0  ;;  %v7804_v54 = vmax.f32 %v7468_v62, 0.0 }
0x1093   :  { %v7399_v60 = vadd.f32 %v7398_v30, %v24085_v35  ;;  %v7472_v36 = vadd.f32 %v7471_v41, %v24089_v51  ;;  %9077 = vmatprep.mubr.bf16.mxu1 %v7975_v3  ;;  %9142 = vmatprep.mubr.bf16.mxu0 %v7977_v4  ;;  %v7803_v24 = vmax.f32 %v7397_v22, 0.0  ;;  %v7805_v43 = vmax.f32 %v7470_v6, 0.0  ;;  %v21468_v6 = vld [vmem:[%s26814_s13 + $0x230] sm:$0xff]  }
0x1094   :  { %v7400_v49 = vpop.f32.mrf.mxu1  ;;  %v7473_v56 = vpop.f32.mrf.mxu0  ;;  %9078 = vmatmul.mubr.bf16.gmra.mxu1 %v7974_v33  ;;  %9143 = vmatmul.mubr.bf16.gmra.mxu0 %v7976_v11 }
0x1095   :  { %v7401_v39 = vadd.f32 %v7400_v49, %v24077_v21  ;;  %v7474_v37 = vadd.f32 %v7473_v56, %v24081_v52  ;;  %v7818_v12 = vmax.f32 %v7399_v60, 0.0  ;;  %v7820_v1 = vmax.f32 %v7472_v36, 0.0  ;;  %v21469_v60 = vld [vmem:[%s26814_s13 + $0x2b0] sm:$0xff]   ;;  %v21470_v56 = vld [vmem:[%s26814_s13 + $0x268] sm:$0xff]  }
0x1096   :  { %v7404_v40 = vpop.f32.mrf.mxu1  ;;  %v7477_v0 = vpop.f32.mrf.mxu0 }
0x1097   :  { %v7819_v53 = vmax.f32 %v7401_v39, 0.0  ;;  %v7821_v9 = vmax.f32 %v7474_v37, 0.0  ;;  %v7930_v17 = vpack.c.bf16 %v7818_v12, %v7802_v50  ;;  %v7932_v27 = vpack.c.bf16 %v7820_v1, %v7804_v54  ;;  %v21471_v39 = vld [vmem:[%s26814_s13 + $0x2e8] sm:$0xff]  }
0x1098   :  { %v7406_v8 = vpop.f32.mrf.mxu1  ;;  %v7479_v58 = vpop.f32.mrf.mxu0  ;;  %v7405_v3 = vadd.f32 %v7404_v40, %v24085_v35  ;;  %v7478_v4 = vadd.f32 %v7477_v0, %v24089_v51  ;;  %v21472_v50 = vld [vmem:[%s26814_s13 + $0x228] sm:$0xff]  }
0x1099   :  { %v7931_v23 = vpack.c.bf16 %v7819_v53, %v7803_v24  ;;  %v7933_v47 = vpack.c.bf16 %v7821_v9, %v7805_v43  ;;  %v7407_v2 = vadd.f32 %v7406_v8, %v24077_v21  ;;  %v7480_v33 = vadd.f32 %v7479_v58, %v24081_v52 }
0x109a   :  { %v7408_v57 = vpop.f32.mrf.mxu1  ;;  %v7481_v44 = vpop.f32.mrf.mxu0  ;;  %v7834_v40 = vmax.f32 %v7405_v3, 0.0  ;;  %v7836_v0 = vmax.f32 %v7478_v4, 0.0 }
0x109b   :  { %v7409_v42 = vadd.f32 %v7408_v57, %v24085_v35  ;;  %v7482_v48 = vadd.f32 %v7481_v44, %v24089_v51  ;;  %9183 = vmatprep.mubr.bf16.mxu1 %v7931_v23  ;;  %9248 = vmatprep.mubr.bf16.mxu0 %v7933_v47  ;;  %v7835_v37 = vmax.f32 %v7407_v2, 0.0  ;;  %v7837_v24 = vmax.f32 %v7480_v33, 0.0  ;;  %v21476_v33 = vld [vmem:[%s26814_s13 + $0x220] sm:$0xff]  }
0x109c   :  { %v7410_v11 = vpop.f32.mrf.mxu1  ;;  %v7483_v22 = vpop.f32.mrf.mxu0  ;;  %9184 = vmatmul.mubr.bf16.vlgmr.msra.gmra.mxu1 %v7930_v17  ;;  %9249 = vmatmul.mubr.bf16.vlgmr.msra.gmra.mxu0 %v7932_v27 }
0x109d   :  { %v7411_v30 = vadd.f32 %v7410_v11, %v24077_v21  ;;  %v7484_v41 = vadd.f32 %v7483_v22, %v24081_v52  ;;  %19913 = vmatpush3.bf16.msra.mxu1 %v21464_v20  ;;  %19953 = vmatpush3.bf16.msra.mxu0 %v21465_v34  ;;  %v7850_v36 = vmax.f32 %v7409_v42, 0.0  ;;  %v7852_v45 = vmax.f32 %v7482_v48, 0.0  ;;  %v21473_v20 = vld [vmem:[%s26814_s13 + $0x2a8] sm:$0xff]   ;;  %v21474_v34 = vld [vmem:[%s26814_s13 + $0x260] sm:$0xff]  }
0x109e   :  { %v7414_v62 = vpop.f32.mrf.mxu1  ;;  %v7487_v49 = vpop.f32.mrf.mxu0  ;;  %19914 = vmatprep.subr.bf16.mxu1 %v21466_v29  ;;  %19954 = vmatprep.subr.bf16.mxu0 %v21467_v38  ;;  %v21475_v29 = vld [vmem:[%s26814_s13 + $0x2e0] sm:$0xff]  }
0x109f   :  { %v7851_v12 = vmax.f32 %v7411_v30, 0.0  ;;  %v7853_v1 = vmax.f32 %v7484_v41, 0.0  ;;  %v7946_v54 = vpack.c.bf16 %v7850_v36, %v7834_v40  ;;  %v7948_v8 = vpack.c.bf16 %v7852_v45, %v7836_v0 }
0x10a0   :  { %v7416_v43 = vpop.f32.mrf.mxu1  ;;  %v7489_v53 = vpop.f32.mrf.mxu0  ;;  %v7415_v38 = vadd.f32 %v7414_v62, %v24085_v35  ;;  %v7488_v2 = vadd.f32 %v7487_v49, %v24089_v51 }
0x10a1   :  { %19915 = vmatpush3.bf16.msra.mxu1 %v21468_v6  ;;  %19955 = vmatpush3.bf16.msra.mxu0 %v21469_v60  ;;  %v7947_v9 = vpack.c.bf16 %v7851_v12, %v7835_v37  ;;  %v7949_v47 = vpack.c.bf16 %v7853_v1, %v7837_v24  ;;  %v7417_v17 = vadd.f32 %v7416_v43, %v24077_v21  ;;  %v21477_v6 = vld [vmem:[%s26814_s13 + $0x2a0] sm:$0xff]   ;;  %v21478_v60 = vld [vmem:[%s26814_s13 + $0x258] sm:$0xff]  }
0x10a2   :  { %v7418_v58 = vpop.f32.mrf.mxu1  ;;  %v7491_v23 = vpop.f32.mrf.mxu0  ;;  %19916 = vmatprep.subr.bf16.mxu1 %v21470_v56  ;;  %19956 = vmatprep.subr.bf16.mxu0 %v21471_v39  ;;  %v7490_v27 = vadd.f32 %v7489_v53, %v24081_v52  ;;  %v7866_v56 = vmax.f32 %v7415_v38, 0.0  ;;  %v7868_v39 = vmax.f32 %v7488_v2, 0.0  ;;  %v21479_v1 = vld [vmem:[%s26814_s13 + $0x2d8] sm:$0xff]   ;;  %v24186_v2 = vld [vmem:[%s26813_s12 + $0x8] sm:$0xff] }
0x10a3   :  { %v7419_v57 = vadd.f32 %v7418_v58, %v24085_v35  ;;  %v7492_v44 = vadd.f32 %v7491_v23, %v24089_v51  ;;  %9191 = vmatprep.mubr.bf16.mxu1 %v7947_v9  ;;  %9256 = vmatprep.mubr.bf16.mxu0 %v7949_v47  ;;  %v7867_v36 = vmax.f32 %v7417_v17, 0.0  ;;  %v21480_v24 = vld [vmem:[%s26814_s13 + $0x218] sm:$0xff]   ;;  %v21482_v58 = vld [vmem:[%s26814_s13 + $0x250] sm:$0xff]  }
0x10a4   :  { %v7420_v42 = vpop.f32.mrf.mxu1  ;;  %v7493_v48 = vpop.f32.mrf.mxu0  ;;  %9192 = vmatmul.mubr.bf16.gmra.mxu1 %v7946_v54  ;;  %9257 = vmatmul.mubr.bf16.gmra.mxu0 %v7948_v8  ;;  %v7869_v45 = vmax.f32 %v7490_v27, 0.0  ;;  %v21481_v8 = vld [vmem:[%s26814_s13 + $0x298] sm:$0xff]  }
0x10a5   :  { %v7421_v3 = vadd.f32 %v7420_v42, %v24077_v21  ;;  %v7494_v4 = vadd.f32 %v7493_v48, %v24081_v52  ;;  %19917 = vmatpush3.bf16.msra.mxu1 %v21472_v50  ;;  %v7882_v11 = vmax.f32 %v7419_v57, 0.0  ;;  %v7884_v22 = vmax.f32 %v7492_v44, 0.0  ;;  %19957 = vmatpush3.bf16.msra.mxu0 %v21473_v20 }
0x10a6   :  { %v7424_v30 = vpop.f32.mrf.mxu1  ;;  %v7497_v41 = vpop.f32.mrf.mxu0  ;;  %19918 = vmatprep.subr.bf16.mxu1 %v21474_v34  ;;  %19958 = vmatprep.subr.bf16.mxu0 %v21475_v29  ;;  %v21483_v34 = vld [vmem:[%s26814_s13 + $0x2d0] sm:$0xff]  }
0x10a7   :  { %v7883_v62 = vmax.f32 %v7421_v3, 0.0  ;;  %v7885_v49 = vmax.f32 %v7494_v4, 0.0  ;;  %v7962_v43 = vpack.c.bf16 %v7882_v11, %v7866_v56  ;;  %v7964_v53 = vpack.c.bf16 %v7884_v22, %v7868_v39  ;;  %v21485_v4 = vld [vmem:[%s26814_s13 + $0x290] sm:$0xff]   ;;  %v21487_v56 = vld [vmem:[%s26814_s13 + $0x2c8] sm:$0xff]  }
0x10a8   :  { %v7426_v37 = vpop.f32.mrf.mxu1  ;;  %v7499_v12 = vpop.f32.mrf.mxu0  ;;  %v7425_v17 = vadd.f32 %v7424_v30, %v24085_v35  ;;  %v7498_v27 = vadd.f32 %v7497_v41, %v24089_v51 }
0x10a9   :  { %19919 = vmatpush3.bf16.msra.mxu1 %v21476_v33  ;;  %v7963_v40 = vpack.c.bf16 %v7883_v62, %v7867_v36  ;;  %v7965_v0 = vpack.c.bf16 %v7885_v49, %v7869_v45  ;;  %v7427_v9 = vadd.f32 %v7426_v37, %v24077_v21  ;;  %19959 = vmatpush3.bf16.msra.mxu0 %v21477_v6  ;;  %v21486_v33 = vld [vmem:[%s26814_s13 + $0x248] sm:$0xff]  }
0x10aa   :  { %v7428_v50 = vpop.f32.mrf.mxu1  ;;  %v7501_v54 = vpop.f32.mrf.mxu0  ;;  %19920 = vmatprep.subr.bf16.mxu1 %v21478_v60  ;;  %v7500_v23 = vadd.f32 %v7499_v12, %v24081_v52  ;;  %19960 = vmatprep.subr.bf16.mxu0 %v21479_v1  ;;  %v7898_v6 = vmax.f32 %v7425_v17, 0.0  ;;  %v7900_v60 = vmax.f32 %v7498_v27, 0.0  ;;  %v24207_v36 = vrot.slane %v24186_v2, %v23863_v18  ;;  %v21488_v12 = vld [vmem:[%s26814_s13 + $0x208] sm:$0xff]  }
0x10ab   :  { %v7429_v47 = vadd.f32 %v7428_v50, %v24085_v35  ;;  %v7502_v20 = vadd.f32 %v7501_v54, %v24089_v51  ;;  %9199 = vmatprep.mubr.bf16.mxu1 %v7963_v40  ;;  %9264 = vmatprep.mubr.bf16.mxu0 %v7965_v0  ;;  %v21484_v35 = vld [vmem:[%s26814_s13 + $0x210] sm:$0xff]   ;;  %v7899_v11 = vmax.f32 %v7427_v9, 0.0  ;;  %v24211_v45 = vrot.slane %v24186_v2, %v23873_v10  ;;  %v21490_v9 = vld [vmem:[%s26814_s13 + $0x240] sm:$0xff]  }
0x10ac   :  { %v7430_v57 = vpop.f32.mrf.mxu1  ;;  %v7503_v44 = vpop.f32.mrf.mxu0  ;;  %9200 = vmatmul.mubr.bf16.gmra.mxu1 %v7962_v43  ;;  %9265 = vmatmul.mubr.bf16.gmra.mxu0 %v7964_v53  ;;  %v7901_v22 = vmax.f32 %v7500_v23, 0.0  ;;  %v21489_v53 = vld [vmem:[%s26814_s13 + $0x288] sm:$0xff]  }
0x10ad   :  { %v7431_v29 = vadd.f32 %v7430_v57, %v24077_v21  ;;  %v7504_v38 = vadd.f32 %v7503_v44, %v24081_v52  ;;  %19921 = vmatpush3.bf16.msra.mxu1 %v21480_v24  ;;  %v7914_v51 = vmax.f32 %v7429_v47, 0.0  ;;  %v7916_v42 = vmax.f32 %v7502_v20, 0.0  ;;  %19961 = vmatpush3.bf16.msra.mxu0 %v21481_v8  ;;  %v21492_v57 = vld [vmem:[%s26814_s13 + $0x200] sm:$0xff]  }
0x10ae   :  { %v7540_v48 = vpop.f32.mrf.mxu1  ;;  %v7613_v3 = vpop.f32.mrf.mxu0  ;;  %v24193_v21 = vrot.slane %v24186_v2, %v23815_v55  ;;  %v24197_v52 = vrot.slane %v24186_v2, %v23826_v19  ;;  %19922 = vmatprep.subr.bf16.mxu1 %v21482_v58  ;;  %19962 = vmatprep.subr.bf16.mxu0 %v21483_v34  ;;  %v21491_v58 = vld [vmem:[%s26814_s13 + $0x2c0] sm:$0xff]  }
0x10af   :  { %v7915_v30 = vmax.f32 %v7431_v29, 0.0  ;;  %v7917_v41 = vmax.f32 %v7504_v38, 0.0  ;;  %v7978_v1 = vpack.c.bf16 %v7914_v51, %v7898_v6  ;;  %v7980_v40 = vpack.c.bf16 %v7916_v42, %v7900_v60  ;;  %v21493_v51 = vld [vmem:[%s26814_s13 + $0x280] sm:$0xff]   ;;  %v21494_v42 = vld [vmem:[%s26814_s13 + $0x378] sm:$0xff]  }
0x10b0   :  { %v7542_v62 = vpop.f32.mrf.mxu1  ;;  %v7615_v49 = vpop.f32.mrf.mxu0  ;;  %v7541_v23 = vadd.f32 %v7540_v48, %v24207_v36  ;;  %v7614_v47 = vadd.f32 %v7613_v3, %v24211_v45  ;;  %v21495_v6 = vld [vmem:[%s26814_s13 + $0x3f8] sm:$0xff]  }
0x10b1   :  { %19923 = vmatpush3.bf16.msra.mxu1 %v21484_v35  ;;  %v7979_v39 = vpack.c.bf16 %v7915_v30, %v7899_v11  ;;  %v7981_v37 = vpack.c.bf16 %v7917_v41, %v7901_v22  ;;  %v7543_v0 = vadd.f32 %v7542_v62, %v24193_v21  ;;  %19963 = vmatpush3.bf16.msra.mxu0 %v21485_v4 }
0x10b2   :  { %v7544_v24 = vpop.f32.mrf.mxu1  ;;  %v7617_v43 = vpop.f32.mrf.mxu0  ;;  %19924 = vmatprep.subr.bf16.mxu1 %v21486_v33  ;;  %v7616_v50 = vadd.f32 %v7615_v49, %v24197_v52  ;;  %19964 = vmatprep.subr.bf16.mxu0 %v21487_v56  ;;  %v7806_v11 = vmax.f32 %v7541_v23, 0.0  ;;  %v7808_v22 = vmax.f32 %v7614_v47, 0.0  ;;  %v21496_v49 = vld [vmem:[%s26814_s13 + $0x338] sm:$0xff]  }
0x10b3   :  { %v7545_v54 = vadd.f32 %v7544_v24, %v24207_v36  ;;  %v7618_v8 = vadd.f32 %v7617_v43, %v24211_v45  ;;  %9207 = vmatprep.mubr.bf16.mxu1 %v7979_v39  ;;  %9272 = vmatprep.mubr.bf16.mxu0 %v7981_v37  ;;  %v7807_v48 = vmax.f32 %v7543_v0, 0.0  ;;  %v21498_v0 = vld [vmem:[%s26814_s13 + $0x370] sm:$0xff]  }
0x10b4   :  { %v7546_v20 = vpop.f32.mrf.mxu1  ;;  %v7619_v34 = vpop.f32.mrf.mxu0  ;;  %9208 = vmatmul.mubr.bf16.gmra.mxu1 %v7978_v1  ;;  %9273 = vmatmul.mubr.bf16.gmra.mxu0 %v7980_v40  ;;  %v7809_v3 = vmax.f32 %v7616_v50, 0.0  ;;  %v21497_v40 = vld [vmem:[%s26814_s13 + $0x3b8] sm:$0xff]  }
0x10b5   :  { %v7547_v17 = vadd.f32 %v7546_v20, %v24193_v21  ;;  %v7620_v27 = vadd.f32 %v7619_v34, %v24197_v52  ;;  %19925 = vmatpush3.bf16.msra.mxu1 %v21488_v12  ;;  %v7822_v44 = vmax.f32 %v7545_v54, 0.0  ;;  %v7824_v29 = vmax.f32 %v7618_v8, 0.0  ;;  %19965 = vmatpush3.bf16.msra.mxu0 %v21489_v53  ;;  %v21500_v20 = vld [vmem:[%s26814_s13 + $0x330] sm:$0xff]  }
0x10b6   :  { %v7550_v38 = vpop.f32.mrf.mxu1  ;;  %v7623_v35 = vpop.f32.mrf.mxu0  ;;  %19926 = vmatprep.subr.bf16.mxu1 %v21490_v9  ;;  %19966 = vmatprep.subr.bf16.mxu0 %v21491_v58  ;;  %v21499_v9 = vld [vmem:[%s26814_s13 + $0x3f0] sm:$0xff]  }
0x10b7   :  { %v7823_v4 = vmax.f32 %v7547_v17, 0.0  ;;  %v7825_v33 = vmax.f32 %v7620_v27, 0.0  ;;  %v7934_v56 = vpack.c.bf16 %v7822_v44, %v7806_v11  ;;  %v7936_v39 = vpack.c.bf16 %v7824_v29, %v7808_v22  ;;  %v21501_v44 = vld [vmem:[%s26814_s13 + $0x3b0] sm:$0xff]   ;;  %v21502_v29 = vld [vmem:[%s26814_s13 + $0x368] sm:$0xff]  }
0x10b8   :  { %v7552_v30 = vpop.f32.mrf.mxu1  ;;  %v7625_v41 = vpop.f32.mrf.mxu0  ;;  %v7551_v50 = vadd.f32 %v7550_v38, %v24207_v36  ;;  %v7624_v54 = vadd.f32 %v7623_v35, %v24211_v45  ;;  %v21503_v11 = vld [vmem:[%s26814_s13 + $0x3e8] sm:$0xff]  }
0x10b9   :  { %19927 = vmatpush3.bf16.msra.mxu1 %v21492_v57  ;;  %v7935_v60 = vpack.c.bf16 %v7823_v4, %v7807_v48  ;;  %v7937_v62 = vpack.c.bf16 %v7825_v33, %v7809_v3  ;;  %v7553_v37 = vadd.f32 %v7552_v30, %v24193_v21  ;;  %19967 = vmatpush3.bf16.msra.mxu0 %v21493_v51 }
0x10ba   :  { %v7554_v12 = vpop.f32.mrf.mxu1  ;;  %v7627_v1 = vpop.f32.mrf.mxu0  ;;  %19992 = vmatprep.subr.bf16.mxu1 %v21494_v42  ;;  %v7626_v24 = vadd.f32 %v7625_v41, %v24197_v52  ;;  %20032 = vmatprep.subr.bf16.mxu0 %v21495_v6  ;;  %v7838_v48 = vmax.f32 %v7551_v50, 0.0  ;;  %v7840_v3 = vmax.f32 %v7624_v54, 0.0  ;;  %v21504_v41 = vld [vmem:[%s26814_s13 + $0x328] sm:$0xff]  }
0x10bb   :  { %v7555_v43 = vadd.f32 %v7554_v12, %v24207_v36  ;;  %v7628_v53 = vadd.f32 %v7627_v1, %v24211_v45  ;;  %9313 = vmatprep.mubr.bf16.mxu1 %v7935_v60  ;;  %9378 = vmatprep.mubr.bf16.mxu0 %v7937_v62  ;;  %v7839_v38 = vmax.f32 %v7553_v37, 0.0  ;;  %v21506_v37 = vld [vmem:[%s26814_s13 + $0x360] sm:$0xff]  }
0x10bc   :  { %v7556_v8 = vpop.f32.mrf.mxu1  ;;  %v7629_v58 = vpop.f32.mrf.mxu0  ;;  %9314 = vmatmul.mubr.bf16.vlgmr.msra.gmra.mxu1 %v7934_v56  ;;  %9379 = vmatmul.mubr.bf16.vlgmr.msra.gmra.mxu0 %v7936_v39  ;;  %v7841_v35 = vmax.f32 %v7626_v24, 0.0  ;;  %v21505_v39 = vld [vmem:[%s26814_s13 + $0x3a8] sm:$0xff]  }
0x10bd   :  { %v7557_v23 = vadd.f32 %v7556_v8, %v24193_v21  ;;  %v7630_v47 = vadd.f32 %v7629_v58, %v24197_v52  ;;  %19993 = vmatpush3.bf16.msra.mxu1 %v21496_v49  ;;  %v7854_v34 = vmax.f32 %v7555_v43, 0.0  ;;  %v7856_v17 = vmax.f32 %v7628_v53, 0.0  ;;  %20033 = vmatpush3.bf16.msra.mxu0 %v21497_v40  ;;  %v21508_v8 = vld [vmem:[%s26814_s13 + $0x320] sm:$0xff]  }
0x10be   :  { %v7560_v27 = vpop.f32.mrf.mxu1  ;;  %v7633_v57 = vpop.f32.mrf.mxu0  ;;  %19994 = vmatprep.subr.bf16.mxu1 %v21498_v0  ;;  %20034 = vmatprep.subr.bf16.mxu0 %v21499_v9  ;;  %v21507_v0 = vld [vmem:[%s26814_s13 + $0x3e0] sm:$0xff]  }
0x10bf   :  { %v7855_v51 = vmax.f32 %v7557_v23, 0.0  ;;  %v7857_v42 = vmax.f32 %v7630_v47, 0.0  ;;  %v7950_v6 = vpack.c.bf16 %v7854_v34, %v7838_v48  ;;  %v7952_v60 = vpack.c.bf16 %v7856_v17, %v7840_v3  ;;  %v21509_v34 = vld [vmem:[%s26814_s13 + $0x3a0] sm:$0xff]   ;;  %v21510_v17 = vld [vmem:[%s26814_s13 + $0x358] sm:$0xff]  }
0x10c0   :  { %v7562_v4 = vpop.f32.mrf.mxu1  ;;  %v7635_v33 = vpop.f32.mrf.mxu0  ;;  %v7561_v24 = vadd.f32 %v7560_v27, %v24207_v36  ;;  %v7634_v43 = vadd.f32 %v7633_v57, %v24211_v45  ;;  %v21511_v48 = vld [vmem:[%s26814_s13 + $0x3d8] sm:$0xff]  }
0x10c1   :  { %19995 = vmatpush3.bf16.msra.mxu1 %v21500_v20  ;;  %v7951_v22 = vpack.c.bf16 %v7855_v51, %v7839_v38  ;;  %v7953_v30 = vpack.c.bf16 %v7857_v42, %v7841_v35  ;;  %v7563_v62 = vadd.f32 %v7562_v4, %v24193_v21  ;;  %20035 = vmatpush3.bf16.msra.mxu0 %v21501_v44 }
0x10c2   :  { %v7564_v49 = vpop.f32.mrf.mxu1  ;;  %v7637_v56 = vpop.f32.mrf.mxu0  ;;  %19996 = vmatprep.subr.bf16.mxu1 %v21502_v29  ;;  %v7636_v12 = vadd.f32 %v7635_v33, %v24197_v52  ;;  %20036 = vmatprep.subr.bf16.mxu0 %v21503_v11  ;;  %v7870_v38 = vmax.f32 %v7561_v24, 0.0  ;;  %v7872_v35 = vmax.f32 %v7634_v43, 0.0  ;;  %v21512_v33 = vld [vmem:[%s26814_s13 + $0x318] sm:$0xff]  }
0x10c3   :  { %v7565_v1 = vadd.f32 %v7564_v49, %v24207_v36  ;;  %v7638_v40 = vadd.f32 %v7637_v56, %v24211_v45  ;;  %9321 = vmatprep.mubr.bf16.mxu1 %v7951_v22  ;;  %9386 = vmatprep.mubr.bf16.mxu0 %v7953_v30  ;;  %v7871_v27 = vmax.f32 %v7563_v62, 0.0  ;;  %v21514_v62 = vld [vmem:[%s26814_s13 + $0x350] sm:$0xff]  }
0x10c4   :  { %v7566_v53 = vpop.f32.mrf.mxu1  ;;  %v7639_v9 = vpop.f32.mrf.mxu0  ;;  %9322 = vmatmul.mubr.bf16.gmra.mxu1 %v7950_v6  ;;  %9387 = vmatmul.mubr.bf16.gmra.mxu0 %v7952_v60  ;;  %v7873_v57 = vmax.f32 %v7636_v12, 0.0  ;;  %v21513_v60 = vld [vmem:[%s26814_s13 + $0x398] sm:$0xff]  }
0x10c5   :  { %v7567_v50 = vadd.f32 %v7566_v53, %v24193_v21  ;;  %v7640_v54 = vadd.f32 %v7639_v9, %v24197_v52  ;;  %19997 = vmatpush3.bf16.msra.mxu1 %v21504_v41  ;;  %v7886_v58 = vmax.f32 %v7565_v1, 0.0  ;;  %v7888_v23 = vmax.f32 %v7638_v40, 0.0  ;;  %20037 = vmatpush3.bf16.msra.mxu0 %v21505_v39  ;;  %v21516_v53 = vld [vmem:[%s26814_s13 + $0x310] sm:$0xff]  }
0x10c6   :  { %v7570_v47 = vpop.f32.mrf.mxu1  ;;  %v7643_v20 = vpop.f32.mrf.mxu0  ;;  %19998 = vmatprep.subr.bf16.mxu1 %v21506_v37  ;;  %20038 = vmatprep.subr.bf16.mxu0 %v21507_v0  ;;  %v21515_v37 = vld [vmem:[%s26814_s13 + $0x3d0] sm:$0xff]  }
0x10c7   :  { %v7887_v44 = vmax.f32 %v7567_v50, 0.0  ;;  %v7889_v29 = vmax.f32 %v7640_v54, 0.0  ;;  %v7966_v11 = vpack.c.bf16 %v7886_v58, %v7870_v38  ;;  %v7968_v22 = vpack.c.bf16 %v7888_v23, %v7872_v35  ;;  %v21519_v38 = vld [vmem:[%s26814_s13 + $0x3c8] sm:$0xff]  }
0x10c8   :  { %v7572_v51 = vpop.f32.mrf.mxu1  ;;  %v7645_v42 = vpop.f32.mrf.mxu0  ;;  %v7571_v12 = vadd.f32 %v7570_v47, %v24207_v36  ;;  %v7644_v1 = vadd.f32 %v7643_v20, %v24211_v45 }
0x10c9   :  { %19999 = vmatpush3.bf16.msra.mxu1 %v21508_v8  ;;  %v7967_v3 = vpack.c.bf16 %v7887_v44, %v7871_v27  ;;  %v7969_v4 = vpack.c.bf16 %v7889_v29, %v7873_v57  ;;  %v7573_v30 = vadd.f32 %v7572_v51, %v24193_v21  ;;  %20039 = vmatpush3.bf16.msra.mxu0 %v21509_v34  ;;  %v21518_v8 = vld [vmem:[%s26814_s13 + $0x348] sm:$0xff]  }
0x10ca   :  { %v7574_v41 = vpop.f32.mrf.mxu1  ;;  %v7647_v6 = vpop.f32.mrf.mxu0  ;;  %20000 = vmatprep.subr.bf16.mxu1 %v21510_v17  ;;  %v7646_v49 = vadd.f32 %v7645_v42, %v24197_v52  ;;  %20040 = vmatprep.subr.bf16.mxu0 %v21511_v48  ;;  %v7902_v34 = vmax.f32 %v7571_v12, 0.0  ;;  %v7904_v17 = vmax.f32 %v7644_v1, 0.0  ;;  %v24351_v27 = vrot.slane %v24186_v2, %v24068_v16  ;;  %v21520_v42 = vld [vmem:[%s26814_s13 + $0x308] sm:$0xff]   ;;  %v21524_v1 = vld [vmem:[%s26814_s13 + $0x300] sm:$0xff]  }
0x10cb   :  { %v7575_v56 = vadd.f32 %v7574_v41, %v24207_v36  ;;  %v7648_v39 = vadd.f32 %v7647_v6, %v24211_v45  ;;  %9329 = vmatprep.mubr.bf16.mxu1 %v7967_v3  ;;  %9394 = vmatprep.mubr.bf16.mxu0 %v7969_v4  ;;  %v24337_v45 = vrot.slane %v24186_v2, %v24056_v26  ;;  %v7903_v58 = vmax.f32 %v7573_v30, 0.0 }
0x10cc   :  { %v7576_v40 = vpop.f32.mrf.mxu1  ;;  %v7649_v0 = vpop.f32.mrf.mxu0  ;;  %9330 = vmatmul.mubr.bf16.gmra.mxu1 %v7966_v11  ;;  %9395 = vmatmul.mubr.bf16.gmra.mxu0 %v7968_v22  ;;  %v7905_v23 = vmax.f32 %v7646_v49, 0.0  ;;  %v24355_v57 = vrot.slane %v24186_v2, %v24071_v32  ;;  %v21521_v11 = vld [vmem:[%s26814_s13 + $0x388] sm:$0xff]   ;;  %v21522_v22 = vld [vmem:[%s26814_s13 + $0x340] sm:$0xff]  }
0x10cd   :  { %v7577_v24 = vadd.f32 %v7576_v40, %v24193_v21  ;;  %v7650_v43 = vadd.f32 %v7649_v0, %v24197_v52  ;;  %20001 = vmatpush3.bf16.msra.mxu1 %v21512_v33  ;;  %v7918_v9 = vmax.f32 %v7575_v56, 0.0  ;;  %v7920_v50 = vmax.f32 %v7648_v39, 0.0  ;;  %20041 = vmatpush3.bf16.msra.mxu0 %v21513_v60  ;;  %v21517_v52 = vld [vmem:[%s26814_s13 + $0x390] sm:$0xff]   ;;  %v21523_v60 = vld [vmem:[%s26814_s13 + $0x3c0] sm:$0xff]  }
0x10ce   :  { %v7686_v36 = vpop.f32.mrf.mxu1  ;;  %v7759_v54 = vpop.f32.mrf.mxu0  ;;  %v24341_v21 = vrot.slane %v24186_v2, %v24060_v5  ;;  %20002 = vmatprep.subr.bf16.mxu1 %v21514_v62  ;;  %20042 = vmatprep.subr.bf16.mxu0 %v21515_v37 }
0x10cf   :  { %v7919_v47 = vmax.f32 %v7577_v24, 0.0  ;;  %v7921_v20 = vmax.f32 %v7650_v43, 0.0  ;;  %v7982_v48 = vpack.c.bf16 %v7918_v9, %v7902_v34  ;;  %v7984_v3 = vpack.c.bf16 %v7920_v50, %v7904_v17 }
0x10d0   :  { %v7688_v44 = vpop.f32.mrf.mxu1  ;;  %v7761_v29 = vpop.f32.mrf.mxu0  ;;  %v7687_v62 = vadd.f32 %v7686_v36, %v24351_v27  ;;  %v7760_v49 = vadd.f32 %v7759_v54, %v24355_v57 }
0x10d1   :  { %20003 = vmatpush3.bf16.msra.mxu1 %v21516_v53  ;;  %v7983_v35 = vpack.c.bf16 %v7919_v47, %v7903_v58  ;;  %v7985_v51 = vpack.c.bf16 %v7921_v20, %v7905_v23  ;;  %v7689_v4 = vadd.f32 %v7688_v44, %v24337_v45  ;;  %20043 = vmatpush3.bf16.msra.mxu0 %v21517_v52  ;;  %v21525_v53 = vld [vmem:[%s26814_s13 + $0x380] sm:$0xff]  }
0x10d2   :  { %v7690_v2 = vpop.f32.mrf.mxu1  ;;  %v7763_v33 = vpop.f32.mrf.mxu0  ;;  %20004 = vmatprep.subr.bf16.mxu1 %v21518_v8  ;;  %v7762_v30 = vadd.f32 %v7761_v29, %v24341_v21  ;;  %20044 = vmatprep.subr.bf16.mxu0 %v21519_v38  ;;  %v7810_v52 = vmax.f32 %v7687_v62, 0.0  ;;  %v7812_v8 = vmax.f32 %v7760_v49, 0.0 }
0x10d3   :  { %v7691_v41 = vadd.f32 %v7690_v2, %v24351_v27  ;;  %v7764_v6 = vadd.f32 %v7763_v33, %v24355_v57  ;;  %9337 = vmatprep.mubr.bf16.mxu1 %v7983_v35  ;;  %9402 = vmatprep.mubr.bf16.mxu0 %v7985_v51  ;;  %v7811_v9 = vmax.f32 %v7689_v4, 0.0 }
0x10d4   :  { %v7692_v56 = vpop.f32.mrf.mxu1  ;;  %v7765_v39 = vpop.f32.mrf.mxu0  ;;  %9338 = vmatmul.mubr.bf16.gmra.mxu1 %v7982_v48  ;;  %9403 = vmatmul.mubr.bf16.gmra.mxu0 %v7984_v3  ;;  %v7813_v50 = vmax.f32 %v7762_v30, 0.0 }
0x10d5   :  { %v7693_v37 = vadd.f32 %v7692_v56, %v24337_v45  ;;  %v7766_v12 = vadd.f32 %v7765_v39, %v24341_v21  ;;  %20005 = vmatpush3.bf16.msra.mxu1 %v21520_v42  ;;  %v7826_v40 = vmax.f32 %v7691_v41, 0.0  ;;  %v7828_v0 = vmax.f32 %v7764_v6, 0.0  ;;  %20045 = vmatpush3.bf16.msra.mxu0 %v21521_v11 }
0x10d6   :  { %v7696_v24 = vpop.f32.mrf.mxu1  ;;  %v7769_v43 = vpop.f32.mrf.mxu0  ;;  %20006 = vmatprep.subr.bf16.mxu1 %v21522_v22  ;;  %20046 = vmatprep.subr.bf16.mxu0 %v21523_v60 }
0x10d7   :  { %v7827_v36 = vmax.f32 %v7693_v37, 0.0  ;;  %v7829_v54 = vmax.f32 %v7766_v12, 0.0  ;;  %v7938_v34 = vpack.c.bf16 %v7826_v40, %v7810_v52  ;;  %v7940_v17 = vpack.c.bf16 %v7828_v0, %v7812_v8 }
0x10d8   :  { %v7698_v58 = vpop.f32.mrf.mxu1  ;;  %v7771_v23 = vpop.f32.mrf.mxu0  ;;  %v7697_v48 = vadd.f32 %v7696_v24, %v24351_v27  ;;  %v7770_v3 = vadd.f32 %v7769_v43, %v24355_v57 }
0x10d9   :  { %20007 = vmatpush3.bf16.msra.mxu1 %v21524_v1  ;;  %v7939_v47 = vpack.c.bf16 %v7827_v36, %v7811_v9  ;;  %v7941_v20 = vpack.c.bf16 %v7829_v54, %v7813_v50  ;;  %v7699_v44 = vadd.f32 %v7698_v58, %v24337_v45  ;;  %20047 = vmatpush3.bf16.msra.mxu0 %v21525_v53 }
0x10da   :  { %v7700_v29 = vpop.f32.mrf.mxu1  ;;  %v7773_v38 = vpop.f32.mrf.mxu0  ;;  %v7772_v35 = vadd.f32 %v7771_v23, %v24341_v21  ;;  %20996 = vmatprep.subr.mxu0 %v26878_v7  ;;  %v7842_v39 = vmax.f32 %v7697_v48, 0.0  ;;  %v7844_v37 = vmax.f32 %v7770_v3, 0.0 }
0x10db   :  { %v7701_v51 = vadd.f32 %v7700_v29, %v24351_v27  ;;  %v7774_v42 = vadd.f32 %v7773_v38, %v24355_v57  ;;  %9443 = vmatprep.mubr.bf16.mxu1 %v7939_v47  ;;  %9508 = vmatprep.mubr.bf16.mxu0 %v7941_v20  ;;  %v7843_v60 = vmax.f32 %v7699_v44, 0.0 }
0x10dc   :  { %v7702_v4 = vpop.f32.mrf.mxu1  ;;  %v7775_v2 = vpop.f32.mrf.mxu0  ;;  %9444 = vmatmul.mubr.bf16.vlgmr.msra.gmra.mxu1 %v7938_v34  ;;  %9509 = vmatmul.mubr.bf16.vlgmr.msra.gmra.mxu0 %v7940_v17  ;;  %v7845_v62 = vmax.f32 %v7772_v35, 0.0 }
0x10dd   :  { %v7703_v33 = vadd.f32 %v7702_v4, %v24337_v45  ;;  %v7776_v11 = vadd.f32 %v7775_v2, %v24341_v21  ;;  %v7858_v22 = vmax.f32 %v7701_v51, 0.0  ;;  %v7860_v30 = vmax.f32 %v7774_v42, 0.0 }
0x10de   :  { %v7706_v41 = vpop.f32.mrf.mxu1  ;;  %v7779_v6 = vpop.f32.mrf.mxu0 }
0x10df   :  { %v7859_v49 = vmax.f32 %v7703_v33, 0.0  ;;  %v7861_v56 = vmax.f32 %v7776_v11, 0.0  ;;  %v7954_v24 = vpack.c.bf16 %v7858_v22, %v7842_v39  ;;  %v7956_v43 = vpack.c.bf16 %v7860_v30, %v7844_v37 }
0x10e0   :  { %v7708_v12 = vpop.f32.mrf.mxu1  ;;  %v7781_v1 = vpop.f32.mrf.mxu0  ;;  %v7707_v8 = vadd.f32 %v7706_v41, %v24351_v27  ;;  %v7780_v58 = vadd.f32 %v7779_v6, %v24355_v57 }
0x10e1   :  { %v7955_v40 = vpack.c.bf16 %v7859_v49, %v7843_v60  ;;  %v7957_v0 = vpack.c.bf16 %v7861_v56, %v7845_v62  ;;  %v7709_v53 = vadd.f32 %v7708_v12, %v24337_v45  ;;  %v7782_v36 = vadd.f32 %v7781_v1, %v24341_v21 }
0x10e2   :  { %v7710_v9 = vpop.f32.mrf.mxu1  ;;  %v7783_v50 = vpop.f32.mrf.mxu0  ;;  %v7874_v3 = vmax.f32 %v7707_v8, 0.0  ;;  %v7876_v4 = vmax.f32 %v7780_v58, 0.0 }
0x10e3   :  { %v7711_v54 = vadd.f32 %v7710_v9, %v24351_v27  ;;  %v7784_v52 = vadd.f32 %v7783_v50, %v24355_v57  ;;  %9451 = vmatprep.mubr.bf16.mxu1 %v7955_v40  ;;  %9516 = vmatprep.mubr.bf16.mxu0 %v7957_v0  ;;  %v7875_v35 = vmax.f32 %v7709_v53, 0.0  ;;  %v7877_v51 = vmax.f32 %v7782_v36, 0.0 }
0x10e4   :  { %v7712_v23 = vpop.f32.mrf.mxu1  ;;  %v7785_v47 = vpop.f32.mrf.mxu0  ;;  %9452 = vmatmul.mubr.bf16.gmra.mxu1 %v7954_v24  ;;  %9517 = vmatmul.mubr.bf16.gmra.mxu0 %v7956_v43 }
0x10e5   :  { %v7713_v20 = vadd.f32 %v7712_v23, %v24337_v45  ;;  %v7786_v34 = vadd.f32 %v7785_v47, %v24341_v21  ;;  %v7890_v17 = vmax.f32 %v7711_v54, 0.0  ;;  %v7892_v44 = vmax.f32 %v7784_v52, 0.0 }
0x10e6   :  { %v7716_v29 = vpop.f32.mrf.mxu1  ;;  %v7789_v38 = vpop.f32.mrf.mxu0 }
0x10e7   :  { %v7891_v42 = vmax.f32 %v7713_v20, 0.0  ;;  %v7893_v48 = vmax.f32 %v7786_v34, 0.0  ;;  %v7970_v30 = vpack.c.bf16 %v7890_v17, %v7874_v3  ;;  %v7972_v41 = vpack.c.bf16 %v7892_v44, %v7876_v4 }
0x10e8   :  { %v7718_v2 = vpop.f32.mrf.mxu1  ;;  %v7791_v33 = vpop.f32.mrf.mxu0  ;;  %v7717_v37 = vadd.f32 %v7716_v29, %v24351_v27  ;;  %v7790_v40 = vadd.f32 %v7789_v38, %v24355_v57 }
0x10e9   :  { %v7971_v11 = vpack.c.bf16 %v7891_v42, %v7875_v35  ;;  %v7973_v22 = vpack.c.bf16 %v7893_v48, %v7877_v51  ;;  %v7719_v6 = vadd.f32 %v7718_v2, %v24337_v45  ;;  %v7792_v49 = vadd.f32 %v7791_v33, %v24341_v21 }
0x10ea   :  { %v7720_v60 = vpop.f32.mrf.mxu1  ;;  %v7793_v62 = vpop.f32.mrf.mxu0  ;;  %v7906_v58 = vmax.f32 %v7717_v37, 0.0  ;;  %v7908_v23 = vmax.f32 %v7790_v40, 0.0 }
0x10eb   :  { %v7721_v56 = vadd.f32 %v7720_v60, %v24351_v27  ;;  %v7794_v39 = vadd.f32 %v7793_v62, %v24355_v57  ;;  %9459 = vmatprep.mubr.bf16.mxu1 %v7971_v11  ;;  %9524 = vmatprep.mubr.bf16.mxu0 %v7973_v22  ;;  %v7907_v43 = vmax.f32 %v7719_v6, 0.0  ;;  %v7909_v50 = vmax.f32 %v7792_v49, 0.0  ;;  %v24414_v27 = vld [vmem:[%s26815_s14] ss:$0 sm:$0xff] }
0x10ec   :  { %v7722_v12 = vpop.f32.mrf.mxu1  ;;  %v7795_v1 = vpop.f32.mrf.mxu0  ;;  %9460 = vmatmul.mubr.bf16.gmra.mxu1 %v7970_v30  ;;  %9525 = vmatmul.mubr.bf16.gmra.mxu0 %v7972_v41 }
0x10ed   :  { %v7723_v0 = vadd.f32 %v7722_v12, %v24337_v45  ;;  %v7796_v24 = vadd.f32 %v7795_v1, %v24341_v21  ;;  %v7922_v53 = vmax.f32 %v7721_v56, 0.0  ;;  %v7924_v36 = vmax.f32 %v7794_v39, 0.0 }
0x10ee   :  { %v19768_v9 = vpop.f32.mrf.mxu1 }
0x10ef   :  { %v7923_v54 = vmax.f32 %v7723_v0, 0.0  ;;  %v7925_v52 = vmax.f32 %v7796_v24, 0.0  ;;  %v19808_v8 = vpop.f32.mrf.mxu0  ;;  %v7986_v34 = vpack.c.bf16 %v7922_v53, %v7906_v58  ;;  %v7988_v44 = vpack.c.bf16 %v7924_v36, %v7908_v23 }
0x10f0   :  { %v19769_v57 = vpop.f32.mrf.mxu1 }
0x10f1   :  { %v19770_v45 = vadd.f32 %v19769_v57, %v19768_v9  ;;  %v19809_v47 = vpop.f32.mrf.mxu0  ;;  %v7987_v21 = vpack.c.bf16 %v7923_v54, %v7907_v43  ;;  %v7989_v20 = vpack.c.bf16 %v7925_v52, %v7909_v50 }
0x10f2   :  { %v19771_v17 = vpop.f32.mrf.mxu1  ;;  %v19810_v38 = vadd.f32 %v19809_v47, %v19808_v8 }
0x10f3   :  { %v9056_v29 = vadd.f32 %v19770_v45, %v24414_v27  ;;  %v19811_v35 = vpop.f32.mrf.mxu0  ;;  %9467 = vmatprep.mubr.bf16.mxu1 %v7987_v21  ;;  %9532 = vmatprep.mubr.bf16.mxu0 %v7989_v20 }
0x10f4   :  { %v19772_v51 = vpop.f32.mrf.mxu1  ;;  %9468 = vmatmul.mubr.bf16.gmra.mxu1 %v7986_v34  ;;  %9533 = vmatmul.mubr.bf16.gmra.mxu0 %v7988_v44 }
0x10f5   :  { %v24417_v42 = vadd.f32 %v19810_v38, %v9056_v29  ;;  %v19773_v48 = vadd.f32 %v19772_v51, %v19771_v17  ;;  %v19812_v3 = vpop.f32.mrf.mxu0  ;;  %20998 = vmatprep.mubr.msk.f32.mxu0 %vm22048_vm4, %v26878_v7 }
0x10f6   :  { %v19774_v4 = vpop.f32.mrf.mxu1  ;;  %v19813_v33 = vadd.f32 %v19812_v3, %v19811_v35 }
0x10f7   :  { %v9059_v2 = vadd.f32 %v19773_v48, %v24414_v27  ;;  %v19814_v11 = vpop.f32.mrf.mxu0 }
0x10f8   :  { %v19775_v22 = vpop.f32.mrf.mxu1 }
0x10f9   :  { %v24422_v30 = vadd.f32 %v19813_v33, %v9059_v2  ;;  %v19776_v41 = vadd.f32 %v19775_v22, %v19774_v4  ;;  %v19815_v6 = vpop.f32.mrf.mxu0 }
0x10fa   :  { %v19777_v60 = vpop.f32.mrf.mxu1  ;;  %v19816_v49 = vadd.f32 %v19815_v6, %v19814_v11 }
0x10fb   :  { %v9064_v62 = vadd.f32 %v19776_v41, %v24414_v27  ;;  %v19817_v56 = vpop.f32.mrf.mxu0 }
0x10fc   :  { %v19778_v39 = vpop.f32.mrf.mxu1 }
0x10fd   :  { %v24425_v37 = vadd.f32 %v19816_v49, %v9064_v62  ;;  %v19779_v12 = vadd.f32 %v19778_v39, %v19777_v60  ;;  %v19818_v1 = vpop.f32.mrf.mxu0 }
0x10fe   :  { %v19819_v0 = vadd.f32 %v19818_v1, %v19817_v56 }
0x10ff   :  { %v9067_v40 = vadd.f32 %v19779_v12, %v24414_v27 }
0x1101   :  { %v24428_v24 = vadd.f32 %v19819_v0, %v9067_v40 }
0x114c   :  { %v19780_v43 = vpop.f32.mrf.mxu1  ;;  %v19820_v53 = vpop.f32.mrf.mxu0 }
0x114e   :  { %v19781_v9 = vpop.f32.mrf.mxu1  ;;  %v19821_v50 = vpop.f32.mrf.mxu0 }
0x114f   :  { %v19782_v36 = vadd.f32 %v19781_v9, %v19780_v43  ;;  %v19822_v58 = vadd.f32 %v19821_v50, %v19820_v53 }
0x1150   :  { %v19783_v54 = vpop.f32.mrf.mxu1  ;;  %v19823_v52 = vpop.f32.mrf.mxu0 }
0x1151   :  { %v9072_v8 = vadd.f32 %v19782_v36, %v24414_v27 }
0x1152   :  { %v19784_v57 = vpop.f32.mrf.mxu1  ;;  %v19824_v23 = vpop.f32.mrf.mxu0 }
0x1153   :  { %v24431_v45 = vadd.f32 %v19822_v58, %v9072_v8  ;;  %v19785_v47 = vadd.f32 %v19784_v57, %v19783_v54  ;;  %v19825_v17 = vadd.f32 %v19824_v23, %v19823_v52 }
0x1154   :  { %v19786_v21 = vpop.f32.mrf.mxu1  ;;  %v19826_v20 = vpop.f32.mrf.mxu0 }
0x1155   :  { %v9075_v34 = vadd.f32 %v19785_v47, %v24414_v27 }
0x1156   :  { %v19787_v44 = vpop.f32.mrf.mxu1  ;;  %v19827_v29 = vpop.f32.mrf.mxu0 }
0x1157   :  { %v24434_v38 = vadd.f32 %v19825_v17, %v9075_v34  ;;  %v19788_v35 = vadd.f32 %v19787_v44, %v19786_v21  ;;  %v19828_v4 = vadd.f32 %v19827_v29, %v19826_v20 }
0x1158   :  { %v19789_v51 = vpop.f32.mrf.mxu1  ;;  %v19829_v48 = vpop.f32.mrf.mxu0 }
0x1159   :  { %v9080_v3 = vadd.f32 %v19788_v35, %v24414_v27 }
0x115a   :  { %v19790_v2 = vpop.f32.mrf.mxu1  ;;  %v19830_v33 = vpop.f32.mrf.mxu0 }
0x115b   :  { %v24437_v11 = vadd.f32 %v19828_v4, %v9080_v3  ;;  %v19791_v22 = vadd.f32 %v19790_v2, %v19789_v51  ;;  %v19831_v62 = vadd.f32 %v19830_v33, %v19829_v48 }
0x115c   :  { %v19848_v41 = vpop.f32.mrf.mxu1  ;;  %v24439_v6 = vpop.f32.mrf.mxu0 }
0x115d   :  { %26897 = vst [vmem:[#allocation20_spill] sm:$0xff] %v24437_v11  ;;  %v9083_v60 = vadd.f32 %v19791_v22, %v24414_v27 }
0x115e   :  { %v19849_v49 = vpop.f32.mrf.mxu1  ;;  %v19889_v56 = vpop.f32.mrf.mxu0 }
0x115f   :  { %v24442_v39 = vadd.f32 %v19831_v62, %v9083_v60 }
0x1160   :  { %v19851_v12 = vpop.f32.mrf.mxu1  ;;  %v24444_v1 = vpop.f32.mrf.mxu0 }
0x1161   :  { %26898 = vst [vmem:[#allocation21_spill] sm:$0xff] %v24442_v39 }
0x1162   :  { %v19852_v40 = vpop.f32.mrf.mxu1  ;;  %v24446_v0 = vpop.f32.mrf.mxu0 }
0x1164   :  { %v19854_v43 = vpop.f32.mrf.mxu1  ;;  %v24448_v53 = vpop.f32.mrf.mxu0 }
0x1166   :  { %v19855_v9 = vpop.f32.mrf.mxu1  ;;  %v24450_v50 = vpop.f32.mrf.mxu0 }
0x1168   :  { %v24452_v36 = vpop.f32.mrf.mxu1  ;;  %v24454_v27 = vpop.f32.mrf.mxu0 }
0x116a   :  { %v19858_v54 = vpop.f32.mrf.mxu1  ;;  %v24456_v52 = vpop.f32.mrf.mxu0 }
0x116c   :  { %v24458_v8 = vpop.f32.mrf.mxu1  ;;  %v24460_v58 = vpop.f32.mrf.mxu0 }
0x116e   :  { %v24462_v57 = vpop.f32.mrf.mxu1  ;;  %v24464_v23 = vpop.f32.mrf.mxu0 }
0x1170   :  { %v24466_v47 = vpop.f32.mrf.mxu1  ;;  %v24468_v21 = vpop.f32.mrf.mxu0 }
0x1172   :  { %v24470_v20 = vpop.f32.mrf.mxu1  ;;  %v24472_v34 = vpop.f32.mrf.mxu0 }
0x1174   :  { %v24474_v17 = vpop.f32.mrf.mxu1  ;;  %v24476_v44 = vpop.f32.mrf.mxu0 }
0x1175   :  { %26899 = vst [vmem:[#allocation22_spill] sm:$0xff] %v24476_v44 }
0x1176   :  { %v24478_v29 = vpop.f32.mrf.mxu1  ;;  %v24480_v35 = vpop.f32.mrf.mxu0 }
0x1177   :  { %26900 = vst [vmem:[#allocation23_spill] sm:$0xff] %v24480_v35 }
0x1178   :  { %v24482_v51 = vpop.f32.mrf.mxu1  ;;  %v24484_v48 = vpop.f32.mrf.mxu0 }
0x1179   :  { %26901 = vst [vmem:[#allocation24_spill] sm:$0xff] %v24482_v51  ;;  %26902 = vst [vmem:[#allocation25_spill] sm:$0xff] %v24484_v48  ;;  %v19850_v48 = vadd.f32 %v19849_v49, %v19848_v41  ;;  %v19856_v41 = vadd.f32 %v19855_v9, %v19854_v43 }
0x117a   :  { %v24486_v3 = vpop.f32.mrf.mxu1  ;;  %v24488_v4 = vpop.f32.mrf.mxu0 }
0x117b   :  { %26903 = vst [vmem:[#allocation26_spill] sm:$0xff] %v24486_v3  ;;  %26904 = vst [vmem:[#allocation27_spill] sm:$0xff] %v24488_v4  ;;  %v9186_v25 = vadd.f32 %v19850_v48, %v24417_v42  ;;  %v19853_v3 = vadd.f32 %v19852_v40, %v19851_v12  ;;  %v19893_v42 = vadd.f32 %v24446_v0, %v24444_v1 }
0x117c   :  { %v19928_v2 = vpop.f32.mrf.mxu1  ;;  %v19968_v33 = vpop.f32.mrf.mxu0 }
0x117e   :  { %v19929_v22 = vpop.f32.mrf.mxu1  ;;  %v19969_v60 = vpop.f32.mrf.mxu0 }
0x117f   :  { %v19930_v11 = vadd.f32 %v19929_v22, %v19928_v2 }
0x1180   :  { %v19931_v62 = vpop.f32.mrf.mxu1  ;;  %v19971_v32 = vpop.f32.mrf.mxu0 }
0x1182   :  { %v19932_v16 = vpop.f32.mrf.mxu1  ;;  %v19972_v5 = vpop.f32.mrf.mxu0 }
0x1183   :  { %v19933_v40 = vadd.f32 %v19932_v16, %v19931_v62 }
0x1184   :  { %v19934_v26 = vpop.f32.mrf.mxu1  ;;  %v24490_v10 = vpop.f32.mrf.mxu0 }
0x1186   :  { %v19935_v18 = vpop.f32.mrf.mxu1  ;;  %v24492_v19 = vpop.f32.mrf.mxu0 }
0x1188   :  { %v19937_v55 = vpop.f32.mrf.mxu1  ;;  %v24494_v46 = vpop.f32.mrf.mxu0 }
0x118a   :  { %v19938_v63 = vpop.f32.mrf.mxu1  ;;  %v24496_v7 = vpop.f32.mrf.mxu0 }
0x118c   :  { %v24498_v31 = vpop.f32.mrf.mxu1  ;;  %v24500_v59 = vpop.f32.mrf.mxu0 }
0x118d   :  { %26905 = vst [vmem:[#allocation28_spill] sm:$0xff] %v24500_v59 }
0x118e   :  { %v24502_v28 = vpop.f32.mrf.mxu1  ;;  %v24504_v14 = vpop.f32.mrf.mxu0 }
0x118f   :  { %26906 = vst [vmem:[#allocation29_spill] sm:$0xff] %v24504_v14  ;;  %v19890_v14 = vadd.f32 %v19889_v56, %v24439_v6  ;;  %v9194_v6 = vadd.f32 %v19856_v41, %v24425_v37  ;;  %v19859_v56 = vadd.f32 %v19858_v54, %v24452_v36  ;;  %v19862_v37 = vadd.f32 %v24462_v57, %v24458_v8 }
0x1190   :  { %v24506_v4 = vpop.f32.mrf.mxu1  ;;  %v24508_v13 = vpop.f32.mrf.mxu0  ;;  %v19973_v36 = vadd.f32 %v19972_v5, %v19971_v32  ;;  %v19976_v5 = vadd.f32 %v24492_v19, %v24490_v10 }
0x1191   :  { %26907 = vst [vmem:[#allocation30_spill] sm:$0xff] %v24506_v4  ;;  %26908 = vst [vmem:[#allocation31_spill] sm:$0xff] %v24508_v13  ;;  %v9251_v13 = vadd.f32 %v19890_v14, %v9186_v25  ;;  %v19970_v25 = vadd.f32 %v19969_v60, %v19968_v33  ;;  %v9202_v8 = vadd.f32 %v19862_v37, %v24431_v45 }
0x1192   :  { %v24510_v39 = vpop.f32.mrf.mxu1  ;;  %v24512_v35 = vpop.f32.mrf.mxu0 }
0x1193   :  { %26909 = vst [vmem:[#allocation32_spill] sm:$0xff] %v24510_v39  ;;  %26910 = vst [vmem:[#allocation33_spill] sm:$0xff] %v24512_v35  ;;  %v9189_v35 = vadd.f32 %v19853_v3, %v24422_v30  ;;  %v9316_v12 = vadd.f32 %v19930_v11, %v9251_v13  ;;  %v19896_v30 = vadd.f32 %v24450_v50, %v24448_v53 }
0x1194   :  { %v24514_v44 = vpop.f32.mrf.mxu1  ;;  %v24517_v51 = vpop.f32.mrf.mxu0  ;;  %v19936_v3 = vadd.f32 %v19935_v18, %v19934_v26  ;;  %v9197_v11 = vadd.f32 %v19859_v56, %v24428_v24  ;;  %v19899_v53 = vadd.f32 %v24456_v52, %v24454_v27  ;;  %v19939_v26 = vadd.f32 %v19938_v63, %v19937_v55 }
0x1195   :  { %26911 = vst [vmem:[#allocation34_spill] sm:$0xff] %v24514_v44  ;;  %v9254_v9 = vadd.f32 %v19893_v42, %v9189_v35  ;;  %v9381_v22 = vadd.f32 %v19970_v25, %v9316_v12  ;;  %v9259_v16 = vadd.f32 %v19896_v30, %v9194_v6  ;;  %v19865_v24 = vadd.f32 %v24470_v20, %v24466_v47 }
0x1196   :  { %v24519_v59 = vpop.f32.mrf.mxu1  ;;  %v24522_v4 = vpop.f32.mrf.mxu0  ;;  %v9262_v12 = vadd.f32 %v19899_v53, %v9197_v11  ;;  %v19902_v55 = vadd.f32 %v24464_v23, %v24460_v58  ;;  %v19942_v47 = vadd.f32 %v24502_v28, %v24498_v31  ;;  %v19979_v58 = vadd.f32 %v24496_v7, %v24494_v46 }
0x1197   :  { %v9324_v18 = vadd.f32 %v19936_v3, %v9259_v16  ;;  %v9205_v56 = vadd.f32 %v19865_v24, %v24434_v38  ;;  %v26915_v16 = vld [vmem:[#allocation20_spill] sm:$0xff] }
0x1198   :  { %v24524_v49 = vpop.f32.mrf.mxu1  ;;  %v24527_v39 = vpop.f32.mrf.mxu0  ;;  %v9327_v52 = vadd.f32 %v19939_v26, %v9262_v12  ;;  %v26913_v38 = vld [vmem:[#allocation30_spill] sm:$0xff] }
0x1199   :  { %26912 = vst [vmem:[#allocation35_spill] sm:$0xff] %v24527_v39  ;;  %v9319_v39 = vadd.f32 %v19933_v40, %v9254_v9 }
0x119a   :  { %v24529_v44 = vpop.f32.mrf.mxu1  ;;  %v24533_v48 = vpop.f32.mrf.mxu0  ;;  %v9392_v30 = vadd.f32 %v19979_v58, %v9327_v52  ;;  %v26914_v3 = vld [vmem:[#allocation32_spill] sm:$0xff]  ;;  %v26929_v58 = vld [vmem:[#allocation27_spill] sm:$0xff] }
0x119b   :  { %v9384_v60 = vadd.f32 %v19973_v36, %v9319_v39  ;;  %v9389_v39 = vadd.f32 %v19976_v5, %v9324_v18  ;;  %v26920_v18 = vld [vmem:[#allocation6_spill] sm:$0xff] }
0x119c   :  { %v20008_v43 = vpop.f32.mrf.mxu1  ;;  %v20048_v14 = vpop.f32.mrf.mxu0 }
0x119e   :  { %v20009_v2 = vpop.f32.mrf.mxu1  ;;  %v20049_v13 = vpop.f32.mrf.mxu0 }
0x119f   :  { %v20010_v1 = vadd.f32 %v20009_v2, %v20008_v43  ;;  %v20050_v35 = vadd.f32 %v20049_v13, %v20048_v14  ;;  %v9267_v43 = vadd.f32 %v19902_v55, %v9202_v8  ;;  %v19905_v14 = vadd.f32 %v24472_v34, %v24468_v21  ;;  %v26918_v21 = vld [vmem:[#allocation28_spill] sm:$0xff]  ;;  %v26919_v34 = vld [vmem:[#allocation29_spill] sm:$0xff]  ;;  %v26924_v55 = vld [vmem:[#allocation31_spill] sm:$0xff] }
0x11a0   :  { %v20011_v0 = vpop.f32.mrf.mxu1  ;;  %v20051_v33 = vpop.f32.mrf.mxu0  ;;  %v19945_v2 = vadd.f32 %v26914_v3, %v26913_v38 }
0x11a1   :  { %v9446_v54 = vadd.f32 %v20010_v1, %v9381_v22  ;;  %v9270_v13 = vadd.f32 %v19905_v14, %v9205_v56 }
0x11a2   :  { %v20012_v50 = vpop.f32.mrf.mxu1  ;;  %v20052_v42 = vpop.f32.mrf.mxu0 }
0x11a3   :  { %v9511_v62 = vadd.f32 %v20050_v35, %v9446_v54  ;;  %v20013_v41 = vadd.f32 %v20012_v50, %v20011_v0  ;;  %v20053_v40 = vadd.f32 %v20052_v42, %v20051_v33  ;;  %v26917_v0 = vld [vmem:[#allocation26_spill] sm:$0xff]  ;;  %v19982_v54 = vadd.f32 %v26919_v34, %v26918_v21  ;;  %v26931_v21 = vld [vmem:[#allocation35_spill] sm:$0xff] }
0x11a4   :  { %v20014_v32 = vpop.f32.mrf.mxu1  ;;  %v20054_v27 = vpop.f32.mrf.mxu0  ;;  %v26921_v50 = vld [vmem:[#allocation22_spill] sm:$0xff] }
0x11a5   :  { %v9449_v57 = vadd.f32 %v20013_v41, %v9384_v60  ;;  %v24550_v63 = vadd.f32 %v9511_v62, %v23544_v61  ;;  %v19868_v61 = vadd.f32 %v24478_v29, %v24474_v17  ;;  %v9332_v29 = vadd.f32 %v19942_v47, %v9267_v43  ;;  %v26922_v60 = vld [vmem:[#allocation23_spill] sm:$0xff]  ;;  %v26923_v42 = vld [vmem:[#allocation34_spill] sm:$0xff]  ;;  %v26926_v47 = vld [vmem:[#allocation21_spill] sm:$0xff] }
0x11a6   :  { %v20015_v6 = vpop.f32.mrf.mxu1  ;;  %v20055_v10 = vpop.f32.mrf.mxu0  ;;  %v19908_v62 = vadd.f32 %v26922_v60, %v26921_v50  ;;  %v9335_v41 = vadd.f32 %v19945_v2, %v9270_v13  ;;  %v19948_v12 = vadd.f32 %v24519_v59, %v26923_v42  ;;  %v26927_v59 = vld [vmem:[#allocation7_spill] sm:$0xff]  ;;  %v19988_v2 = vadd.f32 %v24522_v4, %v24517_v51 }
0x11a7   :  { %v9514_v20 = vadd.f32 %v20053_v40, %v9449_v57  ;;  %v20016_v19 = vadd.f32 %v20015_v6, %v20014_v32  ;;  %v9551_v45 = vsel %vm105_vm0, %v24550_v63, 0.0  ;;  %v20056_v25 = vadd.f32 %v20055_v10, %v20054_v27 }
0x11a8   :  { %v20017_v23 = vpop.f32.mrf.mxu1  ;;  %9552 = vadd.xlane.f32.xlu1 %v9551_v45  ;;  %v20057_v28 = vpop.f32.mrf.mxu0  ;;  %v9210_v11 = vadd.f32 %v19868_v61, %v26915_v16  ;;  %v9397_v5 = vadd.f32 %v19982_v54, %v9332_v29  ;;  %v26928_v61 = vld [vmem:[#allocation25_spill] sm:$0xff]  ;;  %v19991_v51 = vadd.f32 %v24533_v48, %v26931_v21  ;;  %v26935_v21 = vmov 0.0  }
0x11a9   :  { %v9454_v9 = vadd.f32 %v20016_v19, %v9389_v39  ;;  %v24564_v31 = vadd.f32 %v9514_v20, %v23541_v15  ;;  %v26916_v15 = vld [vmem:[#allocation24_spill] sm:$0xff]  ;;  %v26925_v39 = vld [vmem:[#allocation33_spill] sm:$0xff] }
0x11aa   :  { %v20018_v17 = vpop.f32.mrf.mxu1  ;;  %v20058_v46 = vpop.f32.mrf.mxu0  ;;  %v19871_v37 = vadd.f32 %v26917_v0, %v26916_v15  ;;  %v9275_v27 = vadd.f32 %v19908_v62, %v9210_v11  ;;  %v19985_v52 = vadd.f32 %v26925_v39, %v26924_v55 }
0x11ab   :  { %v9519_v22 = vadd.f32 %v20056_v25, %v9454_v9  ;;  %v20019_v7 = vadd.f32 %v20018_v17, %v20017_v23  ;;  %v9554_v1 = vsel %vm105_vm0, %v24564_v31, 0.0  ;;  %v20059_v33 = vadd.f32 %v20058_v46, %v20057_v28 }
0x11ac   :  { %v20020_v36 = vpop.f32.mrf.mxu1  ;;  %9555 = vadd.xlane.f32.xlu0 %v9554_v1  ;;  %v20060_v53 = vpop.f32.mrf.mxu0  ;;  %v9213_v20 = vadd.f32 %v19871_v37, %v26926_v47  ;;  %v19911_v23 = vadd.f32 %v26929_v58, %v26928_v61  ;;  %v9400_v43 = vadd.f32 %v19985_v52, %v9335_v41  ;;  %v9340_v9 = vadd.f32 %v19948_v12, %v9275_v27  ;;  %v26930_v1 = vld [vmem:[#allocation10_spill] sm:$0xff] }
0x11ad   :  { %v9457_v35 = vadd.f32 %v20019_v7, %v9392_v30  ;;  %v24578_v26 = vadd.f32 %v9519_v22, %v26920_v18  ;;  %v19951_v28 = vadd.f32 %v24529_v44, %v24524_v49 }
0x11ae   :  { %v20021_v24 = vpop.f32.mrf.mxu1  ;;  %v20061_v57 = vpop.f32.mrf.mxu0  ;;  %v9278_v29 = vadd.f32 %v19911_v23, %v9213_v20  ;;  %v9405_v16 = vadd.f32 %v19988_v2, %v9340_v9 }
0x11af   :  { %v9522_v32 = vadd.f32 %v20059_v33, %v9457_v35  ;;  %v20022_v8 = vadd.f32 %v20021_v24, %v20020_v36  ;;  %v9557_v40 = vsel %vm105_vm0, %v24578_v26, 0.0  ;;  %v20062_v10 = vadd.f32 %v20061_v57, %v20060_v53  ;;  %v26932_v35 = vld [vmem:[#allocation9_spill] sm:$0xff]  ;;  %v26933_v24 = vld [vmem:[#allocation11_spill] sm:$0xff] }
0x11b0   :  { %v20023_v6 = vpop.f32.mrf.mxu1  ;;  %9558 = vadd.xlane.f32.xlu1 %v9557_v40  ;;  %v20063_v45 = vpop.f32.mrf.mxu0  ;;  %v9343_v44 = vadd.f32 %v19951_v28, %v9278_v29 }
0x11b1   :  { %v9462_v19 = vadd.f32 %v20022_v8, %v9397_v5  ;;  %v24590_v56 = vadd.f32 %v9522_v32, %v26927_v59  ;;  %v26934_v8 = vld [vmem:[#allocation12_spill] sm:$0xff] }
0x11b2   :  { %v20024_v25 = vpop.f32.mrf.mxu1  ;;  %v20064_v38 = vpop.f32.mrf.mxu0  ;;  %v9408_v18 = vadd.f32 %v19991_v51, %v9343_v44 }
0x11b3   :  { %v9527_v14 = vadd.f32 %v20062_v10, %v9462_v19  ;;  %v20025_v30 = vadd.f32 %v20024_v25, %v20023_v6  ;;  %v9560_v3 = vsel %vm105_vm0, %v24590_v56, 0.0  ;;  %v20065_v7 = vadd.f32 %v20064_v38, %v20063_v45 }
0x11b4   :  { %v20026_v17 = vpop.f32.mrf.mxu1  ;;  %9561 = vadd.xlane.f32.xlu0 %v9560_v3  ;;  %v20066_v46 = vpop.f32.mrf.mxu0 }
0x11b5   :  { %v9465_v22 = vadd.f32 %v20025_v30, %v9400_v43  ;;  %v9545_v13 = vadd.f32 %v9527_v14, %v26930_v1 }
0x11b6   :  { %v20027_v11 = vpop.f32.mrf.mxu1  ;;  %v20067_v0 = vpop.f32.mrf.mxu0 }
0x11b7   :  { %v9530_v49 = vadd.f32 %v20065_v7, %v9465_v22  ;;  %v20028_v15 = vadd.f32 %v20027_v11, %v20026_v17  ;;  %v9563_v37 = vsel %vm105_vm0, %v9545_v13, 0.0  ;;  %v20068_v34 = vadd.f32 %v20067_v0, %v20066_v46 }
0x11b8   :  { %v20029_v36 = vpop.f32.mrf.mxu1  ;;  %9564 = vadd.xlane.f32.xlu1 %v9563_v37  ;;  %v20069_v54 = vpop.f32.mrf.mxu0  ;;  %v21526_v37 = vld [vmem:[%s26806_s5 + $0x18] sm:$0xff]  }
0x11b9   :  { %v9470_v4 = vadd.f32 %v20028_v15, %v9405_v16  ;;  %v9546_v33 = vadd.f32 %v9530_v49, %v26932_v35  ;;  %20984 = vmatprep.subr.bf16.mxu1 %v21526_v37 }
0x11ba   :  { %v20030_v53 = vpop.f32.mrf.mxu1  ;;  %v20070_v62 = vpop.f32.mrf.mxu0  ;;  %20985 = vmatpush3.bf16.msra.mxu1 %v21526_v37 }
0x11bb   :  { %v9535_v50 = vadd.f32 %v20068_v34, %v9470_v4  ;;  %v20031_v60 = vadd.f32 %v20030_v53, %v20029_v36  ;;  %v9566_v41 = vsel %vm105_vm0, %v9546_v33, 0.0  ;;  %v20071_v12 = vadd.f32 %v20070_v62, %v20069_v54  ;;  %v21527_v36 = vld [vmem:[%s26806_s5 + $0x10] sm:$0xff]  }
0x11bc   :  { %9567 = vadd.xlane.f32.xlu0 %v9566_v41  ;;  %20986 = vmatprep.subr.bf16.mxu1 %v21527_v36 }
0x11bd   :  { %v9473_v42 = vadd.f32 %v20031_v60, %v9408_v18  ;;  %v9547_v5 = vadd.f32 %v9535_v50, %v26933_v24 }
0x11be   :  { %20987 = vmatpush3.bf16.msra.mxu1 %v21527_v36 }
0x11bf   :  { %v9538_v32 = vadd.f32 %v20071_v12, %v9473_v42  ;;  %v9569_v48 = vsel %vm105_vm0, %v9547_v5, 0.0  ;;  %21006 = vmatprep.subr.mxu1 %v26935_v21 }
0x11c0   :  { %9570 = vadd.xlane.f32.xlu1 %v9569_v48  ;;  %v18923_v48 = vld [vmem:[%s26816_s15] ss:$0 sm:$0xff] }
0x11c1   :  { %v9548_v57 = vadd.f32 %v9538_v32, %v26934_v8 }
0x11c3   :  { %v9572_v40 = vsel %vm105_vm0, %v9548_v57, 0.0 }
0x11c4   :  { %9573 = vadd.xlane.f32.xlu0 %v9572_v40 }
0x1231   :  { %v9553_v27 = vpop.xlane.xlu1 %9552 }
0x1232   :  { %v9575_v55 = vmul.f32 0.03125, %v9553_v27 }
0x1234   :  { %v24611_v39 = vsub.f32 %v24550_v63, %v9575_v55 }
0x1235   :  { %v9556_v52 = vpop.xlane.xlu0 %9555 }
0x1236   :  { %v9576_v6 = vmul.f32 0.03125, %v9556_v52  ;;  %v9591_v47 = vmul.f32 %v24611_v39, %v24611_v39 }
0x1238   :  { %v24616_v20 = vsub.f32 %v24564_v31, %v9576_v6  ;;  %v9599_v19 = vsel %vm105_vm0, %v9591_v47, 0.0  ;;  %v18924_v6 = vld [vmem:[%s26817_s16] ss:$0 sm:$0xff] }
0x1239   :  { %v9559_v10 = vpop.xlane.xlu1 %9558  ;;  %9600 = vadd.xlane.f32.xlu1 %v9599_v19 }
0x123a   :  { %v9577_v45 = vmul.f32 0.03125, %v9559_v10  ;;  %v9592_v59 = vmul.f32 %v24616_v20, %v24616_v20 }
0x123c   :  { %v24622_v61 = vsub.f32 %v24578_v26, %v9577_v45  ;;  %v9602_v63 = vsel %vm105_vm0, %v9592_v59, 0.0 }
0x123d   :  { %v9562_v58 = vpop.xlane.xlu0 %9561  ;;  %9603 = vadd.xlane.f32.xlu0 %v9602_v63 }
0x123e   :  { %v9578_v23 = vmul.f32 0.03125, %v9562_v58  ;;  %v9593_v31 = vmul.f32 %v24622_v61, %v24622_v61 }
0x1240   :  { %v24628_v43 = vsub.f32 %v24590_v56, %v9578_v23  ;;  %v9605_v9 = vsel %vm105_vm0, %v9593_v31, 0.0 }
0x1241   :  { %v9565_v25 = vpop.xlane.xlu1 %9564  ;;  %9606 = vadd.xlane.f32.xlu1 %v9605_v9 }
0x1242   :  { %v9579_v28 = vmul.f32 0.03125, %v9565_v25  ;;  %v9594_v26 = vmul.f32 %v24628_v43, %v24628_v43 }
0x1244   :  { %v24633_v14 = vsub.f32 %v9545_v13, %v9579_v28  ;;  %v9608_v30 = vsel %vm105_vm0, %v9594_v26, 0.0 }
0x1245   :  { %v9568_v38 = vpop.xlane.xlu0 %9567  ;;  %9609 = vadd.xlane.f32.xlu0 %v9608_v30 }
0x1246   :  { %v9580_v3 = vmul.f32 0.03125, %v9568_v38  ;;  %v9595_v2 = vmul.f32 %v24633_v14, %v24633_v14 }
0x1248   :  { %v24638_v56 = vsub.f32 %v9546_v33, %v9580_v3  ;;  %v9611_v17 = vsel %vm105_vm0, %v9595_v2, 0.0 }
0x1249   :  { %9612 = vadd.xlane.f32.xlu1 %v9611_v17  ;;  %v9571_v29 = vpop.xlane.xlu1 %9570 }
0x124a   :  { %v9581_v22 = vmul.f32 0.03125, %v9571_v29  ;;  %v9596_v7 = vmul.f32 %v24638_v56, %v24638_v56 }
0x124c   :  { %v24643_v46 = vsub.f32 %v9547_v5, %v9581_v22  ;;  %v9614_v1 = vsel %vm105_vm0, %v9596_v7, 0.0 }
0x124d   :  { %9615 = vadd.xlane.f32.xlu0 %v9614_v1  ;;  %v9574_v13 = vpop.xlane.xlu0 %9573 }
0x124e   :  { %v9582_v16 = vmul.f32 0.03125, %v9574_v13  ;;  %v9597_v11 = vmul.f32 %v24643_v46, %v24643_v46 }
0x1250   :  { %v24648_v44 = vsub.f32 %v9548_v57, %v9582_v16  ;;  %v9617_v49 = vsel %vm105_vm0, %v9597_v11, 0.0 }
0x1251   :  { %9618 = vadd.xlane.f32.xlu1 %v9617_v49 }
0x1252   :  { %v9598_v15 = vmul.f32 %v24648_v44, %v24648_v44 }
0x1254   :  { %v9620_v0 = vsel %vm105_vm0, %v9598_v15, 0.0 }
0x1255   :  { %9621 = vadd.xlane.f32.xlu0 %v9620_v0 }
0x12c2   :  { %v9601_v51 = vpop.xlane.xlu1 %9600 }
0x12c3   :  { %v9623_v4 = vmul.f32 0.03125, %v9601_v51 }
0x12c5   :  { %v9631_v34 = vadd.f32 1e-05, %v9623_v4 }
0x12c6   :  { %v9604_v54 = vpop.xlane.xlu0 %9603 }
0x12c7   :  { %21848 = vrsqrt.f32 %v9631_v34  ;;  %v9624_v35 = vmul.f32 0.03125, %v9604_v54 }
0x12c9   :  { %v9632_v33 = vadd.f32 1e-05, %v9624_v35 }
0x12ca   :  { %v9607_v53 = vpop.xlane.xlu1 %9606 }
0x12cb   :  { %21850 = vrsqrt.f32 %v9632_v33  ;;  %v9625_v18 = vmul.f32 0.03125, %v9607_v53 }
0x12cd   :  { %v9633_v50 = vadd.f32 1e-05, %v9625_v18 }
0x12ce   :  { %v9610_v60 = vpop.xlane.xlu0 %9609 }
0x12cf   :  { %21852 = vrsqrt.f32 %v9633_v50  ;;  %v9626_v62 = vmul.f32 0.03125, %v9610_v60 }
0x12d1   :  { %v9634_v41 = vadd.f32 1e-05, %v9626_v62 }
0x12d2   :  { %v9613_v42 = vpop.xlane.xlu1 %9612 }
0x12d3   :  { %21854 = vrsqrt.f32 %v9634_v41  ;;  %v9627_v12 = vmul.f32 0.03125, %v9613_v42 }
0x12d4   :  { %v21849_v24 = vpop.eup %21848 }
0x12d5   :  { %v9635_v5 = vadd.f32 1e-05, %v9627_v12  ;;  %v9647_v32 = vmul.f32 %v21849_v24, %v24611_v39 }
0x12d6   :  { %v9616_v8 = vpop.xlane.xlu0 %9615 }
0x12d7   :  { %21856 = vrsqrt.f32 %v9635_v5  ;;  %v9628_v57 = vmul.f32 0.03125, %v9616_v8  ;;  %v9661_v52 = vmul.f32 %v18923_v48, %v9647_v32 }
0x12d8   :  { %v21851_v40 = vpop.eup %21850 }
0x12d9   :  { %v9636_v27 = vadd.f32 1e-05, %v9628_v57  ;;  %v9648_v55 = vmul.f32 %v21851_v40, %v24616_v20  ;;  %v24670_v63 = vadd.f32 %v18924_v6, %v9661_v52 }
0x12da   :  { %v9619_v47 = vpop.xlane.xlu1 %9618 }
0x12db   :  { %21858 = vrsqrt.f32 %v9636_v27  ;;  %v9629_v19 = vmul.f32 0.03125, %v9619_v47  ;;  %v9662_v39 = vmul.f32 %v18923_v48, %v9648_v55 }
0x12dc   :  { %v21853_v10 = vpop.eup %21852 }
0x12dd   :  { %v9649_v45 = vmul.f32 %v21853_v10, %v24622_v61  ;;  %v9637_v59 = vadd.f32 1e-05, %v9629_v19  ;;  %v24672_v58 = vadd.f32 %v18924_v6, %v9662_v39 }
0x12de   :  { %v9622_v23 = vpop.xlane.xlu0 %9621 }
0x12df   :  { %21860 = vrsqrt.f32 %v9637_v59  ;;  %v9630_v20 = vmul.f32 0.03125, %v9622_v23  ;;  %v9683_v31 = vpack.c.bf16 %v24672_v58, %v24670_v63  ;;  %v9663_v25 = vmul.f32 %v18923_v48, %v9649_v45 }
0x12e0   :  { %v21855_v9 = vpop.eup %21854 }
0x12e1   :  { %v9650_v28 = vmul.f32 %v21855_v9, %v24628_v43  ;;  %v9638_v26 = vadd.f32 1e-05, %v9630_v20  ;;  %20988 = vmatprep.mubr.msk.bf16.mxu1 %vm105_vm0, %v9683_v31  ;;  %v24678_v38 = vadd.f32 %v18924_v6, %v9663_v25  ;;  %v26939_v9 = vld [vmem:[#allocation8_spill] sm:$0xff] }
0x12e3   :  { %v9664_v30 = vmul.f32 %v18923_v48, %v9650_v28  ;;  %21862 = vrsqrt.f32 %v9638_v26 }
0x12e4   :  { %v21857_v61 = vpop.eup %21856 }
0x12e5   :  { %v24680_v3 = vadd.f32 %v18924_v6, %v9664_v30  ;;  %v9651_v2 = vmul.f32 %v21857_v61, %v24633_v14 }
0x12e7   :  { %v9684_v17 = vpack.c.bf16 %v24680_v3, %v24678_v38  ;;  %v9665_v22 = vmul.f32 %v18923_v48, %v9651_v2 }
0x12e8   :  { %v21859_v29 = vpop.eup %21858 }
0x12e9   :  { %20989 = vmatmul.mubr.msk.bf16.vlgmr.msra.gmra.mxu1 %vm105_vm0, %v9684_v17  ;;  %v9652_v43 = vmul.f32 %v21859_v29, %v24638_v56  ;;  %v24688_v16 = vadd.f32 %v18924_v6, %v9665_v22 }
0x12eb   :  { %v9666_v7 = vmul.f32 %v18923_v48, %v9652_v43  ;;  %26936 = vst [vmem:[#allocation30_spill] sm:$0xff] %v24688_v16 }
0x12ec   :  { %v21861_v1 = vpop.eup %21860 }
0x12ed   :  { %v9653_v13 = vmul.f32 %v21861_v1, %v24643_v46  ;;  %v24690_v11 = vadd.f32 %v18924_v6, %v9666_v7 }
0x12ef   :  { %v9685_v14 = vpack.c.bf16 %v24690_v11, %v24688_v16  ;;  %v9667_v0 = vmul.f32 %v18923_v48, %v9653_v13 }
0x12f0   :  { %v21863_v49 = vpop.eup %21862 }
0x12f1   :  { %v9654_v15 = vmul.f32 %v21863_v49, %v24648_v44  ;;  %20992 = vmatprep.mubr.msk.bf16.mxu1 %vm105_vm0, %v9685_v14  ;;  %v24696_v56 = vadd.f32 %v18924_v6, %v9667_v0  ;;  %v18930_v44 = vld [vmem:[%s26807_s6 + $0x1] ss:$0 sm:$0xff] }
0x12f3   :  { %v9668_v37 = vmul.f32 %v18923_v48, %v9654_v15  ;;  %26937 = vst [vmem:[#allocation32_spill] sm:$0xff] %v24696_v56 }
0x12f5   :  { %v24698_v36 = vadd.f32 %v18924_v6, %v9668_v37 }
0x12f7   :  { %26938 = vst [vmem:[#allocation20_spill] sm:$0xff] %v24698_v36  ;;  %v9686_v46 = vpack.c.bf16 %v24698_v36, %v24696_v56 }
0x12f9   :  { %20993 = vmatmul.mubr.msk.bf16.gmra.mxu1 %vm105_vm0, %v9686_v46 }
0x12fa   :  { %21008 = vmatprep.mubr.msk.f32.mxu1 %vm22048_vm4, %v26935_v21 }
0x13a9   :  { %v20990_v51 = vpop.f32.mrf.mxu1 }
0x13aa   :  { %v24712_v33 = vadd.f32 %v20990_v51, %v18930_v44 }
0x13ab   :  { %v9758_v4 = vpop.f32.mrf.mxu1 }
0x13ac   :  { %v24708_v34 = vadd.f32 %v18930_v44, %v9758_v4  ;;  %v24757_v27 = vmul.f32 0.35355338, %v24712_v33 }
0x13ad   :  { %v20991_v54 = vpop.f32.mrf.mxu1 }
0x13ae   :  { %9803 = vrot.lane.b32.xlu1 %v24708_v34, %s22049_s23  ;;  %v24720_v18 = vadd.f32 %v20991_v54, %v18930_v44  ;;  %v24744_v48 = vmul.f32 0.35355338, %v24708_v34 }
0x13af   :  { %v9761_v35 = vpop.f32.mrf.mxu1 }
0x13b0   :  { %v24714_v53 = vadd.f32 %v18930_v44, %v9761_v35  ;;  %v24769_v52 = vmul.f32 0.35355338, %v24720_v18 }
0x13b2   :  { %9881 = vrot.lane.b32.xlu0 %v24714_v53, %s22049_s23  ;;  %9959 = vrot.lane.b32.xlu1 %v24712_v33, %s22049_s23  ;;  %v24754_v40 = vmul.f32 0.35355338, %v24714_v53 }
0x13b6   :  { %10037 = vrot.lane.b32.xlu1 %v24720_v18, %s22049_s23 }
0x13b9   :  { %v20994_v50 = vpop.f32.mrf.mxu1 }
0x13ba   :  { %v24728_v12 = vadd.f32 %v20994_v50, %v18930_v44 }
0x13bb   :  { %v9774_v60 = vpop.f32.mrf.mxu1 }
0x13bc   :  { %v24724_v62 = vadd.f32 %v18930_v44, %v9774_v60  ;;  %v24793_v45 = vmul.f32 0.35355338, %v24728_v12 }
0x13bd   :  { %v20995_v41 = vpop.f32.mrf.mxu1 }
0x13be   :  { %10115 = vrot.lane.b32.xlu0 %v24724_v62, %s22049_s23  ;;  %v24736_v5 = vadd.f32 %v20995_v41, %v18930_v44  ;;  %v24780_v47 = vmul.f32 0.35355338, %v24724_v62 }
0x13bf   :  { %v9777_v42 = vpop.f32.mrf.mxu1 }
0x13c0   :  { %v24730_v24 = vadd.f32 %v18930_v44, %v9777_v42  ;;  %v24805_v23 = vmul.f32 0.35355338, %v24736_v5 }
0x13c2   :  { %10193 = vrot.lane.b32.xlu1 %v24730_v24, %s22049_s23  ;;  %10271 = vrot.lane.b32.xlu0 %v24728_v12, %s22049_s23  ;;  %v24790_v10 = vmul.f32 0.35355338, %v24730_v24 }
0x13c6   :  { %10349 = vrot.lane.b32.xlu1 %v24736_v5, %s22049_s23 }
0x13ca   :  { %10514 = vrot.lane.b32.xlu1 %v24708_v34, %s22050_s24 }
0x1420   :  { %v9804_v32 = vpop.permute.xlu1 %9803 }
0x1421   :  { %20997 = vmatpush3.xpose.msk.msra.mxu0 %vm696_vm3, %v9804_v32 }
0x1422   :  { %21001 = vmatprep.subr.mxu0 %v26935_v21 }
0x1424   :  { %v9882_v8 = vpop.permute.xlu0 %9881  ;;  %20999 = vmatmul.mubr.msk.f32.vlgmr.msra.gmra.mxu0 %vm696_vm3, %v24744_v48  ;;  %v9960_v57 = vpop.permute.xlu1 %9959 }
0x1425   :  { %21002 = vmatpush3.xpose.msk.msra.mxu0 %vm696_vm3, %v9882_v8  ;;  %21007 = vmatpush3.xpose.msk.msra.mxu1 %vm696_vm3, %v9960_v57 }
0x1426   :  { %21003 = vmatprep.mubr.msk.f32.mxu0 %vm22048_vm4, %v26935_v21  ;;  %21011 = vmatprep.subr.mxu0 %v26935_v21 }
0x1427   :  { %21016 = vmatprep.subr.mxu1 %v26935_v21 }
0x1428   :  { %21004 = vmatmul.mubr.msk.f32.vlgmr.msra.gmra.mxu0 %vm696_vm3, %v24754_v40  ;;  %21009 = vmatmul.mubr.msk.f32.vlgmr.msra.gmra.mxu1 %vm696_vm3, %v24757_v27  ;;  %v10038_v55 = vpop.permute.xlu1 %10037 }
0x1429   :  { %21012 = vmatpush3.xpose.msk.msra.mxu0 %vm696_vm3, %v10038_v55  ;;  %21013 = vmatprep.mubr.msk.f32.mxu0 %vm22048_vm4, %v26935_v21 }
0x142a   :  { %21018 = vmatprep.mubr.msk.f32.mxu1 %vm22048_vm4, %v26935_v21  ;;  %21021 = vmatprep.subr.mxu0 %v26935_v21 }
0x142c   :  { %21014 = vmatmul.mubr.msk.f32.vlgmr.msra.gmra.mxu0 %vm696_vm3, %v24769_v52 }
0x142d   :  { %21023 = vmatprep.mubr.msk.f32.mxu0 %vm22048_vm4, %v26935_v21 }
0x1430   :  { %v10116_v6 = vpop.permute.xlu0 %10115 }
0x1431   :  { %21017 = vmatpush3.xpose.msk.msra.mxu1 %vm696_vm3, %v10116_v6 }
0x1432   :  { %21026 = vmatprep.subr.mxu1 %v26935_v21 }
0x1434   :  { %v10272_v19 = vpop.permute.xlu0 %10271  ;;  %21019 = vmatmul.mubr.msk.f32.vlgmr.msra.gmra.mxu1 %vm696_vm3, %v24780_v47  ;;  %v10194_v39 = vpop.permute.xlu1 %10193 }
0x1435   :  { %21022 = vmatpush3.xpose.msk.msra.mxu0 %vm696_vm3, %v10194_v39  ;;  %21027 = vmatpush3.xpose.msk.msra.mxu1 %vm696_vm3, %v10272_v19 }
0x1436   :  { %21028 = vmatprep.mubr.msk.f32.mxu1 %vm22048_vm4, %v26935_v21  ;;  %21031 = vmatprep.subr.mxu0 %v26935_v21 }
0x1437   :  { %21036 = vmatprep.subr.mxu1 %v26935_v21 }
0x1438   :  { %21024 = vmatmul.mubr.msk.f32.vlgmr.msra.gmra.mxu0 %vm696_vm3, %v24790_v10  ;;  %21029 = vmatmul.mubr.msk.f32.vlgmr.msra.gmra.mxu1 %vm696_vm3, %v24793_v45  ;;  %v10350_v59 = vpop.permute.xlu1 %10349 }
0x1439   :  { %21032 = vmatpush3.xpose.msk.msra.mxu0 %vm696_vm3, %v10350_v59  ;;  %21033 = vmatprep.mubr.msk.f32.mxu0 %vm22048_vm4, %v26935_v21 }
0x143a   :  { %21041 = vmatprep.subr.mxu0 %v26935_v21  ;;  %21038 = vmatprep.mubr.msk.f32.mxu1 %vm22048_vm4, %v26935_v21 }
0x143c   :  { %21034 = vmatmul.mubr.msk.f32.vlgmr.msra.gmra.mxu0 %vm696_vm3, %v24805_v23  ;;  %v10515_v20 = vpop.permute.xlu1 %10514 }
0x143d   :  { %21037 = vmatpush3.msra.mxu1 %v10515_v20  ;;  %21043 = vmatprep.mubr.msk.f32.mxu0 %vm22048_vm4, %v26935_v21 }
0x143e   :  { %21046 = vmatprep.subr.mxu1 %v26935_v21 }
0x14e4   :  { %v9876_v31 = vpop.f32.mrf.mxu0 }
0x14e5   :  { %v9877_v25 = vadd.f32 %v9876_v31, %v26939_v9 }
0x14e6   :  { %v21000_v28 = vpop.f32.mrf.mxu0 }
0x14e7   :  { %v10426_v26 = vsel %vm696_vm3, %v9877_v25, -inf }
0x14e8   :  { %10427 = vmax.xlane.f32.xlu0 %v10426_v26  ;;  %v9954_v30 = vpop.f32.mrf.mxu0  ;;  %v10032_v61 = vpop.f32.mrf.mxu1 }
0x14e9   :  { %v9955_v2 = vadd.f32 %v9954_v30, %v26939_v9  ;;  %v10033_v17 = vadd.f32 %v10032_v61, %v26939_v9 }
0x14ea   :  { %v21005_v29 = vpop.f32.mrf.mxu0  ;;  %v21010_v43 = vpop.f32.mrf.mxu1 }
0x14eb   :  { %v10429_v22 = vsel %vm696_vm3, %v9955_v2, -inf  ;;  %v10432_v7 = vsel %vm696_vm3, %v10033_v17, -inf }
0x14ec   :  { %10430 = vmax.xlane.f32.xlu1 %v10429_v22  ;;  %10433 = vmax.xlane.f32.xlu0 %v10432_v7  ;;  %v10110_v1 = vpop.f32.mrf.mxu0 }
0x14ed   :  { %v10111_v13 = vadd.f32 %v10110_v1, %v26939_v9 }
0x14ee   :  { %v21015_v14 = vpop.f32.mrf.mxu0 }
0x14ef   :  { %v10435_v49 = vsel %vm696_vm3, %v10111_v13, -inf }
0x14f0   :  { %10436 = vmax.xlane.f32.xlu0 %v10435_v49 }
0x14f4   :  { %v10188_v15 = vpop.f32.mrf.mxu1 }
0x14f5   :  { %v24824_v0 = vadd.f32 %v10188_v15, %v26939_v9 }
0x14f6   :  { %v21020_v37 = vpop.f32.mrf.mxu1 }
0x14f7   :  { %v10438_v46 = vsel %vm696_vm3, %v24824_v0, -inf }
0x14f8   :  { %10439 = vmax.xlane.f32.xlu1 %v10438_v46  ;;  %v10266_v51 = vpop.f32.mrf.mxu0  ;;  %v10344_v44 = vpop.f32.mrf.mxu1 }
0x14f9   :  { %v10267_v4 = vadd.f32 %v10266_v51, %v26939_v9  ;;  %v24830_v54 = vadd.f32 %v10344_v44, %v26939_v9 }
0x14fa   :  { %v21025_v35 = vpop.f32.mrf.mxu0  ;;  %v21030_v50 = vpop.f32.mrf.mxu1 }
0x14fb   :  { %v10444_v60 = vsel %vm696_vm3, %v24830_v54, -inf  ;;  %v10441_v41 = vsel %vm696_vm3, %v10267_v4, -inf }
0x14fc   :  { %10445 = vmax.xlane.f32.xlu1 %v10444_v60  ;;  %10442 = vmax.xlane.f32.xlu0 %v10441_v41  ;;  %v10422_v42 = vpop.f32.mrf.mxu0 }
0x14fd   :  { %v10423_v32 = vadd.f32 %v10422_v42, %v26939_v9 }
0x14fe   :  { %v21035_v8 = vpop.f32.mrf.mxu0 }
0x14ff   :  { %v10447_v57 = vsel %vm696_vm3, %v10423_v32, -inf }
0x1500   :  { %10448 = vmax.xlane.f32.xlu0 %v10447_v57 }
0x150d   :  { %10666 = vrot.lane.b32.xlu1 %v24712_v33, %s22050_s24 }
0x1511   :  { %10742 = vrot.lane.b32.xlu1 %v24720_v18, %s22050_s24 }
0x1515   :  { %10894 = vrot.lane.b32.xlu1 %v24730_v24, %s22050_s24 }
0x1516   :  { %10590 = vrot.lane.b32.xlu0 %v24714_v53, %s22050_s24 }
0x1519   :  { %11046 = vrot.lane.b32.xlu1 %v24736_v5, %s22050_s24 }
0x151a   :  { %10818 = vrot.lane.b32.xlu0 %v24724_v62, %s22050_s24 }
0x151d   :  { %11202 = vrot.lane.b32.xlu1 %v24714_v53, %s22052_s25 }
0x151e   :  { %10970 = vrot.lane.b32.xlu0 %v24728_v12, %s22050_s24 }
0x1521   :  { %11200 = vrot.lane.b32.xlu1 %v24754_v40, %s22053_s26 }
0x1522   :  { %11124 = vrot.lane.b32.xlu0 %v24708_v34, %s22052_s25 }
0x1525   :  { %11358 = vrot.lane.b32.xlu1 %v24720_v18, %s22052_s25 }
0x1526   :  { %11122 = vrot.lane.b32.xlu0 %v24744_v48, %s22053_s26 }
0x152a   :  { %11280 = vrot.lane.b32.xlu0 %v24712_v33, %s22052_s25 }
0x152e   :  { %11278 = vrot.lane.b32.xlu0 %v24757_v27, %s22053_s26 }
0x1571   :  { %v10428_v55 = vpop.xlane.xlu0 %10427 }
0x1572   :  { %v10450_v6 = vsub.f32 %v9877_v25, %v10428_v55 }
0x1574   :  { %v10458_v31 = vmul.f32 1.442695, %v10450_v6 }
0x1575   :  { %v10434_v19 = vpop.xlane.xlu0 %10433  ;;  %v10431_v39 = vpop.xlane.xlu1 %10430 }
0x1576   :  { %v10452_v59 = vsub.f32 %v10033_v17, %v10434_v19  ;;  %v10451_v20 = vsub.f32 %v9955_v2, %v10431_v39 }
0x1578   :  { %v10462_v28 = vmul.f32 1.442695, %v10452_v59  ;;  %v10460_v26 = vmul.f32 1.442695, %v10451_v20 }
0x1579   :  { %v10437_v30 = vpop.xlane.xlu0 %10436 }
0x157a   :  { %21864 = vpow2.f32 %v10462_v28  ;;  %v10453_v61 = vsub.f32 %v10111_v13, %v10437_v30 }
0x157b   :  { %21866 = vpow2.f32 %v10460_v26 }
0x157c   :  { %21868 = vpow2.f32 %v10458_v31  ;;  %v10464_v29 = vmul.f32 1.442695, %v10453_v61 }
0x157e   :  { %21870 = vpow2.f32 %v10464_v29 }
0x1581   :  { %v10440_v41 = vpop.xlane.xlu1 %10439 }
0x1582   :  { %v10454_v42 = vsub.f32 %v24824_v0, %v10440_v41 }
0x1584   :  { %v10466_v8 = vmul.f32 1.442695, %v10454_v42 }
0x1585   :  { %v10443_v43 = vpop.xlane.xlu0 %10442 }
0x1586   :  { %v10455_v22 = vsub.f32 %v10267_v4, %v10443_v43 }
0x1587   :  { %v24865_v7 = vpop.eup %21864 }
0x1588   :  { %v24867_v1 = vpop.eup %21866  ;;  %v10468_v25 = vmul.f32 1.442695, %v10455_v22  ;;  %v10480_v2 = vsel %vm696_vm3, %v24865_v7, 0.0 }
0x1589   :  { %v24871_v17 = vpop.eup %21868  ;;  %10481 = vadd.xlane.f32.xlu1 %v10480_v2  ;;  %v10449_v14 = vpop.xlane.xlu0 %10448  ;;  %v10477_v13 = vsel %vm696_vm3, %v24867_v1, 0.0 }
0x158a   :  { %21872 = vpow2.f32 %v10468_v25  ;;  %v10457_v49 = vsub.f32 %v10423_v32, %v10449_v14  ;;  %10478 = vadd.xlane.f32.xlu0 %v10477_v13  ;;  %v10474_v46 = vsel %vm696_vm3, %v24871_v17, 0.0  ;;  %v10446_v32 = vpop.xlane.xlu1 %10445 }
0x158b   :  { %v24875_v15 = vpop.eup %21870  ;;  %v10456_v57 = vsub.f32 %v24830_v54, %v10446_v32 }
0x158c   :  { %v10472_v37 = vmul.f32 1.442695, %v10457_v49  ;;  %v10483_v51 = vsel %vm696_vm3, %v24875_v15, 0.0 }
0x158d   :  { %10475 = vadd.xlane.f32.xlu1 %v10474_v46  ;;  %v10591_v44 = vpop.permute.xlu0 %10590  ;;  %v10470_v55 = vmul.f32 1.442695, %v10456_v57 }
0x158e   :  { %21874 = vpow2.f32 %v10472_v37  ;;  %10484 = vadd.xlane.f32.xlu0 %v10483_v51  ;;  %21042 = vmatpush3.msra.mxu0 %v10591_v44  ;;  %v10667_v39 = vpop.permute.xlu1 %10666 }
0x158f   :  { %21051 = vmatprep.subr.mxu0 %v26935_v21  ;;  %21876 = vpow2.f32 %v10466_v8 }
0x1590   :  { %21878 = vpow2.f32 %v10470_v55 }
0x1591   :  { %v10819_v20 = vpop.permute.xlu0 %10818 }
0x1592   :  { %v10743_v59 = vpop.permute.xlu1 %10742 }
0x1595   :  { %v24918_v28 = vpop.permute.xlu0 %10970 }
0x1596   :  { %v10895_v31 = vpop.permute.xlu1 %10894 }
0x1597   :  { %v24882_v4 = vpop.eup %21872 }
0x1598   :  { %v10489_v35 = vsel %vm696_vm3, %v24882_v4, 0.0 }
0x1599   :  { %10490 = vadd.xlane.f32.xlu0 %v10489_v35  ;;  %v24920_v30 = vpop.permute.xlu0 %11124 }
0x159a   :  { %v11047_v26 = vpop.permute.xlu1 %11046 }
0x159b   :  { %v24886_v50 = vpop.eup %21874 }
0x159c   :  { %v10495_v60 = vsel %vm696_vm3, %v24886_v50, 0.0  ;;  %v24900_v6 = vpop.eup %21876 }
0x159d   :  { %10496 = vadd.xlane.f32.xlu0 %v10495_v60  ;;  %v10486_v0 = vsel %vm696_vm3, %v24900_v6, 0.0  ;;  %v24906_v54 = vpop.eup %21878  ;;  %v24922_v29 = vpop.permute.xlu0 %11122 }
0x159e   :  { %11356 = vrot.lane.b32.xlu1 %v24769_v52, %s22053_s26  ;;  %v10492_v19 = vsel %vm696_vm3, %v24906_v54, 0.0  ;;  %v11203_v61 = vpop.permute.xlu1 %11202 }
0x15a1   :  { %v24924_v22 = vpop.permute.xlu0 %11280 }
0x15a2   :  { %v11201_v43 = vpop.permute.xlu1 %11200 }
0x15a5   :  { %v24926_v2 = vpop.permute.xlu0 %11278 }
0x15a6   :  { %v11359_v25 = vpop.permute.xlu1 %11358 }
0x15b3   :  { %11436 = vrot.lane.b32.xlu0 %v24724_v62, %s22052_s25 }
0x15b7   :  { %11434 = vrot.lane.b32.xlu0 %v24780_v47, %s22053_s26 }
0x15bb   :  { %11592 = vrot.lane.b32.xlu0 %v24728_v12, %s22052_s25 }
0x15bf   :  { %11590 = vrot.lane.b32.xlu0 %v24793_v45, %s22053_s26 }
0x15c2   :  { %10487 = vadd.xlane.f32.xlu1 %v10486_v0 }
0x15c6   :  { %10493 = vadd.xlane.f32.xlu1 %v10492_v19 }
0x15d7   :  { %11514 = vrot.lane.b32.xlu1 %v24730_v24, %s22052_s25 }
0x15db   :  { %11512 = vrot.lane.b32.xlu1 %v24790_v10, %s22053_s26 }
0x15df   :  { %11670 = vrot.lane.b32.xlu1 %v24736_v5, %s22052_s25 }
0x15e3   :  { %11668 = vrot.lane.b32.xlu1 %v24805_v23, %s22053_s26  ;;  %s26940_s26 = smov 104  }
0x1612   :  { %v10482_v14 = vpop.xlane.xlu1 %10481 }
0x1613   :  { %v10479_v13 = vpop.xlane.xlu0 %10478 }
0x1614   :  { %21880 = vrcp.f32 %v10479_v13 }
0x1616   :  { %v10476_v49 = vpop.xlane.xlu1 %10475 }
0x1617   :  { %v10485_v37 = vpop.xlane.xlu0 %10484  ;;  %21882 = vrcp.f32 %v10476_v49 }
0x1618   :  { %21884 = vrcp.f32 %v10485_v37 }
0x1619   :  { %21886 = vrcp.f32 %v10482_v14 }
0x1621   :  { %v21881_v46 = vpop.eup %21880 }
0x1622   :  { %v10507_v51 = vmul.f32 %v21881_v46, %v24867_v1  ;;  %v10491_v44 = vpop.xlane.xlu0 %10490 }
0x1623   :  { %21888 = vrcp.f32 %v10491_v44 }
0x1624   :  { %v21883_v35 = vpop.eup %21882  ;;  %21044 = vmatmul.mubr.msk.f32.vlgmr.msra.gmra.mxu0 %vm696_vm3, %v10507_v51 }
0x1625   :  { %v21885_v60 = vpop.eup %21884  ;;  %v10506_v41 = vmul.f32 %v21883_v35, %v24871_v17  ;;  %21052 = vmatpush3.msra.mxu0 %v10743_v59  ;;  %21053 = vmatprep.mubr.msk.f32.mxu0 %vm22048_vm4, %v26935_v21 }
0x1626   :  { %v21887_v42 = vpop.eup %21886  ;;  %v10509_v32 = vmul.f32 %v21885_v60, %v24875_v15  ;;  %v10497_v8 = vpop.xlane.xlu0 %10496  ;;  %21061 = vmatprep.subr.mxu0 %v26935_v21 }
0x1627   :  { %21890 = vrcp.f32 %v10497_v8  ;;  %21039 = vmatmul.mubr.msk.f32.vlgmr.msra.gmra.mxu1 %vm696_vm3, %v10506_v41  ;;  %v10508_v1 = vmul.f32 %v21887_v42, %v24865_v7 }
0x1628   :  { %21047 = vmatpush3.msra.mxu1 %v10667_v39  ;;  %21054 = vmatmul.mubr.msk.f32.vlgmr.msra.gmra.mxu0 %vm696_vm3, %v10509_v32 }
0x1629   :  { %21062 = vmatpush3.msra.mxu0 %v10895_v31  ;;  %21048 = vmatprep.mubr.msk.f32.mxu1 %vm22048_vm4, %v26935_v21 }
0x162a   :  { %21056 = vmatprep.subr.mxu1 %v26935_v21  ;;  %21063 = vmatprep.mubr.msk.f32.mxu0 %vm22048_vm4, %v26935_v21 }
0x162b   :  { %21049 = vmatmul.mubr.msk.f32.vlgmr.msra.gmra.mxu1 %vm696_vm3, %v10508_v1  ;;  %21071 = vmatprep.subr.mxu0 %v26935_v21 }
0x162c   :  { %21057 = vmatpush3.msra.mxu1 %v10819_v20  ;;  %21058 = vmatprep.mubr.msk.f32.mxu1 %vm22048_vm4, %v26935_v21 }
0x162d   :  { %21066 = vmatprep.subr.mxu1 %v26935_v21 }
0x1630   :  { %v21889_v7 = vpop.eup %21888 }
0x1631   :  { %v10511_v17 = vmul.f32 %v21889_v7, %v24882_v4  ;;  %v11357_v4 = vpop.permute.xlu1 %11356 }
0x1633   :  { %21064 = vmatmul.mubr.msk.f32.vlgmr.msra.gmra.mxu0 %vm696_vm3, %v10511_v17 }
0x1634   :  { %v21891_v15 = vpop.eup %21890  ;;  %21072 = vmatpush3.msra.mxu0 %v11047_v26  ;;  %21073 = vmatprep.mubr.msk.f32.mxu0 %vm22048_vm4, %v26935_v21  ;;  %v11437_v26 = vpop.permute.xlu0 %11436 }
0x1635   :  { %v10513_v57 = vmul.f32 %v21891_v15, %v24886_v50  ;;  %21081 = vmatprep.subr.mxu0 %v26935_v21 }
0x1637   :  { %21074 = vmatmul.mubr.msk.f32.vlgmr.msra.gmra.mxu0 %vm696_vm3, %v10513_v57 }
0x1638   :  { %21082 = vmatpush3.xpose.msk.msra.mxu0 %vm696_vm3, %v11203_v61  ;;  %21083 = vmatprep.mubr.msk.f32.mxu0 %vm22048_vm4, %v26935_v21 }
0x1639   :  { %21091 = vmatprep.subr.mxu0 %v26935_v21 }
0x163b   :  { %21084 = vmatmul.mubr.msk.f32.vlgmr.msra.gmra.mxu0 %vm696_vm3, %v11201_v43 }
0x163c   :  { %21092 = vmatpush3.xpose.msk.msra.mxu0 %vm696_vm3, %v11359_v25  ;;  %21093 = vmatprep.mubr.msk.f32.mxu0 %vm22048_vm4, %v26935_v21 }
0x163d   :  { %21101 = vmatprep.subr.mxu0 %v26935_v21 }
0x163f   :  { %21094 = vmatmul.mubr.msk.f32.vlgmr.msra.gmra.mxu0 %vm696_vm3, %v11357_v4 }
0x1640   :  { %21103 = vmatprep.mubr.msk.f32.mxu0 %vm22048_vm4, %v26935_v21 }
0x164b   :  { %v10488_v50 = vpop.xlane.xlu1 %10487 }
0x164c   :  { %21892 = vrcp.f32 %v10488_v50 }
0x164f   :  { %v10494_v55 = vpop.xlane.xlu1 %10493 }
0x1650   :  { %21894 = vrcp.f32 %v10494_v55 }
0x1653   :  { %v11515_v0 = vpop.permute.xlu1 %11514 }
0x1654   :  { %21102 = vmatpush3.xpose.msk.msra.mxu0 %vm696_vm3, %v11515_v0 }
0x1655   :  { %21111 = vmatprep.subr.mxu0 %v26935_v21 }
0x1657   :  { %v11513_v19 = vpop.permute.xlu1 %11512 }
0x1658   :  { %21104 = vmatmul.mubr.msk.f32.vlgmr.msra.gmra.mxu0 %vm696_vm3, %v11513_v19 }
0x1659   :  { %v21893_v39 = vpop.eup %21892  ;;  %21113 = vmatprep.mubr.msk.f32.mxu0 %vm22048_vm4, %v26935_v21 }
0x165a   :  { %v10510_v59 = vmul.f32 %v21893_v39, %v24900_v6  ;;  %v11435_v6 = vpop.permute.xlu0 %11434 }
0x165b   :  { %v11671_v20 = vpop.permute.xlu1 %11670 }
0x165c   :  { %21059 = vmatmul.mubr.msk.f32.vlgmr.msra.gmra.mxu1 %vm696_vm3, %v10510_v59  ;;  %21112 = vmatpush3.xpose.msk.msra.mxu0 %vm696_vm3, %v11671_v20 }
0x165d   :  { %v21895_v31 = vpop.eup %21894  ;;  %21067 = vmatpush3.msra.mxu1 %v24918_v28  ;;  %21068 = vmatprep.mubr.msk.f32.mxu1 %vm22048_vm4, %v26935_v21 }
0x165e   :  { %v10512_v61 = vmul.f32 %v21895_v31, %v24906_v54  ;;  %21076 = vmatprep.subr.mxu1 %v26935_v21  ;;  %21121 = vmatprep.subr.mxu0 %v26935_v21  ;;  %v11593_v54 = vpop.permute.xlu0 %11592 }
0x165f   :  { %v11669_v43 = vpop.permute.xlu1 %11668 }
0x1660   :  { %21069 = vmatmul.mubr.msk.f32.vlgmr.msra.gmra.mxu1 %vm696_vm3, %v10512_v61  ;;  %21114 = vmatmul.mubr.msk.f32.vlgmr.msra.gmra.mxu0 %vm696_vm3, %v11669_v43 }
0x1661   :  { %21077 = vmatpush3.xpose.msk.msra.mxu1 %vm696_vm3, %v24920_v30  ;;  %21078 = vmatprep.mubr.msk.f32.mxu1 %vm22048_vm4, %v26935_v21 }
0x1662   :  { %21086 = vmatprep.subr.mxu1 %v26935_v21  ;;  %21123 = vmatprep.mubr.msk.f32.mxu0 %vm22048_vm4, %v26935_v21  ;;  %v11591_v28 = vpop.permute.xlu0 %11590 }
0x1664   :  { %21079 = vmatmul.mubr.msk.f32.vlgmr.msra.gmra.mxu1 %vm696_vm3, %v24922_v29 }
0x1665   :  { %21087 = vmatpush3.xpose.msk.msra.mxu1 %vm696_vm3, %v24924_v22  ;;  %21088 = vmatprep.mubr.msk.f32.mxu1 %vm22048_vm4, %v26935_v21 }
0x1666   :  { %21096 = vmatprep.subr.mxu1 %v26935_v21 }
0x1668   :  { %21089 = vmatmul.mubr.msk.f32.vlgmr.msra.gmra.mxu1 %vm696_vm3, %v24926_v2 }
0x1669   :  { %21097 = vmatpush3.xpose.msk.msra.mxu1 %vm696_vm3, %v11437_v26  ;;  %21098 = vmatprep.mubr.msk.f32.mxu1 %vm22048_vm4, %v26935_v21 }
0x166a   :  { %21106 = vmatprep.subr.mxu1 %v26935_v21 }
0x166c   :  { %21099 = vmatmul.mubr.msk.f32.vlgmr.msra.gmra.mxu1 %vm696_vm3, %v11435_v6 }
0x166d   :  { %21107 = vmatpush3.xpose.msk.msra.mxu1 %vm696_vm3, %v11593_v54  ;;  %21108 = vmatprep.mubr.msk.f32.mxu1 %vm22048_vm4, %v26935_v21 }
0x166e   :  { %21116 = vmatprep.subr.mxu1 %v26935_v21 }
0x1670   :  { %21109 = vmatmul.mubr.msk.f32.vlgmr.msra.gmra.mxu1 %vm696_vm3, %v11591_v28 }
0x1671   :  { %21118 = vmatprep.mubr.msk.f32.mxu1 %vm22048_vm4, %v26935_v21 }
0x16e4   :  { %v25011_v30 = vpop.f32.mrf.mxu0 }
0x16e6   :  { %v21045_v29 = vpop.f32.mrf.mxu0 }
0x16e7   :  { %v25013_v22 = vpop.f32.mrf.mxu1 }
0x16e8   :  { %v25015_v25 = vpop.f32.mrf.mxu0 }
0x16e9   :  { %v21040_v2 = vpop.f32.mrf.mxu1 }
0x16ea   :  { %v21055_v14 = vpop.f32.mrf.mxu0 }
0x16eb   :  { %v25017_v13 = vpop.f32.mrf.mxu1 }
0x16ed   :  { %v21050_v49 = vpop.f32.mrf.mxu1 }
0x16f3   :  { %v25019_v37 = vpop.f32.mrf.mxu0 }
0x16f5   :  { %v21065_v46 = vpop.f32.mrf.mxu0 }
0x16f7   :  { %v25021_v51 = vpop.f32.mrf.mxu0 }
0x16f9   :  { %v21075_v44 = vpop.f32.mrf.mxu0 }
0x16fb   :  { %v11274_v35 = vpop.f32.mrf.mxu0 }
0x16fc   :  { %v11275_v60 = vadd.f32 %v11274_v35, %v26939_v9 }
0x16fd   :  { %v21085_v41 = vpop.f32.mrf.mxu0 }
0x16fe   :  { %v11749_v42 = vsel %vm696_vm3, %v11275_v60, -inf }
0x16ff   :  { %11750 = vmax.xlane.f32.xlu1 %v11749_v42  ;;  %v11430_v32 = vpop.f32.mrf.mxu0 }
0x1700   :  { %v11431_v61 = vadd.f32 %v11430_v32, %v26939_v9 }
0x1701   :  { %v21095_v8 = vpop.f32.mrf.mxu0 }
0x1702   :  { %v11755_v2 = vsel %vm696_vm3, %v11431_v61, -inf }
0x1718   :  { %v11586_v1 = vpop.f32.mrf.mxu0 }
0x1719   :  { %v11587_v29 = vadd.f32 %v11586_v1, %v26939_v9 }
0x171a   :  { %v21105_v7 = vpop.f32.mrf.mxu0 }
0x171b   :  { %v11761_v42 = vsel %vm696_vm3, %v11587_v29, -inf }
0x171c   :  { %v25025_v17 = vpop.f32.mrf.mxu1 }
0x171e   :  { %v21060_v15 = vpop.f32.mrf.mxu1 }
0x1720   :  { %v25027_v57 = vpop.f32.mrf.mxu1  ;;  %v11742_v4 = vpop.f32.mrf.mxu0 }
0x1721   :  { %v11743_v35 = vadd.f32 %v11742_v4, %v26939_v9 }
0x1722   :  { %v21070_v50 = vpop.f32.mrf.mxu1  ;;  %v21115_v55 = vpop.f32.mrf.mxu0 }
0x1723   :  { %v11767_v32 = vsel %vm696_vm3, %v11743_v35, -inf }
0x1724   :  { %v11196_v0 = vpop.f32.mrf.mxu1 }
0x1725   :  { %v11197_v19 = vadd.f32 %v11196_v0, %v26939_v9 }
0x1726   :  { %v21080_v39 = vpop.f32.mrf.mxu1 }
0x1727   :  { %v11746_v59 = vsel %vm696_vm3, %v11197_v19, -inf }
0x1728   :  { %11747 = vmax.xlane.f32.xlu0 %v11746_v59  ;;  %v11352_v20 = vpop.f32.mrf.mxu1 }
0x1729   :  { %v11353_v31 = vadd.f32 %v11352_v20, %v26939_v9 }
0x172a   :  { %v21090_v26 = vpop.f32.mrf.mxu1 }
0x172b   :  { %v11752_v43 = vsel %vm696_vm3, %v11353_v31, -inf }
0x172c   :  { %11753 = vmax.xlane.f32.xlu0 %v11752_v43  ;;  %v11508_v6 = vpop.f32.mrf.mxu1 }
0x172d   :  { %v11509_v54 = vadd.f32 %v11508_v6, %v26939_v9 }
0x172e   :  { %v21100_v28 = vpop.f32.mrf.mxu1 }
0x172f   :  { %v11758_v14 = vsel %vm696_vm3, %v11509_v54, -inf }
0x1730   :  { %11756 = vmax.xlane.f32.xlu0 %v11755_v2  ;;  %11759 = vmax.xlane.f32.xlu1 %v11758_v14  ;;  %v11664_v49 = vpop.f32.mrf.mxu1 }
0x1731   :  { %v11665_v46 = vadd.f32 %v11664_v49, %v26939_v9 }
0x1732   :  { %v21110_v44 = vpop.f32.mrf.mxu1 }
0x1733   :  { %v11764_v41 = vsel %vm696_vm3, %v11665_v46, -inf }
0x1734   :  { %11765 = vmax.xlane.f32.xlu1 %v11764_v41  ;;  %11762 = vmax.xlane.f32.xlu0 %v11761_v42 }
0x1738   :  { %11768 = vmax.xlane.f32.xlu0 %v11767_v32 }
0x1745   :  { %11834 = vrot.lane.b32.xlu1 %v24708_v34, %s22054_s27 }
0x1749   :  { %11986 = vrot.lane.b32.xlu1 %v24712_v33, %s22054_s27 }
0x174d   :  { %12062 = vrot.lane.b32.xlu1 %v24720_v18, %s22054_s27 }
0x174e   :  { %11910 = vrot.lane.b32.xlu0 %v24714_v53, %s22054_s27 }
0x1751   :  { %12214 = vrot.lane.b32.xlu1 %v24730_v24, %s22054_s27 }
0x1752   :  { %12138 = vrot.lane.b32.xlu0 %v24724_v62, %s22054_s27 }
0x1788   :  { %v11751_v8 = vpop.xlane.xlu1 %11750 }
0x1789   :  { %v11771_v1 = vsub.f32 %v11275_v60, %v11751_v8 }
0x178b   :  { %v11780_v7 = vmul.f32 1.442695, %v11771_v1 }
0x178d   :  { %21896 = vpow2.f32 %v11780_v7 }
0x179a   :  { %v25055_v15 = vpop.eup %21896 }
0x179b   :  { %v11797_v4 = vsel %vm696_vm3, %v25055_v15, 0.0 }
0x179c   :  { %11798 = vadd.xlane.f32.xlu0 %v11797_v4 }
0x17b1   :  { %v11748_v50 = vpop.xlane.xlu0 %11747 }
0x17b2   :  { %v11770_v55 = vsub.f32 %v11197_v19, %v11748_v50 }
0x17b4   :  { %v11778_v0 = vmul.f32 1.442695, %v11770_v55 }
0x17b5   :  { %v11754_v39 = vpop.xlane.xlu0 %11753 }
0x17b6   :  { %21898 = vpow2.f32 %v11778_v0  ;;  %v11772_v59 = vsub.f32 %v11353_v31, %v11754_v39 }
0x17b8   :  { %v11782_v20 = vmul.f32 1.442695, %v11772_v59 }
0x17b9   :  { %v11757_v26 = vpop.xlane.xlu0 %11756  ;;  %v11760_v43 = vpop.xlane.xlu1 %11759 }
0x17ba   :  { %21900 = vpow2.f32 %v11782_v20  ;;  %v11773_v6 = vsub.f32 %v11431_v61, %v11757_v26  ;;  %v11774_v60 = vsub.f32 %v11509_v54, %v11760_v43 }
0x17bc   :  { %v11784_v28 = vmul.f32 1.442695, %v11773_v6  ;;  %v11786_v2 = vmul.f32 1.442695, %v11774_v60 }
0x17bd   :  { %v11763_v14 = vpop.xlane.xlu0 %11762  ;;  %v11766_v49 = vpop.xlane.xlu1 %11765 }
0x17be   :  { %21902 = vpow2.f32 %v11784_v28  ;;  %v11775_v44 = vsub.f32 %v11587_v29, %v11763_v14  ;;  %v11776_v41 = vsub.f32 %v11665_v46, %v11766_v49 }
0x17bf   :  { %21904 = vpow2.f32 %v11786_v2 }
0x17c0   :  { %v11788_v42 = vmul.f32 1.442695, %v11775_v44  ;;  %v11790_v19 = vmul.f32 1.442695, %v11776_v41 }
0x17c1   :  { %v11769_v32 = vpop.xlane.xlu0 %11768  ;;  %v11835_v8 = vpop.permute.xlu1 %11834 }
0x17c2   :  { %21906 = vpow2.f32 %v11788_v42  ;;  %v11777_v31 = vsub.f32 %v11743_v35, %v11769_v32  ;;  %21117 = vmatpush3.msra.mxu1 %v11835_v8 }
0x17c3   :  { %v25059_v1 = vpop.eup %21898  ;;  %21908 = vpow2.f32 %v11790_v19  ;;  %21126 = vmatprep.subr.mxu1 %v26935_v21 }
0x17c4   :  { %v11792_v61 = vmul.f32 1.442695, %v11777_v31  ;;  %v11794_v54 = vsel %vm696_vm3, %v25059_v1, 0.0 }
0x17c5   :  { %11795 = vadd.xlane.f32.xlu1 %v11794_v54  ;;  %v11911_v29 = vpop.permute.xlu0 %11910  ;;  %v11987_v28 = vpop.permute.xlu1 %11986 }
0x17c6   :  { %21910 = vpow2.f32 %v11792_v61  ;;  %21122 = vmatpush3.msra.mxu0 %v11911_v29 }
0x17c7   :  { %v25064_v46 = vpop.eup %21900  ;;  %21131 = vmatprep.subr.mxu0 %v26935_v21 }
0x17c8   :  { %v11800_v35 = vsel %vm696_vm3, %v25064_v46, 0.0 }
0x17c9   :  { %11801 = vadd.xlane.f32.xlu1 %v11800_v35  ;;  %v12139_v6 = vpop.permute.xlu0 %12138  ;;  %v12063_v49 = vpop.permute.xlu1 %12062 }
0x17cb   :  { %v25069_v7 = vpop.eup %21902 }
0x17cc   :  { %v25071_v4 = vpop.eup %21904  ;;  %v11803_v50 = vsel %vm696_vm3, %v25069_v7, 0.0 }
0x17cd   :  { %11804 = vadd.xlane.f32.xlu0 %v11803_v50  ;;  %v11806_v55 = vsel %vm696_vm3, %v25071_v4, 0.0  ;;  %v12215_v44 = vpop.permute.xlu1 %12214 }
0x17ce   :  { %11807 = vadd.xlane.f32.xlu1 %v11806_v55 }
0x17cf   :  { %v25077_v0 = vpop.eup %21906 }
0x17d0   :  { %v25079_v39 = vpop.eup %21908  ;;  %v11809_v59 = vsel %vm696_vm3, %v25077_v0, 0.0 }
0x17d1   :  { %11810 = vadd.xlane.f32.xlu0 %v11809_v59  ;;  %v11812_v20 = vsel %vm696_vm3, %v25079_v39, 0.0 }
0x17d2   :  { %11813 = vadd.xlane.f32.xlu1 %v11812_v20 }
0x17d3   :  { %v25085_v26 = vpop.eup %21910 }
0x17d4   :  { %v11815_v43 = vsel %vm696_vm3, %v25085_v26, 0.0 }
0x17d5   :  { %11816 = vadd.xlane.f32.xlu0 %v11815_v43 }
0x17e3   :  { %12366 = vrot.lane.b32.xlu1 %v24736_v5, %s22054_s27 }
0x17e7   :  { %12780 = vrot.lane.b32.xlu1 %v24714_v53, %s22055_s29 }
0x17eb   :  { %12778 = vrot.lane.b32.xlu1 %v24754_v40, %s22056_s30  ;;  %12290 = vrot.lane.b32.xlu0 %v24728_v12, %s22054_s27  ;;  %s26941_s27 = smov 72  }
0x17ef   :  { %12936 = vrot.lane.b32.xlu1 %v24720_v18, %s22055_s29  ;;  %12702 = vrot.lane.b32.xlu0 %v24708_v34, %s22055_s29 }
0x17f3   :  { %12934 = vrot.lane.b32.xlu1 %v24769_v52, %s22056_s30  ;;  %12700 = vrot.lane.b32.xlu0 %v24744_v48, %s22056_s30 }
0x17f7   :  { %13092 = vrot.lane.b32.xlu1 %v24730_v24, %s22055_s29  ;;  %12858 = vrot.lane.b32.xlu0 %v24712_v33, %s22055_s29 }
0x17fb   :  { %13090 = vrot.lane.b32.xlu1 %v24790_v10, %s22056_s30  ;;  %12856 = vrot.lane.b32.xlu0 %v24757_v27, %s22056_s30 }
0x17ff   :  { %13248 = vrot.lane.b32.xlu1 %v24736_v5, %s22055_s29  ;;  %13014 = vrot.lane.b32.xlu0 %v24724_v62, %s22055_s29 }
0x1803   :  { %13246 = vrot.lane.b32.xlu1 %v24805_v23, %s22056_s30  ;;  %13012 = vrot.lane.b32.xlu0 %v24780_v47, %s22056_s30 }
0x1807   :  { %13170 = vrot.lane.b32.xlu0 %v24728_v12, %s22055_s29 }
0x180b   :  { %13168 = vrot.lane.b32.xlu0 %v24793_v45, %s22056_s30 }
0x1825   :  { %v11799_v60 = vpop.xlane.xlu0 %11798 }
0x1826   :  { %21912 = vrcp.f32 %v11799_v60 }
0x1833   :  { %v21913_v2 = vpop.eup %21912 }
0x1834   :  { %v11827_v14 = vmul.f32 %v21913_v2, %v25055_v15 }
0x1836   :  { %21124 = vmatmul.mubr.msk.f32.vlgmr.msra.gmra.mxu0 %vm696_vm3, %v11827_v14 }
0x1837   :  { %21132 = vmatpush3.msra.mxu0 %v12063_v49  ;;  %21133 = vmatprep.mubr.msk.f32.mxu0 %vm22048_vm4, %v26935_v21 }
0x1838   :  { %21141 = vmatprep.subr.mxu0 %v26935_v21 }
0x184e   :  { %v11796_v41 = vpop.xlane.xlu1 %11795 }
0x184f   :  { %21914 = vrcp.f32 %v11796_v41 }
0x1852   :  { %v11802_v42 = vpop.xlane.xlu1 %11801 }
0x1853   :  { %21916 = vrcp.f32 %v11802_v42 }
0x1856   :  { %v11805_v19 = vpop.xlane.xlu0 %11804 }
0x1857   :  { %21918 = vrcp.f32 %v11805_v19  ;;  %v11808_v32 = vpop.xlane.xlu1 %11807 }
0x1858   :  { %21920 = vrcp.f32 %v11808_v32 }
0x185a   :  { %v11811_v8 = vpop.xlane.xlu0 %11810 }
0x185b   :  { %21922 = vrcp.f32 %v11811_v8  ;;  %v11814_v15 = vpop.xlane.xlu1 %11813 }
0x185c   :  { %v21915_v31 = vpop.eup %21914  ;;  %21924 = vrcp.f32 %v11814_v15 }
0x185d   :  { %v11826_v61 = vmul.f32 %v21915_v31, %v25059_v1 }
0x185e   :  { %v11817_v54 = vpop.xlane.xlu0 %11816 }
0x185f   :  { %21926 = vrcp.f32 %v11817_v54  ;;  %v12367_v29 = vpop.permute.xlu1 %12366  ;;  %21119 = vmatmul.mubr.msk.f32.vlgmr.msra.gmra.mxu1 %vm696_vm3, %v11826_v61 }
0x1860   :  { %v21917_v35 = vpop.eup %21916  ;;  %21127 = vmatpush3.msra.mxu1 %v11987_v28  ;;  %21128 = vmatprep.mubr.msk.f32.mxu1 %vm22048_vm4, %v26935_v21 }
0x1861   :  { %v11828_v50 = vmul.f32 %v21917_v35, %v25064_v46  ;;  %21136 = vmatprep.subr.mxu1 %v26935_v21 }
0x1862   :  { %v12291_v60 = vpop.permute.xlu0 %12290 }
0x1863   :  { %21129 = vmatmul.mubr.msk.f32.vlgmr.msra.gmra.mxu1 %vm696_vm3, %v11828_v50  ;;  %v12781_v59 = vpop.permute.xlu1 %12780 }
0x1864   :  { %v21919_v55 = vpop.eup %21918  ;;  %21137 = vmatpush3.msra.mxu1 %v12139_v6  ;;  %21138 = vmatprep.mubr.msk.f32.mxu1 %vm22048_vm4, %v26935_v21 }
0x1865   :  { %v21921_v1 = vpop.eup %21920  ;;  %v11829_v20 = vmul.f32 %v21919_v55, %v25069_v7  ;;  %21146 = vmatprep.subr.mxu1 %v26935_v21 }
0x1866   :  { %v11830_v43 = vmul.f32 %v21921_v1, %v25071_v4  ;;  %v18937_v4 = vld [vmem:[%s26808_s7 + $0x20] sm:$0xff] }
0x1867   :  { %21134 = vmatmul.mubr.msk.f32.vlgmr.msra.gmra.mxu0 %vm696_vm3, %v11829_v20  ;;  %v12779_v2 = vpop.permute.xlu1 %12778 }
0x1868   :  { %v21923_v46 = vpop.eup %21922  ;;  %21139 = vmatmul.mubr.msk.f32.vlgmr.msra.gmra.mxu1 %vm696_vm3, %v11830_v43  ;;  %21142 = vmatpush3.msra.mxu0 %v12215_v44 }
0x1869   :  { %v21925_v28 = vpop.eup %21924  ;;  %v11831_v6 = vmul.f32 %v21923_v46, %v25077_v0  ;;  %21147 = vmatpush3.msra.mxu1 %v12291_v60  ;;  %21143 = vmatprep.mubr.msk.f32.mxu0 %vm22048_vm4, %v26935_v21 }
0x186a   :  { %v11832_v7 = vmul.f32 %v21925_v28, %v25079_v39  ;;  %21148 = vmatprep.mubr.msk.f32.mxu1 %vm22048_vm4, %v26935_v21  ;;  %21151 = vmatprep.subr.mxu0 %v26935_v21 }
0x186b   :  { %21144 = vmatmul.mubr.msk.f32.vlgmr.msra.gmra.mxu0 %vm696_vm3, %v11831_v6  ;;  %v12937_v39 = vpop.permute.xlu1 %12936 }
0x186c   :  { %v21927_v14 = vpop.eup %21926  ;;  %21149 = vmatmul.mubr.msk.f32.vlgmr.msra.gmra.mxu1 %vm696_vm3, %v11832_v7  ;;  %21152 = vmatpush3.msra.mxu0 %v12367_v29 }
0x186d   :  { %v11833_v0 = vmul.f32 %v21927_v14, %v25085_v26  ;;  %21153 = vmatprep.mubr.msk.f32.mxu0 %vm22048_vm4, %v26935_v21  ;;  %21170 = vmatprep.subr.mxu0 %v18937_v4 }
0x186f   :  { %21154 = vmatmul.mubr.msk.f32.vlgmr.msra.gmra.mxu0 %vm696_vm3, %v11833_v0  ;;  %v12935_v26 = vpop.permute.xlu1 %12934 }
0x1870   :  { %21172 = vmatprep.mubr.msk.f32.mxu0 %vm696_vm3, %v25013_v22  ;;  %21171 = vmatpush3.msra.mxu0 %v18937_v4  ;;  %v18938_v22 = vld [vmem:[%s26808_s7 + $0x28] sm:$0xff] }
0x1871   :  { %21189 = vmatprep.subr.mxu0 %v26935_v21  ;;  %21156 = vmatprep.subr.mxu1 %v18938_v22 }
0x1872   :  { %21157 = vmatpush3.msra.mxu1 %v18938_v22 }
0x1873   :  { %21173 = vmatmul.mubr.msk.f32.vlgmr.msra.gmra.mxu0 %vm696_vm3, %v25011_v30  ;;  %21184 = vmatprep.subr.mxu1 %v26935_v21  ;;  %v13093_v30 = vpop.permute.xlu1 %13092 }
0x1874   :  { %21190 = vmatpush3.xpose.msk.msra.mxu0 %vm696_vm3, %v12781_v59  ;;  %21175 = vmatprep.mubr.msk.f32.mxu0 %vm696_vm3, %v25017_v13 }
0x1875   :  { %21199 = vmatprep.subr.mxu0 %v26935_v21 }
0x1877   :  { %21176 = vmatmul.mubr.msk.f32.gmra.mxu0 %vm696_vm3, %v25015_v25  ;;  %v13091_v25 = vpop.permute.xlu1 %13090 }
0x1878   :  { %21178 = vmatprep.mubr.msk.f32.mxu0 %vm696_vm3, %v25025_v17 }
0x187b   :  { %21179 = vmatmul.mubr.msk.f32.gmra.mxu0 %vm696_vm3, %v25019_v37  ;;  %v13249_v13 = vpop.permute.xlu1 %13248 }
0x187c   :  { %21181 = vmatprep.mubr.msk.f32.mxu0 %vm696_vm3, %v25027_v57  ;;  %v12703_v57 = vpop.permute.xlu0 %12702 }
0x187f   :  { %21182 = vmatmul.mubr.msk.f32.gmra.mxu0 %vm696_vm3, %v25021_v51  ;;  %v13247_v37 = vpop.permute.xlu1 %13246 }
0x1880   :  { %21191 = vmatprep.mubr.msk.f32.mxu0 %vm22048_vm4, %v26935_v21  ;;  %v12701_v49 = vpop.permute.xlu0 %12700 }
0x1883   :  { %21192 = vmatmul.mubr.msk.f32.vlgmr.msra.gmra.mxu0 %vm696_vm3, %v12779_v2 }
0x1884   :  { %21200 = vmatpush3.xpose.msk.msra.mxu0 %vm696_vm3, %v12937_v39  ;;  %21201 = vmatprep.mubr.msk.f32.mxu0 %vm22048_vm4, %v26935_v21  ;;  %v12859_v41 = vpop.permute.xlu0 %12858 }
0x1885   :  { %21209 = vmatprep.subr.mxu0 %v26935_v21 }
0x1887   :  { %21202 = vmatmul.mubr.msk.f32.vlgmr.msra.gmra.mxu0 %vm696_vm3, %v12935_v26 }
0x1888   :  { %21210 = vmatpush3.xpose.msk.msra.mxu0 %vm696_vm3, %v13093_v30  ;;  %21211 = vmatprep.mubr.msk.f32.mxu0 %vm22048_vm4, %v26935_v21  ;;  %v12857_v8 = vpop.permute.xlu0 %12856 }
0x1889   :  { %21219 = vmatprep.subr.mxu0 %v26935_v21 }
0x188b   :  { %21212 = vmatmul.mubr.msk.f32.vlgmr.msra.gmra.mxu0 %vm696_vm3, %v13091_v25 }
0x188c   :  { %21220 = vmatpush3.xpose.msk.msra.mxu0 %vm696_vm3, %v13249_v13  ;;  %21221 = vmatprep.mubr.msk.f32.mxu0 %vm22048_vm4, %v26935_v21  ;;  %v13015_v50 = vpop.permute.xlu0 %13014 }
0x188d   :  { %21229 = vmatprep.subr.mxu0 %v26935_v21 }
0x188f   :  { %21222 = vmatmul.mubr.msk.f32.vlgmr.msra.gmra.mxu0 %vm696_vm3, %v13247_v37 }
0x1890   :  { %21231 = vmatprep.mubr.msk.f32.mxu0 %vm22048_vm4, %v26935_v21  ;;  %v13013_v43 = vpop.permute.xlu0 %13012 }
0x1894   :  { %v13171_v6 = vpop.permute.xlu0 %13170 }
0x1898   :  { %v13169_v14 = vpop.permute.xlu0 %13168 }
0x18f6   :  { %v11982_v51 = vpop.f32.mrf.mxu0 }
0x18f8   :  { %v21125_v17 = vpop.f32.mrf.mxu0 }
0x191f   :  { %v11906_v44 = vpop.f32.mrf.mxu1 }
0x1920   :  { %21158 = vmatprep.mubr.msk.f32.mxu1 %vm696_vm3, %v11906_v44 }
0x1921   :  { %v21120_v42 = vpop.f32.mrf.mxu1  ;;  %21159 = vmatmul.mubr.msk.f32.vlgmr.msra.gmra.mxu1 %vm696_vm3, %v11982_v51 }
0x1922   :  { %21185 = vmatpush3.xpose.msk.msra.mxu1 %vm696_vm3, %v12703_v57 }
0x1923   :  { %v12058_v19 = vpop.f32.mrf.mxu1  ;;  %21194 = vmatprep.subr.mxu1 %v26935_v21 }
0x1924   :  { %21161 = vmatprep.mubr.msk.f32.mxu1 %vm696_vm3, %v12058_v19 }
0x1925   :  { %v21130_v32 = vpop.f32.mrf.mxu1 }
0x1927   :  { %v12134_v15 = vpop.f32.mrf.mxu0 }
0x1928   :  { %v12210_v31 = vpop.f32.mrf.mxu1  ;;  %21162 = vmatmul.mubr.msk.f32.gmra.mxu1 %vm696_vm3, %v12134_v15 }
0x1929   :  { %v21135_v61 = vpop.f32.mrf.mxu0  ;;  %21164 = vmatprep.mubr.msk.f32.mxu1 %vm696_vm3, %v12210_v31 }
0x192a   :  { %v21140_v54 = vpop.f32.mrf.mxu1 }
0x192b   :  { %v12286_v29 = vpop.f32.mrf.mxu0 }
0x192c   :  { %v12362_v35 = vpop.f32.mrf.mxu1  ;;  %21165 = vmatmul.mubr.msk.f32.gmra.mxu1 %vm696_vm3, %v12286_v29 }
0x192d   :  { %v21145_v55 = vpop.f32.mrf.mxu0  ;;  %21167 = vmatprep.mubr.msk.f32.mxu1 %vm696_vm3, %v12362_v35 }
0x192e   :  { %v21150_v59 = vpop.f32.mrf.mxu1 }
0x192f   :  { %v12438_v1 = vpop.f32.mrf.mxu0 }
0x1930   :  { %21168 = vmatmul.mubr.msk.f32.gmra.mxu1 %vm696_vm3, %v12438_v1 }
0x1931   :  { %v21155_v20 = vpop.f32.mrf.mxu0  ;;  %21186 = vmatprep.mubr.msk.f32.mxu1 %vm22048_vm4, %v26935_v21 }
0x1933   :  { %v25215_v46 = vpop.f32.mrf.mxu0 }
0x1934   :  { %21187 = vmatmul.mubr.msk.f32.vlgmr.msra.gmra.mxu1 %vm696_vm3, %v12701_v49 }
0x1935   :  { %21195 = vmatpush3.xpose.msk.msra.mxu1 %vm696_vm3, %v12859_v41  ;;  %v25219_v60 = vpop.f32.mrf.mxu0  ;;  %21196 = vmatprep.mubr.msk.f32.mxu1 %vm22048_vm4, %v26935_v21 }
0x1936   :  { %21204 = vmatprep.subr.mxu1 %v26935_v21 }
0x1937   :  { %v25224_v28 = vpop.f32.mrf.mxu0 }
0x1938   :  { %21197 = vmatmul.mubr.msk.f32.vlgmr.msra.gmra.mxu1 %vm696_vm3, %v12857_v8 }
0x1939   :  { %21205 = vmatpush3.xpose.msk.msra.mxu1 %vm696_vm3, %v13015_v50  ;;  %v25228_v7 = vpop.f32.mrf.mxu0  ;;  %21206 = vmatprep.mubr.msk.f32.mxu1 %vm22048_vm4, %v26935_v21 }
0x193a   :  { %21214 = vmatprep.subr.mxu1 %v26935_v21 }
0x193b   :  { %v25233_v2 = vpop.f32.mrf.mxu0 }
0x193c   :  { %21207 = vmatmul.mubr.msk.f32.vlgmr.msra.gmra.mxu1 %vm696_vm3, %v13013_v43 }
0x193d   :  { %21215 = vmatpush3.xpose.msk.msra.mxu1 %vm696_vm3, %v13171_v6  ;;  %v25237_v4 = vpop.f32.mrf.mxu0  ;;  %21216 = vmatprep.mubr.msk.f32.mxu1 %vm22048_vm4, %v26935_v21 }
0x193e   :  { %21224 = vmatprep.subr.mxu1 %v26935_v21 }
0x193f   :  { %v25242_v0 = vpop.f32.mrf.mxu0 }
0x1940   :  { %21217 = vmatmul.mubr.msk.f32.vlgmr.msra.gmra.mxu1 %vm696_vm3, %v13169_v14 }
0x1941   :  { %v25245_v39 = vpop.f32.mrf.mxu0  ;;  %21226 = vmatprep.mubr.msk.f32.mxu1 %vm22048_vm4, %v26935_v21 }
0x1943   :  { %v12852_v26 = vpop.f32.mrf.mxu0 }
0x1944   :  { %v12853_v22 = vadd.f32 %v12852_v26, %v26939_v9 }
0x1945   :  { %v21193_v30 = vpop.f32.mrf.mxu0 }
0x1946   :  { %v13327_v25 = vsel %vm696_vm3, %v12853_v22, -inf }
0x1947   :  { %13328 = vmax.xlane.f32.xlu1 %v13327_v25  ;;  %v13008_v13 = vpop.f32.mrf.mxu0 }
0x1948   :  { %v13009_v6 = vadd.f32 %v13008_v13, %v26939_v9 }
0x1949   :  { %v21203_v37 = vpop.f32.mrf.mxu0 }
0x194b   :  { %v13164_v51 = vpop.f32.mrf.mxu0 }
0x194c   :  { %v13165_v25 = vadd.f32 %v13164_v51, %v26939_v9 }
0x194d   :  { %v21213_v17 = vpop.f32.mrf.mxu0 }
0x194e   :  { %v13333_v17 = vsel %vm696_vm3, %v13009_v6, -inf }
0x194f   :  { %v13320_v57 = vpop.f32.mrf.mxu0 }
0x1951   :  { %v21223_v49 = vpop.f32.mrf.mxu0 }
0x19d0   :  { %v13329_v15 = vpop.xlane.xlu1 %13328 }
0x19d1   :  { %v13349_v54 = vsub.f32 %v12853_v22, %v13329_v15 }
0x19d3   :  { %v13358_v55 = vmul.f32 1.442695, %v13349_v54  ;;  %v13321_v54 = vadd.f32 %v13320_v57, %v26939_v9 }
0x19d5   :  { %21928 = vpow2.f32 %v13358_v55  ;;  %v13345_v51 = vsel %vm696_vm3, %v13321_v54, -inf }
0x19e1   :  { %v25251_v44 = vpop.f32.mrf.mxu1 }
0x19e2   :  { %v25281_v55 = vpop.eup %21928 }
0x19e3   :  { %v25253_v41 = vpop.f32.mrf.mxu1 }
0x19e8   :  { %v25255_v42 = vpop.f32.mrf.mxu1 }
0x19ea   :  { %v25257_v19 = vpop.f32.mrf.mxu1 }
0x19ec   :  { %v25259_v32 = vpop.f32.mrf.mxu1 }
0x19ee   :  { %v25261_v8 = vpop.f32.mrf.mxu1 }
0x19f0   :  { %v25263_v31 = vpop.f32.mrf.mxu1 }
0x19f2   :  { %v25265_v61 = vpop.f32.mrf.mxu1 }
0x19f4   :  { %v12774_v29 = vpop.f32.mrf.mxu1 }
0x19f5   :  { %v12775_v35 = vadd.f32 %v12774_v29, %v26939_v9 }
0x19f6   :  { %v21188_v50 = vpop.f32.mrf.mxu1 }
0x19f7   :  { %v13324_v59 = vsel %vm696_vm3, %v12775_v35, -inf  ;;  %v13339_v50 = vsel %vm696_vm3, %v13165_v25, -inf }
0x19f8   :  { %13325 = vmax.xlane.f32.xlu0 %v13324_v59  ;;  %v12930_v1 = vpop.f32.mrf.mxu1  ;;  %v13375_v59 = vsel %vm696_vm3, %v25281_v55, 0.0 }
0x19f9   :  { %v12931_v20 = vadd.f32 %v12930_v1, %v26939_v9 }
0x19fa   :  { %v21198_v43 = vpop.f32.mrf.mxu1 }
0x19fb   :  { %v13330_v14 = vsel %vm696_vm3, %v12931_v20, -inf }
0x19fc   :  { %13331 = vmax.xlane.f32.xlu0 %v13330_v14  ;;  %v13086_v26 = vpop.f32.mrf.mxu1 }
0x19fd   :  { %v13087_v22 = vadd.f32 %v13086_v26, %v26939_v9 }
0x19fe   :  { %v21208_v30 = vpop.f32.mrf.mxu1 }
0x19ff   :  { %v13336_v37 = vsel %vm696_vm3, %v13087_v22, -inf }
0x1a00   :  { %v13242_v49 = vpop.f32.mrf.mxu1  ;;  %13337 = vmax.xlane.f32.xlu1 %v13336_v37  ;;  %13334 = vmax.xlane.f32.xlu0 %v13333_v17 }
0x1a01   :  { %v13243_v15 = vadd.f32 %v13242_v49, %v26939_v9 }
0x1a02   :  { %v21218_v13 = vpop.f32.mrf.mxu1 }
0x1a03   :  { %v13342_v29 = vsel %vm696_vm3, %v13243_v15, -inf }
0x1a04   :  { %13343 = vmax.xlane.f32.xlu1 %v13342_v29  ;;  %13340 = vmax.xlane.f32.xlu0 %v13339_v50 }
0x1a08   :  { %13346 = vmax.xlane.f32.xlu0 %v13345_v51 }
0x1a0c   :  { %13376 = vadd.xlane.f32.xlu0 %v13375_v59 }
0x1a15   :  { %13412 = vrot.lane.b32.xlu1 %v24708_v34, %s22057_s0 }
0x1a19   :  { %13564 = vrot.lane.b32.xlu1 %v24712_v33, %s22057_s0 }
0x1a1d   :  { %13640 = vrot.lane.b32.xlu1 %v24720_v18, %s22057_s0 }
0x1a21   :  { %13792 = vrot.lane.b32.xlu1 %v24730_v24, %s22057_s0 }
0x1a81   :  { %v13326_v57 = vpop.xlane.xlu0 %13325 }
0x1a82   :  { %v13348_v1 = vsub.f32 %v12775_v35, %v13326_v57 }
0x1a84   :  { %v13356_v43 = vmul.f32 1.442695, %v13348_v1 }
0x1a85   :  { %v13332_v14 = vpop.xlane.xlu0 %13331 }
0x1a86   :  { %21930 = vpow2.f32 %v13356_v43  ;;  %v13350_v26 = vsub.f32 %v12931_v20, %v13332_v14 }
0x1a88   :  { %v13360_v30 = vmul.f32 1.442695, %v13350_v26 }
0x1a89   :  { %v13335_v37 = vpop.xlane.xlu0 %13334  ;;  %v13338_v17 = vpop.xlane.xlu1 %13337 }
0x1a8a   :  { %21932 = vpow2.f32 %v13360_v30  ;;  %v13351_v49 = vsub.f32 %v13009_v6, %v13335_v37  ;;  %v13352_v13 = vsub.f32 %v13087_v22, %v13338_v17 }
0x1a8c   :  { %v13362_v29 = vmul.f32 1.442695, %v13351_v49  ;;  %v13364_v50 = vmul.f32 1.442695, %v13352_v13 }
0x1a8d   :  { %v13341_v51 = vpop.xlane.xlu0 %13340  ;;  %v13344_v59 = vpop.xlane.xlu1 %13343 }
0x1a8e   :  { %21934 = vpow2.f32 %v13362_v29  ;;  %v13353_v56 = vsub.f32 %v13165_v25, %v13341_v51  ;;  %v13354_v36 = vsub.f32 %v13243_v15, %v13344_v59 }
0x1a8f   :  { %21936 = vpow2.f32 %v13364_v50 }
0x1a90   :  { %v13366_v16 = vmul.f32 1.442695, %v13353_v56  ;;  %v13368_v35 = vmul.f32 1.442695, %v13354_v36 }
0x1a91   :  { %v13347_v57 = vpop.xlane.xlu0 %13346  ;;  %v13413_v1 = vpop.permute.xlu1 %13412 }
0x1a92   :  { %21938 = vpow2.f32 %v13366_v16  ;;  %v13355_v20 = vsub.f32 %v13321_v54, %v13347_v57  ;;  %21225 = vmatpush3.msra.mxu1 %v13413_v1 }
0x1a93   :  { %v25293_v43 = vpop.eup %21930  ;;  %21940 = vpow2.f32 %v13368_v35  ;;  %21234 = vmatprep.subr.mxu1 %v26935_v21 }
0x1a94   :  { %v13370_v6 = vmul.f32 1.442695, %v13355_v20  ;;  %v13372_v22 = vsel %vm696_vm3, %v25293_v43, 0.0 }
0x1a95   :  { %13373 = vadd.xlane.f32.xlu1 %v13372_v22 }
0x1a96   :  { %21942 = vpow2.f32 %v13370_v6 }
0x1a97   :  { %v25298_v25 = vpop.eup %21932 }
0x1a98   :  { %v13378_v56 = vsel %vm696_vm3, %v25298_v25, 0.0 }
0x1a99   :  { %13379 = vadd.xlane.f32.xlu1 %v13378_v56 }
0x1a9b   :  { %v25302_v16 = vpop.eup %21934 }
0x1a9c   :  { %v25304_v36 = vpop.eup %21936  ;;  %v13381_v15 = vsel %vm696_vm3, %v25302_v16, 0.0 }
0x1a9d   :  { %13382 = vadd.xlane.f32.xlu0 %v13381_v15  ;;  %v13384_v54 = vsel %vm696_vm3, %v25304_v36, 0.0 }
0x1a9e   :  { %13385 = vadd.xlane.f32.xlu1 %v13384_v54 }
0x1a9f   :  { %v25310_v14 = vpop.eup %21938 }
0x1aa0   :  { %v25312_v26 = vpop.eup %21940  ;;  %v13387_v30 = vsel %vm696_vm3, %v25310_v14, 0.0 }
0x1aa1   :  { %13388 = vadd.xlane.f32.xlu0 %v13387_v30  ;;  %v13390_v37 = vsel %vm696_vm3, %v25312_v26, 0.0 }
0x1aa2   :  { %13391 = vadd.xlane.f32.xlu1 %v13390_v37 }
0x1aa3   :  { %v25318_v17 = vpop.eup %21942 }
0x1aa4   :  { %v13393_v49 = vsel %vm696_vm3, %v25318_v17, 0.0 }
0x1aa5   :  { %13394 = vadd.xlane.f32.xlu0 %v13393_v49 }
0x1ab3   :  { %13944 = vrot.lane.b32.xlu1 %v24736_v5, %s22057_s0 }
0x1ab7   :  { %14157 = vrot.lane.b32.xlu1 %v24744_v48, %s26940_s26  ;;  %v13565_v48 = vpop.permute.xlu1 %13564 }
0x1abb   :  { %14235 = vrot.lane.b32.xlu1 %v24754_v40, %s26940_s26  ;;  %13488 = vrot.lane.b32.xlu0 %v24714_v53, %s22057_s0  ;;  %v13641_v40 = vpop.permute.xlu1 %13640 }
0x1abf   :  { %14313 = vrot.lane.b32.xlu1 %v24757_v27, %s26940_s26  ;;  %13716 = vrot.lane.b32.xlu0 %v24724_v62, %s22057_s0  ;;  %v13793_v27 = vpop.permute.xlu1 %13792 }
0x1ac3   :  { %14391 = vrot.lane.b32.xlu1 %v24769_v52, %s26940_s26  ;;  %13868 = vrot.lane.b32.xlu0 %v24728_v12, %s22057_s0  ;;  %s26942_s0 = smov 40  }
0x1ac7   :  { %14549 = vrot.lane.b32.xlu1 %v24730_v24, %s26941_s27  ;;  %14159 = vrot.lane.b32.xlu0 %v24708_v34, %s26941_s27 }
0x1acb   :  { %14547 = vrot.lane.b32.xlu1 %v24790_v10, %s26940_s26  ;;  %14237 = vrot.lane.b32.xlu0 %v24714_v53, %s26941_s27  ;;  %v13377_v10 = vpop.xlane.xlu0 %13376 }
0x1acf   :  { %14705 = vrot.lane.b32.xlu1 %v24736_v5, %s26941_s27  ;;  %14315 = vrot.lane.b32.xlu0 %v24712_v33, %s26941_s27 }
0x1ad3   :  { %14703 = vrot.lane.b32.xlu1 %v24805_v23, %s26940_s26  ;;  %14393 = vrot.lane.b32.xlu0 %v24720_v18, %s26941_s27 }
0x1ad7   :  { %14471 = vrot.lane.b32.xlu0 %v24724_v62, %s26941_s27 }
0x1adb   :  { %14469 = vrot.lane.b32.xlu0 %v24780_v47, %s26940_s26 }
0x1adf   :  { %14627 = vrot.lane.b32.xlu0 %v24728_v12, %s26941_s27 }
0x1ae3   :  { %14625 = vrot.lane.b32.xlu0 %v24793_v45, %s26940_s26 }
0x1b1e   :  { %v13374_v52 = vpop.xlane.xlu1 %13373 }
0x1b1f   :  { %21944 = vrcp.f32 %v13374_v52 }
0x1b20   :  { %21946 = vrcp.f32 %v13377_v10 }
0x1b22   :  { %v13380_v23 = vpop.xlane.xlu1 %13379 }
0x1b23   :  { %21948 = vrcp.f32 %v13380_v23 }
0x1b26   :  { %v13383_v13 = vpop.xlane.xlu0 %13382 }
0x1b27   :  { %21950 = vrcp.f32 %v13383_v13  ;;  %v13386_v29 = vpop.xlane.xlu1 %13385 }
0x1b28   :  { %21952 = vrcp.f32 %v13386_v29 }
0x1b2a   :  { %v13389_v47 = vpop.xlane.xlu0 %13388 }
0x1b2b   :  { %21954 = vrcp.f32 %v13389_v47  ;;  %v13392_v50 = vpop.xlane.xlu1 %13391 }
0x1b2c   :  { %v21945_v51 = vpop.eup %21944  ;;  %21956 = vrcp.f32 %v13392_v50 }
0x1b2d   :  { %v13404_v45 = vmul.f32 %v21945_v51, %v25293_v43  ;;  %v21947_v35 = vpop.eup %21946  ;;  %v18939_v51 = vld [vmem:[%s26808_s7 + $0x30] sm:$0xff] }
0x1b2e   :  { %v13395_v59 = vpop.xlane.xlu0 %13394  ;;  %v13405_v6 = vmul.f32 %v21947_v35, %v25281_v55 }
0x1b2f   :  { %21958 = vrcp.f32 %v13395_v59  ;;  %v13945_v57 = vpop.permute.xlu1 %13944  ;;  %21227 = vmatmul.mubr.msk.f32.vlgmr.msra.gmra.mxu1 %vm696_vm3, %v13404_v45 }
0x1b30   :  { %v21949_v1 = vpop.eup %21948  ;;  %21235 = vmatpush3.msra.mxu1 %v13565_v48  ;;  %21236 = vmatprep.mubr.msk.f32.mxu1 %vm22048_vm4, %v26935_v21 }
0x1b31   :  { %v13406_v20 = vmul.f32 %v21949_v1, %v25298_v25  ;;  %21244 = vmatprep.subr.mxu1 %v26935_v21 }
0x1b32   :  { %v13489_v22 = vpop.permute.xlu0 %13488 }
0x1b33   :  { %v14158_v56 = vpop.permute.xlu1 %14157  ;;  %21230 = vmatpush3.msra.mxu0 %v13489_v22  ;;  %21237 = vmatmul.mubr.msk.f32.vlgmr.msra.gmra.mxu1 %vm696_vm3, %v13406_v20 }
0x1b34   :  { %v21951_v43 = vpop.eup %21950  ;;  %21232 = vmatmul.mubr.msk.f32.vlgmr.msra.gmra.mxu0 %vm696_vm3, %v13405_v6  ;;  %21239 = vmatprep.subr.mxu0 %v26935_v21 }
0x1b35   :  { %v21953_v15 = vpop.eup %21952  ;;  %v13407_v54 = vmul.f32 %v21951_v43, %v25302_v16  ;;  %21240 = vmatpush3.msra.mxu0 %v13641_v40  ;;  %21241 = vmatprep.mubr.msk.f32.mxu0 %vm22048_vm4, %v26935_v21 }
0x1b36   :  { %v13408_v25 = vmul.f32 %v21953_v15, %v25304_v36  ;;  %v13717_v55 = vpop.permute.xlu0 %13716  ;;  %21246 = vmatprep.mubr.msk.f32.mxu1 %vm22048_vm4, %v26935_v21  ;;  %21249 = vmatprep.subr.mxu0 %v26935_v21 }
0x1b37   :  { %v14236_v30 = vpop.permute.xlu1 %14235  ;;  %21245 = vmatpush3.msra.mxu1 %v13717_v55 }
0x1b38   :  { %v21955_v37 = vpop.eup %21954  ;;  %21242 = vmatmul.mubr.msk.f32.vlgmr.msra.gmra.mxu0 %vm696_vm3, %v13407_v54  ;;  %21247 = vmatmul.mubr.msk.f32.vlgmr.msra.gmra.mxu1 %vm696_vm3, %v13408_v25 }
0x1b39   :  { %v21957_v16 = vpop.eup %21956  ;;  %v13409_v49 = vmul.f32 %v21955_v37, %v25310_v14  ;;  %21250 = vmatpush3.msra.mxu0 %v13793_v27  ;;  %21254 = vmatprep.subr.mxu1 %v26935_v21 }
0x1b3a   :  { %v13410_v36 = vmul.f32 %v21957_v16, %v25312_v26  ;;  %v13869_v48 = vpop.permute.xlu0 %13868  ;;  %21251 = vmatprep.mubr.msk.f32.mxu0 %vm22048_vm4, %v26935_v21  ;;  %21256 = vmatprep.mubr.msk.f32.mxu1 %vm22048_vm4, %v26935_v21 }
0x1b3b   :  { %v14314_v40 = vpop.permute.xlu1 %14313  ;;  %21255 = vmatpush3.msra.mxu1 %v13869_v48  ;;  %21259 = vmatprep.subr.mxu0 %v26935_v21 }
0x1b3c   :  { %v21959_v52 = vpop.eup %21958  ;;  %21252 = vmatmul.mubr.msk.f32.vlgmr.msra.gmra.mxu0 %vm696_vm3, %v13409_v49  ;;  %21257 = vmatmul.mubr.msk.f32.vlgmr.msra.gmra.mxu1 %vm696_vm3, %v13410_v36 }
0x1b3d   :  { %v13411_v14 = vmul.f32 %v21959_v52, %v25318_v17  ;;  %21260 = vmatpush3.msra.mxu0 %v13945_v57  ;;  %21261 = vmatprep.mubr.msk.f32.mxu0 %vm22048_vm4, %v26935_v21 }
0x1b3e   :  { %v14160_v26 = vpop.permute.xlu0 %14159  ;;  %21278 = vmatprep.subr.mxu0 %v26935_v21  ;;  %21264 = vmatprep.subr.mxu1 %v18939_v51 }
0x1b3f   :  { %v14392_v27 = vpop.permute.xlu1 %14391  ;;  %21265 = vmatpush3.msra.mxu1 %v18939_v51 }
0x1b40   :  { %21262 = vmatmul.mubr.msk.f32.vlgmr.msra.gmra.mxu0 %vm696_vm3, %v13411_v14  ;;  %21298 = vmatprep.subr.mxu1 %v26935_v21 }
0x1b41   :  { %21279 = vmatpush3.xpose.msk.msra.mxu0 %vm696_vm3, %v14160_v26  ;;  %21280 = vmatprep.mubr.msk.f32.mxu0 %vm22048_vm4, %v26935_v21 }
0x1b42   :  { %v14238_v10 = vpop.permute.xlu0 %14237  ;;  %21283 = vmatprep.subr.mxu0 %v26935_v21 }
0x1b43   :  { %v14550_v17 = vpop.permute.xlu1 %14549 }
0x1b44   :  { %21281 = vmatmul.mubr.msk.f32.vlgmr.msra.gmra.mxu0 %vm696_vm3, %v14158_v56 }
0x1b45   :  { %21284 = vmatpush3.xpose.msk.msra.mxu0 %vm696_vm3, %v14238_v10  ;;  %21285 = vmatprep.mubr.msk.f32.mxu0 %vm22048_vm4, %v26935_v21 }
0x1b46   :  { %v14316_v23 = vpop.permute.xlu0 %14315  ;;  %21288 = vmatprep.subr.mxu0 %v26935_v21 }
0x1b47   :  { %v14548_v29 = vpop.permute.xlu1 %14547 }
0x1b48   :  { %21286 = vmatmul.mubr.msk.f32.vlgmr.msra.gmra.mxu0 %vm696_vm3, %v14236_v30 }
0x1b49   :  { %21289 = vmatpush3.xpose.msk.msra.mxu0 %vm696_vm3, %v14316_v23  ;;  %21290 = vmatprep.mubr.msk.f32.mxu0 %vm22048_vm4, %v26935_v21 }
0x1b4a   :  { %v14394_v13 = vpop.permute.xlu0 %14393  ;;  %21293 = vmatprep.subr.mxu0 %v26935_v21 }
0x1b4b   :  { %v14706_v47 = vpop.permute.xlu1 %14705 }
0x1b4c   :  { %21291 = vmatmul.mubr.msk.f32.vlgmr.msra.gmra.mxu0 %vm696_vm3, %v14314_v40 }
0x1b4d   :  { %21294 = vmatpush3.xpose.msk.msra.mxu0 %vm696_vm3, %v14394_v13  ;;  %21295 = vmatprep.mubr.msk.f32.mxu0 %vm22048_vm4, %v26935_v21 }
0x1b4e   :  { %21303 = vmatprep.subr.mxu0 %v26935_v21  ;;  %v14472_v1 = vpop.permute.xlu0 %14471 }
0x1b4f   :  { %v14704_v50 = vpop.permute.xlu1 %14703 }
0x1b50   :  { %21296 = vmatmul.mubr.msk.f32.vlgmr.msra.gmra.mxu0 %vm696_vm3, %v14392_v27 }
0x1b51   :  { %21304 = vmatpush3.xpose.msk.msra.mxu0 %vm696_vm3, %v14550_v17  ;;  %21305 = vmatprep.mubr.msk.f32.mxu0 %vm22048_vm4, %v26935_v21 }
0x1b52   :  { %21313 = vmatprep.subr.mxu0 %v26935_v21  ;;  %v14470_v54 = vpop.permute.xlu0 %14469 }
0x1b54   :  { %21306 = vmatmul.mubr.msk.f32.vlgmr.msra.gmra.mxu0 %vm696_vm3, %v14548_v29 }
0x1b55   :  { %21314 = vmatpush3.xpose.msk.msra.mxu0 %vm696_vm3, %v14706_v47  ;;  %21315 = vmatprep.mubr.msk.f32.mxu0 %vm22048_vm4, %v26935_v21 }
0x1b56   :  { %21323 = vmatprep.subr.mxu0 %v26935_v21  ;;  %v14628_v49 = vpop.permute.xlu0 %14627 }
0x1b58   :  { %21316 = vmatmul.mubr.msk.f32.vlgmr.msra.gmra.mxu0 %vm696_vm3, %v14704_v50 }
0x1b59   :  { %21325 = vmatprep.mubr.msk.f32.mxu0 %vm22048_vm4, %v26935_v21 }
0x1b5a   :  { %v14626_v26 = vpop.permute.xlu0 %14625 }
0x1bef   :  { %v13484_v45 = vpop.f32.mrf.mxu1 }
0x1bf0   :  { %21266 = vmatprep.mubr.msk.f32.mxu1 %vm696_vm3, %v13484_v45 }
0x1bf1   :  { %v21228_v59 = vpop.f32.mrf.mxu1 }
0x1bf3   :  { %v13636_v35 = vpop.f32.mrf.mxu1 }
0x1bf4   :  { %v13560_v57 = vpop.f32.mrf.mxu0 }
0x1bf5   :  { %v21238_v20 = vpop.f32.mrf.mxu1  ;;  %21267 = vmatmul.mubr.msk.f32.vlgmr.msra.gmra.mxu1 %vm696_vm3, %v13560_v57 }
0x1bf6   :  { %21299 = vmatpush3.xpose.msk.msra.mxu1 %vm696_vm3, %v14472_v1  ;;  %v21233_v6 = vpop.f32.mrf.mxu0  ;;  %21269 = vmatprep.mubr.msk.f32.mxu1 %vm696_vm3, %v13636_v35 }
0x1bf7   :  { %21308 = vmatprep.subr.mxu1 %v26935_v21 }
0x1bf8   :  { %v13712_v22 = vpop.f32.mrf.mxu0  ;;  %v13788_v56 = vpop.f32.mrf.mxu1 }
0x1bf9   :  { %21270 = vmatmul.mubr.msk.f32.gmra.mxu1 %vm696_vm3, %v13712_v22 }
0x1bfa   :  { %v21243_v43 = vpop.f32.mrf.mxu0  ;;  %v21248_v15 = vpop.f32.mrf.mxu1  ;;  %21272 = vmatprep.mubr.msk.f32.mxu1 %vm696_vm3, %v13788_v56 }
0x1bfc   :  { %v13864_v25 = vpop.f32.mrf.mxu0  ;;  %v13940_v55 = vpop.f32.mrf.mxu1 }
0x1bfd   :  { %21273 = vmatmul.mubr.msk.f32.gmra.mxu1 %vm696_vm3, %v13864_v25 }
0x1bfe   :  { %v21253_v30 = vpop.f32.mrf.mxu0  ;;  %v21258_v37 = vpop.f32.mrf.mxu1  ;;  %21275 = vmatprep.mubr.msk.f32.mxu1 %vm696_vm3, %v13940_v55 }
0x1c00   :  { %v14016_v16 = vpop.f32.mrf.mxu0 }
0x1c01   :  { %21276 = vmatmul.mubr.msk.f32.gmra.mxu1 %vm696_vm3, %v14016_v16 }
0x1c02   :  { %v21263_v36 = vpop.f32.mrf.mxu0  ;;  %21300 = vmatprep.mubr.msk.f32.mxu1 %vm22048_vm4, %v26935_v21 }
0x1c04   :  { %v14231_v48 = vpop.f32.mrf.mxu0 }
0x1c05   :  { %v25445_v40 = vadd.f32 %v14231_v48, %v26939_v9  ;;  %21301 = vmatmul.mubr.msk.f32.vlgmr.msra.gmra.mxu1 %vm696_vm3, %v14470_v54 }
0x1c06   :  { %21309 = vmatpush3.xpose.msk.msra.mxu1 %vm696_vm3, %v14628_v49  ;;  %v21282_v52 = vpop.f32.mrf.mxu0  ;;  %21310 = vmatprep.mubr.msk.f32.mxu1 %vm22048_vm4, %v26935_v21 }
0x1c07   :  { %v14781_v14 = vsel %vm696_vm3, %v25445_v40, -inf  ;;  %21318 = vmatprep.subr.mxu1 %v26935_v21 }
0x1c08   :  { %14782 = vmax.xlane.f32.xlu0 %v14781_v14  ;;  %v14309_v27 = vpop.f32.mrf.mxu0 }
0x1c09   :  { %v14310_v10 = vadd.f32 %v14309_v27, %v26939_v9  ;;  %21311 = vmatmul.mubr.msk.f32.vlgmr.msra.gmra.mxu1 %vm696_vm3, %v14626_v26 }
0x1c0a   :  { %v21287_v17 = vpop.f32.mrf.mxu0  ;;  %21320 = vmatprep.mubr.msk.f32.mxu1 %vm22048_vm4, %v26935_v21 }
0x1c0b   :  { %v14784_v23 = vsel %vm696_vm3, %v14310_v10, -inf }
0x1c0c   :  { %14785 = vmax.xlane.f32.xlu1 %v14784_v23  ;;  %v14387_v13 = vpop.f32.mrf.mxu0 }
0x1c0d   :  { %v25460_v29 = vadd.f32 %v14387_v13, %v26939_v9 }
0x1c0e   :  { %v21292_v47 = vpop.f32.mrf.mxu0 }
0x1c0f   :  { %v14787_v50 = vsel %vm696_vm3, %v25460_v29, -inf }
0x1c10   :  { %14788 = vmax.xlane.f32.xlu0 %v14787_v50  ;;  %v14465_v51 = vpop.f32.mrf.mxu0 }
0x1c11   :  { %v14466_v45 = vadd.f32 %v14465_v51, %v26939_v9  ;;  %v12667_v51 = vadd.f32 %v25215_v46, %v25251_v44 }
0x1c12   :  { %v21297_v59 = vpop.f32.mrf.mxu0 }
0x1c13   :  { %v14790_v35 = vsel %vm696_vm3, %v14466_v45, -inf }
0x1c14   :  { %14791 = vmax.xlane.f32.xlu0 %v14790_v35  ;;  %v14621_v57 = vpop.f32.mrf.mxu0  ;;  %v12662_v35 = vadd.f32 %v25219_v60, %v25253_v41  ;;  %v12687_v41 = vadd.f32 %v25233_v2, %v25259_v32 }
0x1c15   :  { %v14622_v1 = vadd.f32 %v14621_v57, %v26939_v9 }
0x1c16   :  { %v21307_v20 = vpop.f32.mrf.mxu0 }
0x1c17   :  { %v14796_v6 = vsel %vm696_vm3, %v14622_v1, -inf }
0x1c18   :  { %14797 = vmax.xlane.f32.xlu0 %v14796_v6  ;;  %v14777_v22 = vpop.f32.mrf.mxu0  ;;  %v12677_v6 = vadd.f32 %v25224_v28, %v25255_v42  ;;  %v12682_v42 = vadd.f32 %v25237_v4, %v25261_v8 }
0x1c19   :  { %v14778_v56 = vadd.f32 %v14777_v22, %v26939_v9 }
0x1c1a   :  { %v21317_v43 = vpop.f32.mrf.mxu0 }
0x1c1b   :  { %v14802_v15 = vsel %vm696_vm3, %v14778_v56, -inf }
0x1c1c   :  { %14803 = vmax.xlane.f32.xlu0 %v14802_v15 }
0x1c91   :  { %v14783_v54 = vpop.xlane.xlu0 %14782 }
0x1c92   :  { %v14805_v22 = vsub.f32 %v25445_v40, %v14783_v54 }
0x1c94   :  { %v14813_v15 = vmul.f32 1.442695, %v14805_v22 }
0x1c95   :  { %v14786_v25 = vpop.xlane.xlu1 %14785 }
0x1c96   :  { %v14806_v55 = vsub.f32 %v14310_v10, %v14786_v25 }
0x1c98   :  { %v14815_v30 = vmul.f32 1.442695, %v14806_v55  ;;  %v12697_v55 = vadd.f32 %v25242_v0, %v25263_v31 }
0x1c99   :  { %v14789_v37 = vpop.xlane.xlu0 %14788 }
0x1c9a   :  { %21960 = vpow2.f32 %v14815_v30  ;;  %v14807_v25 = vsub.f32 %v25460_v29, %v14789_v37 }
0x1c9c   :  { %v14817_v30 = vmul.f32 1.442695, %v14807_v25 }
0x1c9d   :  { %v14792_v16 = vpop.xlane.xlu0 %14791 }
0x1c9e   :  { %v14808_v49 = vsub.f32 %v14466_v45, %v14792_v16 }
0x1ca0   :  { %v14819_v36 = vmul.f32 1.442695, %v14808_v49 }
0x1ca1   :  { %v14798_v48 = vpop.xlane.xlu0 %14797 }
0x1ca2   :  { %21962 = vpow2.f32 %v14819_v36  ;;  %v14810_v52 = vsub.f32 %v14622_v1, %v14798_v48 }
0x1ca4   :  { %v14823_v14 = vmul.f32 1.442695, %v14810_v52 }
0x1ca5   :  { %v14804_v26 = vpop.xlane.xlu0 %14803 }
0x1ca6   :  { %21964 = vpow2.f32 %v14823_v14  ;;  %v14812_v27 = vsub.f32 %v14778_v56, %v14804_v26 }
0x1ca7   :  { %v25470_v17 = vpop.eup %21960 }
0x1ca8   :  { %v14827_v23 = vmul.f32 1.442695, %v14812_v27  ;;  %v14832_v13 = vsel %vm696_vm3, %v25470_v17, 0.0 }
0x1ca9   :  { %14833 = vadd.xlane.f32.xlu0 %v14832_v13 }
0x1caa   :  { %21966 = vpow2.f32 %v14827_v23 }
0x1cab   :  { %21968 = vpow2.f32 %v14813_v15 }
0x1cac   :  { %21970 = vpow2.f32 %v14817_v30 }
0x1caf   :  { %v25474_v10 = vpop.eup %21962 }
0x1cb0   :  { %v14838_v47 = vsel %vm696_vm3, %v25474_v10, 0.0 }
0x1cb1   :  { %14839 = vadd.xlane.f32.xlu0 %v14838_v47 }
0x1cb3   :  { %v25478_v50 = vpop.eup %21964 }
0x1cb4   :  { %v14844_v45 = vsel %vm696_vm3, %v25478_v50, 0.0 }
0x1cb5   :  { %v21268_v59 = vpop.f32.mrf.mxu1  ;;  %14845 = vadd.xlane.f32.xlu0 %v14844_v45 }
0x1cb6   :  { %v25486_v57 = vadd.f32 %v21268_v59, %v12667_v51 }
0x1cb7   :  { %v25488_v1 = vpop.eup %21966  ;;  %v14110_v20 = vpop.f32.mrf.mxu1 }
0x1cb8   :  { %v25493_v56 = vadd.f32 %v14110_v20, %v12662_v35  ;;  %v14850_v46 = vsel %vm696_vm3, %v25488_v1, 0.0  ;;  %v21969_v52 = vpop.eup %21968 }
0x1cb9   :  { %v21271_v44 = vpop.f32.mrf.mxu1  ;;  %14851 = vadd.xlane.f32.xlu0 %v14850_v46  ;;  %v14829_v14 = vsel %vm696_vm3, %v21969_v52, 0.0  ;;  %v21971_v26 = vpop.eup %21970 }
0x1cba   :  { %v25497_v43 = vadd.f32 %v21271_v44, %v12677_v6  ;;  %v14835_v27 = vsel %vm696_vm3, %v21971_v26, 0.0 }
0x1cbb   :  { %v25499_v60 = vpop.f32.mrf.mxu1 }
0x1cbd   :  { %v21274_v28 = vpop.f32.mrf.mxu1 }
0x1cbe   :  { %v25506_v40 = vadd.f32 %v21274_v28, %v12687_v41 }
0x1cbf   :  { %v14130_v54 = vpop.f32.mrf.mxu1 }
0x1cc0   :  { %v25510_v16 = vadd.f32 %v14130_v54, %v12682_v42 }
0x1cc1   :  { %v21277_v49 = vpop.f32.mrf.mxu1 }
0x1cc2   :  { %v25512_v36 = vadd.f32 %v21277_v49, %v12697_v55 }
0x1cc3   :  { %v25514_v2 = vpop.f32.mrf.mxu1 }
0x1cc5   :  { %v14543_v32 = vpop.f32.mrf.mxu1 }
0x1cc6   :  { %v14544_v29 = vadd.f32 %v14543_v32, %v26939_v9 }
0x1cc7   :  { %v21302_v4 = vpop.f32.mrf.mxu1 }
0x1cc8   :  { %v14793_v8 = vsel %vm696_vm3, %v14544_v29, -inf }
0x1cc9   :  { %v14699_v37 = vpop.f32.mrf.mxu1  ;;  %14794 = vmax.xlane.f32.xlu1 %v14793_v8  ;;  %v18940_v8 = vld [vmem:[%s26808_s7 + $0x38] sm:$0xff] }
0x1cca   :  { %v14700_v0 = vadd.f32 %v14699_v37, %v26939_v9 }
0x1ccb   :  { %v21312_v31 = vpop.f32.mrf.mxu1 }
0x1ccc   :  { %v14799_v48 = vsel %vm696_vm3, %v14700_v0, -inf }
0x1ccd   :  { %14800 = vmax.xlane.f32.xlu1 %v14799_v48 }
0x1ccf   :  { %14945 = vrot.lane.b32.xlu0 %v24714_v53, %s26942_s0 }
0x1cd1   :  { %14830 = vadd.xlane.f32.xlu1 %v14829_v14 }
0x1cd3   :  { %15173 = vrot.lane.b32.xlu0 %v24724_v62, %s26942_s0 }
0x1cd5   :  { %14836 = vadd.xlane.f32.xlu1 %v14835_v27 }
0x1cd7   :  { %15325 = vrot.lane.b32.xlu0 %v24728_v12, %s26942_s0 }
0x1ce6   :  { %14869 = vrot.lane.b32.xlu1 %v24708_v34, %s26942_s0 }
0x1cea   :  { %15021 = vrot.lane.b32.xlu1 %v24712_v33, %s26942_s0 }
0x1cee   :  { %15097 = vrot.lane.b32.xlu1 %v24720_v18, %s26942_s0 }
0x1cf2   :  { %15249 = vrot.lane.b32.xlu1 %v24730_v24, %s26942_s0 }
0x1d32   :  { %v14834_v53 = vpop.xlane.xlu0 %14833 }
0x1d33   :  { %21972 = vrcp.f32 %v14834_v53 }
0x1d3a   :  { %v14840_v62 = vpop.xlane.xlu0 %14839 }
0x1d3e   :  { %v14846_v9 = vpop.xlane.xlu0 %14845 }
0x1d40   :  { %v21973_v13 = vpop.eup %21972 }
0x1d41   :  { %v14862_v12 = vmul.f32 %v21973_v13, %v25470_v17 }
0x1d42   :  { %v14852_v23 = vpop.xlane.xlu0 %14851 }
0x1d46   :  { %v14946_v47 = vpop.permute.xlu0 %14945 }
0x1d47   :  { %21324 = vmatpush3.msra.mxu0 %v14946_v47  ;;  %v26943_v47 = vmov 0  }
0x1d48   :  { %21326 = vmatmul.mubr.msk.f32.vlgmr.msra.gmra.mxu0 %vm696_vm3, %v14862_v12  ;;  %21333 = vmatprep.subr.mxu0 %v26935_v21 }
0x1d49   :  { %21335 = vmatprep.mubr.msk.f32.mxu0 %vm22048_vm4, %v26935_v21 }
0x1d4a   :  { %v15174_v32 = vpop.permute.xlu0 %15173 }
0x1d4e   :  { %v15326_v48 = vpop.permute.xlu0 %15325 }
0x1d52   :  { %v14795_v34 = vpop.xlane.xlu1 %14794 }
0x1d53   :  { %v14809_v33 = vsub.f32 %v14544_v29, %v14795_v34 }
0x1d55   :  { %v14821_v18 = vmul.f32 1.442695, %v14809_v33 }
0x1d56   :  { %v14801_v24 = vpop.xlane.xlu1 %14800 }
0x1d57   :  { %21974 = vpow2.f32 %v14821_v18  ;;  %v14811_v51 = vsub.f32 %v14700_v0, %v14801_v24 }
0x1d58   :  { %21976 = vrcp.f32 %v14840_v62 }
0x1d59   :  { %v14825_v45 = vmul.f32 1.442695, %v14811_v51 }
0x1d5a   :  { %v14831_v59 = vpop.xlane.xlu1 %14830 }
0x1d5b   :  { %21978 = vpow2.f32 %v14825_v45 }
0x1d5c   :  { %21980 = vrcp.f32 %v14831_v59 }
0x1d5d   :  { %21982 = vrcp.f32 %v14846_v9 }
0x1d5e   :  { %v14837_v17 = vpop.xlane.xlu1 %14836 }
0x1d5f   :  { %21984 = vrcp.f32 %v14837_v17  ;;  %v19070_v17 = vld [vmem:[%s26809_s8 + $0x1] ss:$0 sm:$0xff] }
0x1d60   :  { %21986 = vrcp.f32 %v14852_v23 }
0x1d62   :  { %v14870_v35 = vpop.permute.xlu1 %14869 }
0x1d63   :  { %21319 = vmatpush3.msra.mxu1 %v14870_v35 }
0x1d64   :  { %v21975_v20 = vpop.eup %21974  ;;  %21328 = vmatprep.subr.mxu1 %v26935_v21 }
0x1d65   :  { %v14841_v6 = vsel %vm696_vm3, %v21975_v20, 0.0  ;;  %v21977_v46 = vpop.eup %21976 }
0x1d66   :  { %14842 = vadd.xlane.f32.xlu1 %v14841_v6  ;;  %v15022_v22 = vpop.permute.xlu1 %15021  ;;  %v14864_v25 = vmul.f32 %v21977_v46, %v25474_v10  ;;  %v12672_v6 = vadd.f32 %v25228_v7, %v25257_v19 }
0x1d68   :  { %v21979_v44 = vpop.eup %21978 }
0x1d69   :  { %v21981_v41 = vpop.eup %21980  ;;  %v14847_v15 = vsel %vm696_vm3, %v21979_v44, 0.0 }
0x1d6a   :  { %v14861_v28 = vmul.f32 %v21981_v41, %v21969_v52  ;;  %14848 = vadd.xlane.f32.xlu1 %v14847_v15  ;;  %v15098_v42 = vpop.permute.xlu1 %15097  ;;  %v21983_v54 = vpop.eup %21982  ;;  %v14151_v41 = vadd.f32 %v25499_v60, %v12672_v6 }
0x1d6b   :  { %21334 = vmatpush3.msra.mxu0 %v15098_v42  ;;  %v14866_v49 = vmul.f32 %v21983_v54, %v25478_v50 }
0x1d6c   :  { %v21985_v55 = vpop.eup %21984  ;;  %21321 = vmatmul.mubr.msk.f32.vlgmr.msra.gmra.mxu1 %vm696_vm3, %v14861_v28  ;;  %21336 = vmatmul.mubr.msk.f32.vlgmr.msra.gmra.mxu0 %vm696_vm3, %v14864_v25 }
0x1d6d   :  { %v14863_v30 = vmul.f32 %v21985_v55, %v21971_v26  ;;  %21329 = vmatpush3.msra.mxu1 %v15022_v22  ;;  %21330 = vmatprep.mubr.msk.f32.mxu1 %vm22048_vm4, %v26935_v21  ;;  %v21987_v4 = vpop.eup %21986 }
0x1d6e   :  { %21338 = vmatprep.subr.mxu1 %v26935_v21  ;;  %21343 = vmatprep.subr.mxu0 %v26935_v21  ;;  %v15250_v10 = vpop.permute.xlu1 %15249  ;;  %v14868_v37 = vmul.f32 %v21987_v4, %v25488_v1  ;;  %v12692_v4 = vadd.f32 %v25245_v39, %v25265_v61  ;;  %v26944_v61 = vld [vmem:[#allocation30_spill] sm:$0xff] }
0x1d6f   :  { %21344 = vmatpush3.msra.mxu0 %v15250_v10  ;;  %21345 = vmatprep.mubr.msk.f32.mxu0 %vm22048_vm4, %v26935_v21 }
0x1d70   :  { %21331 = vmatmul.mubr.msk.f32.vlgmr.msra.gmra.mxu1 %vm696_vm3, %v14863_v30  ;;  %21346 = vmatmul.mubr.msk.f32.vlgmr.msra.gmra.mxu0 %vm696_vm3, %v14866_v49 }
0x1d71   :  { %21339 = vmatpush3.msra.mxu1 %v15174_v32  ;;  %21353 = vmatprep.subr.mxu0 %v26935_v21 }
0x1d72   :  { %21355 = vmatprep.mubr.msk.f32.mxu0 %vm22048_vm4, %v26935_v21  ;;  %21340 = vmatprep.mubr.msk.f32.mxu1 %vm22048_vm4, %v26935_v21 }
0x1d73   :  { %21348 = vmatprep.subr.mxu1 %v26935_v21 }
0x1d7b   :  { %15401 = vrot.lane.b32.xlu1 %v24736_v5, %s26942_s0 }
0x1def   :  { %v14843_v50 = vpop.xlane.xlu1 %14842 }
0x1df0   :  { %21988 = vrcp.f32 %v14843_v50 }
0x1df3   :  { %v14849_v29 = vpop.xlane.xlu1 %14848 }
0x1df4   :  { %21990 = vrcp.f32 %v14849_v29 }
0x1df7   :  { %v15402_v0 = vpop.permute.xlu1 %15401 }
0x1df8   :  { %21354 = vmatpush3.msra.mxu0 %v15402_v0 }
0x1df9   :  { %21356 = vmatmul.mubr.msk.f32.vlgmr.msra.gmra.mxu0 %vm696_vm3, %v14868_v37  ;;  %21358 = vmatprep.subr.mxu0 %v18940_v8 }
0x1dfa   :  { %21359 = vmatpush3.msra.mxu0 %v18940_v8 }
0x1dfd   :  { %v21989_v31 = vpop.eup %21988 }
0x1dfe   :  { %v14865_v5 = vmul.f32 %v21989_v31, %v21975_v20  ;;  %v14155_v31 = vadd.f32 %v25514_v2, %v12692_v4 }
0x1e00   :  { %21341 = vmatmul.mubr.msk.f32.vlgmr.msra.gmra.mxu1 %vm696_vm3, %v14865_v5 }
0x1e01   :  { %v21991_v52 = vpop.eup %21990  ;;  %21349 = vmatpush3.msra.mxu1 %v15326_v48  ;;  %21350 = vmatprep.mubr.msk.f32.mxu1 %vm22048_vm4, %v26935_v21 }
0x1e02   :  { %v14867_v14 = vmul.f32 %v21991_v52, %v21979_v44  ;;  %21372 = vmatprep.subr.mxu1 %v18940_v8 }
0x1e04   :  { %21351 = vmatmul.mubr.msk.f32.vlgmr.msra.gmra.mxu1 %vm696_vm3, %v14867_v14 }
0x1e05   :  { %21373 = vmatpush3.msra.mxu1 %v18940_v8 }
0x1e08   :  { %v15017_v1 = vpop.f32.mrf.mxu0 }
0x1e0a   :  { %v21327_v26 = vpop.f32.mrf.mxu0 }
0x1e2c   :  { %v14941_v27 = vpop.f32.mrf.mxu1  ;;  %v15169_v53 = vpop.f32.mrf.mxu0 }
0x1e2d   :  { %21360 = vmatprep.mubr.msk.f32.mxu0 %vm696_vm3, %v14941_v27 }
0x1e2e   :  { %v21322_v62 = vpop.f32.mrf.mxu1  ;;  %21361 = vmatmul.mubr.msk.f32.vlgmr.msra.gmra.mxu0 %vm696_vm3, %v15017_v1  ;;  %v21337_v9 = vpop.f32.mrf.mxu0 }
0x1e30   :  { %v15093_v23 = vpop.f32.mrf.mxu1  ;;  %v15321_v13 = vpop.f32.mrf.mxu0 }
0x1e31   :  { %21363 = vmatprep.mubr.msk.f32.mxu0 %vm696_vm3, %v15093_v23  ;;  %v26945_v23 = vld [vmem:[#allocation20_spill] sm:$0xff] }
0x1e32   :  { %v21332_v21 = vpop.f32.mrf.mxu1  ;;  %21364 = vmatmul.mubr.msk.f32.gmra.mxu0 %vm696_vm3, %v15169_v53  ;;  %v21347_v12 = vpop.f32.mrf.mxu0 }
0x1e33   :  { %16100 = vmatprep.mubr.bf16.mxu0 %v26943_v47  ;;  %v26946_v12 = vld [vmem:[#allocation32_spill] sm:$0xff] }
0x1eb9   :  { %v15473_v34 = vpop.f32.mrf.mxu0 }
0x1ebb   :  { %v21357_v33 = vpop.f32.mrf.mxu0 }
0x1ec0   :  { %v15245_v18 = vpop.f32.mrf.mxu1 }
0x1ec1   :  { %21366 = vmatprep.mubr.msk.f32.mxu1 %vm696_vm3, %v15245_v18 }
0x1ec2   :  { %v21342_v24 = vpop.f32.mrf.mxu1  ;;  %21367 = vmatmul.mubr.msk.f32.vlgmr.msra.gmra.mxu1 %vm696_vm3, %v15321_v13 }
0x1ec4   :  { %v15397_v51 = vpop.f32.mrf.mxu1 }
0x1ec5   :  { %21369 = vmatprep.mubr.msk.f32.mxu1 %vm696_vm3, %v15397_v51 }
0x1ec6   :  { %v21352_v45 = vpop.f32.mrf.mxu1  ;;  %21370 = vmatmul.mubr.msk.f32.gmra.mxu1 %vm696_vm3, %v15473_v34 }
0x1ec7   :  { %16173 = vmatprep.mubr.bf16.mxu1 %v26943_v47 }
0x1eee   :  { %v21362_v59 = vpop.f32.mrf.mxu0 }
0x1eef   :  { %v15607_v35 = vadd.f32 %v21362_v59, %v25486_v57 }
0x1ef0   :  { %v15567_v20 = vpop.f32.mrf.mxu0 }
0x1ef1   :  { %v15623_v22 = vadd.f32 %v19070_v17, %v15607_v35  ;;  %v15606_v46 = vadd.f32 %v15567_v20, %v25493_v56 }
0x1ef2   :  { %v21365_v44 = vpop.f32.mrf.mxu0 }
0x1ef3   :  { %v15622_v15 = vadd.f32 %v19070_v17, %v15606_v46  ;;  %v15609_v25 = vadd.f32 %v21365_v44, %v25497_v43  ;;  %v15631_v28 = vadd.f32 %v15623_v22, %v24672_v58  ;;  %v19091_v22 = vld [vmem:[%s26812_s11 + $0x180] sm:$0xff]  ;;  %v19092_v44 = vld [vmem:[%s26812_s11 + $0x188] sm:$0xff] }
0x1ef4   :  { %v15577_v42 = vpop.f32.mrf.mxu0  ;;  %v19099_v46 = vld [vmem:[%s26812_s11 + $0x1c0] sm:$0xff] }
0x1ef5   :  { %v15608_v54 = vadd.f32 %v15577_v42, %v14151_v41  ;;  %v15645_v55 = vsel %vm105_vm0, %v15631_v28, 0.0  ;;  %v15630_v57 = vadd.f32 %v15622_v15, %v24670_v63  ;;  %v15625_v30 = vadd.f32 %v19070_v17, %v15609_v25  ;;  %v19100_v15 = vld [vmem:[%s26812_s11 + $0x1c8] sm:$0xff] }
0x1ef6   :  { %15646 = vadd.xlane.f32.xlu1 %v15645_v55  ;;  %v19126_v41 = vcombine.high %v19091_v22, %v19099_v46  ;;  %v19125_v25 = vcombine.low %v19091_v22, %v19099_v46  ;;  %v19128_v42 = vcombine.high %v19092_v44, %v19100_v15  ;;  %v19083_v55 = vld [vmem:[%s26812_s11 + $0x140] sm:$0xff] }
0x1ef7   :  { %v15624_v7 = vadd.f32 %v19070_v17, %v15608_v54  ;;  %v15642_v19 = vsel %vm105_vm0, %v15630_v57, 0.0  ;;  %v15633_v43 = vadd.f32 %v15625_v30, %v24680_v3  ;;  %v19075_v54 = vld [vmem:[%s26812_s11 + $0x100] sm:$0xff] }
0x1ef8   :  { %15643 = vadd.xlane.f32.xlu0 %v15642_v19  ;;  %16080 = vmatprep.subr.bf16.mxu0 %v19126_v41  ;;  %v19110_v30 = vcombine.high %v19075_v54, %v19083_v55  ;;  %v19109_v19 = vcombine.low %v19075_v54, %v19083_v55 }
0x1ef9   :  { %v15632_v56 = vadd.f32 %v15624_v7, %v24678_v38  ;;  %v15651_v58 = vsel %vm105_vm0, %v15633_v43, 0.0  ;;  %16153 = vmatprep.subr.bf16.mxu1 %v19128_v42  ;;  %16081 = vmatpush1.bf16.msra.mxu0 %v19125_v25  ;;  %v19084_v7 = vld [vmem:[%s26812_s11 + $0x148] sm:$0xff]  ;;  %v19093_v25 = vld [vmem:[%s26812_s11 + $0x190] sm:$0xff]  ;;  %v19094_v42 = vld [vmem:[%s26812_s11 + $0x198] sm:$0xff] }
0x1efa   :  { %16082 = vmatprep.subr.bf16.mxu0 %v19110_v30  ;;  %v19077_v30 = vld [vmem:[%s26812_s11 + $0x110] sm:$0xff] }
0x1efb   :  { %v15648_v60 = vsel %vm105_vm0, %v15632_v56, 0.0 }
0x1efc   :  { %15649 = vadd.xlane.f32.xlu0 %v15648_v60 }
0x1efd   :  { %16083 = vmatpush1.bf16.msra.mxu0 %v19109_v19 }
0x1f00   :  { %15652 = vadd.xlane.f32.xlu0 %v15651_v58 }
0x1f7f   :  { %v15647_v49 = vpop.xlane.xlu1 %15646 }
0x1f80   :  { %v15667_v50 = vmul.f32 0.03125, %v15647_v49 }
0x1f81   :  { %v15644_v10 = vpop.xlane.xlu0 %15643 }
0x1f82   :  { %v21368_v32 = vpop.f32.mrf.mxu1  ;;  %v15666_v0 = vmul.f32 0.03125, %v15644_v10  ;;  %v25607_v14 = vsub.f32 %v15631_v28, %v15667_v50  ;;  %v19127_v28 = vcombine.low %v19092_v44, %v19100_v15 }
0x1f83   :  { %v15611_v63 = vadd.f32 %v21368_v32, %v25506_v40 }
0x1f84   :  { %v15587_v29 = vpop.f32.mrf.mxu1  ;;  %v25611_v53 = vsub.f32 %v15630_v57, %v15666_v0  ;;  %v15683_v33 = vmul.f32 %v25607_v14, %v25607_v14  ;;  %v19076_v57 = vld [vmem:[%s26812_s11 + $0x108] sm:$0xff]  ;;  %16154 = vmatpush1.bf16.msra.mxu1 %v19127_v28  ;;  %v19101_v28 = vld [vmem:[%s26812_s11 + $0x1d0] sm:$0xff] }
0x1f85   :  { %v15627_v8 = vadd.f32 %v19070_v17, %v15611_v63  ;;  %v15610_v38 = vadd.f32 %v15587_v29, %v25510_v16  ;;  %v15650_v37 = vpop.xlane.xlu0 %15649  ;;  %v19112_v60 = vcombine.high %v19076_v57, %v19084_v7  ;;  %v19129_v54 = vcombine.low %v19093_v25, %v19101_v28 }
0x1f86   :  { %v21371_v3 = vpop.f32.mrf.mxu1  ;;  %v15668_v2 = vmul.f32 0.03125, %v15650_v37  ;;  %v15682_v51 = vmul.f32 %v25611_v53, %v25611_v53  ;;  %v15693_v45 = vsel %vm105_vm0, %v15683_v33, 0.0  ;;  %v19130_v55 = vcombine.high %v19093_v25, %v19101_v28  ;;  %v19088_v25 = vld [vmem:[%s26812_s11 + $0x168] sm:$0xff] }
0x1f87   :  { %v15626_v5 = vadd.f32 %v19070_v17, %v15610_v38  ;;  %v15613_v48 = vadd.f32 %v21371_v3, %v25512_v36  ;;  %v15635_v52 = vadd.f32 %v15627_v8, %v24690_v11  ;;  %16155 = vmatprep.subr.bf16.mxu1 %v19112_v60 }
0x1f88   :  { %v15597_v40 = vpop.f32.mrf.mxu1  ;;  %v25621_v18 = vsub.f32 %v15632_v56, %v15668_v2  ;;  %v19111_v56 = vcombine.low %v19076_v57, %v19084_v7  ;;  %v19102_v57 = vld [vmem:[%s26812_s11 + $0x1d8] sm:$0xff]  ;;  %v19085_v7 = vld [vmem:[%s26812_s11 + $0x150] sm:$0xff]  ;;  %16226 = vmatprep.subr.bf16.mxu0 %v19130_v55 }
0x1f89   :  { %v15629_v1 = vadd.f32 %v19070_v17, %v15613_v48  ;;  %v15612_v26 = vadd.f32 %v15597_v40, %v14155_v31  ;;  %v15653_v27 = vpop.xlane.xlu0 %15652  ;;  %v15657_v39 = vsel %vm105_vm0, %v15635_v52, 0.0  ;;  %v15634_v16 = vadd.f32 %v15626_v5, %v26944_v61  ;;  %v19105_v55 = vld [vmem:[%s26812_s11 + $0x1f0] sm:$0xff] }
0x1f8a   :  { %v15669_v62 = vmul.f32 0.03125, %v15653_v27  ;;  %15658 = vadd.xlane.f32.xlu0 %v15657_v39  ;;  %v15684_v35 = vmul.f32 %v25621_v18, %v25621_v18  ;;  %16156 = vmatpush1.bf16.msra.mxu1 %v19111_v56  ;;  %v19131_v19 = vcombine.low %v19094_v42, %v19102_v57  ;;  %v19132_v56 = vcombine.high %v19094_v42, %v19102_v57  ;;  %v19098_v57 = vld [vmem:[%s26812_s11 + $0x1b8] sm:$0xff] }
0x1f8b   :  { %v15628_v9 = vadd.f32 %v19070_v17, %v15612_v26  ;;  %v15654_v36 = vsel %vm105_vm0, %v15634_v16, 0.0  ;;  %v15637_v11 = vadd.f32 %v15629_v1, %v26945_v23  ;;  %v15690_v17 = vsel %vm105_vm0, %v15682_v51, 0.0 }
0x1f8c   :  { %15655 = vadd.xlane.f32.xlu1 %v15654_v36  ;;  %v25615_v13 = vsub.f32 %v15633_v43, %v15669_v62  ;;  %v15696_v6 = vsel %vm105_vm0, %v15684_v35, 0.0  ;;  %v19114_v60 = vcombine.high %v19077_v30, %v19085_v7  ;;  %16299 = vmatprep.subr.bf16.mxu1 %v19132_v56 }
0x1f8d   :  { %v15663_v21 = vsel %vm105_vm0, %v15637_v11, 0.0  ;;  %v15636_v34 = vadd.f32 %v15628_v9, %v26946_v12 }
0x1f8e   :  { %15664 = vadd.xlane.f32.xlu0 %v15663_v21  ;;  %v15685_v59 = vmul.f32 %v25615_v13, %v25615_v13 }
0x1f8f   :  { %v15660_v24 = vsel %vm105_vm0, %v15636_v34, 0.0 }
0x1f90   :  { %15661 = vadd.xlane.f32.xlu1 %v15660_v24  ;;  %v15699_v20 = vsel %vm105_vm0, %v15685_v59, 0.0 }
0x1f92   :  { %15694 = vadd.xlane.f32.xlu0 %v15693_v45 }
0x1f94   :  { %15691 = vadd.xlane.f32.xlu1 %v15690_v17  ;;  %v25689_v17 = vld [vmem:[%s26811_s10 + $0x1] ss:$0 sm:$0xff] }
0x1f96   :  { %15700 = vadd.xlane.f32.xlu0 %v15699_v20 }
0x1f98   :  { %15697 = vadd.xlane.f32.xlu1 %v15696_v6 }
0x2013   :  { %v15659_v43 = vpop.xlane.xlu0 %15658 }
0x2014   :  { %v15671_v58 = vmul.f32 0.03125, %v15659_v43  ;;  %v19078_v43 = vld [vmem:[%s26812_s11 + $0x118] sm:$0xff] }
0x2015   :  { %v15656_v49 = vpop.xlane.xlu1 %15655 }
0x2016   :  { %v25658_v10 = vsub.f32 %v15635_v52, %v15671_v58  ;;  %v15670_v32 = vmul.f32 0.03125, %v15656_v49  ;;  %v19086_v58 = vld [vmem:[%s26812_s11 + $0x158] sm:$0xff] }
0x2017   :  { %v15665_v63 = vpop.xlane.xlu0 %15664  ;;  %v19116_v49 = vcombine.high %v19078_v43, %v19086_v58 }
0x2018   :  { %v25660_v50 = vsub.f32 %v15634_v16, %v15670_v32  ;;  %v15673_v29 = vmul.f32 0.03125, %v15665_v63  ;;  %v15687_v4 = vmul.f32 %v25658_v10, %v25658_v10  ;;  %v19113_v32 = vcombine.low %v19077_v30, %v19085_v7  ;;  %v19106_v30 = vld [vmem:[%s26812_s11 + $0x1f8] sm:$0xff] }
0x2019   :  { %v15662_v8 = vpop.xlane.xlu1 %15661  ;;  %v19115_v63 = vcombine.low %v19078_v43, %v19086_v58  ;;  %v19081_v43 = vld [vmem:[%s26812_s11 + $0x130] sm:$0xff] }
0x201a   :  { %v25664_v38 = vsub.f32 %v15637_v11, %v15673_v29  ;;  %v15672_v37 = vmul.f32 0.03125, %v15662_v8  ;;  %v15705_v0 = vsel %vm105_vm0, %v15687_v4, 0.0  ;;  %v15686_v3 = vmul.f32 %v25660_v50, %v25660_v50  ;;  %v25755_v29 = vld [vmem:[%s26812_s11 + $0x1a0] sm:$0xff]  ;;  %v25765_v8 = vld [vmem:[%s26812_s11 + $0x1a8] sm:$0xff]  ;;  %v19089_v58 = vld [vmem:[%s26812_s11 + $0x170] sm:$0xff] }
0x201b   :  { %15706 = vadd.xlane.f32.xlu0 %v15705_v0  ;;  %v15695_v31 = vpop.xlane.xlu0 %15694  ;;  %v25760_v4 = vld [vmem:[%s26812_s11 + $0x1e0] sm:$0xff] }
0x201c   :  { %v25669_v5 = vsub.f32 %v15636_v34, %v15672_v37  ;;  %v15715_v48 = vmul.f32 0.03125, %v15695_v31  ;;  %v15702_v52 = vsel %vm105_vm0, %v15686_v3, 0.0  ;;  %v15689_v40 = vmul.f32 %v25664_v38, %v25664_v38  ;;  %v25681_v34 = vld [vmem:[%s26810_s9 + $0x1] ss:$0 sm:$0xff]  ;;  %v19104_v3 = vld [vmem:[%s26812_s11 + $0x1e8] sm:$0xff] }
0x201d   :  { %v15692_v1 = vpop.xlane.xlu1 %15691  ;;  %15703 = vadd.xlane.f32.xlu1 %v15702_v52  ;;  %v19133_v37 = vcombine.low %v25755_v29, %v25760_v4  ;;  %v19134_v0 = vcombine.high %v25755_v29, %v25760_v4  ;;  %v19135_v31 = vcombine.low %v25765_v8, %v19104_v3  ;;  %v19139_v29 = vcombine.low %v19098_v57, %v19106_v30 }
0x201e   :  { %v15723_v26 = vadd.f32 1e-05, %v15715_v48  ;;  %v15714_v27 = vmul.f32 0.03125, %v15692_v1  ;;  %v15711_v39 = vsel %vm105_vm0, %v15689_v40, 0.0  ;;  %v15688_v61 = vmul.f32 %v25669_v5, %v25669_v5 }
0x201f   :  { %15712 = vadd.xlane.f32.xlu0 %v15711_v39  ;;  %v15701_v16 = vpop.xlane.xlu0 %15700  ;;  %v19136_v48 = vcombine.high %v25765_v8, %v19104_v3  ;;  %v19122_v4 = vcombine.high %v19081_v43, %v19089_v58  ;;  %v21528_v3 = vld [vmem:[%s26814_s13 + $0x478] sm:$0xff]  }
0x2020   :  { %21992 = vrsqrt.f32 %v15723_v26  ;;  %v15722_v62 = vadd.f32 1e-05, %v15714_v27  ;;  %v15717_v2 = vmul.f32 0.03125, %v15701_v16  ;;  %v15708_v9 = vsel %vm105_vm0, %v15688_v61, 0.0 }
0x2021   :  { %15709 = vadd.xlane.f32.xlu1 %v15708_v9  ;;  %v15698_v36 = vpop.xlane.xlu1 %15697 }
0x2022   :  { %21994 = vrsqrt.f32 %v15722_v62  ;;  %v15725_v23 = vadd.f32 1e-05, %v15717_v2  ;;  %v15716_v11 = vmul.f32 0.03125, %v15698_v36 }
0x2024   :  { %21996 = vrsqrt.f32 %v15725_v23  ;;  %v15724_v21 = vadd.f32 1e-05, %v15716_v11 }
0x2026   :  { %21998 = vrsqrt.f32 %v15724_v21 }
0x202d   :  { %v21993_v12 = vpop.eup %21992 }
0x202e   :  { %v15739_v33 = vmul.f32 %v21993_v12, %v25607_v14 }
0x202f   :  { %v21995_v24 = vpop.eup %21994 }
0x2030   :  { %v15753_v51 = vmul.f32 %v25681_v34, %v15739_v33  ;;  %v15738_v45 = vmul.f32 %v21995_v24, %v25611_v53 }
0x2031   :  { %v21997_v59 = vpop.eup %21996 }
0x2032   :  { %v15752_v35 = vmul.f32 %v25681_v34, %v15738_v45  ;;  %v25693_v6 = vadd.f32 %v25689_v17, %v15753_v51  ;;  %v15741_v14 = vmul.f32 %v21997_v59, %v25615_v13 }
0x2033   :  { %v21999_v20 = vpop.eup %21998 }
0x2034   :  { %v25696_v22 = vadd.f32 %v25689_v17, %v15752_v35  ;;  %v15740_v46 = vmul.f32 %v21999_v20, %v25621_v18  ;;  %v15755_v41 = vmul.f32 %v25681_v34, %v15741_v14 }
0x2036   :  { %v25702_v53 = vpack.c.bf16 %v25693_v6, %v25696_v22  ;;  %v15754_v44 = vmul.f32 %v25681_v34, %v15740_v46  ;;  %v25716_v18 = vadd.f32 %v25689_v17, %v15755_v41  ;;  %v19080_v41 = vld [vmem:[%s26812_s11 + $0x128] sm:$0xff] }
0x2037   :  { %v19120_v42 = vcombine.high %v19080_v41, %v19088_v25 }
0x2038   :  { %19141 = vmatmul.mubr.msk.bf16.vlgmr.msra.gmra.mxu0 %vm105_vm0, %v25702_v53  ;;  %19145 = vmatmul.mubr.msk.bf16.vlgmr.msra.gmra.mxu1 %vm105_vm0, %v25702_v53  ;;  %v25713_v13 = vadd.f32 %v25689_v17, %v15754_v44  ;;  %26948 = vst [vmem:[#allocation26_spill] sm:$0xff] %v25716_v18 }
0x2039   :  { %16110 = vmatprep.mubr.bf16.mxu0 %v26943_v47  ;;  %16183 = vmatprep.mubr.bf16.mxu1 %v26943_v47 }
0x203a   :  { %26947 = vst [vmem:[#allocation24_spill] sm:$0xff] %v25713_v13  ;;  %v25720_v15 = vpack.c.bf16 %v25716_v18, %v25713_v13  ;;  %16227 = vmatpush1.bf16.msra.mxu0 %v19129_v54  ;;  %16300 = vmatpush1.bf16.msra.mxu1 %v19131_v19  ;;  %v19097_v54 = vld [vmem:[%s26812_s11 + $0x1b0] sm:$0xff]  ;;  %v19119_v19 = vcombine.low %v19080_v41, %v19088_v25 }
0x203b   :  { %16228 = vmatprep.subr.bf16.mxu0 %v19114_v60  ;;  %16301 = vmatprep.subr.bf16.mxu1 %v19116_v49  ;;  %v19138_v56 = vcombine.high %v19097_v54, %v19105_v55  ;;  %v19140_v60 = vcombine.high %v19098_v57, %v19106_v30  ;;  %v19082_v49 = vld [vmem:[%s26812_s11 + $0x138] sm:$0xff]  ;;  %v21548_v57 = vld [vmem:[%s26814_s13 + $0x450] sm:$0xff]  }
0x203c   :  { %v21549_v30 = vld [vmem:[%s26814_s13 + $0x4d0] sm:$0xff]  }
0x203e   :  { %16229 = vmatpush1.bf16.msra.mxu0 %v19113_v32  ;;  %16302 = vmatpush1.bf16.msra.mxu1 %v19115_v63  ;;  %v19090_v32 = vld [vmem:[%s26812_s11 + $0x178] sm:$0xff]  ;;  %v19137_v63 = vcombine.low %v19097_v54, %v19105_v55  ;;  %v26954_v54 = vld [vmem:[#allocation13_spill] sm:$0xff] }
0x203f   :  { %16372 = vmatprep.subr.bf16.mxu0 %v19134_v0  ;;  %16445 = vmatprep.subr.bf16.mxu1 %v19136_v48  ;;  %v19124_v8 = vcombine.high %v19082_v49, %v19090_v32  ;;  %v19123_v0 = vcombine.low %v19082_v49, %v19090_v32  ;;  %v21551_v49 = vld [vmem:[%s26814_s13 + $0x490] sm:$0xff]  }
0x2040   :  { %19142 = vmatmul.mubr.msk.bf16.gmra.mxu0 %vm105_vm0, %v25720_v15  ;;  %19146 = vmatmul.mubr.msk.bf16.gmra.mxu1 %vm105_vm0, %v25720_v15 }
0x2041   :  { %16120 = vmatprep.mubr.bf16.mxu0 %v26943_v47  ;;  %16193 = vmatprep.mubr.bf16.mxu1 %v26943_v47 }
0x20a4   :  { %v15707_v52 = vpop.xlane.xlu0 %15706 }
0x20a5   :  { %v15719_v40 = vmul.f32 0.03125, %v15707_v52 }
0x20a6   :  { %v15704_v1 = vpop.xlane.xlu1 %15703 }
0x20a7   :  { %v15727_v26 = vadd.f32 1e-05, %v15719_v40  ;;  %v15718_v27 = vmul.f32 0.03125, %v15704_v1 }
0x20a8   :  { %v15713_v39 = vpop.xlane.xlu0 %15712 }
0x20a9   :  { %22000 = vrsqrt.f32 %v15727_v26  ;;  %v15726_v61 = vadd.f32 1e-05, %v15718_v27  ;;  %v15721_v16 = vmul.f32 0.03125, %v15713_v39  ;;  %v21530_v26 = vld [vmem:[%s26814_s13 + $0x438] sm:$0xff]   ;;  %v21532_v39 = vld [vmem:[%s26814_s13 + $0x470] sm:$0xff]  }
0x20aa   :  { %v15710_v62 = vpop.xlane.xlu1 %15709  ;;  %v21531_v27 = vld [vmem:[%s26814_s13 + $0x4b8] sm:$0xff]  }
0x20ab   :  { %22002 = vrsqrt.f32 %v15726_v61  ;;  %v15729_v2 = vadd.f32 1e-05, %v15721_v16  ;;  %v15720_v9 = vmul.f32 0.03125, %v15710_v62  ;;  %v21533_v61 = vld [vmem:[%s26814_s13 + $0x4f0] sm:$0xff]  }
0x20ad   :  { %22004 = vrsqrt.f32 %v15729_v2  ;;  %v15728_v36 = vadd.f32 1e-05, %v15720_v9  ;;  %v21534_v2 = vld [vmem:[%s26814_s13 + $0x430] sm:$0xff]  }
0x20ae   :  { %v21535_v9 = vld [vmem:[%s26814_s13 + $0x4b0] sm:$0xff]  }
0x20af   :  { %22006 = vrsqrt.f32 %v15728_v36  ;;  %v21536_v36 = vld [vmem:[%s26814_s13 + $0x468] sm:$0xff]  }
0x20b6   :  { %v22001_v23 = vpop.eup %22000 }
0x20b7   :  { %v15743_v11 = vmul.f32 %v22001_v23, %v25658_v10 }
0x20b8   :  { %v22003_v21 = vpop.eup %22002 }
0x20b9   :  { %v15757_v12 = vmul.f32 %v25681_v34, %v15743_v11  ;;  %v15742_v33 = vmul.f32 %v22003_v21, %v25660_v50  ;;  %v21538_v21 = vld [vmem:[%s26814_s13 + $0x428] sm:$0xff]  }
0x20ba   :  { %v22005_v24 = vpop.eup %22004 }
0x20bb   :  { %v15756_v51 = vmul.f32 %v25681_v34, %v15742_v33  ;;  %v25781_v59 = vadd.f32 %v25689_v17, %v15757_v12  ;;  %v15745_v20 = vmul.f32 %v22005_v24, %v25664_v38  ;;  %v21539_v12 = vld [vmem:[%s26814_s13 + $0x4a8] sm:$0xff]   ;;  %v21540_v33 = vld [vmem:[%s26814_s13 + $0x460] sm:$0xff]  }
0x20bc   :  { %v22007_v45 = vpop.eup %22006  ;;  %v21541_v24 = vld [vmem:[%s26814_s13 + $0x4e0] sm:$0xff]  }
0x20bd   :  { %26949 = vst [vmem:[#allocation28_spill] sm:$0xff] %v25781_v59  ;;  %v25784_v35 = vadd.f32 %v25689_v17, %v15756_v51  ;;  %v15744_v14 = vmul.f32 %v22007_v45, %v25669_v5  ;;  %v15759_v46 = vmul.f32 %v25681_v34, %v15745_v20  ;;  %v21542_v20 = vld [vmem:[%s26814_s13 + $0x420] sm:$0xff]  }
0x20bf   :  { %26950 = vst [vmem:[#allocation29_spill] sm:$0xff] %v25784_v35  ;;  %v25790_v10 = vpack.c.bf16 %v25781_v59, %v25784_v35  ;;  %v15758_v50 = vmul.f32 %v25681_v34, %v15744_v14  ;;  %v25804_v5 = vadd.f32 %v25689_v17, %v15759_v46  ;;  %v19079_v34 = vld [vmem:[%s26812_s11 + $0x120] sm:$0xff]  ;;  %v25983_v46 = vld [vmem:[%s26813_s12 + $0x10] sm:$0xff] }
0x20c0   :  { %v21543_v14 = vld [vmem:[%s26814_s13 + $0x4a0] sm:$0xff]   ;;  %v25997_v55 = vrot.slane %v25983_v46, %v26954_v54 }
0x20c1   :  { %19143 = vmatmul.mubr.msk.bf16.gmra.mxu0 %vm105_vm0, %v25790_v10  ;;  %19147 = vmatmul.mubr.msk.bf16.gmra.mxu1 %vm105_vm0, %v25790_v10  ;;  %v25801_v38 = vadd.f32 %v25689_v17, %v15758_v50  ;;  %26952 = vst [vmem:[#allocation22_spill] sm:$0xff] %v25804_v5  ;;  %v19087_v17 = vld [vmem:[%s26812_s11 + $0x160] sm:$0xff]  ;;  %v21544_v50 = vld [vmem:[%s26814_s13 + $0x458] sm:$0xff]  }
0x20c2   :  { %16130 = vmatprep.mubr.bf16.mxu0 %v26943_v47  ;;  %16203 = vmatprep.mubr.bf16.mxu1 %v26943_v47  ;;  %v19118_v28 = vcombine.high %v19079_v34, %v19087_v17  ;;  %v19117_v7 = vcombine.low %v19079_v34, %v19087_v17  ;;  %v26953_v17 = vld [vmem:[#allocation5_spill] sm:$0xff] }
0x20c3   :  { %26951 = vst [vmem:[#allocation6_spill] sm:$0xff] %v25801_v38  ;;  %v25808_v44 = vpack.c.bf16 %v25804_v5, %v25801_v38  ;;  %v25987_v41 = vrot.slane %v25983_v46, %v26953_v17 }
0x20c9   :  { %19144 = vmatmul.mubr.msk.bf16.gmra.mxu0 %vm105_vm0, %v25808_v44  ;;  %19148 = vmatmul.mubr.msk.bf16.gmra.mxu1 %vm105_vm0, %v25808_v44 }
0x20ca   :  { %16246 = vmatprep.mubr.bf16.mxu0 %v26943_v47  ;;  %16319 = vmatprep.mubr.bf16.mxu1 %v26943_v47 }
0x20d1   :  { %19149 = vmatmul.mubr.msk.bf16.vlgmr.msra.gmra.mxu0 %vm105_vm0, %v25702_v53  ;;  %19153 = vmatmul.mubr.msk.bf16.vlgmr.msra.gmra.mxu1 %vm105_vm0, %v25702_v53 }
0x20d2   :  { %16256 = vmatprep.mubr.bf16.mxu0 %v26943_v47  ;;  %16329 = vmatprep.mubr.bf16.mxu1 %v26943_v47 }
0x20d3   :  { %16373 = vmatpush1.bf16.msra.mxu0 %v19133_v37  ;;  %16446 = vmatpush1.bf16.msra.mxu1 %v19135_v31  ;;  %v19121_v37 = vcombine.low %v19081_v43, %v19089_v58  ;;  %v21529_v31 = vld [vmem:[%s26814_s13 + $0x4f8] sm:$0xff]   ;;  %v21550_v58 = vld [vmem:[%s26814_s13 + $0x410] sm:$0xff]  }
0x20d4   :  { %16374 = vmatprep.subr.bf16.mxu0 %v19118_v28  ;;  %16447 = vmatprep.subr.bf16.mxu1 %v19120_v42  ;;  %v21546_v28 = vld [vmem:[%s26814_s13 + $0x418] sm:$0xff]  }
0x20d5   :  { %v21547_v42 = vld [vmem:[%s26814_s13 + $0x498] sm:$0xff]  }
0x20d7   :  { %16375 = vmatpush1.bf16.msra.mxu0 %v19117_v7  ;;  %16448 = vmatpush1.bf16.msra.mxu1 %v19119_v19 }
0x20d8   :  { %16518 = vmatprep.subr.bf16.mxu0 %v19138_v56  ;;  %16591 = vmatprep.subr.bf16.mxu1 %v19140_v60 }
0x20d9   :  { %19150 = vmatmul.mubr.msk.bf16.gmra.mxu0 %vm105_vm0, %v25720_v15  ;;  %19154 = vmatmul.mubr.msk.bf16.gmra.mxu1 %vm105_vm0, %v25720_v15 }
0x20da   :  { %16266 = vmatprep.mubr.bf16.mxu0 %v26943_v47  ;;  %16339 = vmatprep.mubr.bf16.mxu1 %v26943_v47 }
0x20e1   :  { %19151 = vmatmul.mubr.msk.bf16.gmra.mxu0 %vm105_vm0, %v25790_v10  ;;  %19155 = vmatmul.mubr.msk.bf16.gmra.mxu1 %vm105_vm0, %v25790_v10 }
0x20e2   :  { %16276 = vmatprep.mubr.bf16.mxu0 %v26943_v47  ;;  %16349 = vmatprep.mubr.bf16.mxu1 %v26943_v47 }
0x20e9   :  { %19152 = vmatmul.mubr.msk.bf16.gmra.mxu0 %vm105_vm0, %v25808_v44  ;;  %19156 = vmatmul.mubr.msk.bf16.gmra.mxu1 %vm105_vm0, %v25808_v44 }
0x20ea   :  { %16392 = vmatprep.mubr.bf16.mxu0 %v26943_v47  ;;  %16465 = vmatprep.mubr.bf16.mxu1 %v26943_v47 }
0x20f1   :  { %19157 = vmatmul.mubr.msk.bf16.vlgmr.msra.gmra.mxu0 %vm105_vm0, %v25702_v53  ;;  %19161 = vmatmul.mubr.msk.bf16.vlgmr.msra.gmra.mxu1 %vm105_vm0, %v25702_v53 }
0x20f2   :  { %16402 = vmatprep.mubr.bf16.mxu0 %v26943_v47  ;;  %16475 = vmatprep.mubr.bf16.mxu1 %v26943_v47 }
0x20f3   :  { %16519 = vmatpush1.bf16.msra.mxu0 %v19137_v63  ;;  %16592 = vmatpush1.bf16.msra.mxu1 %v19139_v29  ;;  %v21553_v63 = vld [vmem:[%s26814_s13 + $0x4c8] sm:$0xff]  }
0x20f4   :  { %16520 = vmatprep.subr.bf16.mxu0 %v19122_v4  ;;  %16593 = vmatprep.subr.bf16.mxu1 %v19124_v8  ;;  %v26955_v4 = vld [vmem:[#allocation14_spill] sm:$0xff] }
0x20f5   :  { %v26034_v8 = vrot.slane %v25983_v46, %v26955_v4 }
0x20f7   :  { %16521 = vmatpush1.bf16.msra.mxu0 %v19121_v37  ;;  %16594 = vmatpush1.bf16.msra.mxu1 %v19123_v0 }
0x20f8   :  { %20242 = vmatprep.subr.bf16.mxu0 %v21528_v3  ;;  %20282 = vmatprep.subr.bf16.mxu1 %v21529_v31  ;;  %v25900_v48 = vpop.f32.mrf.mxu0  ;;  %v25906_v52 = vpop.f32.mrf.mxu1  ;;  %v26956_v3 = vld [vmem:[#allocation15_spill] sm:$0xff] }
0x20f9   :  { %19158 = vmatmul.mubr.msk.bf16.gmra.mxu0 %vm105_vm0, %v25720_v15  ;;  %19162 = vmatmul.mubr.msk.bf16.gmra.mxu1 %vm105_vm0, %v25720_v15  ;;  %v26038_v31 = vrot.slane %v25983_v46, %v26956_v3 }
0x20fa   :  { %16412 = vmatprep.mubr.bf16.mxu0 %v26943_v47  ;;  %16485 = vmatprep.mubr.bf16.mxu1 %v26943_v47  ;;  %v16104_v40 = vpop.f32.mrf.mxu0  ;;  %v25910_v1 = vpop.f32.mrf.mxu1 }
0x20fb   :  { %v16105_v60 = vadd.f32 %v16104_v40, %v25987_v41  ;;  %v16178_v32 = vadd.f32 %v25910_v1, %v25997_v55 }
0x20fc   :  { %v25924_v16 = vpop.f32.mrf.mxu0  ;;  %v25930_v62 = vpop.f32.mrf.mxu1 }
0x20fd   :  { %v16653_v40 = vmax.f32 %v16105_v60, 0.0 }
0x20fe   :  { %v16108_v23 = vpop.f32.mrf.mxu0  ;;  %v16181_v11 = vpop.f32.mrf.mxu1 }
0x20ff   :  { %v16109_v7 = vadd.f32 %v16108_v23, %v25987_v41  ;;  %v16182_v19 = vadd.f32 %v16181_v11, %v25997_v55  ;;  %v16176_v11 = vadd.f32 %v25906_v52, %v26038_v31  ;;  %v21560_v52 = vld [vmem:[%s26814_s13 + $0x578] sm:$0xff]  }
0x2100   :  { %v25958_v51 = vpop.f32.mrf.mxu0  ;;  %v25964_v45 = vpop.f32.mrf.mxu1 }
0x2101   :  { %19159 = vmatmul.mubr.msk.bf16.gmra.mxu0 %vm105_vm0, %v25790_v10  ;;  %19163 = vmatmul.mubr.msk.bf16.gmra.mxu1 %vm105_vm0, %v25790_v10  ;;  %v16669_v29 = vmax.f32 %v16109_v7, 0.0  ;;  %v16671_v37 = vmax.f32 %v16182_v19, 0.0 }
0x2102   :  { %16422 = vmatprep.mubr.bf16.mxu0 %v26943_v47  ;;  %16495 = vmatprep.mubr.bf16.mxu1 %v26943_v47  ;;  %v16114_v34 = vpop.f32.mrf.mxu0  ;;  %v16187_v25 = vpop.f32.mrf.mxu1 }
0x2104   :  { %v26007_v56 = vpop.f32.mrf.mxu0  ;;  %v26014_v43 = vpop.f32.mrf.mxu1 }
0x2105   :  { %v16190_v19 = vadd.f32 %v26014_v43, %v26038_v31  ;;  %v16186_v43 = vadd.f32 %v25964_v45, %v26038_v31  ;;  %v21568_v45 = vld [vmem:[%s26814_s13 + $0x568] sm:$0xff]  }
0x2106   :  { %v16118_v0 = vpop.f32.mrf.mxu0  ;;  %v16191_v1 = vpop.f32.mrf.mxu1 }
0x2107   :  { %v16192_v23 = vadd.f32 %v16191_v1, %v25997_v55  ;;  %v16686_v1 = vmax.f32 %v16186_v43, 0.0 }
0x2109   :  { %19160 = vmatmul.mubr.msk.bf16.gmra.mxu0 %vm105_vm0, %v25808_v44  ;;  %19164 = vmatmul.mubr.msk.bf16.gmra.mxu1 %vm105_vm0, %v25808_v44 }
0x210a   :  { %16538 = vmatprep.mubr.bf16.mxu0 %v26943_v47  ;;  %16611 = vmatprep.mubr.bf16.mxu1 %v26943_v47 }
0x2111   :  { %19165 = vmatmul.mubr.msk.bf16.vlgmr.msra.gmra.mxu0 %vm105_vm0, %v25702_v53  ;;  %19169 = vmatmul.mubr.msk.bf16.vlgmr.msra.gmra.mxu1 %vm105_vm0, %v25702_v53  ;;  %v21537_v53 = vld [vmem:[%s26814_s13 + $0x4e8] sm:$0xff]  }
0x2112   :  { %20243 = vmatpush3.bf16.msra.mxu0 %v21530_v26  ;;  %20283 = vmatpush3.bf16.msra.mxu1 %v21531_v27  ;;  %v21554_v26 = vld [vmem:[%s26814_s13 + $0x408] sm:$0xff]   ;;  %v16655_v27 = vmax.f32 %v16178_v32, 0.0 }
0x2113   :  { %20244 = vmatprep.subr.bf16.mxu0 %v21532_v39  ;;  %20284 = vmatprep.subr.bf16.mxu1 %v21533_v61  ;;  %v21555_v39 = vld [vmem:[%s26814_s13 + $0x488] sm:$0xff]   ;;  %v16180_v61 = vadd.f32 %v25930_v62, %v26038_v31 }
0x2114   :  { %16548 = vmatprep.mubr.bf16.mxu0 %v26943_v47  ;;  %16621 = vmatprep.mubr.bf16.mxu1 %v26943_v47  ;;  %v16783_v62 = vpack.c.bf16 %v16671_v37, %v16655_v27  ;;  %v16702_v37 = vmax.f32 %v16190_v19, 0.0  ;;  %v21570_v27 = vld [vmem:[%s26814_s13 + $0x528] sm:$0xff]  }
0x2116   :  { %20245 = vmatpush3.bf16.msra.mxu0 %v21534_v2  ;;  %20285 = vmatpush3.bf16.msra.mxu1 %v21535_v9  ;;  %v16119_v2 = vadd.f32 %v16118_v0, %v25987_v41  ;;  %v16781_v9 = vpack.c.bf16 %v16669_v29, %v16653_v40  ;;  %v21566_v29 = vld [vmem:[%s26814_s13 + $0x530] sm:$0xff]   ;;  %v21569_v40 = vld [vmem:[%s26814_s13 + $0x5e8] sm:$0xff]  }
0x2117   :  { %20246 = vmatprep.subr.bf16.mxu0 %v21536_v36  ;;  %20286 = vmatprep.subr.bf16.mxu1 %v21537_v53  ;;  %v21556_v36 = vld [vmem:[%s26814_s13 + $0x440] sm:$0xff]   ;;  %v16103_v53 = vadd.f32 %v25900_v48, %v26034_v8 }
0x2118   :  { %v21558_v48 = vld [vmem:[%s26814_s13 + $0x400] sm:$0xff]  }
0x2119   :  { %19166 = vmatmul.mubr.msk.bf16.gmra.mxu0 %vm105_vm0, %v25720_v15  ;;  %19170 = vmatmul.mubr.msk.bf16.gmra.mxu1 %vm105_vm0, %v25720_v15  ;;  %v21545_v15 = vld [vmem:[%s26814_s13 + $0x4d8] sm:$0xff]  }
0x211a   :  { %20247 = vmatpush3.bf16.msra.mxu0 %v21538_v21  ;;  %20287 = vmatpush3.bf16.msra.mxu1 %v21539_v12  ;;  %v16115_v21 = vadd.f32 %v16114_v34, %v25987_v41  ;;  %v16654_v34 = vmax.f32 %v16176_v11, 0.0  ;;  %v21580_v11 = vld [vmem:[%s26814_s13 + $0x550] sm:$0xff]  }
0x211b   :  { %20248 = vmatprep.subr.bf16.mxu0 %v21540_v33  ;;  %20288 = vmatprep.subr.bf16.mxu1 %v21541_v24  ;;  %v16188_v33 = vadd.f32 %v16187_v25, %v25997_v55  ;;  %v16670_v24 = vmax.f32 %v16180_v61, 0.0  ;;  %v21572_v61 = vld [vmem:[%s26814_s13 + $0x560] sm:$0xff]  }
0x211c   :  { %16558 = vmatprep.mubr.bf16.mxu0 %v26943_v47  ;;  %16631 = vmatprep.mubr.bf16.mxu1 %v26943_v47  ;;  %v16685_v25 = vmax.f32 %v16115_v21, 0.0  ;;  %v21581_v21 = vld [vmem:[%s26814_s13 + $0x5d0] sm:$0xff]  }
0x211d   :  { %v16782_v7 = vpack.c.bf16 %v16670_v24, %v16654_v34  ;;  %v21587_v24 = vld [vmem:[%s26814_s13 + $0x588] sm:$0xff]   ;;  %v21592_v34 = vld [vmem:[%s26814_s13 + $0x678] sm:$0xff]  }
0x211e   :  { %20249 = vmatpush3.bf16.msra.mxu0 %v21542_v20  ;;  %20289 = vmatpush3.bf16.msra.mxu1 %v21543_v14  ;;  %v16701_v20 = vmax.f32 %v16119_v2, 0.0  ;;  %v21561_v14 = vld [vmem:[%s26814_s13 + $0x5f8] sm:$0xff]   ;;  %v21573_v2 = vld [vmem:[%s26814_s13 + $0x5e0] sm:$0xff]  }
0x211f   :  { %20250 = vmatprep.subr.bf16.mxu0 %v21544_v50  ;;  %20290 = vmatprep.subr.bf16.mxu1 %v21545_v15  ;;  %v16652_v50 = vmax.f32 %v16103_v53, 0.0  ;;  %v16703_v15 = vmax.f32 %v16192_v23, 0.0  ;;  %v21577_v53 = vld [vmem:[%s26814_s13 + $0x5d8] sm:$0xff]  }
0x2120   :  { %v16797_v60 = vpack.c.bf16 %v16701_v20, %v16685_v25  ;;  %v21578_v23 = vld [vmem:[%s26814_s13 + $0x518] sm:$0xff]   ;;  %v21588_v20 = vld [vmem:[%s26814_s13 + $0x540] sm:$0xff]  }
0x2121   :  { %19167 = vmatmul.mubr.msk.bf16.gmra.mxu0 %vm105_vm0, %v25790_v10  ;;  %19171 = vmatmul.mubr.msk.bf16.gmra.mxu1 %vm105_vm0, %v25790_v10  ;;  %v21552_v10 = vld [vmem:[%s26814_s13 + $0x448] sm:$0xff]   ;;  %v21593_v25 = vld [vmem:[%s26814_s13 + $0x6f8] sm:$0xff]  }
0x2122   :  { %20251 = vmatpush3.bf16.msra.mxu0 %v21546_v28  ;;  %20291 = vmatpush3.bf16.msra.mxu1 %v21547_v42  ;;  %v16687_v42 = vmax.f32 %v16188_v33, 0.0  ;;  %v21584_v33 = vld [vmem:[%s26814_s13 + $0x548] sm:$0xff]  }
0x2123   :  { %20252 = vmatprep.subr.bf16.mxu0 %v21548_v57  ;;  %20292 = vmatprep.subr.bf16.mxu1 %v21549_v30  ;;  %v16117_v57 = vadd.f32 %v26007_v56, %v26034_v8  ;;  %v21562_v30 = vld [vmem:[%s26814_s13 + $0x538] sm:$0xff]   ;;  %v21564_v56 = vld [vmem:[%s26814_s13 + $0x570] sm:$0xff]  }
0x2124   :  { %16568 = vmatprep.mubr.bf16.mxu0 %v26943_v47  ;;  %16641 = vmatprep.mubr.bf16.mxu1 %v26943_v47  ;;  %v16107_v47 = vadd.f32 %v25924_v16, %v26034_v8  ;;  %v21557_v16 = vld [vmem:[%s26814_s13 + $0x4c0] sm:$0xff]   ;;  %v16799_v32 = vpack.c.bf16 %v16703_v15, %v16687_v42 }
0x2125   :  { %v21591_v15 = vld [vmem:[%s26814_s13 + $0x580] sm:$0xff]  }
0x2126   :  { %20253 = vmatpush3.bf16.msra.mxu0 %v21550_v58  ;;  %20293 = vmatpush3.bf16.msra.mxu1 %v21551_v49  ;;  %v16668_v12 = vmax.f32 %v16107_v47, 0.0  ;;  %v21563_v58 = vld [vmem:[%s26814_s13 + $0x5b8] sm:$0xff]   ;;  %v16113_v49 = vadd.f32 %v25958_v51, %v26034_v8  ;;  %v21567_v51 = vld [vmem:[%s26814_s13 + $0x5b0] sm:$0xff]   ;;  %v16798_v47 = vpack.c.bf16 %v16702_v37, %v16686_v1 }
0x2127   :  { %20254 = vmatprep.subr.bf16.mxu0 %v21552_v10  ;;  %20294 = vmatprep.subr.bf16.mxu1 %v21553_v63  ;;  %v21565_v10 = vld [vmem:[%s26814_s13 + $0x5f0] sm:$0xff]   ;;  %v16700_v63 = vmax.f32 %v16117_v57, 0.0 }
0x2128   :  { %v16780_v28 = vpack.c.bf16 %v16668_v12, %v16652_v50  ;;  %v16684_v0 = vmax.f32 %v16113_v49, 0.0  ;;  %v21583_v12 = vld [vmem:[%s26814_s13 + $0x590] sm:$0xff]   ;;  %v21590_v50 = vld [vmem:[%s26814_s13 + $0x500] sm:$0xff]  }
0x2129   :  { %19168 = vmatmul.mubr.msk.bf16.gmra.mxu0 %vm105_vm0, %v25808_v44  ;;  %19172 = vmatmul.mubr.msk.bf16.gmra.mxu1 %vm105_vm0, %v25808_v44  ;;  %v21559_v44 = vld [vmem:[%s26814_s13 + $0x480] sm:$0xff]  }
0x212a   :  { %20255 = vmatpush3.bf16.msra.mxu0 %v21554_v26  ;;  %17909 = vmatprep.mubr.bf16.mxu0 %v16781_v9  ;;  %v16796_v26 = vpack.c.bf16 %v16700_v63, %v16684_v0  ;;  %v21574_v9 = vld [vmem:[%s26814_s13 + $0x520] sm:$0xff]  }
0x212b   :  { %20295 = vmatpush3.bf16.msra.mxu1 %v21555_v39  ;;  %17974 = vmatprep.mubr.bf16.mxu1 %v16783_v62  ;;  %v21571_v39 = vld [vmem:[%s26814_s13 + $0x5a8] sm:$0xff]   ;;  %v21579_v62 = vld [vmem:[%s26814_s13 + $0x598] sm:$0xff]  }
0x212c   :  { %20256 = vmatprep.subr.bf16.mxu0 %v21556_v36  ;;  %20296 = vmatprep.subr.bf16.mxu1 %v21557_v16  ;;  %v21575_v36 = vld [vmem:[%s26814_s13 + $0x5a0] sm:$0xff]   ;;  %v21576_v16 = vld [vmem:[%s26814_s13 + $0x558] sm:$0xff]  }
0x212e   :  { %20257 = vmatpush3.bf16.msra.mxu0 %v21558_v48  ;;  %v21582_v48 = vld [vmem:[%s26814_s13 + $0x510] sm:$0xff]  }
0x212f   :  { %20297 = vmatpush3.bf16.msra.mxu1 %v21559_v44  ;;  %20322 = vmatprep.subr.bf16.mxu0 %v21560_v52  ;;  %v21585_v44 = vld [vmem:[%s26814_s13 + $0x5c8] sm:$0xff]  }
0x2130   :  { %20362 = vmatprep.subr.bf16.mxu1 %v21561_v14  ;;  %v21586_v52 = vld [vmem:[%s26814_s13 + $0x508] sm:$0xff]   ;;  %v21589_v14 = vld [vmem:[%s26814_s13 + $0x5c0] sm:$0xff]  }
0x2131   :  { %17910 = vmatmul.mubr.bf16.vlgmr.msra.gmra.mxu0 %v16780_v28 }
0x2132   :  { %17975 = vmatmul.mubr.bf16.vlgmr.msra.gmra.mxu1 %v16782_v7  ;;  %17917 = vmatprep.mubr.bf16.mxu0 %v16797_v60 }
0x2133   :  { %17982 = vmatprep.mubr.bf16.mxu1 %v16799_v32  ;;  %20323 = vmatpush3.bf16.msra.mxu0 %v21562_v30 }
0x2134   :  { %20363 = vmatpush3.bf16.msra.mxu1 %v21563_v58  ;;  %20324 = vmatprep.subr.bf16.mxu0 %v21564_v56 }
0x2135   :  { %20364 = vmatprep.subr.bf16.mxu1 %v21565_v10 }
0x2137   :  { %20325 = vmatpush3.bf16.msra.mxu0 %v21566_v29 }
0x2138   :  { %20365 = vmatpush3.bf16.msra.mxu1 %v21567_v51  ;;  %20326 = vmatprep.subr.bf16.mxu0 %v21568_v45 }
0x2139   :  { %17918 = vmatmul.mubr.bf16.gmra.mxu0 %v16796_v26  ;;  %20366 = vmatprep.subr.bf16.mxu1 %v21569_v40 }
0x213a   :  { %17983 = vmatmul.mubr.bf16.gmra.mxu1 %v16798_v47 }
0x213b   :  { %20327 = vmatpush3.bf16.msra.mxu0 %v21570_v27 }
0x213c   :  { %20367 = vmatpush3.bf16.msra.mxu1 %v21571_v39  ;;  %20328 = vmatprep.subr.bf16.mxu0 %v21572_v61 }
0x213d   :  { %20368 = vmatprep.subr.bf16.mxu1 %v21573_v2 }
0x213f   :  { %20329 = vmatpush3.bf16.msra.mxu0 %v21574_v9 }
0x2140   :  { %20369 = vmatpush3.bf16.msra.mxu1 %v21575_v36  ;;  %20330 = vmatprep.subr.bf16.mxu0 %v21576_v16 }
0x2141   :  { %20370 = vmatprep.subr.bf16.mxu1 %v21577_v53 }
0x2143   :  { %20331 = vmatpush3.bf16.msra.mxu0 %v21578_v23 }
0x2144   :  { %20371 = vmatpush3.bf16.msra.mxu1 %v21579_v62  ;;  %20332 = vmatprep.subr.bf16.mxu0 %v21580_v11 }
0x2145   :  { %20372 = vmatprep.subr.bf16.mxu1 %v21581_v21 }
0x2147   :  { %20333 = vmatpush3.bf16.msra.mxu0 %v21582_v48 }
0x2148   :  { %20373 = vmatpush3.bf16.msra.mxu1 %v21583_v12  ;;  %20334 = vmatprep.subr.bf16.mxu0 %v21584_v33 }
0x2149   :  { %20374 = vmatprep.subr.bf16.mxu1 %v21585_v44 }
0x214b   :  { %20335 = vmatpush3.bf16.msra.mxu0 %v21586_v52 }
0x214c   :  { %20375 = vmatpush3.bf16.msra.mxu1 %v21587_v24  ;;  %20336 = vmatprep.subr.bf16.mxu0 %v21588_v20 }
0x214d   :  { %20376 = vmatprep.subr.bf16.mxu1 %v21589_v14 }
0x214f   :  { %20337 = vmatpush3.bf16.msra.mxu0 %v21590_v50 }
0x2150   :  { %20377 = vmatpush3.bf16.msra.mxu1 %v21591_v15  ;;  %20402 = vmatprep.subr.bf16.mxu0 %v21592_v34 }
0x2151   :  { %20442 = vmatprep.subr.bf16.mxu1 %v21593_v25 }
0x2181   :  { %v16122_v28 = vpop.f32.mrf.mxu0  ;;  %v16195_v42 = vpop.f32.mrf.mxu1 }
0x2182   :  { %v16123_v32 = vadd.f32 %v16122_v28, %v26034_v8  ;;  %v16196_v10 = vadd.f32 %v16195_v42, %v26038_v31  ;;  %v26957_v42 = vld [vmem:[#allocation16_spill] sm:$0xff] }
0x2183   :  { %v16124_v57 = vpop.f32.mrf.mxu0  ;;  %v16197_v30 = vpop.f32.mrf.mxu1 }
0x2184   :  { %v16125_v60 = vadd.f32 %v16124_v57, %v25987_v41  ;;  %v16198_v58 = vadd.f32 %v16197_v30, %v25997_v55  ;;  %v16716_v39 = vmax.f32 %v16123_v32, 0.0  ;;  %v16718_v61 = vmax.f32 %v16196_v10, 0.0  ;;  %v26958_v30 = vld [vmem:[#allocation17_spill] sm:$0xff] }
0x2185   :  { %v16126_v7 = vpop.f32.mrf.mxu0  ;;  %v16199_v19 = vpop.f32.mrf.mxu1  ;;  %v26202_v57 = vrot.slane %v25983_v46, %v26957_v42 }
0x2186   :  { %v16127_v56 = vadd.f32 %v16126_v7, %v26034_v8  ;;  %v16200_v49 = vadd.f32 %v16199_v19, %v26038_v31  ;;  %v16717_v1 = vmax.f32 %v16125_v60, 0.0  ;;  %v16719_v26 = vmax.f32 %v16198_v58, 0.0 }
0x2187   :  { %v16128_v43 = vpop.f32.mrf.mxu0  ;;  %v16201_v63 = vpop.f32.mrf.mxu1 }
0x2188   :  { %v16129_v29 = vadd.f32 %v16128_v43, %v25987_v41  ;;  %v16202_v37 = vadd.f32 %v16201_v63, %v25997_v55  ;;  %v16732_v51 = vmax.f32 %v16127_v56, 0.0  ;;  %v16734_v45 = vmax.f32 %v16200_v49, 0.0  ;;  %v26959_v56 = vld [vmem:[#allocation18_spill] sm:$0xff]  ;;  %v26960_v49 = vld [vmem:[#allocation19_spill] sm:$0xff] }
0x2189   :  { %v16132_v0 = vpop.f32.mrf.mxu0  ;;  %v16205_v40 = vpop.f32.mrf.mxu1  ;;  %v26214_v32 = vrot.slane %v25983_v46, %v26960_v49 }
0x218a   :  { %v16733_v27 = vmax.f32 %v16129_v29, 0.0  ;;  %v16735_v47 = vmax.f32 %v16202_v37, 0.0  ;;  %v16812_v53 = vpack.c.bf16 %v16732_v51, %v16716_v39  ;;  %v16814_v23 = vpack.c.bf16 %v16734_v45, %v16718_v61 }
0x218b   :  { %v16134_v2 = vpop.f32.mrf.mxu0  ;;  %v16207_v9 = vpop.f32.mrf.mxu1  ;;  %v16133_v44 = vadd.f32 %v16132_v0, %v26034_v8  ;;  %v16206_v52 = vadd.f32 %v16205_v40, %v26038_v31 }
0x218c   :  { %v16813_v36 = vpack.c.bf16 %v16733_v27, %v16717_v1  ;;  %v16815_v16 = vpack.c.bf16 %v16735_v47, %v16719_v26  ;;  %v16135_v62 = vadd.f32 %v16134_v2, %v25987_v41  ;;  %v16208_v48 = vadd.f32 %v16207_v9, %v25997_v55 }
0x218d   :  { %v16136_v11 = vpop.f32.mrf.mxu0  ;;  %v16209_v21 = vpop.f32.mrf.mxu1  ;;  %v16748_v58 = vmax.f32 %v16133_v44, 0.0 }
0x218e   :  { %v16137_v12 = vadd.f32 %v16136_v11, %v26034_v8  ;;  %v16210_v33 = vadd.f32 %v16209_v21, %v26038_v31  ;;  %17925 = vmatprep.mubr.bf16.mxu0 %v16813_v36  ;;  %17990 = vmatprep.mubr.bf16.mxu1 %v16815_v16  ;;  %v26206_v8 = vrot.slane %v25983_v46, %v26958_v30  ;;  %v16749_v31 = vmax.f32 %v16135_v62, 0.0 }
0x218f   :  { %v16138_v24 = vpop.f32.mrf.mxu0  ;;  %v16211_v20 = vpop.f32.mrf.mxu1  ;;  %17926 = vmatmul.mubr.bf16.gmra.mxu0 %v16812_v53  ;;  %17991 = vmatmul.mubr.bf16.gmra.mxu1 %v16814_v23  ;;  %v16751_v7 = vmax.f32 %v16208_v48, 0.0 }
0x2190   :  { %v16139_v14 = vadd.f32 %v16138_v24, %v25987_v41  ;;  %v16212_v50 = vadd.f32 %v16211_v20, %v25997_v55  ;;  %v16764_v15 = vmax.f32 %v16137_v12, 0.0  ;;  %v16766_v34 = vmax.f32 %v16210_v33, 0.0 }
0x2191   :  { %v16248_v25 = vpop.f32.mrf.mxu0  ;;  %v16321_v28 = vpop.f32.mrf.mxu1  ;;  %v16750_v41 = vmax.f32 %v16206_v52, 0.0  ;;  %v26210_v55 = vrot.slane %v25983_v46, %v26959_v56 }
0x2192   :  { %v16765_v19 = vmax.f32 %v16139_v14, 0.0  ;;  %v16767_v60 = vmax.f32 %v16212_v50, 0.0  ;;  %v16828_v37 = vpack.c.bf16 %v16764_v15, %v16748_v58  ;;  %v16322_v47 = vadd.f32 %v16321_v28, %v26214_v32  ;;  %v21594_v14 = vld [vmem:[%s26814_s13 + $0x638] sm:$0xff]  }
0x2193   :  { %v16250_v10 = vpop.f32.mrf.mxu0  ;;  %v16323_v43 = vpop.f32.mrf.mxu1  ;;  %v16830_v51 = vpack.c.bf16 %v16766_v34, %v16750_v41  ;;  %v16249_v46 = vadd.f32 %v16248_v25, %v26210_v55  ;;  %v21595_v50 = vld [vmem:[%s26814_s13 + $0x6b8] sm:$0xff]  }
0x2194   :  { %v16829_v63 = vpack.c.bf16 %v16765_v19, %v16749_v31  ;;  %v16831_v29 = vpack.c.bf16 %v16767_v60, %v16751_v7  ;;  %v16251_v45 = vadd.f32 %v16250_v10, %v26202_v57  ;;  %v16324_v1 = vadd.f32 %v16323_v43, %v26206_v8  ;;  %v21596_v7 = vld [vmem:[%s26814_s13 + $0x670] sm:$0xff]  }
0x2195   :  { %v16252_v0 = vpop.f32.mrf.mxu0  ;;  %v16325_v40 = vpop.f32.mrf.mxu1  ;;  %v16656_v12 = vmax.f32 %v16249_v46, 0.0  ;;  %v16658_v33 = vmax.f32 %v16322_v47, 0.0  ;;  %v21597_v19 = vld [vmem:[%s26814_s13 + $0x6f0] sm:$0xff]   ;;  %v21600_v46 = vld [vmem:[%s26814_s13 + $0x668] sm:$0xff]  }
0x2196   :  { %v16253_v26 = vadd.f32 %v16252_v0, %v26210_v55  ;;  %v16326_v27 = vadd.f32 %v16325_v40, %v26214_v32  ;;  %17933 = vmatprep.mubr.bf16.mxu0 %v16829_v63  ;;  %17998 = vmatprep.mubr.bf16.mxu1 %v16831_v29  ;;  %v16657_v62 = vmax.f32 %v16251_v45, 0.0  ;;  %v16659_v11 = vmax.f32 %v16324_v1, 0.0  ;;  %v21598_v45 = vld [vmem:[%s26814_s13 + $0x630] sm:$0xff]  }
0x2197   :  { %v16254_v39 = vpop.f32.mrf.mxu0  ;;  %v16327_v61 = vpop.f32.mrf.mxu1  ;;  %17934 = vmatmul.mubr.bf16.gmra.mxu0 %v16828_v37  ;;  %17999 = vmatmul.mubr.bf16.gmra.mxu1 %v16830_v51 }
0x2198   :  { %v16255_v2 = vadd.f32 %v16254_v39, %v26202_v57  ;;  %v16328_v9 = vadd.f32 %v16327_v61, %v26206_v8  ;;  %v16672_v36 = vmax.f32 %v16253_v26, 0.0  ;;  %v16674_v16 = vmax.f32 %v16326_v27, 0.0  ;;  %v21599_v27 = vld [vmem:[%s26814_s13 + $0x6b0] sm:$0xff]  }
0x2199   :  { %v16258_v53 = vpop.f32.mrf.mxu0  ;;  %v16331_v23 = vpop.f32.mrf.mxu1 }
0x219a   :  { %v16673_v21 = vmax.f32 %v16255_v2, 0.0  ;;  %v16675_v48 = vmax.f32 %v16328_v9, 0.0  ;;  %v16784_v15 = vpack.c.bf16 %v16672_v36, %v16656_v12  ;;  %v16786_v34 = vpack.c.bf16 %v16674_v16, %v16658_v33 }
0x219b   :  { %v16260_v44 = vpop.f32.mrf.mxu0  ;;  %v16333_v52 = vpop.f32.mrf.mxu1  ;;  %v16259_v10 = vadd.f32 %v16258_v53, %v26210_v55  ;;  %v16332_v43 = vadd.f32 %v16331_v23, %v26214_v32 }
0x219c   :  { %v16785_v24 = vpack.c.bf16 %v16673_v21, %v16657_v62  ;;  %v16787_v20 = vpack.c.bf16 %v16675_v48, %v16659_v11  ;;  %v16261_v25 = vadd.f32 %v16260_v44, %v26202_v57  ;;  %v16334_v60 = vadd.f32 %v16333_v52, %v26206_v8  ;;  %v21601_v11 = vld [vmem:[%s26814_s13 + $0x6e8] sm:$0xff]  }
0x219d   :  { %v16262_v28 = vpop.f32.mrf.mxu0  ;;  %v16335_v31 = vpop.f32.mrf.mxu1  ;;  %v16688_v9 = vmax.f32 %v16259_v10, 0.0  ;;  %v16690_v36 = vmax.f32 %v16332_v43, 0.0  ;;  %v21602_v21 = vld [vmem:[%s26814_s13 + $0x628] sm:$0xff]  }
0x219e   :  { %v16263_v58 = vadd.f32 %v16262_v28, %v26210_v55  ;;  %v16336_v41 = vadd.f32 %v16335_v31, %v26214_v32  ;;  %18039 = vmatprep.mubr.bf16.mxu0 %v16785_v24  ;;  %18104 = vmatprep.mubr.bf16.mxu1 %v16787_v20  ;;  %v16689_v47 = vmax.f32 %v16261_v25, 0.0  ;;  %v16691_v39 = vmax.f32 %v16334_v60, 0.0  ;;  %v21603_v24 = vld [vmem:[%s26814_s13 + $0x6a8] sm:$0xff]   ;;  %v21604_v20 = vld [vmem:[%s26814_s13 + $0x660] sm:$0xff]  }
0x219f   :  { %v16264_v63 = vpop.f32.mrf.mxu0  ;;  %v16337_v29 = vpop.f32.mrf.mxu1  ;;  %18040 = vmatmul.mubr.bf16.vlgmr.msra.gmra.mxu0 %v16784_v15  ;;  %18105 = vmatmul.mubr.bf16.vlgmr.msra.gmra.mxu1 %v16786_v34  ;;  %v21605_v34 = vld [vmem:[%s26814_s13 + $0x6e0] sm:$0xff]  }
0x21a0   :  { %v16265_v37 = vadd.f32 %v16264_v63, %v26202_v57  ;;  %v16338_v51 = vadd.f32 %v16337_v29, %v26206_v8  ;;  %20403 = vmatpush3.bf16.msra.mxu0 %v21594_v14  ;;  %20443 = vmatpush3.bf16.msra.mxu1 %v21595_v50  ;;  %v16704_v0 = vmax.f32 %v16263_v58, 0.0  ;;  %v16706_v40 = vmax.f32 %v16336_v41, 0.0  ;;  %v21606_v58 = vld [vmem:[%s26814_s13 + $0x620] sm:$0xff]  }
0x21a1   :  { %v16268_v1 = vpop.f32.mrf.mxu0  ;;  %v16341_v26 = vpop.f32.mrf.mxu1  ;;  %20404 = vmatprep.subr.bf16.mxu0 %v21596_v7  ;;  %20444 = vmatprep.subr.bf16.mxu1 %v21597_v19  ;;  %v21607_v29 = vld [vmem:[%s26814_s13 + $0x6a0] sm:$0xff]  }
0x21a2   :  { %v16705_v61 = vmax.f32 %v16265_v37, 0.0  ;;  %v16707_v2 = vmax.f32 %v16338_v51, 0.0  ;;  %v16800_v48 = vpack.c.bf16 %v16704_v0, %v16688_v9  ;;  %v16802_v12 = vpack.c.bf16 %v16706_v40, %v16690_v36  ;;  %v21608_v37 = vld [vmem:[%s26814_s13 + $0x658] sm:$0xff]  }
0x21a3   :  { %v16270_v16 = vpop.f32.mrf.mxu0  ;;  %v16343_v53 = vpop.f32.mrf.mxu1  ;;  %v16269_v25 = vadd.f32 %v16268_v1, %v26210_v55  ;;  %v16342_v28 = vadd.f32 %v16341_v26, %v26214_v32 }
0x21a4   :  { %v16801_v23 = vpack.c.bf16 %v16705_v61, %v16689_v47  ;;  %v16803_v62 = vpack.c.bf16 %v16707_v2, %v16691_v39  ;;  %20405 = vmatpush3.bf16.msra.mxu0 %v21598_v45  ;;  %v16271_v33 = vadd.f32 %v16270_v16, %v26202_v57  ;;  %20445 = vmatpush3.bf16.msra.mxu1 %v21599_v27  ;;  %v21609_v61 = vld [vmem:[%s26814_s13 + $0x6d8] sm:$0xff]  }
0x21a5   :  { %v16272_v44 = vpop.f32.mrf.mxu0  ;;  %v16345_v52 = vpop.f32.mrf.mxu1  ;;  %20406 = vmatprep.subr.bf16.mxu0 %v21600_v46  ;;  %v16344_v14 = vadd.f32 %v16343_v53, %v26206_v8  ;;  %20446 = vmatprep.subr.bf16.mxu1 %v21601_v11  ;;  %v16720_v1 = vmax.f32 %v16269_v25, 0.0  ;;  %v16722_v26 = vmax.f32 %v16342_v28, 0.0  ;;  %v21610_v2 = vld [vmem:[%s26814_s13 + $0x618] sm:$0xff]   ;;  %v21612_v11 = vld [vmem:[%s26814_s13 + $0x650] sm:$0xff]  }
0x21a6   :  { %v16273_v50 = vadd.f32 %v16272_v44, %v26210_v55  ;;  %v16346_v15 = vadd.f32 %v16345_v52, %v26214_v32  ;;  %18047 = vmatprep.mubr.bf16.mxu0 %v16801_v23  ;;  %18112 = vmatprep.mubr.bf16.mxu1 %v16803_v62  ;;  %v16721_v51 = vmax.f32 %v16271_v33, 0.0  ;;  %v21611_v62 = vld [vmem:[%s26814_s13 + $0x698] sm:$0xff]   ;;  %v21613_v33 = vld [vmem:[%s26814_s13 + $0x6d0] sm:$0xff]  }
0x21a7   :  { %v16274_v31 = vpop.f32.mrf.mxu0  ;;  %v16347_v7 = vpop.f32.mrf.mxu1  ;;  %18048 = vmatmul.mubr.bf16.gmra.mxu0 %v16800_v48  ;;  %18113 = vmatmul.mubr.bf16.gmra.mxu1 %v16802_v12  ;;  %v16723_v45 = vmax.f32 %v16344_v14, 0.0 }
0x21a8   :  { %v16275_v19 = vadd.f32 %v16274_v31, %v26202_v57  ;;  %v16348_v60 = vadd.f32 %v16347_v7, %v26206_v8  ;;  %20407 = vmatpush3.bf16.msra.mxu0 %v21602_v21  ;;  %v16736_v41 = vmax.f32 %v16273_v50, 0.0  ;;  %v16738_v10 = vmax.f32 %v16346_v15, 0.0  ;;  %20447 = vmatpush3.bf16.msra.mxu1 %v21603_v24  ;;  %v26311_v15 = vld [vmem:[%s26813_s12 + $0x18] sm:$0xff]  ;;  %v21615_v31 = vld [vmem:[%s26814_s13 + $0x690] sm:$0xff]   ;;  %v21616_v7 = vld [vmem:[%s26814_s13 + $0x648] sm:$0xff]  }
0x21a9   :  { %v16278_v43 = vpop.f32.mrf.mxu0  ;;  %v16351_v63 = vpop.f32.mrf.mxu1  ;;  %20408 = vmatprep.subr.bf16.mxu0 %v21604_v20  ;;  %20448 = vmatprep.subr.bf16.mxu1 %v21605_v34 }
0x21aa   :  { %v16737_v0 = vmax.f32 %v16275_v19, 0.0  ;;  %v16739_v40 = vmax.f32 %v16348_v60, 0.0  ;;  %v16816_v9 = vpack.c.bf16 %v16736_v41, %v16720_v1  ;;  %v16818_v36 = vpack.c.bf16 %v16738_v10, %v16722_v26 }
0x21ab   :  { %v16280_v27 = vpop.f32.mrf.mxu0  ;;  %v16353_v46 = vpop.f32.mrf.mxu1  ;;  %v16279_v44 = vadd.f32 %v16278_v43, %v26210_v55  ;;  %v16352_v52 = vadd.f32 %v16351_v63, %v26214_v32  ;;  %v26336_v43 = vrot.slane %v26311_v15, %v26956_v3 }
0x21ac   :  { %v16817_v47 = vpack.c.bf16 %v16737_v0, %v16721_v51  ;;  %v16819_v39 = vpack.c.bf16 %v16739_v40, %v16723_v45  ;;  %20409 = vmatpush3.bf16.msra.mxu0 %v21606_v58  ;;  %v16281_v16 = vadd.f32 %v16280_v27, %v26202_v57  ;;  %20449 = vmatpush3.bf16.msra.mxu1 %v21607_v29  ;;  %v21617_v45 = vld [vmem:[%s26814_s13 + $0x6c8] sm:$0xff]  }
0x21ad   :  { %v16282_v53 = vpop.f32.mrf.mxu0  ;;  %v16355_v23 = vpop.f32.mrf.mxu1  ;;  %20410 = vmatprep.subr.bf16.mxu0 %v21608_v37  ;;  %v16354_v21 = vadd.f32 %v16353_v46, %v26206_v8  ;;  %20450 = vmatprep.subr.bf16.mxu1 %v21609_v61  ;;  %v16754_v10 = vmax.f32 %v16352_v52, 0.0  ;;  %v21618_v0 = vld [vmem:[%s26814_s13 + $0x608] sm:$0xff]   ;;  %v21620_v46 = vld [vmem:[%s26814_s13 + $0x640] sm:$0xff]   ;;  %v21624_v52 = vld [vmem:[%s26814_s13 + $0x778] sm:$0xff]  }
0x21ae   :  { %v16283_v48 = vadd.f32 %v16282_v53, %v26210_v55  ;;  %v16356_v12 = vadd.f32 %v16355_v23, %v26214_v32  ;;  %18055 = vmatprep.mubr.bf16.mxu0 %v16817_v47  ;;  %18120 = vmatprep.mubr.bf16.mxu1 %v16819_v39  ;;  %v21614_v55 = vld [vmem:[%s26814_s13 + $0x610] sm:$0xff]   ;;  %v16753_v19 = vmax.f32 %v16281_v16, 0.0  ;;  %v21619_v27 = vld [vmem:[%s26814_s13 + $0x688] sm:$0xff]  }
0x21af   :  { %v16284_v24 = vpop.f32.mrf.mxu0  ;;  %v16357_v20 = vpop.f32.mrf.mxu1  ;;  %18056 = vmatmul.mubr.bf16.gmra.mxu0 %v16816_v9  ;;  %18121 = vmatmul.mubr.bf16.gmra.mxu1 %v16818_v36  ;;  %v16755_v60 = vmax.f32 %v16354_v21, 0.0 }
0x21b0   :  { %v16285_v14 = vadd.f32 %v16284_v24, %v26202_v57  ;;  %v16358_v50 = vadd.f32 %v16357_v20, %v26206_v8  ;;  %20411 = vmatpush3.bf16.msra.mxu0 %v21610_v2  ;;  %v16768_v32 = vmax.f32 %v16283_v48, 0.0  ;;  %v16770_v34 = vmax.f32 %v16356_v12, 0.0  ;;  %20451 = vmatpush3.bf16.msra.mxu1 %v21611_v62  ;;  %v21621_v2 = vld [vmem:[%s26814_s13 + $0x6c0] sm:$0xff]  }
0x21b1   :  { %v16394_v25 = vpop.f32.mrf.mxu0  ;;  %v16467_v28 = vpop.f32.mrf.mxu1  ;;  %v26318_v57 = vrot.slane %v26311_v15, %v26953_v17  ;;  %v26322_v8 = vrot.slane %v26311_v15, %v26954_v54  ;;  %20412 = vmatprep.subr.bf16.mxu0 %v21612_v11  ;;  %20452 = vmatprep.subr.bf16.mxu1 %v21613_v33  ;;  %v16752_v17 = vmax.f32 %v16279_v44, 0.0  ;;  %v26332_v54 = vrot.slane %v26311_v15, %v26955_v4  ;;  %v21622_v11 = vld [vmem:[%s26814_s13 + $0x600] sm:$0xff]  }
0x21b2   :  { %v16769_v58 = vmax.f32 %v16285_v14, 0.0  ;;  %v16771_v41 = vmax.f32 %v16358_v50, 0.0  ;;  %v16834_v4 = vpack.c.bf16 %v16770_v34, %v16754_v10  ;;  %v16468_v36 = vadd.f32 %v16467_v28, %v26336_v43  ;;  %v21623_v44 = vld [vmem:[%s26814_s13 + $0x680] sm:$0xff]   ;;  %v21625_v28 = vld [vmem:[%s26814_s13 + $0x7f8] sm:$0xff]  }
0x21b3   :  { %v16396_v63 = vpop.f32.mrf.mxu0  ;;  %v16469_v29 = vpop.f32.mrf.mxu1  ;;  %v16832_v40 = vpack.c.bf16 %v16768_v32, %v16752_v17  ;;  %v16395_v9 = vadd.f32 %v16394_v25, %v26332_v54 }
0x21b4   :  { %v16833_v37 = vpack.c.bf16 %v16769_v58, %v16753_v19  ;;  %v16835_v51 = vpack.c.bf16 %v16771_v41, %v16755_v60  ;;  %20413 = vmatpush3.bf16.msra.mxu0 %v21614_v55  ;;  %v16397_v1 = vadd.f32 %v16396_v63, %v26318_v57  ;;  %20453 = vmatpush3.bf16.msra.mxu1 %v21615_v31  ;;  %v16662_v32 = vmax.f32 %v16468_v36, 0.0  ;;  %v21626_v19 = vld [vmem:[%s26814_s13 + $0x738] sm:$0xff]   ;;  %v21632_v36 = vld [vmem:[%s26814_s13 + $0x768] sm:$0xff]  }
0x21b5   :  { %v16398_v3 = vpop.f32.mrf.mxu0  ;;  %v16471_v26 = vpop.f32.mrf.mxu1  ;;  %20414 = vmatprep.subr.bf16.mxu0 %v21616_v7  ;;  %v16470_v47 = vadd.f32 %v16469_v29, %v26322_v8  ;;  %20454 = vmatprep.subr.bf16.mxu1 %v21617_v45  ;;  %v16660_v55 = vmax.f32 %v16395_v9, 0.0  ;;  %v21627_v63 = vld [vmem:[%s26814_s13 + $0x7b8] sm:$0xff]   ;;  %v21628_v29 = vld [vmem:[%s26814_s13 + $0x770] sm:$0xff]  }
0x21b6   :  { %v16399_v39 = vadd.f32 %v16398_v3, %v26332_v54  ;;  %v16472_v61 = vadd.f32 %v16471_v26, %v26336_v43  ;;  %18063 = vmatprep.mubr.bf16.mxu0 %v16833_v37  ;;  %18128 = vmatprep.mubr.bf16.mxu1 %v16835_v51  ;;  %v16661_v24 = vmax.f32 %v16397_v1, 0.0  ;;  %v21631_v9 = vld [vmem:[%s26814_s13 + $0x7b0] sm:$0xff]  }
0x21b7   :  { %v16400_v16 = vpop.f32.mrf.mxu0  ;;  %v16473_v53 = vpop.f32.mrf.mxu1  ;;  %18064 = vmatmul.mubr.bf16.gmra.mxu0 %v16832_v40  ;;  %18129 = vmatmul.mubr.bf16.gmra.mxu1 %v16834_v4  ;;  %v16663_v20 = vmax.f32 %v16470_v47, 0.0 }
0x21b8   :  { %v16401_v23 = vadd.f32 %v16400_v16, %v26318_v57  ;;  %v16474_v62 = vadd.f32 %v16473_v53, %v26322_v8  ;;  %20415 = vmatpush3.bf16.msra.mxu0 %v21618_v0  ;;  %v16676_v21 = vmax.f32 %v16399_v39, 0.0  ;;  %v16678_v48 = vmax.f32 %v16472_v61, 0.0  ;;  %20455 = vmatpush3.bf16.msra.mxu1 %v21619_v27  ;;  %v21629_v0 = vld [vmem:[%s26814_s13 + $0x7f0] sm:$0xff]  }
0x21b9   :  { %v16404_v12 = vpop.f32.mrf.mxu0  ;;  %v16477_v33 = vpop.f32.mrf.mxu1  ;;  %20416 = vmatprep.subr.bf16.mxu0 %v21620_v46  ;;  %20456 = vmatprep.subr.bf16.mxu1 %v21621_v2  ;;  %v21630_v46 = vld [vmem:[%s26814_s13 + $0x730] sm:$0xff]  }
0x21ba   :  { %v16677_v14 = vmax.f32 %v16401_v23, 0.0  ;;  %v16679_v50 = vmax.f32 %v16474_v62, 0.0  ;;  %v16788_v60 = vpack.c.bf16 %v16676_v21, %v16660_v55  ;;  %v16790_v58 = vpack.c.bf16 %v16678_v48, %v16662_v32 }
0x21bb   :  { %v16406_v34 = vpop.f32.mrf.mxu0  ;;  %v16479_v25 = vpop.f32.mrf.mxu1  ;;  %v16405_v40 = vadd.f32 %v16404_v12, %v26332_v54  ;;  %v16478_v4 = vadd.f32 %v16477_v33, %v26336_v43  ;;  %v21633_v33 = vld [vmem:[%s26814_s13 + $0x7e8] sm:$0xff]  }
0x21bc   :  { %v16789_v31 = vpack.c.bf16 %v16677_v14, %v16661_v24  ;;  %v16791_v7 = vpack.c.bf16 %v16679_v50, %v16663_v20  ;;  %20417 = vmatpush3.bf16.msra.mxu0 %v21622_v11  ;;  %v16407_v41 = vadd.f32 %v16406_v34, %v26318_v57  ;;  %20457 = vmatpush3.bf16.msra.mxu1 %v21623_v44  ;;  %v21634_v24 = vld [vmem:[%s26814_s13 + $0x728] sm:$0xff]  }
0x21bd   :  { %v16408_v17 = vpop.f32.mrf.mxu0  ;;  %v16481_v10 = vpop.f32.mrf.mxu1  ;;  %20482 = vmatprep.subr.bf16.mxu0 %v21624_v52  ;;  %v16480_v37 = vadd.f32 %v16479_v25, %v26322_v8  ;;  %20522 = vmatprep.subr.bf16.mxu1 %v21625_v28  ;;  %v16692_v11 = vmax.f32 %v16405_v40, 0.0  ;;  %v16694_v21 = vmax.f32 %v16478_v4, 0.0  ;;  %v21635_v34 = vld [vmem:[%s26814_s13 + $0x7a8] sm:$0xff]   ;;  %v21636_v25 = vld [vmem:[%s26814_s13 + $0x760] sm:$0xff]   ;;  %v21640_v4 = vld [vmem:[%s26814_s13 + $0x758] sm:$0xff]  }
0x21be   :  { %v16409_v51 = vadd.f32 %v16408_v17, %v26332_v54  ;;  %v16482_v45 = vadd.f32 %v16481_v10, %v26336_v43  ;;  %18169 = vmatprep.mubr.bf16.mxu0 %v16789_v31  ;;  %18234 = vmatprep.mubr.bf16.mxu1 %v16791_v7  ;;  %v16693_v16 = vmax.f32 %v16407_v41, 0.0  ;;  %v21639_v40 = vld [vmem:[%s26814_s13 + $0x7a0] sm:$0xff]  }
0x21bf   :  { %v16410_v1 = vpop.f32.mrf.mxu0  ;;  %v16483_v3 = vpop.f32.mrf.mxu1  ;;  %18170 = vmatmul.mubr.bf16.vlgmr.msra.gmra.mxu0 %v16788_v60  ;;  %18235 = vmatmul.mubr.bf16.vlgmr.msra.gmra.mxu1 %v16790_v58  ;;  %v16695_v53 = vmax.f32 %v16480_v37, 0.0 }
0x21c0   :  { %v16411_v26 = vadd.f32 %v16410_v1, %v26318_v57  ;;  %v16484_v27 = vadd.f32 %v16483_v3, %v26322_v8  ;;  %20483 = vmatpush3.bf16.msra.mxu0 %v21626_v19  ;;  %v16708_v47 = vmax.f32 %v16409_v51, 0.0  ;;  %v16710_v39 = vmax.f32 %v16482_v45, 0.0  ;;  %20523 = vmatpush3.bf16.msra.mxu1 %v21627_v63  ;;  %v21637_v19 = vld [vmem:[%s26814_s13 + $0x7e0] sm:$0xff]  }
0x21c1   :  { %v16414_v61 = vpop.f32.mrf.mxu0  ;;  %v16487_v2 = vpop.f32.mrf.mxu1  ;;  %20484 = vmatprep.subr.bf16.mxu0 %v21628_v29  ;;  %20524 = vmatprep.subr.bf16.mxu1 %v21629_v0  ;;  %v21638_v29 = vld [vmem:[%s26814_s13 + $0x720] sm:$0xff]  }
0x21c2   :  { %v16709_v23 = vmax.f32 %v16411_v26, 0.0  ;;  %v16711_v62 = vmax.f32 %v16484_v27, 0.0  ;;  %v16804_v20 = vpack.c.bf16 %v16708_v47, %v16692_v11  ;;  %v16806_v14 = vpack.c.bf16 %v16710_v39, %v16694_v21 }
0x21c3   :  { %v16416_v48 = vpop.f32.mrf.mxu0  ;;  %v16489_v12 = vpop.f32.mrf.mxu1  ;;  %v16415_v60 = vadd.f32 %v16414_v61, %v26332_v54  ;;  %v16488_v58 = vadd.f32 %v16487_v2, %v26336_v43  ;;  %v21641_v2 = vld [vmem:[%s26814_s13 + $0x7d8] sm:$0xff]  }
0x21c4   :  { %v16805_v44 = vpack.c.bf16 %v16709_v23, %v16693_v16  ;;  %v16807_v52 = vpack.c.bf16 %v16711_v62, %v16695_v53  ;;  %20485 = vmatpush3.bf16.msra.mxu0 %v21630_v46  ;;  %v16417_v50 = vadd.f32 %v16416_v48, %v26318_v57  ;;  %20525 = vmatpush3.bf16.msra.mxu1 %v21631_v9  ;;  %v21642_v16 = vld [vmem:[%s26814_s13 + $0x718] sm:$0xff]  }
0x21c5   :  { %v16418_v55 = vpop.f32.mrf.mxu0  ;;  %v16491_v32 = vpop.f32.mrf.mxu1  ;;  %20486 = vmatprep.subr.bf16.mxu0 %v21632_v36  ;;  %v16490_v28 = vadd.f32 %v16489_v12, %v26322_v8  ;;  %20526 = vmatprep.subr.bf16.mxu1 %v21633_v33  ;;  %v16724_v46 = vmax.f32 %v16415_v60, 0.0  ;;  %v16726_v47 = vmax.f32 %v16488_v58, 0.0  ;;  %v21643_v48 = vld [vmem:[%s26814_s13 + $0x798] sm:$0xff]   ;;  %v21644_v12 = vld [vmem:[%s26814_s13 + $0x750] sm:$0xff]  }
0x21c6   :  { %v16419_v31 = vadd.f32 %v16418_v55, %v26332_v54  ;;  %v16492_v7 = vadd.f32 %v16491_v32, %v26336_v43  ;;  %18177 = vmatprep.mubr.bf16.mxu0 %v16805_v44  ;;  %18242 = vmatprep.mubr.bf16.mxu1 %v16807_v52  ;;  %v16725_v1 = vmax.f32 %v16417_v50, 0.0 }
0x21c7   :  { %v16420_v41 = vpop.f32.mrf.mxu0  ;;  %v16493_v17 = vpop.f32.mrf.mxu1  ;;  %18178 = vmatmul.mubr.bf16.gmra.mxu0 %v16804_v20  ;;  %18243 = vmatmul.mubr.bf16.gmra.mxu1 %v16806_v14  ;;  %v16727_v3 = vmax.f32 %v16490_v28, 0.0 }
0x21c8   :  { %v16421_v10 = vadd.f32 %v16420_v41, %v26318_v57  ;;  %v16494_v63 = vadd.f32 %v16493_v17, %v26322_v8  ;;  %20487 = vmatpush3.bf16.msra.mxu0 %v21634_v24  ;;  %v16740_v37 = vmax.f32 %v16419_v31, 0.0  ;;  %v16742_v51 = vmax.f32 %v16492_v7, 0.0  ;;  %20527 = vmatpush3.bf16.msra.mxu1 %v21635_v34  ;;  %v21645_v24 = vld [vmem:[%s26814_s13 + $0x7d0] sm:$0xff]  }
0x21c9   :  { %v16424_v45 = vpop.f32.mrf.mxu0  ;;  %v16497_v0 = vpop.f32.mrf.mxu1  ;;  %20488 = vmatprep.subr.bf16.mxu0 %v21636_v25  ;;  %20528 = vmatprep.subr.bf16.mxu1 %v21637_v19  ;;  %v21646_v25 = vld [vmem:[%s26814_s13 + $0x710] sm:$0xff]   ;;  %v21648_v19 = vld [vmem:[%s26814_s13 + $0x748] sm:$0xff]  }
0x21ca   :  { %v16741_v26 = vmax.f32 %v16421_v10, 0.0  ;;  %v16743_v27 = vmax.f32 %v16494_v63, 0.0  ;;  %v16820_v53 = vpack.c.bf16 %v16740_v37, %v16724_v46  ;;  %v16822_v23 = vpack.c.bf16 %v16742_v51, %v16726_v47  ;;  %v21649_v51 = vld [vmem:[%s26814_s13 + $0x7c8] sm:$0xff]  }
0x21cb   :  { %v16426_v39 = vpop.f32.mrf.mxu0  ;;  %v16499_v61 = vpop.f32.mrf.mxu1  ;;  %v16425_v20 = vadd.f32 %v16424_v45, %v26332_v54  ;;  %v16498_v14 = vadd.f32 %v16497_v0, %v26336_v43  ;;  %v26480_v63 = vrot.slane %v26311_v15, %v26960_v49 }
0x21cc   :  { %v16821_v9 = vpack.c.bf16 %v16741_v26, %v16725_v1  ;;  %v16823_v36 = vpack.c.bf16 %v16743_v27, %v16727_v3  ;;  %20489 = vmatpush3.bf16.msra.mxu0 %v21638_v29  ;;  %v16427_v62 = vadd.f32 %v16426_v39, %v26318_v57  ;;  %20529 = vmatpush3.bf16.msra.mxu1 %v21639_v40  ;;  %v21650_v40 = vld [vmem:[%s26814_s13 + $0x708] sm:$0xff]   ;;  %v21652_v26 = vld [vmem:[%s26814_s13 + $0x740] sm:$0xff]  }
0x21cd   :  { %v16428_v11 = vpop.f32.mrf.mxu0  ;;  %v16501_v21 = vpop.f32.mrf.mxu1  ;;  %20490 = vmatprep.subr.bf16.mxu0 %v21640_v4  ;;  %v16500_v33 = vadd.f32 %v16499_v61, %v26322_v8  ;;  %20530 = vmatprep.subr.bf16.mxu1 %v21641_v2  ;;  %v16758_v10 = vmax.f32 %v16498_v14, 0.0  ;;  %v21651_v3 = vld [vmem:[%s26814_s13 + $0x788] sm:$0xff]   ;;  %v21653_v39 = vld [vmem:[%s26814_s13 + $0x7c0] sm:$0xff]  }
0x21ce   :  { %v16429_v44 = vadd.f32 %v16428_v11, %v26332_v54  ;;  %v16502_v52 = vadd.f32 %v16501_v21, %v26336_v43  ;;  %18185 = vmatprep.mubr.bf16.mxu0 %v16821_v9  ;;  %18250 = vmatprep.mubr.bf16.mxu1 %v16823_v36  ;;  %v26462_v43 = vrot.slane %v26311_v15, %v26957_v42  ;;  %v16757_v60 = vmax.f32 %v16427_v62, 0.0 }
0x21cf   :  { %v16430_v50 = vpop.f32.mrf.mxu0  ;;  %v16503_v55 = vpop.f32.mrf.mxu1  ;;  %18186 = vmatmul.mubr.bf16.gmra.mxu0 %v16820_v53  ;;  %18251 = vmatmul.mubr.bf16.gmra.mxu1 %v16822_v23  ;;  %v16759_v58 = vmax.f32 %v16500_v33, 0.0  ;;  %v16756_v42 = vmax.f32 %v16425_v20, 0.0  ;;  %v21654_v23 = vld [vmem:[%s26814_s13 + $0x700] sm:$0xff]  }
0x21d0   :  { %v16431_v32 = vadd.f32 %v16430_v50, %v26318_v57  ;;  %v16504_v34 = vadd.f32 %v16503_v55, %v26322_v8  ;;  %20491 = vmatpush3.bf16.msra.mxu0 %v21642_v16  ;;  %v16772_v28 = vmax.f32 %v16429_v44, 0.0  ;;  %v16774_v31 = vmax.f32 %v16502_v52, 0.0  ;;  %20531 = vmatpush3.bf16.msra.mxu1 %v21643_v48  ;;  %v21647_v8 = vld [vmem:[%s26814_s13 + $0x790] sm:$0xff]  }
0x21d1   :  { %v16540_v54 = vpop.f32.mrf.mxu0  ;;  %v16613_v7 = vpop.f32.mrf.mxu1  ;;  %v26466_v57 = vrot.slane %v26311_v15, %v26958_v30  ;;  %20492 = vmatprep.subr.bf16.mxu0 %v21644_v12  ;;  %20532 = vmatprep.subr.bf16.mxu1 %v21645_v24  ;;  %v26476_v30 = vrot.slane %v26311_v15, %v26959_v56  ;;  %v21655_v12 = vld [vmem:[%s26814_s13 + $0x780] sm:$0xff]  }
0x21d2   :  { %v16773_v41 = vmax.f32 %v16431_v32, 0.0  ;;  %v16775_v17 = vmax.f32 %v16504_v34, 0.0  ;;  %v16836_v4 = vpack.c.bf16 %v16772_v28, %v16756_v42  ;;  %v16838_v56 = vpack.c.bf16 %v16774_v31, %v16758_v10 }
0x21d3   :  { %v16542_v29 = vpop.f32.mrf.mxu0  ;;  %v16615_v37 = vpop.f32.mrf.mxu1  ;;  %v16541_v61 = vadd.f32 %v16540_v54, %v26476_v30  ;;  %v16614_v2 = vadd.f32 %v16613_v7, %v26480_v63 }
0x21d4   :  { %v16837_v45 = vpack.c.bf16 %v16773_v41, %v16757_v60  ;;  %v16839_v0 = vpack.c.bf16 %v16775_v17, %v16759_v58  ;;  %20493 = vmatpush3.bf16.msra.mxu0 %v21646_v25  ;;  %v16543_v1 = vadd.f32 %v16542_v29, %v26462_v43  ;;  %20533 = vmatpush3.bf16.msra.mxu1 %v21647_v8 }
0x21d5   :  { %v16544_v49 = vpop.f32.mrf.mxu0  ;;  %v16617_v15 = vpop.f32.mrf.mxu1  ;;  %20494 = vmatprep.subr.bf16.mxu0 %v21648_v19  ;;  %v16616_v27 = vadd.f32 %v16615_v37, %v26466_v57  ;;  %20534 = vmatprep.subr.bf16.mxu1 %v21649_v51  ;;  %v16664_v20 = vmax.f32 %v16541_v61, 0.0  ;;  %v16666_v14 = vmax.f32 %v16614_v2, 0.0 }
0x21d6   :  { %v16545_v46 = vadd.f32 %v16544_v49, %v26476_v30  ;;  %v16618_v47 = vadd.f32 %v16617_v15, %v26480_v63  ;;  %18193 = vmatprep.mubr.bf16.mxu0 %v16837_v45  ;;  %18258 = vmatprep.mubr.bf16.mxu1 %v16839_v0  ;;  %v16665_v33 = vmax.f32 %v16543_v1, 0.0 }
0x21d7   :  { %v16546_v9 = vpop.f32.mrf.mxu0  ;;  %v16619_v36 = vpop.f32.mrf.mxu1  ;;  %18194 = vmatmul.mubr.bf16.gmra.mxu0 %v16836_v4  ;;  %18259 = vmatmul.mubr.bf16.gmra.mxu1 %v16838_v56  ;;  %v16667_v44 = vmax.f32 %v16616_v27, 0.0 }
0x21d8   :  { %v16547_v16 = vadd.f32 %v16546_v9, %v26462_v43  ;;  %v16620_v53 = vadd.f32 %v16619_v36, %v26466_v57  ;;  %20495 = vmatpush3.bf16.msra.mxu0 %v21650_v40  ;;  %v16680_v62 = vmax.f32 %v16545_v46, 0.0  ;;  %v16682_v11 = vmax.f32 %v16618_v47, 0.0  ;;  %20535 = vmatpush3.bf16.msra.mxu1 %v21651_v3 }
0x21d9   :  { %v16550_v21 = vpop.f32.mrf.mxu0  ;;  %v16623_v48 = vpop.f32.mrf.mxu1  ;;  %20496 = vmatprep.subr.bf16.mxu0 %v21652_v26  ;;  %20536 = vmatprep.subr.bf16.mxu1 %v21653_v39 }
0x21da   :  { %v16681_v52 = vmax.f32 %v16547_v16, 0.0  ;;  %v16683_v24 = vmax.f32 %v16620_v53, 0.0  ;;  %v16792_v25 = vpack.c.bf16 %v16680_v62, %v16664_v20  ;;  %v16794_v28 = vpack.c.bf16 %v16682_v11, %v16666_v14 }
0x21db   :  { %v16552_v50 = vpop.f32.mrf.mxu0  ;;  %v16625_v55 = vpop.f32.mrf.mxu1  ;;  %v16551_v58 = vadd.f32 %v16550_v21, %v26476_v30  ;;  %v16624_v41 = vadd.f32 %v16623_v48, %v26480_v63 }
0x21dc   :  { %v16793_v32 = vpack.c.bf16 %v16681_v52, %v16665_v33  ;;  %v16795_v34 = vpack.c.bf16 %v16683_v24, %v16667_v44  ;;  %20497 = vmatpush3.bf16.msra.mxu0 %v21654_v23  ;;  %v16553_v31 = vadd.f32 %v16552_v50, %v26462_v43  ;;  %20537 = vmatpush3.bf16.msra.mxu1 %v21655_v12 }
0x21dd   :  { %v16554_v54 = vpop.f32.mrf.mxu0  ;;  %v16627_v7 = vpop.f32.mrf.mxu1  ;;  %v16626_v8 = vadd.f32 %v16625_v55, %v26466_v57  ;;  %v16696_v49 = vmax.f32 %v16551_v58, 0.0  ;;  %v16698_v15 = vmax.f32 %v16624_v41, 0.0 }
0x21de   :  { %v16555_v19 = vadd.f32 %v16554_v54, %v26476_v30  ;;  %v16628_v60 = vadd.f32 %v16627_v7, %v26480_v63  ;;  %18299 = vmatprep.mubr.bf16.mxu0 %v16793_v32  ;;  %18364 = vmatprep.mubr.bf16.mxu1 %v16795_v34  ;;  %v16697_v40 = vmax.f32 %v16553_v31, 0.0 }
0x21df   :  { %v16556_v17 = vpop.f32.mrf.mxu0  ;;  %v16629_v42 = vpop.f32.mrf.mxu1  ;;  %18300 = vmatmul.mubr.bf16.vlgmr.msra.gmra.mxu0 %v16792_v25  ;;  %18365 = vmatmul.mubr.bf16.vlgmr.msra.gmra.mxu1 %v16794_v28  ;;  %v16699_v4 = vmax.f32 %v16626_v8, 0.0 }
0x21e0   :  { %v16557_v10 = vadd.f32 %v16556_v17, %v26462_v43  ;;  %v16630_v29 = vadd.f32 %v16629_v42, %v26466_v57  ;;  %v16712_v37 = vmax.f32 %v16555_v19, 0.0  ;;  %v16714_v51 = vmax.f32 %v16628_v60, 0.0 }
0x21e1   :  { %v16560_v45 = vpop.f32.mrf.mxu0  ;;  %v16633_v0 = vpop.f32.mrf.mxu1 }
0x21e2   :  { %v16713_v56 = vmax.f32 %v16557_v10, 0.0  ;;  %v16715_v1 = vmax.f32 %v16630_v29, 0.0  ;;  %v16808_v47 = vpack.c.bf16 %v16712_v37, %v16696_v49  ;;  %v16810_v39 = vpack.c.bf16 %v16714_v51, %v16698_v15 }
0x21e3   :  { %v16562_v3 = vpop.f32.mrf.mxu0  ;;  %v16635_v26 = vpop.f32.mrf.mxu1  ;;  %v16561_v23 = vadd.f32 %v16560_v45, %v26476_v30  ;;  %v16634_v62 = vadd.f32 %v16633_v0, %v26480_v63 }
0x21e4   :  { %v16809_v27 = vpack.c.bf16 %v16713_v56, %v16697_v40  ;;  %v16811_v46 = vpack.c.bf16 %v16715_v1, %v16699_v4  ;;  %v16563_v61 = vadd.f32 %v16562_v3, %v26462_v43  ;;  %v16636_v36 = vadd.f32 %v16635_v26, %v26466_v57 }
0x21e5   :  { %v16564_v2 = vpop.f32.mrf.mxu0  ;;  %v16637_v9 = vpop.f32.mrf.mxu1  ;;  %v16728_v32 = vmax.f32 %v16561_v23, 0.0  ;;  %v16730_v34 = vmax.f32 %v16634_v62, 0.0 }
0x21e6   :  { %v16565_v16 = vadd.f32 %v16564_v2, %v26476_v30  ;;  %v16638_v53 = vadd.f32 %v16637_v9, %v26480_v63  ;;  %18307 = vmatprep.mubr.bf16.mxu0 %v16809_v27  ;;  %18372 = vmatprep.mubr.bf16.mxu1 %v16811_v46  ;;  %v16729_v20 = vmax.f32 %v16563_v61, 0.0  ;;  %v16731_v14 = vmax.f32 %v16636_v36, 0.0 }
0x21e7   :  { %v16566_v11 = vpop.f32.mrf.mxu0  ;;  %v16639_v21 = vpop.f32.mrf.mxu1  ;;  %18308 = vmatmul.mubr.bf16.gmra.mxu0 %v16808_v47  ;;  %18373 = vmatmul.mubr.bf16.gmra.mxu1 %v16810_v39 }
0x21e8   :  { %v16567_v48 = vadd.f32 %v16566_v11, %v26462_v43  ;;  %v16640_v12 = vadd.f32 %v16639_v21, %v26466_v57  ;;  %v16744_v33 = vmax.f32 %v16565_v16, 0.0  ;;  %v16746_v44 = vmax.f32 %v16638_v53, 0.0 }
0x21e9   :  { %v16570_v52 = vpop.f32.mrf.mxu0  ;;  %v16643_v24 = vpop.f32.mrf.mxu1 }
0x21ea   :  { %v16745_v50 = vmax.f32 %v16567_v48, 0.0  ;;  %v16747_v55 = vmax.f32 %v16640_v12, 0.0  ;;  %v16824_v7 = vpack.c.bf16 %v16744_v33, %v16728_v32  ;;  %v16826_v8 = vpack.c.bf16 %v16746_v44, %v16730_v34 }
0x21eb   :  { %v16572_v25 = vpop.f32.mrf.mxu0  ;;  %v16645_v28 = vpop.f32.mrf.mxu1  ;;  %v16571_v10 = vadd.f32 %v16570_v52, %v26476_v30  ;;  %v16644_v51 = vadd.f32 %v16643_v24, %v26480_v63 }
0x21ec   :  { %v16825_v31 = vpack.c.bf16 %v16745_v50, %v16729_v20  ;;  %v16827_v54 = vpack.c.bf16 %v16747_v55, %v16731_v14  ;;  %v16573_v19 = vadd.f32 %v16572_v25, %v26462_v43  ;;  %v16646_v41 = vadd.f32 %v16645_v28, %v26466_v57 }
0x21ed   :  { %v16574_v60 = vpop.f32.mrf.mxu0  ;;  %v16647_v58 = vpop.f32.mrf.mxu1  ;;  %v16760_v27 = vmax.f32 %v16571_v10, 0.0  ;;  %v16762_v46 = vmax.f32 %v16644_v51, 0.0 }
0x21ee   :  { %v16575_v17 = vadd.f32 %v16574_v60, %v26476_v30  ;;  %v16648_v42 = vadd.f32 %v16647_v58, %v26480_v63  ;;  %18315 = vmatprep.mubr.bf16.mxu0 %v16825_v31  ;;  %18380 = vmatprep.mubr.bf16.mxu1 %v16827_v54  ;;  %v16761_v40 = vmax.f32 %v16573_v19, 0.0  ;;  %v16763_v1 = vmax.f32 %v16646_v41, 0.0  ;;  %v26538_v30 = vld [vmem:[%s26815_s14 + $0x1] ss:$0 sm:$0xff] }
0x21ef   :  { %v16576_v29 = vpop.f32.mrf.mxu0  ;;  %v16649_v37 = vpop.f32.mrf.mxu1  ;;  %18316 = vmatmul.mubr.bf16.gmra.mxu0 %v16824_v7  ;;  %18381 = vmatmul.mubr.bf16.gmra.mxu1 %v16826_v8 }
0x21f0   :  { %v16577_v45 = vadd.f32 %v16576_v29, %v26462_v43  ;;  %v16650_v0 = vadd.f32 %v16649_v37, %v26466_v57  ;;  %v16776_v4 = vmax.f32 %v16575_v17, 0.0  ;;  %v16778_v49 = vmax.f32 %v16648_v42, 0.0 }
0x21f1   :  { %v20258_v56 = vpop.f32.mrf.mxu0 }
0x21f2   :  { %v16777_v15 = vmax.f32 %v16577_v45, 0.0  ;;  %v16779_v3 = vmax.f32 %v16650_v0, 0.0  ;;  %v20298_v26 = vpop.f32.mrf.mxu1  ;;  %v16840_v61 = vpack.c.bf16 %v16776_v4, %v16760_v27  ;;  %v16842_v36 = vpack.c.bf16 %v16778_v49, %v16762_v46 }
0x21f3   :  { %v20259_v63 = vpop.f32.mrf.mxu0 }
0x21f4   :  { %v16841_v43 = vpack.c.bf16 %v16777_v15, %v16761_v40  ;;  %v16843_v47 = vpack.c.bf16 %v16779_v3, %v16763_v1  ;;  %v20260_v57 = vadd.f32 %v20259_v63, %v20258_v56  ;;  %v20299_v39 = vpop.f32.mrf.mxu1 }
0x21f5   :  { %v20300_v2 = vadd.f32 %v20299_v39, %v20298_v26  ;;  %v20261_v9 = vpop.f32.mrf.mxu0 }
0x21f6   :  { %v17912_v16 = vadd.f32 %v20260_v57, %v26538_v30  ;;  %v20301_v53 = vpop.f32.mrf.mxu1  ;;  %18323 = vmatprep.mubr.bf16.mxu0 %v16841_v43  ;;  %18388 = vmatprep.mubr.bf16.mxu1 %v16843_v47 }
0x21f7   :  { %v20262_v23 = vpop.f32.mrf.mxu0  ;;  %18324 = vmatmul.mubr.bf16.gmra.mxu0 %v16840_v61  ;;  %18389 = vmatmul.mubr.bf16.gmra.mxu1 %v16842_v36 }
0x21f8   :  { %v26541_v62 = vadd.f32 %v20300_v2, %v17912_v16  ;;  %v20263_v11 = vadd.f32 %v20262_v23, %v20261_v9  ;;  %v20302_v21 = vpop.f32.mrf.mxu1 }
0x21f9   :  { %v20303_v48 = vadd.f32 %v20302_v21, %v20301_v53  ;;  %v20264_v12 = vpop.f32.mrf.mxu0 }
0x21fa   :  { %v17915_v33 = vadd.f32 %v20263_v11, %v26538_v30  ;;  %v20304_v44 = vpop.f32.mrf.mxu1 }
0x21fb   :  { %v20265_v52 = vpop.f32.mrf.mxu0 }
0x21fc   :  { %v26544_v24 = vadd.f32 %v20303_v48, %v17915_v33  ;;  %v20266_v20 = vadd.f32 %v20265_v52, %v20264_v12  ;;  %v20305_v14 = vpop.f32.mrf.mxu1 }
0x21fd   :  { %v20306_v50 = vadd.f32 %v20305_v14, %v20304_v44  ;;  %v20267_v55 = vpop.f32.mrf.mxu0 }
0x21fe   :  { %v17920_v32 = vadd.f32 %v20266_v20, %v26538_v30  ;;  %v20307_v34 = vpop.f32.mrf.mxu1 }
0x21ff   :  { %v20268_v25 = vpop.f32.mrf.mxu0 }
0x2200   :  { %v26547_v28 = vadd.f32 %v20306_v50, %v17920_v32  ;;  %v20269_v31 = vadd.f32 %v20268_v25, %v20267_v55  ;;  %v20308_v54 = vpop.f32.mrf.mxu1 }
0x2201   :  { %v20309_v8 = vadd.f32 %v20308_v54, %v20307_v34 }
0x2202   :  { %v17923_v7 = vadd.f32 %v20269_v31, %v26538_v30 }
0x2204   :  { %v26550_v19 = vadd.f32 %v20309_v8, %v17923_v7 }
0x224f   :  { %v20270_v60 = vpop.f32.mrf.mxu0  ;;  %v20310_v58 = vpop.f32.mrf.mxu1 }
0x2251   :  { %v20271_v41 = vpop.f32.mrf.mxu0  ;;  %v20311_v17 = vpop.f32.mrf.mxu1 }
0x2252   :  { %v20272_v42 = vadd.f32 %v20271_v41, %v20270_v60  ;;  %v20312_v10 = vadd.f32 %v20311_v17, %v20310_v58 }
0x2253   :  { %v20273_v29 = vpop.f32.mrf.mxu0  ;;  %v20313_v37 = vpop.f32.mrf.mxu1 }
0x2254   :  { %v17928_v51 = vadd.f32 %v20272_v42, %v26538_v30 }
0x2255   :  { %v20274_v45 = vpop.f32.mrf.mxu0  ;;  %v20314_v0 = vpop.f32.mrf.mxu1 }
0x2256   :  { %v26553_v40 = vadd.f32 %v20312_v10, %v17928_v51  ;;  %v20275_v4 = vadd.f32 %v20274_v45, %v20273_v29  ;;  %v20315_v56 = vadd.f32 %v20314_v0, %v20313_v37 }
0x2257   :  { %v20276_v1 = vpop.f32.mrf.mxu0  ;;  %v20316_v49 = vpop.f32.mrf.mxu1 }
0x2258   :  { %v17931_v15 = vadd.f32 %v20275_v4, %v26538_v30 }
0x2259   :  { %v20277_v3 = vpop.f32.mrf.mxu0  ;;  %v20317_v26 = vpop.f32.mrf.mxu1 }
0x225a   :  { %v26556_v27 = vadd.f32 %v20315_v56, %v17931_v15  ;;  %v20278_v63 = vadd.f32 %v20277_v3, %v20276_v1  ;;  %v20318_v46 = vadd.f32 %v20317_v26, %v20316_v49 }
0x225b   :  { %v20279_v43 = vpop.f32.mrf.mxu0  ;;  %v20319_v47 = vpop.f32.mrf.mxu1 }
0x225c   :  { %v17936_v57 = vadd.f32 %v20278_v63, %v26538_v30 }
0x225d   :  { %v20280_v39 = vpop.f32.mrf.mxu0  ;;  %v20320_v61 = vpop.f32.mrf.mxu1 }
0x225e   :  { %v26559_v2 = vadd.f32 %v20318_v46, %v17936_v57  ;;  %v20281_v9 = vadd.f32 %v20280_v39, %v20279_v43  ;;  %v20321_v36 = vadd.f32 %v20320_v61, %v20319_v47 }
0x225f   :  { %v20338_v16 = vpop.f32.mrf.mxu0  ;;  %v26561_v53 = vpop.f32.mrf.mxu1 }
0x2260   :  { %26961 = vst [vmem:[#allocation23_spill] sm:$0xff] %v26559_v2  ;;  %v17939_v23 = vadd.f32 %v20281_v9, %v26538_v30 }
0x2261   :  { %v20339_v11 = vpop.f32.mrf.mxu0  ;;  %v20379_v21 = vpop.f32.mrf.mxu1 }
0x2262   :  { %v26564_v48 = vadd.f32 %v20321_v36, %v17939_v23 }
0x2263   :  { %v20341_v12 = vpop.f32.mrf.mxu0  ;;  %v26566_v33 = vpop.f32.mrf.mxu1 }
0x2264   :  { %26962 = vst [vmem:[#allocation34_spill] sm:$0xff] %v26564_v48 }
0x2265   :  { %v20342_v44 = vpop.f32.mrf.mxu0  ;;  %v26568_v52 = vpop.f32.mrf.mxu1 }
0x2267   :  { %v20344_v20 = vpop.f32.mrf.mxu0  ;;  %v26570_v14 = vpop.f32.mrf.mxu1 }
0x2269   :  { %v20345_v50 = vpop.f32.mrf.mxu0  ;;  %v26572_v55 = vpop.f32.mrf.mxu1 }
0x226b   :  { %v26574_v32 = vpop.f32.mrf.mxu0  ;;  %v26576_v34 = vpop.f32.mrf.mxu1 }
0x226d   :  { %v20348_v30 = vpop.f32.mrf.mxu0  ;;  %v26578_v25 = vpop.f32.mrf.mxu1 }
0x226f   :  { %v26580_v31 = vpop.f32.mrf.mxu0  ;;  %v26582_v54 = vpop.f32.mrf.mxu1 }
0x2271   :  { %v26584_v7 = vpop.f32.mrf.mxu0  ;;  %v26586_v8 = vpop.f32.mrf.mxu1 }
0x2273   :  { %v26588_v60 = vpop.f32.mrf.mxu0  ;;  %v26590_v58 = vpop.f32.mrf.mxu1 }
0x2275   :  { %v26592_v41 = vpop.f32.mrf.mxu0  ;;  %v26594_v17 = vpop.f32.mrf.mxu1 }
0x2277   :  { %v26596_v42 = vpop.f32.mrf.mxu0  ;;  %v26598_v10 = vpop.f32.mrf.mxu1 }
0x2278   :  { %26963 = vst [vmem:[#allocation31_spill] sm:$0xff] %v26598_v10 }
0x2279   :  { %v26600_v29 = vpop.f32.mrf.mxu0  ;;  %v26602_v37 = vpop.f32.mrf.mxu1 }
0x227a   :  { %26964 = vst [vmem:[#allocation33_spill] sm:$0xff] %v26602_v37 }
0x227b   :  { %v26604_v51 = vpop.f32.mrf.mxu0  ;;  %v26606_v45 = vpop.f32.mrf.mxu1 }
0x227c   :  { %26965 = vst [vmem:[#allocation21_spill] sm:$0xff] %v26604_v51  ;;  %26966 = vst [vmem:[#allocation7_spill] sm:$0xff] %v26606_v45  ;;  %v20340_v45 = vadd.f32 %v20339_v11, %v20338_v16  ;;  %v20346_v16 = vadd.f32 %v20345_v50, %v20344_v20 }
0x227d   :  { %v26608_v0 = vpop.f32.mrf.mxu0  ;;  %v26610_v4 = vpop.f32.mrf.mxu1 }
0x227e   :  { %26967 = vst [vmem:[#allocation25_spill] sm:$0xff] %v26608_v0  ;;  %26968 = vst [vmem:[#allocation27_spill] sm:$0xff] %v26610_v4  ;;  %v18042_v13 = vadd.f32 %v20340_v45, %v26541_v62  ;;  %v20343_v0 = vadd.f32 %v20342_v44, %v20341_v12  ;;  %v20383_v62 = vadd.f32 %v26568_v52, %v26566_v33 }
0x227f   :  { %v20418_v56 = vpop.f32.mrf.mxu0  ;;  %v20458_v1 = vpop.f32.mrf.mxu1 }
0x2281   :  { %v20419_v49 = vpop.f32.mrf.mxu0  ;;  %v20459_v15 = vpop.f32.mrf.mxu1 }
0x2282   :  { %v20420_v2 = vadd.f32 %v20419_v49, %v20418_v56 }
0x2283   :  { %v20421_v3 = vpop.f32.mrf.mxu0  ;;  %v20461_v26 = vpop.f32.mrf.mxu1 }
0x2285   :  { %v20422_v63 = vpop.f32.mrf.mxu0  ;;  %v20462_v46 = vpop.f32.mrf.mxu1 }
0x2286   :  { %v20423_v44 = vadd.f32 %v20422_v63, %v20421_v3 }
0x2287   :  { %v20424_v43 = vpop.f32.mrf.mxu0  ;;  %v26612_v47 = vpop.f32.mrf.mxu1 }
0x2289   :  { %v20425_v57 = vpop.f32.mrf.mxu0  ;;  %v26614_v39 = vpop.f32.mrf.mxu1 }
0x228b   :  { %v20427_v61 = vpop.f32.mrf.mxu0  ;;  %v26616_v9 = vpop.f32.mrf.mxu1 }
0x228d   :  { %v20428_v36 = vpop.f32.mrf.mxu0  ;;  %v26618_v23 = vpop.f32.mrf.mxu1 }
0x228f   :  { %v26620_v5 = vpop.f32.mrf.mxu0  ;;  %v26622_v38 = vpop.f32.mrf.mxu1 }
0x2290   :  { %26969 = vst [vmem:[#allocation10_spill] sm:$0xff] %v26622_v38 }
0x2291   :  { %v26624_v59 = vpop.f32.mrf.mxu0  ;;  %v26626_v35 = vpop.f32.mrf.mxu1 }
0x2292   :  { %26970 = vst [vmem:[#allocation35_spill] sm:$0xff] %v26626_v35  ;;  %v20380_v35 = vadd.f32 %v20379_v21, %v26561_v53  ;;  %v18050_v53 = vadd.f32 %v20346_v16, %v26547_v28  ;;  %v20349_v21 = vadd.f32 %v20348_v30, %v26574_v32  ;;  %v20352_v28 = vadd.f32 %v26584_v7, %v26580_v31 }
0x2293   :  { %v26628_v4 = vpop.f32.mrf.mxu0  ;;  %v26630_v18 = vpop.f32.mrf.mxu1  ;;  %v20463_v32 = vadd.f32 %v20462_v46, %v20461_v26  ;;  %v20466_v31 = vadd.f32 %v26614_v39, %v26612_v47 }
0x2294   :  { %26971 = vst [vmem:[#allocation9_spill] sm:$0xff] %v26628_v4  ;;  %26972 = vst [vmem:[#allocation11_spill] sm:$0xff] %v26630_v18  ;;  %v18107_v18 = vadd.f32 %v20380_v35, %v18042_v13  ;;  %v20460_v13 = vadd.f32 %v20459_v15, %v20458_v1  ;;  %v18053_v52 = vadd.f32 %v20349_v21, %v26550_v19 }
0x2295   :  { %v26632_v48 = vpop.f32.mrf.mxu0  ;;  %v26634_v37 = vpop.f32.mrf.mxu1  ;;  %v20429_v15 = vadd.f32 %v20428_v36, %v20427_v61  ;;  %v20355_v19 = vadd.f32 %v26592_v41, %v26588_v60  ;;  %v18058_v26 = vadd.f32 %v20352_v28, %v26553_v40  ;;  %v20432_v60 = vadd.f32 %v26624_v59, %v26620_v5 }
0x2296   :  { %26973 = vst [vmem:[#allocation12_spill] sm:$0xff] %v26632_v48  ;;  %26974 = vst [vmem:[#allocation8_spill] sm:$0xff] %v26634_v37  ;;  %v18045_v37 = vadd.f32 %v20343_v0, %v26544_v24  ;;  %v18172_v12 = vadd.f32 %v20420_v2, %v18107_v18  ;;  %v20386_v24 = vadd.f32 %v26572_v55, %v26570_v14 }
0x2297   :  { %v26636_v10 = vpop.f32.mrf.mxu0  ;;  %v26639_v51 = vpop.f32.mrf.mxu1  ;;  %v20426_v0 = vadd.f32 %v20425_v57, %v20424_v43  ;;  %v20389_v14 = vadd.f32 %v26578_v25, %v26576_v34  ;;  %v18061_v21 = vadd.f32 %v20355_v19, %v26556_v27 }
0x2298   :  { %26975 = vst [vmem:[#allocation30_spill] sm:$0xff] %v26636_v10  ;;  %v18110_v50 = vadd.f32 %v20383_v62, %v18045_v37  ;;  %v18237_v49 = vadd.f32 %v20460_v13, %v18172_v12  ;;  %v18115_v2 = vadd.f32 %v20386_v24, %v18050_v53 }
0x2299   :  { %v26641_v38 = vpop.f32.mrf.mxu0  ;;  %v26644_v4 = vpop.f32.mrf.mxu1  ;;  %v18118_v12 = vadd.f32 %v20389_v14, %v18053_v52 }
0x229a   :  { %v18180_v55 = vadd.f32 %v20426_v0, %v18115_v2  ;;  %v26979_v2 = vld [vmem:[#allocation23_spill] sm:$0xff] }
0x229b   :  { %v26646_v11 = vpop.f32.mrf.mxu0  ;;  %v26649_v48 = vpop.f32.mrf.mxu1  ;;  %v18183_v36 = vadd.f32 %v20429_v15, %v18118_v12  ;;  %v26977_v27 = vld [vmem:[#allocation9_spill] sm:$0xff] }
0x229c   :  { %26976 = vst [vmem:[#allocation20_spill] sm:$0xff] %v26649_v48  ;;  %v18175_v48 = vadd.f32 %v20423_v44, %v18110_v50  ;;  %v18245_v61 = vadd.f32 %v20466_v31, %v18180_v55  ;;  %v26984_v55 = vld [vmem:[#allocation24_spill] sm:$0xff] }
0x229d   :  { %v26651_v10 = vpop.f32.mrf.mxu0  ;;  %v26655_v45 = vpop.f32.mrf.mxu1  ;;  %v26978_v0 = vld [vmem:[#allocation12_spill] sm:$0xff] }
0x229e   :  { %v18240_v43 = vadd.f32 %v20463_v32, %v18175_v48  ;;  %v20392_v48 = vadd.f32 %v26586_v8, %v26582_v54  ;;  %v20469_v54 = vadd.f32 %v26618_v23, %v26616_v9 }
0x229f   :  { %v20498_v20 = vpop.f32.mrf.mxu0  ;;  %v20538_v35 = vpop.f32.mrf.mxu1 }
0x22a0   :  { %v18248_v24 = vadd.f32 %v20469_v54, %v18183_v36  ;;  %v26993_v54 = vld [vmem:[#allocation27_spill] sm:$0xff] }
0x22a1   :  { %v20499_v56 = vpop.f32.mrf.mxu0  ;;  %v20539_v18 = vpop.f32.mrf.mxu1 }
0x22a2   :  { %v20500_v33 = vadd.f32 %v20499_v56, %v20498_v20  ;;  %v20540_v37 = vadd.f32 %v20539_v18, %v20538_v35  ;;  %v18123_v20 = vadd.f32 %v20392_v48, %v18058_v26  ;;  %v20395_v35 = vadd.f32 %v26594_v17, %v26590_v58  ;;  %v26982_v58 = vld [vmem:[#allocation10_spill] sm:$0xff]  ;;  %v26983_v17 = vld [vmem:[#allocation35_spill] sm:$0xff] }
0x22a3   :  { %v20501_v3 = vpop.f32.mrf.mxu0  ;;  %v20541_v1 = vpop.f32.mrf.mxu1  ;;  %v20435_v56 = vadd.f32 %v26978_v0, %v26977_v27  ;;  %v26988_v48 = vld [vmem:[#allocation11_spill] sm:$0xff] }
0x22a4   :  { %v18302_v30 = vadd.f32 %v20500_v33, %v18237_v49  ;;  %v18126_v18 = vadd.f32 %v20395_v35, %v18061_v21 }
0x22a5   :  { %v20502_v63 = vpop.f32.mrf.mxu0  ;;  %v20542_v62 = vpop.f32.mrf.mxu1 }
0x22a6   :  { %v18367_v57 = vadd.f32 %v20540_v37, %v18302_v30  ;;  %v20503_v16 = vadd.f32 %v20502_v63, %v20501_v3  ;;  %v20543_v44 = vadd.f32 %v20542_v62, %v20541_v1  ;;  %v26981_v3 = vld [vmem:[#allocation25_spill] sm:$0xff]  ;;  %v20472_v30 = vadd.f32 %v26983_v17, %v26982_v58  ;;  %v26985_v63 = vld [vmem:[#allocation31_spill] sm:$0xff]  ;;  %v26987_v62 = vld [vmem:[#allocation30_spill] sm:$0xff] }
0x22a7   :  { %v20504_v7 = vpop.f32.mrf.mxu0  ;;  %v20544_v34 = vpop.f32.mrf.mxu1  ;;  %v20438_v12 = vadd.f32 %v26641_v38, %v26987_v62  ;;  %v26991_v38 = vld [vmem:[#allocation26_spill] sm:$0xff]  ;;  %v26995_v58 = vld [vmem:[#allocation20_spill] sm:$0xff] }
0x22a8   :  { %v18305_v46 = vadd.f32 %v20503_v16, %v18240_v43  ;;  %v26672_v25 = vadd.f32 %v18367_v57, %v25696_v22  ;;  %v20358_v22 = vadd.f32 %v26600_v29, %v26596_v42  ;;  %v18188_v29 = vadd.f32 %v20432_v60, %v18123_v20  ;;  %v26986_v43 = vld [vmem:[#allocation33_spill] sm:$0xff]  ;;  %v26990_v60 = vld [vmem:[#allocation34_spill] sm:$0xff] }
0x22a9   :  { %v20505_v53 = vpop.f32.mrf.mxu0  ;;  %v20545_v39 = vpop.f32.mrf.mxu1  ;;  %v20398_v57 = vadd.f32 %v26986_v43, %v26985_v63  ;;  %v18191_v16 = vadd.f32 %v20435_v56, %v18126_v18  ;;  %v20478_v56 = vadd.f32 %v26644_v4, %v26639_v51  ;;  %v20481_v51 = vadd.f32 %v26655_v45, %v26995_v58 }
0x22aa   :  { %v18370_v41 = vadd.f32 %v20543_v44, %v18305_v46  ;;  %v20506_v47 = vadd.f32 %v20505_v53, %v20504_v7  ;;  %v18409_v40 = vsel %vm105_vm0, %v26672_v25, 0.0  ;;  %v20546_v13 = vadd.f32 %v20545_v39, %v20544_v34 }
0x22ab   :  { %v20507_v8 = vpop.f32.mrf.mxu0  ;;  %18410 = vadd.xlane.f32.xlu1 %v18409_v40  ;;  %v20547_v59 = vpop.f32.mrf.mxu1  ;;  %v18066_v52 = vadd.f32 %v20358_v22, %v26979_v2  ;;  %v18253_v31 = vadd.f32 %v20472_v30, %v18188_v29  ;;  %v26992_v22 = vld [vmem:[#allocation7_spill] sm:$0xff] }
0x22ac   :  { %v18310_v50 = vadd.f32 %v20506_v47, %v18245_v61  ;;  %v26686_v5 = vadd.f32 %v18370_v41, %v25693_v6  ;;  %v26980_v6 = vld [vmem:[#allocation21_spill] sm:$0xff]  ;;  %v26989_v61 = vld [vmem:[#allocation8_spill] sm:$0xff] }
0x22ad   :  { %v20508_v42 = vpop.f32.mrf.mxu0  ;;  %v20548_v23 = vpop.f32.mrf.mxu1  ;;  %v20361_v28 = vadd.f32 %v26981_v3, %v26980_v6  ;;  %v18131_v34 = vadd.f32 %v20398_v57, %v18066_v52  ;;  %v20475_v36 = vadd.f32 %v26989_v61, %v26988_v48 }
0x22ae   :  { %v18375_v49 = vadd.f32 %v20546_v13, %v18310_v50  ;;  %v20509_v9 = vadd.f32 %v20508_v42, %v20507_v8  ;;  %v18412_v33 = vsel %vm105_vm0, %v26686_v5, 0.0  ;;  %v20549_v1 = vadd.f32 %v20548_v23, %v20547_v59 }
0x22af   :  { %v20510_v32 = vpop.f32.mrf.mxu0  ;;  %18413 = vadd.xlane.f32.xlu0 %v18412_v33  ;;  %v20550_v14 = vpop.f32.mrf.mxu1  ;;  %v18069_v41 = vadd.f32 %v20361_v28, %v26990_v60  ;;  %v20401_v8 = vadd.f32 %v26993_v54, %v26992_v22  ;;  %v18256_v20 = vadd.f32 %v20475_v36, %v18191_v16  ;;  %v18196_v50 = vadd.f32 %v20438_v12, %v18131_v34  ;;  %v26994_v33 = vld [vmem:[#allocation29_spill] sm:$0xff] }
0x22b0   :  { %v18313_v37 = vadd.f32 %v20509_v9, %v18248_v24  ;;  %v26700_v15 = vadd.f32 %v18375_v49, %v26984_v55  ;;  %v20441_v59 = vadd.f32 %v26651_v10, %v26646_v11 }
0x22b1   :  { %v20511_v19 = vpop.f32.mrf.mxu0  ;;  %v20551_v46 = vpop.f32.mrf.mxu1  ;;  %v18134_v29 = vadd.f32 %v20401_v8, %v18069_v41  ;;  %v18261_v2 = vadd.f32 %v20478_v56, %v18196_v50 }
0x22b2   :  { %v18378_v7 = vadd.f32 %v20549_v1, %v18313_v37  ;;  %v20512_v26 = vadd.f32 %v20511_v19, %v20510_v32  ;;  %v18415_v44 = vsel %vm105_vm0, %v26700_v15, 0.0  ;;  %v20552_v39 = vadd.f32 %v20551_v46, %v20550_v14  ;;  %v26996_v37 = vld [vmem:[#allocation28_spill] sm:$0xff]  ;;  %v26997_v19 = vld [vmem:[#allocation6_spill] sm:$0xff] }
0x22b3   :  { %v20513_v53 = vpop.f32.mrf.mxu0  ;;  %18416 = vadd.xlane.f32.xlu1 %v18415_v44  ;;  %v20553_v40 = vpop.f32.mrf.mxu1  ;;  %v18199_v10 = vadd.f32 %v20441_v59, %v18134_v29 }
0x22b4   :  { %v18318_v47 = vadd.f32 %v20512_v26, %v18253_v31  ;;  %v26712_v21 = vadd.f32 %v18378_v7, %v26991_v38  ;;  %v26998_v26 = vld [vmem:[#allocation22_spill] sm:$0xff] }
0x22b5   :  { %v20514_v13 = vpop.f32.mrf.mxu0  ;;  %v20554_v27 = vpop.f32.mrf.mxu1  ;;  %v18264_v55 = vadd.f32 %v20481_v51, %v18199_v10 }
0x22b6   :  { %v18383_v35 = vadd.f32 %v20552_v39, %v18318_v47  ;;  %v20515_v24 = vadd.f32 %v20514_v13, %v20513_v53  ;;  %v18418_v0 = vsel %vm105_vm0, %v26712_v21, 0.0  ;;  %v20555_v9 = vadd.f32 %v20554_v27, %v20553_v40 }
0x22b7   :  { %v20516_v42 = vpop.f32.mrf.mxu0  ;;  %18419 = vadd.xlane.f32.xlu0 %v18418_v0  ;;  %v20556_v23 = vpop.f32.mrf.mxu1 }
0x22b8   :  { %v18321_v49 = vadd.f32 %v20515_v24, %v18256_v20  ;;  %v18401_v18 = vadd.f32 %v18383_v35, %v26994_v33 }
0x22b9   :  { %v20517_v52 = vpop.f32.mrf.mxu0  ;;  %v20557_v3 = vpop.f32.mrf.mxu1 }
0x22ba   :  { %v18386_v11 = vadd.f32 %v20555_v9, %v18321_v49  ;;  %v20518_v6 = vadd.f32 %v20517_v52, %v20516_v42  ;;  %v18421_v28 = vsel %vm105_vm0, %v18401_v18, 0.0  ;;  %v20558_v17 = vadd.f32 %v20557_v3, %v20556_v23 }
0x22bb   :  { %v20519_v32 = vpop.f32.mrf.mxu0  ;;  %18422 = vadd.xlane.f32.xlu1 %v18421_v28  ;;  %v20559_v30 = vpop.f32.mrf.mxu1 }
0x22bc   :  { %v18326_v4 = vadd.f32 %v20518_v6, %v18261_v2  ;;  %v18402_v1 = vadd.f32 %v18386_v11, %v26996_v37 }
0x22bd   :  { %v20520_v14 = vpop.f32.mrf.mxu0  ;;  %v20560_v57 = vpop.f32.mrf.mxu1 }
0x22be   :  { %v18391_v63 = vadd.f32 %v20558_v17, %v18326_v4  ;;  %v20521_v43 = vadd.f32 %v20520_v14, %v20519_v32  ;;  %v18424_v16 = vsel %vm105_vm0, %v18402_v1, 0.0  ;;  %v20561_v12 = vadd.f32 %v20560_v57, %v20559_v30 }
0x22bf   :  { %18425 = vadd.xlane.f32.xlu0 %v18424_v16 }
0x22c0   :  { %v18329_v62 = vadd.f32 %v20521_v43, %v18264_v55  ;;  %v18403_v31 = vadd.f32 %v18391_v63, %v26997_v19 }
0x22c2   :  { %v18394_v7 = vadd.f32 %v20561_v12, %v18329_v62  ;;  %v18427_v45 = vsel %vm105_vm0, %v18403_v31, 0.0  ;;  %v19561_v62 = vld [vmem:[%s26816_s15 + $0x1] ss:$0 sm:$0xff]  ;;  %s22061_s15 = smov [#allocation2]  }
0x22c3   :  { %18428 = vadd.xlane.f32.xlu1 %v18427_v45 }
0x22c4   :  { %v18404_v46 = vadd.f32 %v18394_v7, %v26998_v26 }
0x22c6   :  { %v18430_v44 = vsel %vm105_vm0, %v18404_v46, 0.0 }
0x22c7   :  { %18431 = vadd.xlane.f32.xlu0 %v18430_v44 }
0x2334   :  { %v18411_v34 = vpop.xlane.xlu1 %18410 }
0x2335   :  { %v18433_v48 = vmul.f32 0.03125, %v18411_v34 }
0x2337   :  { %v26733_v61 = vsub.f32 %v26672_v25, %v18433_v48 }
0x2338   :  { %v18414_v36 = vpop.xlane.xlu0 %18413 }
0x2339   :  { %v18434_v53 = vmul.f32 0.03125, %v18414_v36  ;;  %v18449_v60 = vmul.f32 %v26733_v61, %v26733_v61 }
0x233b   :  { %v26738_v41 = vsub.f32 %v26686_v5, %v18434_v53  ;;  %v18457_v47 = vsel %vm105_vm0, %v18449_v60, 0.0 }
0x233c   :  { %v18417_v39 = vpop.xlane.xlu1 %18416  ;;  %18458 = vadd.xlane.f32.xlu1 %v18457_v47 }
0x233d   :  { %v18435_v40 = vmul.f32 0.03125, %v18417_v39  ;;  %v18450_v38 = vmul.f32 %v26738_v41, %v26738_v41 }
0x233f   :  { %v26744_v22 = vsub.f32 %v26700_v15, %v18435_v40  ;;  %v18460_v25 = vsel %vm105_vm0, %v18450_v38, 0.0 }
0x2340   :  { %v18420_v54 = vpop.xlane.xlu0 %18419  ;;  %18461 = vadd.xlane.f32.xlu0 %v18460_v25 }
0x2341   :  { %v18436_v8 = vmul.f32 0.03125, %v18420_v54  ;;  %v18451_v5 = vmul.f32 %v26744_v22, %v26744_v22 }
0x2343   :  { %v26750_v20 = vsub.f32 %v26712_v21, %v18436_v8  ;;  %v18463_v50 = vsel %vm105_vm0, %v18451_v5, 0.0 }
0x2344   :  { %v18423_v13 = vpop.xlane.xlu1 %18422  ;;  %18464 = vadd.xlane.f32.xlu1 %v18463_v50 }
0x2345   :  { %v18437_v59 = vmul.f32 0.03125, %v18423_v13  ;;  %v18452_v15 = vmul.f32 %v26750_v20, %v26750_v20 }
0x2347   :  { %v26755_v35 = vsub.f32 %v18401_v18, %v18437_v59  ;;  %v18466_v24 = vsel %vm105_vm0, %v18452_v15, 0.0 }
0x2348   :  { %v18426_v27 = vpop.xlane.xlu0 %18425  ;;  %18467 = vadd.xlane.f32.xlu0 %v18466_v24 }
0x2349   :  { %v18438_v0 = vmul.f32 0.03125, %v18426_v27  ;;  %v18453_v56 = vmul.f32 %v26755_v35, %v26755_v35 }
0x234b   :  { %v26760_v21 = vsub.f32 %v18402_v1, %v18438_v0  ;;  %v18469_v42 = vsel %vm105_vm0, %v18453_v56, 0.0 }
0x234c   :  { %18470 = vadd.xlane.f32.xlu1 %v18469_v42  ;;  %v18429_v29 = vpop.xlane.xlu1 %18428 }
0x234d   :  { %v18439_v49 = vmul.f32 0.03125, %v18429_v29  ;;  %v18454_v9 = vmul.f32 %v26760_v21, %v26760_v21 }
0x234f   :  { %v26765_v23 = vsub.f32 %v18403_v31, %v18439_v49  ;;  %v18472_v33 = vsel %vm105_vm0, %v18454_v9, 0.0  ;;  %v19562_v31 = vld [vmem:[%s26817_s16 + $0x1] ss:$0 sm:$0xff]  ;;  %s18554_s16 = sshll.u32 %s22061_s15, 4  ;;  %s18555_s16 = int_to_ptr.vmem [resolvable:$true] %s18554_s16 }
0x2350   :  { %18473 = vadd.xlane.f32.xlu0 %v18472_v33  ;;  %v18432_v18 = vpop.xlane.xlu0 %18431  ;;  %s22024_s20 = scalar_lea.vmem %s18555_s16, 1024  ;;  %p22029_p1 = scmp.lt.s32.totalorder %s18555_s16, %s18555_s16 }
0x2351   :  { %v18440_v2 = vmul.f32 0.03125, %v18432_v18  ;;  %v18455_v52 = vmul.f32 %v26765_v23, %v26765_v23  ;;  %p22025_p0 = scmp.ne.s32.totalorder %s18555_s16, %s22024_s20  ;;  %p22030_p2 = scmp.lt.s32.totalorder %s22024_s20, %s22024_s20 }
0x2353   :  { %v26770_v10 = vsub.f32 %v18404_v46, %v18440_v2  ;;  %v18475_v11 = vsel %vm105_vm0, %v18455_v52, 0.0  ;;  %p22031_p3 = por %p22030_p2, %p22029_p1 }
0x2354   :  { %18476 = vadd.xlane.f32.xlu1 %v18475_v11 }
0x2355   :  { %v18456_v6 = vmul.f32 %v26770_v10, %v26770_v10  ;;  %p22032_p4 = pnand %p22031_p3, %p22025_p0 }
0x2357   :  { %v18478_v3 = vsel %vm105_vm0, %v18456_v6, 0.0 }
0x2358   :  { %18479 = vadd.xlane.f32.xlu0 %v18478_v3 }
0x23c5   :  { %v18459_v28 = vpop.xlane.xlu1 %18458 }
0x23c6   :  { %v18481_v32 = vmul.f32 0.03125, %v18459_v28 }
0x23c8   :  { %v18489_v58 = vadd.f32 1e-05, %v18481_v32 }
0x23c9   :  { %v18462_v51 = vpop.xlane.xlu0 %18461 }
0x23ca   :  { %22008 = vrsqrt.f32 %v18489_v58  ;;  %v18482_v4 = vmul.f32 0.03125, %v18462_v51 }
0x23cc   :  { %v18490_v17 = vadd.f32 1e-05, %v18482_v4 }
0x23cd   :  { %v18465_v30 = vpop.xlane.xlu1 %18464 }
0x23ce   :  { %22010 = vrsqrt.f32 %v18490_v17  ;;  %v18483_v37 = vmul.f32 0.03125, %v18465_v30 }
0x23d0   :  { %v18491_v1 = vadd.f32 1e-05, %v18483_v37 }
0x23d1   :  { %v18468_v14 = vpop.xlane.xlu0 %18467 }
0x23d2   :  { %22012 = vrsqrt.f32 %v18491_v1  ;;  %v18484_v55 = vmul.f32 0.03125, %v18468_v14 }
0x23d4   :  { %v18492_v63 = vadd.f32 1e-05, %v18484_v55 }
0x23d5   :  { %v18471_v43 = vpop.xlane.xlu1 %18470 }
0x23d6   :  { %22014 = vrsqrt.f32 %v18492_v63  ;;  %v18485_v57 = vmul.f32 0.03125, %v18471_v43 }
0x23d7   :  { %v22009_v16 = vpop.eup %22008 }
0x23d8   :  { %v18505_v12 = vmul.f32 %v22009_v16, %v26733_v61  ;;  %v18493_v19 = vadd.f32 1e-05, %v18485_v57 }
0x23d9   :  { %v18474_v7 = vpop.xlane.xlu0 %18473 }
0x23da   :  { %v18519_v45 = vmul.f32 %v19561_v62, %v18505_v12  ;;  %22016 = vrsqrt.f32 %v18493_v19  ;;  %v18486_v26 = vmul.f32 0.03125, %v18474_v7 }
0x23db   :  { %v22011_v46 = vpop.eup %22010 }
0x23dc   :  { %v18533_v44 = vadd.f32 %v19562_v31, %v18519_v45  ;;  %v18506_v34 = vmul.f32 %v22011_v46, %v26738_v41  ;;  %v18494_v48 = vadd.f32 1e-05, %v18486_v26 }
0x23dd   :  { %v18477_v36 = vpop.xlane.xlu1 %18476 }
0x23de   :  { %18541 = vst.msk [vmem:[#allocation2] sm:$0xff] %vm105_vm0, %v18533_v44  ;;  %v18520_v53 = vmul.f32 %v19561_v62, %v18506_v34  ;;  %22018 = vrsqrt.f32 %v18494_v48  ;;  %v18487_v61 = vmul.f32 0.03125, %v18477_v36 }
0x23df   :  { %v22013_v60 = vpop.eup %22012 }
0x23e0   :  { %v18534_v47 = vadd.f32 %v19562_v31, %v18520_v53  ;;  %v18507_v39 = vmul.f32 %v22013_v60, %v26744_v22  ;;  %v18495_v40 = vadd.f32 1e-05, %v18487_v61 }
0x23e1   :  { %v18480_v38 = vpop.xlane.xlu0 %18479 }
0x23e2   :  { %18542 = vst.msk [vmem:[#allocation2 + $0x8] sm:$0xff] %vm105_vm0, %v18534_v47  ;;  %v18521_v25 = vmul.f32 %v19561_v62, %v18507_v39  ;;  %22020 = vrsqrt.f32 %v18495_v40  ;;  %v18488_v54 = vmul.f32 0.03125, %v18480_v38 }
0x23e3   :  { %v22015_v8 = vpop.eup %22014 }
0x23e4   :  { %v18535_v41 = vadd.f32 %v19562_v31, %v18521_v25  ;;  %v18508_v5 = vmul.f32 %v22015_v8, %v26750_v20  ;;  %v18496_v50 = vadd.f32 1e-05, %v18488_v54 }
0x23e6   :  { %18543 = vst.msk [vmem:[#allocation2 + $0x10] sm:$0xff] %vm105_vm0, %v18535_v41  ;;  %v18522_v13 = vmul.f32 %v19561_v62, %v18508_v5  ;;  %22022 = vrsqrt.f32 %v18496_v50 }
0x23e7   :  { %v22017_v59 = vpop.eup %22016 }
0x23e8   :  { %v18536_v15 = vadd.f32 %v19562_v31, %v18522_v13  ;;  %v18509_v22 = vmul.f32 %v22017_v59, %v26755_v35 }
0x23ea   :  { %18544 = vst.msk [vmem:[#allocation2 + $0x18] sm:$0xff] %vm105_vm0, %v18536_v15  ;;  %v18523_v24 = vmul.f32 %v19561_v62, %v18509_v22 }
0x23eb   :  { %v22019_v27 = vpop.eup %22018 }
0x23ec   :  { %v18537_v0 = vadd.f32 %v19562_v31, %v18523_v24  ;;  %v18510_v56 = vmul.f32 %v22019_v27, %v26760_v21 }
0x23ee   :  { %18545 = vst.msk [vmem:[#allocation2 + $0x20] sm:$0xff] %vm105_vm0, %v18537_v0  ;;  %v18524_v42 = vmul.f32 %v19561_v62, %v18510_v56 }
0x23ef   :  { %v22021_v20 = vpop.eup %22020 }
0x23f0   :  { %v18538_v29 = vadd.f32 %v19562_v31, %v18524_v42  ;;  %v18511_v49 = vmul.f32 %v22021_v20, %v26765_v23 }
0x23f2   :  { %18546 = vst.msk [vmem:[#allocation2 + $0x28] sm:$0xff] %vm105_vm0, %v18538_v29  ;;  %v18525_v9 = vmul.f32 %v19561_v62, %v18511_v49 }
0x23f3   :  { %v22023_v33 = vpop.eup %22022 }
0x23f4   :  { %v18539_v18 = vadd.f32 %v19562_v31, %v18525_v9  ;;  %v18512_v35 = vmul.f32 %v22023_v33, %v26770_v10 }
0x23f6   :  { %18547 = vst.msk [vmem:[#allocation2 + $0x30] sm:$0xff] %vm105_vm0, %v18539_v18  ;;  %v18526_v2 = vmul.f32 %v19561_v62, %v18512_v35 }
0x23f8   :  { %v18540_v21 = vadd.f32 %v19562_v31, %v18526_v2 }
0x23fa   :  { %18548 = vst.msk [vmem:[#allocation2 + $0x38] sm:$0xff] %vm105_vm0, %v18540_v21 }
0x23fb   :  { %22035 = shalt.err (!%p22032_p4)
}
0x23fc   :  { %s22062_s3 = smov 128   ;;  %s22063_s4 = smov 8  }
0x23fd   :  { %18560 = dma.vmem_to_hbm [thread:$0]  %s18555_s16, 1024, %s26818_s17, [#allocation3], %s22062_s3, %s22062_s3, %s22063_s4  }
0x23fe   :  { %22044 = dma.done.wait [#allocation3], 1024  }
0x23ff   :  { %22045 = vsyncadd [#allocation3], 4294966272 }
0x2400   :  { %18564 = vsyncpa [#allocation3], 1 }

</bundles_post_ra>
